<compile_context>
chip_gen: v7x
topology: tpu7x:2x2x1
jax: 0.10.0
libtpu: 0.0.40
codegen_flags: <defaults>
</compile_context>

<pallas_src>
import math
from functools import partial

import numpy as np
import jax
import jax.numpy as jnp
from jax.experimental import pallas as pl
from jax.experimental.pallas import tpu as pltpu


# ----------------------------------------------------------------------------
# Compiler-params helper
# ----------------------------------------------------------------------------
def _compiler_params(semantics, per_step_bytes):
    """dimension_semantics + explicit vmem limit when blocks outgrow the
    smallest scoped-VMEM default (16 MiB on v5e); capped below v7x physical."""
    need = int(per_step_bytes) * 4          # double-buffered inputs/outputs + headroom
    limit = None
    if need > 16 * 1024 * 1024:
        limit = int(min(need, 64 * 1024 * 1024))
    return pltpu.CompilerParams(dimension_semantics=semantics,
                                vmem_limit_bytes=limit)


# ----------------------------------------------------------------------------
# Pallas kernels
# ----------------------------------------------------------------------------
def _linear_kernel(x_ref, w_ref, b_ref, o_ref, *, activation):
    y = jnp.dot(x_ref[0], w_ref[0], preferred_element_type=jnp.float32) + b_ref[0]
    if activation == "relu":
        y = jnp.maximum(y, 0.0)
    o_ref[0] = y.astype(o_ref.dtype)


def pallas_linear_batched(x, w, b, activation=None):
    """y[g] = act(x[g] @ w[g] + b[g]); one pallas_call over grid=(G,).
    Matmul operands in bf16, accumulate/output in f32."""
    x = x.astype(jnp.bfloat16)
    w = w.astype(jnp.bfloat16)
    b = b.astype(jnp.float32)
    G, M, K = x.shape
    N = w.shape[-1]
    per_step = M * K * 2 + K * N * 2 + N * 4 + M * N * 4
    return pl.pallas_call(
        partial(_linear_kernel, activation=activation),
        grid=(G,),
        in_specs=[pl.BlockSpec((1, M, K), lambda g: (g, 0, 0)),
                  pl.BlockSpec((1, K, N), lambda g: (g, 0, 0)),
                  pl.BlockSpec((1, 1, N), lambda g: (g, 0, 0))],
        out_specs=pl.BlockSpec((1, M, N), lambda g: (g, 0, 0)),
        out_shape=jax.ShapeDtypeStruct((G, M, N), jnp.float32),
        compiler_params=_compiler_params(("parallel",), per_step),
    )(x, w, b)


def _gat_layer_kernel(x_ref, adj_ref, w_ref, b_ref, a_ref, o_ref, *,
                      num_heads, dh, leaky_alpha, activation):
    gb = x_ref.shape[2]
    n = x_ref.shape[3]
    d_in = x_ref.shape[4]
    d_out = w_ref.shape[2]

    x = x_ref[0, 0]                                                   # (B, N, d_in) bf16
    adj = adj_ref[0, 0]                                               # (B, N, N)    bf16

    # Fused projection for all graphs in the block: one wide MXU pass.
    x_flat = x.reshape(gb * n, d_in)
    wh = jnp.dot(x_flat, w_ref[0], preferred_element_type=jnp.float32) + b_ref[0]   # (B*N, d_out) f32
    wh_b = wh.astype(jnp.bfloat16)

    # Per-head src/dst attention scores via one lane-dense matmul against the
    # block-diagonal [a_src | a_dst] matrix.
    sc = jnp.dot(wh_b, a_ref[0], preferred_element_type=jnp.float32)                # (B*N, 2H) f32
    sc = sc.reshape(gb, n, 2 * num_heads)
    wh_g = wh_b.reshape(gb, n, d_out)

    ones_col = jnp.ones((gb, n, 1), jnp.float32)
    lane = jax.lax.broadcasted_iota(jnp.int32, (1, 1, d_out), 2)
    acc = jnp.zeros((gb, n, d_out), jnp.float32)

    for hd in range(num_heads):
        src = sc[:, :, hd:hd + 1]                                      # (B, N, 1)
        dst = sc[:, :, num_heads + hd:num_heads + hd + 1]              # (B, N, 1)
        # dst broadcast across rows via a K=1 batched outer product (no transpose).
        dst_b = jnp.einsum('gik,gjk->gij', ones_col, dst,
                           preferred_element_type=jnp.float32)         # (B, N, N)
        e = src + dst_b                                                # f32
        e = jnp.where(e > 0, e, leaky_alpha * e)                       # LeakyReLU(0.2)
        e = jnp.where(adj > 0, e, -1e9)                                # adjacency mask (f32)
        e = e - jnp.max(e, axis=-1, keepdims=True)
        pe = jnp.exp(e)
        attn = pe * pl.reciprocal(jnp.sum(pe, axis=-1, keepdims=True), approx=True)
        # 128-lane-wide aggregation: mask wh to this head's columns, one
        # full-width batched matmul per head; the sum over heads equals the
        # concatenation of per-head outputs (columns are disjoint).
        head_mask = (lane >= hd * dh) & (lane < (hd + 1) * dh)
        wh_h = jnp.where(head_mask, wh_g, jnp.zeros_like(wh_g))        # (B, N, d_out) bf16
        acc = acc + jnp.einsum('gnm,gmd->gnd', attn.astype(jnp.bfloat16), wh_h,
                               preferred_element_type=jnp.float32)

    if activation == "elu":
        acc = jnp.where(acc > 0, acc, jnp.exp(acc) - 1.0)
    o_ref[0, 0] = acc.astype(o_ref.dtype)                              # single lane-dense store


def pallas_gat_layer_batched(x, adj, W, bW, A, *, num_heads, dh,
                             leaky_alpha=0.2, activation=None,
                             out_dtype=jnp.float32):
    """Multi-head GAT layer over (Mw weight sets) x (S adjacency variants) x (B graphs).

    x:   (Mw, Sx, B, N, d_in)  node features; Sx == 1 means the same features are
                               reused for every adjacency variant (no duplication).
    adj: (Mw, S,  B, N, N)
    W:   (Mw, d_in, d_out);  bW: (Mw, 1, d_out);  A: (Mw, d_out, 2H)
    returns (Mw, S, B, N, d_out) in out_dtype.
    """
    Mw, Sx, B, N, d_in = x.shape
    S = adj.shape[1]
    d_out = W.shape[-1]

    x = x.astype(jnp.bfloat16)
    adj = adj.astype(jnp.bfloat16)
    W = W.astype(jnp.bfloat16)
    A = A.astype(jnp.bfloat16)
    bW = bW.astype(jnp.float32)

    if Sx == 1:
        x_map = lambda m, s: (m, 0, 0, 0, 0)      # shared block -> fetched once per m
    else:
        x_map = lambda m, s: (m, s, 0, 0, 0)

    per_step = (B * N * d_in * 2 + B * N * N * 2 + d_in * d_out * 2
                + d_out * 4 + d_out * 2 * num_heads * 2
                + B * N * d_out * jnp.dtype(out_dtype).itemsize)

    return pl.pallas_call(
        partial(_gat_layer_kernel, num_heads=num_heads, dh=dh,
                leaky_alpha=leaky_alpha, activation=activation),
        grid=(Mw, S),
        in_specs=[
            pl.BlockSpec((1, 1, B, N, d_in), x_map),
            pl.BlockSpec((1, 1, B, N, N), lambda m, s: (m, s, 0, 0, 0)),
            pl.BlockSpec((1, d_in, d_out), lambda m, s: (m, 0, 0)),
            pl.BlockSpec((1, 1, d_out), lambda m, s: (m, 0, 0)),
            pl.BlockSpec((1, d_out, 2 * num_heads), lambda m, s: (m, 0, 0)),
        ],
        out_specs=pl.BlockSpec((1, 1, B, N, d_out), lambda m, s: (m, s, 0, 0, 0)),
        out_shape=jax.ShapeDtypeStruct((Mw, S, B, N, d_out), out_dtype),
        compiler_params=_compiler_params(("parallel", "parallel"), per_step),
    )(x, adj, W, bW, A)


def _readout_kernel(hs_ref, mask_ref, w_ref, b_ref, o_ref, *, groups):
    hs = hs_ref[0]                                                     # (G*B, N, h)
    gb, n, _ = hs.shape
    per = gb // groups
    w = w_ref[0]                                                       # (1, h)
    # Lane-dense score computation: VPU multiply + lane reduce.
    s = jnp.sum(hs * w, axis=-1, keepdims=True) + b_ref[0]             # (G*B, N, 1)
    # Broadcast the (B, N, 1) length mask over the 4 readout groups in-kernel.
    s = (s.reshape(groups, per, n, 1) + mask_ref[...][None]).reshape(gb, n, 1)
    s = s - jnp.max(s, axis=1, keepdims=True)
    p = jnp.exp(s)
    alpha = p * pl.reciprocal(jnp.sum(p, axis=1, keepdims=True), approx=True)
    o_ref[0] = jnp.sum(alpha * hs, axis=1)                             # (G*B, h) lane-dense


def pallas_readout_batched(hs, mask_col, w, b, *, groups):
    """AttentionAggregator over (Mw weight sets) x (groups*B graphs) — one step
    per weight set (grid=(Mw,)), all graphs processed inside the step.

    hs:       (Mw, groups*B, N, h)
    mask_col: (B, N, 1)
    w:        (Mw, 1, h);  b: (Mw, 1, 1)
    returns   (Mw, groups*B, h)
    """
    Mw, GB, N, H = hs.shape
    B = mask_col.shape[0]
    assert GB == groups * B
    per_step = GB * N * H * 4 + B * N * 4 + H * 4 + GB * H * 4
    return pl.pallas_call(
        partial(_readout_kernel, groups=groups),
        grid=(Mw,),
        in_specs=[pl.BlockSpec((1, GB, N, H), lambda m: (m, 0, 0, 0)),
                  pl.BlockSpec((B, N, 1), lambda m: (0, 0, 0)),
                  pl.BlockSpec((1, 1, H), lambda m: (m, 0, 0)),
                  pl.BlockSpec((1, 1, 1), lambda m: (m, 0, 0))],
        out_specs=pl.BlockSpec((1, GB, H), lambda m: (m, 0, 0)),
        out_shape=jax.ShapeDtypeStruct((Mw, GB, H), jnp.float32),
        compiler_params=_compiler_params(("parallel",), per_step),
    )(hs.astype(jnp.float32), mask_col.astype(jnp.float32),
      w.astype(jnp.float32), b.astype(jnp.float32))


# ----------------------------------------------------------------------------
# GAT glue
# ----------------------------------------------------------------------------
def build_attn_mat(a_src, a_dst):
    """Block-diagonal (H*dh, 2H) matrix so wh @ A yields all per-head src/dst scores."""
    dh, H = a_src.shape
    eye = jnp.eye(H, dtype=jnp.float32)
    A_src = (a_src.T[:, :, None] * eye[:, None, :]).reshape(H * dh, H)
    A_dst = (a_dst.T[:, :, None] * eye[:, None, :]).reshape(H * dh, H)
    return jnp.concatenate([A_src, A_dst], axis=1)


def stack_gat_layers(param_sets, nl):
    layers = []
    for li in range(nl):
        layers.append({
            "W": jnp.stack([ps[li]["W"] for ps in param_sets], 0),
            "bW": jnp.stack([ps[li]["bW"] for ps in param_sets], 0)[:, None, :],
            "A": jnp.stack([build_attn_mat(ps[li]["a_src"], ps[li]["a_dst"])
                            for ps in param_sets], 0),
        })
    return layers


def gat_forward_batched(x, adj, layers, num_heads, dh, leaky_alpha=0.2):
    # TODO(synk): GAT class was not provided in the source; standard multi-head GAT assumed.
    nl = len(layers)
    cur = x                                  # (Mw, Sx, B, N, d_in)
    for li, lay in enumerate(layers):
        is_last = li == nl - 1
        cur = pallas_gat_layer_batched(
            cur, adj, lay["W"], lay["bW"], lay["A"],
            num_heads=num_heads, dh=dh, leaky_alpha=leaky_alpha,
            activation=None if is_last else "elu",
            out_dtype=jnp.float32 if is_last else jnp.bfloat16)
    return cur                               # (Mw, S, B, N, d_out) f32


# ----------------------------------------------------------------------------
# Plain-JAX glue: BiLSTM, quantum statevector sims, helpers
# ----------------------------------------------------------------------------
def bilstm_encode(x, p):
    """BiLSTM with the x@Wih projection hoisted out of the scan and both
    directions fused into a single scan (stacked on a leading direction axis)."""
    # TODO(synk): pack_padded_sequence semantics approximated by running over the full padded sequence.
    B, T, _ = x.shape
    Hd = p["Whh_f"].shape[1]
    xw_f = jnp.einsum('btd,gd->btg', x, p["Wih_f"]) + p["bih_f"] + p["bhh_f"]
    xw_r = jnp.einsum('btd,gd->btg', x, p["Wih_r"]) + p["bih_r"] + p["bhh_r"]
    xw = jnp.stack([xw_f, xw_r[:, ::-1]], axis=0)              # (2, B, T, 4H)
    xw_t = jnp.moveaxis(xw, 2, 0)                              # (T, 2, B, 4H)
    whh_t = jnp.stack([p["Whh_f"].T, p["Whh_r"].T], axis=0)    # (2, H, 4H)

    def step(carry, xt):
        hprev, cprev = carry
        g = xt + jnp.einsum('dbh,dhg->dbg', hprev, whh_t)
        i, f, gg, o = jnp.split(g, 4, axis=-1)
        i = jax.nn.sigmoid(i)
        f = jax.nn.sigmoid(f)
        gg = jnp.tanh(gg)
        o = jax.nn.sigmoid(o)
        c = f * cprev + i * gg
        hcur = o * jnp.tanh(c)
        return (hcur, c), hcur

    zeros = jnp.zeros((2, B, Hd), jnp.float32)
    _, hs = jax.lax.scan(step, (zeros, zeros), xw_t)           # (T, 2, B, H)
    hs = jnp.moveaxis(hs, 0, 2)                                # (2, B, T, H)
    return jnp.concatenate([hs[0], hs[1][:, ::-1]], axis=-1)   # (B, T, 2H)


# --- 6-qubit statevector simulation of the PennyLane qnodes (plain JAX) ------
def _ry_mat(theta):
    theta = jnp.asarray(theta, jnp.float32)
    c = jnp.cos(theta / 2)
    s = jnp.sin(theta / 2)
    row0 = jnp.stack([c, -s], axis=-1)
    row1 = jnp.stack([s, c], axis=-1)
    return jnp.stack([row0, row1], axis=-2)


def _rz_mat(theta):
    theta = jnp.asarray(theta, jnp.float32)
    e_m = jnp.cos(theta / 2) - 1j * jnp.sin(theta / 2)
    e_p = jnp.cos(theta / 2) + 1j * jnp.sin(theta / 2)
    z = jnp.zeros_like(e_m)
    row0 = jnp.stack([e_m, z], axis=-1)
    row1 = jnp.stack([z, e_p], axis=-1)
    return jnp.stack([row0, row1], axis=-2)


def _apply_1q(state, g, wire):
    s = jnp.moveaxis(state, 1 + wire, -1)
    s0, s1 = s[..., 0], s[..., 1]
    if g.ndim == 2:
        g00, g01, g10, g11 = g[0, 0], g[0, 1], g[1, 0], g[1, 1]
    else:
        ex = (slice(None),) + (None,) * (s0.ndim - 1)
        g00, g01, g10, g11 = g[:, 0, 0][ex], g[:, 0, 1][ex], g[:, 1, 0][ex], g[:, 1, 1][ex]
    n0 = g00 * s0 + g01 * s1
    n1 = g10 * s0 + g11 * s1
    s = jnp.stack([n0, n1], axis=-1)
    return jnp.moveaxis(s, -1, 1 + wire)


def _cnot(state, control, target):
    s = jnp.moveaxis(state, (1 + control, 1 + target), (-2, -1))
    c0 = s[..., 0, :]
    c1 = s[..., 1, ::-1]
    s = jnp.stack([c0, c1], axis=-2)
    return jnp.moveaxis(s, (-2, -1), (1 + control, 1 + target))


def _expval_z(state, wire):
    probs = state.real ** 2 + state.imag ** 2
    p = jnp.moveaxis(probs, 1 + wire, -1)
    p = p.reshape(p.shape[0], -1, 2)
    return jnp.sum(p[..., 0] - p[..., 1], axis=1)


def qfnn6_sim(weights, inputs):
    bsz = inputs.shape[0]
    state = jnp.zeros((bsz,) + (2,) * 6, jnp.complex64)
    state = state.at[(slice(None),) + (0,) * 6].set(1.0)
    for q in range(6):                                   # state_prepare
        state = _apply_1q(state, _ry_mat(inputs[:, 2 * q]), q)
        state = _apply_1q(state, _rz_mat(inputs[:, 2 * q + 1]), q)
    for (b1, b2), w in zip([(0, 1), (2, 3), (4, 5)],
                           [weights[0:3], weights[3:6], weights[6:9]]):
        state = _apply_1q(state, _rz_mat(-math.pi / 2), b2)
        state = _apply_1q(state, _rz_mat(w[0]), b1)
        state = _cnot(state, b2, b1)                     # CNOT([b2, b1])
        state = _apply_1q(state, _ry_mat(w[1]), b2)
        state = _apply_1q(state, _ry_mat(w[2]), b2)
        state = _apply_1q(state, _rz_mat(math.pi / 2), b1)
    return jnp.stack([_expval_z(state, q) for q in range(6)], axis=1)


def qmfnn6_sim(weights, inputs):
    bsz = inputs.shape[0]
    # (x / x.sum()) then AmplitudeEmbedding(normalize=True) == sign(sum) * x / ||x||
    sgn = jnp.sign(jnp.sum(inputs, axis=-1, keepdims=True))
    psi = sgn * inputs / jnp.linalg.norm(inputs, axis=-1, keepdims=True)
    state = psi.reshape((bsz,) + (2,) * 6).astype(jnp.complex64)
    for q in range(6):
        state = _apply_1q(state, _rz_mat(weights[q]), q)
    for c, t in [(1, 0), (2, 1), (3, 2), (4, 3), (5, 4), (0, 5)]:
        state = _cnot(state, c, t)
    for q in range(6):
        state = _apply_1q(state, _ry_mat(weights[6 + q]), q)
    return jnp.stack([_expval_z(state, q) for q in range(6)], axis=1)


def l2_normalize(x, axis=-1, eps=1e-12):
    n = jnp.sqrt(jnp.sum(x * x, axis=axis, keepdims=True))
    return x / jnp.maximum(n, eps)


def _drop_edges_np(adj_np, ratio, rng):
    """Host-side mirror of _delete_edge / _add_edge (both zero a sample of
    existing edges).  Runs OUTSIDE the jitted forward (no device sync mid-graph)."""
    bsz = adj_np.shape[0]
    flat = adj_np.reshape(bsz, -1).copy()
    for i in range(bsz):
        edges = np.where(flat[i] == 1)[0]
        if len(edges) == 0:
            continue
        k = math.ceil(len(edges) * ratio)
        sel = rng.choice(edges, size=k, replace=False)
        flat[i, sel] = 0
    return flat.reshape(adj_np.shape)


# ----------------------------------------------------------------------------
# Parameters
# ----------------------------------------------------------------------------
def init_params(key, cfg):
    h = cfg["hidden_size"]
    dt, dv, da = cfg["t_size"], cfg["v_size"], cfg["a_size"]
    heads = cfg["num_gnn_heads"]
    dh = h // heads
    nlayers = cfg["num_gnn_layers"]
    keys = list(jax.random.split(key, 64))
    ki = iter(keys)

    def dense(k, i, o):
        return {"W": jax.random.normal(k, (i, o), jnp.float32) / math.sqrt(i),
                "b": jnp.zeros((o,), jnp.float32)}

    def lstm_params(k, d):
        k1, k2, k3, k4 = jax.random.split(k, 4)
        sc = 1.0 / math.sqrt(d)
        return {"Wih_f": jax.random.normal(k1, (4 * d, d), jnp.float32) * sc,
                "Whh_f": jax.random.normal(k2, (4 * d, d), jnp.float32) * sc,
                "bih_f": jnp.zeros((4 * d,), jnp.float32),
                "bhh_f": jnp.zeros((4 * d,), jnp.float32),
                "Wih_r": jax.random.normal(k3, (4 * d, d), jnp.float32) * sc,
                "Whh_r": jax.random.normal(k4, (4 * d, d), jnp.float32) * sc,
                "bih_r": jnp.zeros((4 * d,), jnp.float32),
                "bhh_r": jnp.zeros((4 * d,), jnp.float32)}

    def gat_params(k):
        layers = []
        kk = jax.random.split(k, nlayers * 3)
        for li in range(nlayers):
            d_in = h if li == 0 else heads * dh
            layers.append({
                "W": jax.random.normal(kk[3 * li], (d_in, heads * dh), jnp.float32) / math.sqrt(d_in),
                "bW": jnp.zeros((heads * dh,), jnp.float32),
                "a_src": jax.random.normal(kk[3 * li + 1], (dh, heads), jnp.float32) * 0.1,
                "a_dst": jax.random.normal(kk[3 * li + 2], (dh, heads), jnp.float32) * 0.1,
            })
        return layers

    def readout_params(k):
        return {"w": jax.random.normal(k, (h, 1), jnp.float32) / math.sqrt(h),
                "b": jnp.zeros((1,), jnp.float32)}

    p = {}
    p["embed"] = jax.random.normal(next(ki), (cfg["vocab"], dt), jnp.float32) * 0.1
    p["project_t"] = dense(next(ki), dt, h)
    p["project_v"] = dense(next(ki), dv * 2, h)
    p["project_a"] = dense(next(ki), da * 2, h)
    p["lstm_v"] = lstm_params(next(ki), dv)
    p["lstm_a"] = lstm_params(next(ki), da)
    p["gat_t"] = gat_params(next(ki))
    p["gat_v"] = gat_params(next(ki))
    p["gat_a"] = gat_params(next(ki))
    p["gat_m"] = gat_params(next(ki))
    p["readout_t"] = readout_params(next(ki))
    p["readout_v"] = readout_params(next(ki))
    p["readout_a"] = readout_params(next(ki))
    p["ret"] = dense(next(ki), h, 4)
    p["rev"] = dense(next(ki), h, 4)
    p["rea"] = dense(next(ki), h, 4)
    p["rem"] = dense(next(ki), 3 * h, 64)
    p["ret2"] = dense(next(ki), h + 2, h)
    p["rev2"] = dense(next(ki), h + 2, h)
    p["rea2"] = dense(next(ki), h + 2, h)
    p["rem2"] = dense(next(ki), 3 * h + 6, 3 * h)
    p["fc_out"] = dense(next(ki), 3 * h, 1)
    p["qfnn_weights"] = jax.random.uniform(next(ki), (9,), jnp.float32, 0.0, 2 * math.pi)
    p["qmfnn_weights"] = jax.random.uniform(next(ki), (12,), jnp.float32, 0.0, 2 * math.pi)
    return p


# ----------------------------------------------------------------------------
# Forward pass (fully jittable: augmented adjacencies are precomputed inputs)
# ----------------------------------------------------------------------------
def forward(p, text_tensor, video_tensor, audio_tensor, lengths,
            adj_matrix, adj_m_aug, adj_t_aug, adj_v_aug, adj_a_aug, *, cfg):
    bsz, max_len, _ = video_tensor.shape
    h = cfg["hidden_size"]
    heads = cfg["num_gnn_heads"]
    dh = h // heads
    nl = cfg["num_gnn_layers"]

    pos = jnp.arange(max_len)[None, :]
    mask = jnp.where(pos >= lengths[:, None], -1e9, 0.0).astype(jnp.float32)   # (B, L)
    mask_col = mask[:, :, None]                                                # (B, L, 1)

    # Adjacency is only used in `adj > 0`; DMA it as bf16 to halve the bytes.
    adj_bf = adj_matrix.astype(jnp.bfloat16)
    adj_t = adj_bf[:, :max_len, :max_len]
    adj_v = adj_bf[:, max_len:2 * max_len, max_len:2 * max_len]
    adj_a = adj_bf[:, 2 * max_len:, 2 * max_len:]

    # ---- encoders ----
    # TODO(synk): BertModel encoder replaced with a deterministic token-embedding lookup.
    hs_t_raw = p["embed"][text_tensor][:, 1:-1]                 # (B, L, dt)
    hs_v_lstm = bilstm_encode(video_tensor, p["lstm_v"])        # (B, L, 2dv)
    hs_a_lstm = bilstm_encode(audio_tensor, p["lstm_a"])        # (B, L, 2da)

    kt, kv, ka = hs_t_raw.shape[-1], hs_v_lstm.shape[-1], hs_a_lstm.shape[-1]
    if kt == kv == ka:
        # one grid=(3,) call for all three modality projections
        x_proj = jnp.stack([hs_t_raw.reshape(bsz * max_len, kt),
                            hs_v_lstm.reshape(bsz * max_len, kv),
                            hs_a_lstm.reshape(bsz * max_len, ka)], axis=0)
        w_proj = jnp.stack([p["project_t"]["W"], p["project_v"]["W"], p["project_a"]["W"]], axis=0)
        b_proj = jnp.stack([p["project_t"]["b"][None], p["project_v"]["b"][None],
                            p["project_a"]["b"][None]], axis=0)
        proj = pallas_linear_batched(x_proj, w_proj, b_proj, activation="relu")
        hs_t = proj[0].reshape(bsz, max_len, h)
        hs_v = proj[1].reshape(bsz, max_len, h)
        hs_a = proj[2].reshape(bsz, max_len, h)
    else:
        hs_t = pallas_linear_batched(hs_t_raw.reshape(1, bsz * max_len, kt),
                                     p["project_t"]["W"][None], p["project_t"]["b"][None, None],
                                     activation="relu")[0].reshape(bsz, max_len, h)
        hs_v = pallas_linear_batched(hs_v_lstm.reshape(1, bsz * max_len, kv),
                                     p["project_v"]["W"][None], p["project_v"]["b"][None, None],
                                     activation="relu")[0].reshape(bsz, max_len, h)
        hs_a = pallas_linear_batched(hs_a_lstm.reshape(1, bsz * max_len, ka),
                                     p["project_a"]["W"][None], p["project_a"]["b"][None, None],
                                     activation="relu")[0].reshape(bsz, max_len, h)

    hs = jnp.concatenate([hs_t, hs_v, hs_a], axis=1)            # (B, 3L, h)

    # ---- multimodal GAT: original + augmented adjacency share the feature block ----
    x_m = hs.astype(jnp.bfloat16)[None, None]                   # (1, 1, B, 3L, h)
    adj_m = jnp.stack([adj_bf, adj_m_aug.astype(jnp.bfloat16)], axis=0)[None]  # (1, 2, B, 3L, 3L)
    gm_layers = stack_gat_layers([p["gat_m"]], nl)
    hs_gnn_m = gat_forward_batched(x_m, adj_m, gm_layers, heads, dh)           # (1, 2, B, 3L, h)
    hs_m_res = jnp.maximum(hs_gnn_m[0] + hs[None], 0.0)                        # (2, B, 3L, h)

    # ---- unimodal GATs: 3 modalities x (original, augmented) in one batched call ----
    x_u_f32 = jnp.stack([hs_t, hs_v, hs_a], axis=0)             # (3, B, L, h)
    x_u = x_u_f32.astype(jnp.bfloat16)[:, None]                 # (3, 1, B, L, h)
    adj_u = jnp.stack([
        jnp.stack([adj_t, adj_t_aug.astype(jnp.bfloat16)], axis=0),
        jnp.stack([adj_v, adj_v_aug.astype(jnp.bfloat16)], axis=0),
        jnp.stack([adj_a, adj_a_aug.astype(jnp.bfloat16)], axis=0)], axis=0)   # (3, 2, B, L, L)
    gu_layers = stack_gat_layers([p["gat_t"], p["gat_v"], p["gat_a"]], nl)
    hs_gnn_u = gat_forward_batched(x_u, adj_u, gu_layers, heads, dh)           # (3, 2, B, L, h)
    hs_u_res = jnp.maximum(hs_gnn_u + x_u_f32[:, None], 0.0)                   # (3, 2, B, L, h)

    # ---- all 12 attention readouts in ONE pallas_call (grid=(3,)) ----
    # TODO(synk): MultimodalGraphReadout class not provided; assumed per-modality attention readout + concat.
    ro_blocks = []
    for mi in range(3):
        sl = slice(mi * max_len, (mi + 1) * max_len)
        ro_blocks.append(jnp.concatenate(
            [hs_m_res[0][:, sl], hs_m_res[1][:, sl],
             hs_u_res[mi, 0], hs_u_res[mi, 1]], axis=0))        # (4B, L, h)
    hs_ro = jnp.stack(ro_blocks, axis=0)                        # (3, 4B, L, h)
    w_ro = jnp.stack([p["readout_t"]["w"].T, p["readout_v"]["w"].T, p["readout_a"]["w"].T], axis=0)
    b_ro = jnp.stack([p["readout_t"]["b"].reshape(1, 1), p["readout_v"]["b"].reshape(1, 1),
                      p["readout_a"]["b"].reshape(1, 1)], axis=0)
    ro = pallas_readout_batched(hs_ro, mask_col, w_ro, b_ro, groups=4)   # (3, 4B, h)

    reps_m = jnp.concatenate([ro[0, :bsz], ro[1, :bsz], ro[2, :bsz]], axis=-1)            # (B, 3h)
    reps_m_aug1 = jnp.concatenate([ro[0, bsz:2 * bsz], ro[1, bsz:2 * bsz], ro[2, bsz:2 * bsz]], axis=-1)
    reps_t, reps_v, reps_a = ro[0, 2 * bsz:3 * bsz], ro[1, 2 * bsz:3 * bsz], ro[2, 2 * bsz:3 * bsz]
    reps_t_aug1, reps_v_aug1, reps_a_aug1 = ro[0, 3 * bsz:], ro[1, 3 * bsz:], ro[2, 3 * bsz:]

    # ---- quantum feature branch (tiny tail linears as plain XLA matmuls) ----
    x_q = jnp.stack([reps_t, reps_v, reps_a], axis=0)                          # (3, B, h)
    w_q = jnp.stack([p["ret"]["W"], p["rev"]["W"], p["rea"]["W"]], axis=0)
    b_q = jnp.stack([p["ret"]["b"], p["rev"]["b"], p["rea"]["b"]], axis=0)
    qlin = jnp.einsum('mbh,mhk->mbk', x_q, w_q) + b_q[:, None, :]              # (3, B, 4)
    qinput = jnp.concatenate([qlin[0], qlin[1], qlin[2]], axis=1)              # (B, 12)
    qf = qfnn6_sim(p["qfnn_weights"], qinput)                                  # (B, 6)
    # matches the original module: all three take qfoutputs[:, 0:2]
    tq = vq = aq = qf[:, 0:2]

    x2 = jnp.stack([jnp.concatenate([reps_t, tq], axis=1),
                    jnp.concatenate([reps_v, vq], axis=1),
                    jnp.concatenate([reps_a, aq], axis=1)], axis=0)            # (3, B, h+2)
    w2 = jnp.stack([p["ret2"]["W"], p["rev2"]["W"], p["rea2"]["W"]], axis=0)
    b2 = jnp.stack([p["ret2"]["b"], p["rev2"]["b"], p["rea2"]["b"]], axis=0)
    r2 = jnp.einsum('mbh,mhk->mbk', x2, w2) + b2[:, None, :]                   # (3, B, h)
    reps_t2, reps_v2, reps_a2 = r2[0], r2[1], r2[2]

    repm = reps_m                                               # dropout_m: identity (eval mode)
    qminput = repm @ p["rem"]["W"] + p["rem"]["b"]              # (B, 64)
    qmf = qmfnn6_sim(p["qmfnn_weights"], qminput)               # (B, 6)
    repm2 = jnp.concatenate([repm, qmf], axis=1) @ p["rem2"]["W"] + p["rem2"]["b"]
    output = repm2 @ p["fc_out"]["W"] + p["fc_out"]["b"]        # (B, 1)

    reps_t_aug = jnp.stack([reps_t_aug1, reps_t2], axis=1)
    reps_v_aug = jnp.stack([reps_v_aug1, reps_v2], axis=1)
    reps_a_aug = jnp.stack([reps_a_aug1, reps_a2], axis=1)
    reps_m_aug = jnp.stack([reps_m_aug1, reps_m], axis=1)

    return (output.reshape(-1),
            l2_normalize(reps_m[:, None, :]),
            l2_normalize(reps_t2[:, None, :]),
            l2_normalize(reps_v2[:, None, :]),
            l2_normalize(reps_a2[:, None, :]),
            l2_normalize(reps_m_aug),
            l2_normalize(reps_t_aug),
            l2_normalize(reps_v_aug),
            l2_normalize(reps_a_aug))


# ----------------------------------------------------------------------------
if __name__ == "__main__":
    # hidden_size must be 128 (ret/ret2/rem layer shapes in the module hard-code it).
    cfg = {"t_size": 32, "v_size": 16, "a_size": 16, "hidden_size": 128,
           "num_gnn_heads": 4, "num_gnn_layers": 2, "dropout_gnn": 0.0,
           "dropout": 0.0, "dropout_t": 0.0, "dropout_v": 0.0, "dropout_a": 0.0,
           "aug_ratio": 0.1, "vocab": 50}

    key = jax.random.PRNGKey(0)
    kp, k1, k2, k3, k4 = jax.random.split(key, 5)
    params = init_params(kp, cfg)

    bsz, max_len = 2, 8
    text_tensor = jax.random.randint(k1, (bsz, max_len + 2), 0, cfg["vocab"])
    video_tensor = jax.random.normal(k2, (bsz, max_len, cfg["v_size"]), jnp.float32)
    audio_tensor = jax.random.normal(k3, (bsz, max_len, cfg["a_size"]), jnp.float32)
    lengths = jnp.array([max_len, max_len - 2], jnp.int32)
    adj = (jax.random.uniform(k4, (bsz, 3 * max_len, 3 * max_len)) < 0.3).astype(jnp.float32)
    eye = jnp.eye(3 * max_len, dtype=jnp.float32)[None]
    adj = jnp.clip(adj + jnp.swapaxes(adj, 1, 2) + eye, 0.0, 1.0)

    # ---- graph augmentation precomputed on host, OUTSIDE the jitted forward ----
    ratio = cfg["aug_ratio"]
    rng_aug = np.random.default_rng(0)
    adj_np = np.asarray(adj, dtype=np.float32)
    adj_t_np = adj_np[:, :max_len, :max_len]
    adj_v_np = adj_np[:, max_len:2 * max_len, max_len:2 * max_len]
    adj_a_np = adj_np[:, 2 * max_len:, 2 * max_len:]
    adj_m_aug = _drop_edges_np(_drop_edges_np(adj_np, ratio, rng_aug), ratio, rng_aug)
    adj_t_aug = _drop_edges_np(_drop_edges_np(adj_t_np, ratio, rng_aug), ratio, rng_aug)
    adj_v_aug = _drop_edges_np(_drop_edges_np(adj_v_np, ratio, rng_aug), ratio, rng_aug)
    adj_a_aug = _drop_edges_np(_drop_edges_np(adj_a_np, ratio, rng_aug), ratio, rng_aug)

    fwd = jax.jit(partial(forward, cfg=cfg))
    outs = fwd(params, text_tensor, video_tensor, audio_tensor, lengths,
               adj, jnp.asarray(adj_m_aug), jnp.asarray(adj_t_aug),
               jnp.asarray(adj_v_aug), jnp.asarray(adj_a_aug))
    outs = jax.tree_util.tree_map(jax.block_until_ready, outs)
    print("KERNEL_OK")
</pallas_src>

<mosaic_0001>
module attributes {stable_mosaic.version = 11 : i64} {
  func.func @_linear_kernel(%arg0: i32, %arg1: memref<1x16x32xbf16, #tpu.memory_space<vmem>>, %arg2: memref<1x32x128xbf16, #tpu.memory_space<vmem>>, %arg3: memref<1x1x128xf32, #tpu.memory_space<vmem>>, %arg4: memref<1x16x128xf32, #tpu.memory_space<vmem>>) attributes {dimension_semantics = [#tpu.dimension_semantics<parallel>], iteration_bounds = array<i64: 3>, scalar_prefetch = 0 : i64, scratch_operands = 0 : i64, tpu.core_type = #tpu.core_type<tc>, window_params = [{transform_indices = @transform_0, window_bounds = array<i64: 1, 16, 32>}, {transform_indices = @transform_1, window_bounds = array<i64: 1, 32, 128>}, {transform_indices = @transform_2, window_bounds = array<i64: 1, 1, 128>}, {transform_indices = @transform_3, window_bounds = array<i64: 1, 16, 128>}]} {
    %c0 = arith.constant 0 : index
    %c0_0 = arith.constant 0 : index
    %c0_1 = arith.constant 0 : index
    %0 = vector.load %arg1[%c0, %c0_0, %c0_1] : memref<1x16x32xbf16, #tpu.memory_space<vmem>>, vector<1x16x32xbf16>
    %1 = vector.shape_cast %0 : vector<1x16x32xbf16> to vector<16x32xbf16>
    %c0_2 = arith.constant 0 : index
    %c0_3 = arith.constant 0 : index
    %c0_4 = arith.constant 0 : index
    %2 = vector.load %arg2[%c0_2, %c0_3, %c0_4] : memref<1x32x128xbf16, #tpu.memory_space<vmem>>, vector<1x32x128xbf16>
    %3 = vector.shape_cast %2 : vector<1x32x128xbf16> to vector<32x128xbf16>
    %cst = arith.constant dense<0.000000e+00> : vector<16x128xf32>
    %4 = tpu.matmul %1, %3, %cst {dimension_numbers = #tpu.dot_dimension_numbers<[1], [0], [0], [1], [0, 0, 1, 1], [], []>} : vector<16x32xbf16>, vector<32x128xbf16>, vector<16x128xf32> -> vector<16x128xf32>
    %c0_5 = arith.constant 0 : index
    %c0_6 = arith.constant 0 : index
    %c0_7 = arith.constant 0 : index
    %5 = vector.load %arg3[%c0_5, %c0_6, %c0_7] : memref<1x1x128xf32, #tpu.memory_space<vmem>>, vector<1x1x128xf32>
    %6 = vector.shape_cast %5 : vector<1x1x128xf32> to vector<1x128xf32>
    %7 = vector.broadcast %6 : vector<1x128xf32> to vector<16x128xf32>
    %8 = arith.addf %4, %7 : vector<16x128xf32>
    %cst_8 = arith.constant 0.000000e+00 : f32
    %9 = vector.broadcast %cst_8 : f32 to vector<16x128xf32>
    %10 = arith.maximumf %8, %9 : vector<16x128xf32>
    %c0_9 = arith.constant 0 : index
    %c0_10 = arith.constant 0 : index
    %c0_11 = arith.constant 0 : index
    %11 = vector.load %arg4[%c0_9, %c0_10, %c0_11] : memref<1x16x128xf32, #tpu.memory_space<vmem>>, vector<1x16x128xf32>
    %12 = vector.shape_cast %11 : vector<1x16x128xf32> to vector<16x128xf32>
    %13 = vector.shape_cast %10 : vector<16x128xf32> to vector<1x16x128xf32>
    tpu.vector_store %arg4[%c0_9, %c0_10, %c0_11], %13 {strides = array<i32>} : memref<1x16x128xf32, #tpu.memory_space<vmem>>, vector<1x16x128xf32>,
    return
  }
  func.func @transform_0(%arg0: i32) -> (i32, i32, i32) {
    %c0_i32 = arith.constant 0 : i32
    %c0_i32_0 = arith.constant 0 : i32
    %c0_i32_1 = arith.constant 0 : i32
    return %arg0, %c0_i32, %c0_i32_0 : i32, i32, i32
  }
  func.func @transform_1(%arg0: i32) -> (i32, i32, i32) {
    %c0_i32 = arith.constant 0 : i32
    %c0_i32_0 = arith.constant 0 : i32
    %c0_i32_1 = arith.constant 0 : i32
    return %arg0, %c0_i32, %c0_i32_0 : i32, i32, i32
  }
  func.func @transform_2(%arg0: i32) -> (i32, i32, i32) {
    %c0_i32 = arith.constant 0 : i32
    %c0_i32_0 = arith.constant 0 : i32
    %c0_i32_1 = arith.constant 0 : i32
    return %arg0, %c0_i32, %c0_i32_0 : i32, i32, i32
  }
  func.func @transform_3(%arg0: i32) -> (i32, i32, i32) {
    %c0_i32 = arith.constant 0 : i32
    %c0_i32_0 = arith.constant 0 : i32
    %c0_i32_1 = arith.constant 0 : i32
    return %arg0, %c0_i32, %c0_i32_0 : i32, i32, i32
  }
}

module attributes {stable_mosaic.version = 11 : i64} {
  func.func @_gat_layer_kernel(%arg0: i32, %arg1: i32, %arg2: memref<1x1x2x8x128xbf16, #tpu.memory_space<vmem>>, %arg3: memref<1x1x2x8x8xbf16, #tpu.memory_space<vmem>>, %arg4: memref<1x128x128xbf16, #tpu.memory_space<vmem>>, %arg5: memref<1x1x128xf32, #tpu.memory_space<vmem>>, %arg6: memref<1x128x8xbf16, #tpu.memory_space<vmem>>, %arg7: memref<1x1x2x8x128xbf16, #tpu.memory_space<vmem>>) attributes {dimension_semantics = [#tpu.dimension_semantics<parallel>, #tpu.dimension_semantics<parallel>], iteration_bounds = array<i64: 3, 2>, scalar_prefetch = 0 : i64, scratch_operands = 0 : i64, tpu.core_type = #tpu.core_type<tc>, window_params = [{transform_indices = @transform_0, window_bounds = array<i64: 1, 1, 2, 8, 128>}, {transform_indices = @transform_1, window_bounds = array<i64: 1, 1, 2, 8, 8>}, {transform_indices = @transform_2, window_bounds = array<i64: 1, 128, 128>}, {transform_indices = @transform_3, window_bounds = array<i64: 1, 1, 128>}, {transform_indices = @transform_4, window_bounds = array<i64: 1, 128, 8>}, {transform_indices = @transform_5, window_bounds = array<i64: 1, 1, 2, 8, 128>}]} {
    %c0 = arith.constant 0 : index
    %c0_0 = arith.constant 0 : index
    %c0_1 = arith.constant 0 : index
    %c0_2 = arith.constant 0 : index
    %c0_3 = arith.constant 0 : index
    %0 = vector.load %arg2[%c0, %c0_0, %c0_1, %c0_2, %c0_3] : memref<1x1x2x8x128xbf16, #tpu.memory_space<vmem>>, vector<1x1x2x8x128xbf16>
    %1 = vector.shape_cast %0 : vector<1x1x2x8x128xbf16> to vector<2x8x128xbf16>
    %c0_4 = arith.constant 0 : index
    %c0_5 = arith.constant 0 : index
    %c0_6 = arith.constant 0 : index
    %c0_7 = arith.constant 0 : index
    %c0_8 = arith.constant 0 : index
    %2 = vector.load %arg3[%c0_4, %c0_5, %c0_6, %c0_7, %c0_8] : memref<1x1x2x8x8xbf16, #tpu.memory_space<vmem>>, vector<1x1x2x8x8xbf16>
    %3 = vector.shape_cast %2 : vector<1x1x2x8x8xbf16> to vector<2x8x8xbf16>
    %4 = vector.shape_cast %1 : vector<2x8x128xbf16> to vector<16x128xbf16>
    %c0_9 = arith.constant 0 : index
    %c0_10 = arith.constant 0 : index
    %c0_11 = arith.constant 0 : index
    %5 = vector.load %arg4[%c0_9, %c0_10, %c0_11] : memref<1x128x128xbf16, #tpu.memory_space<vmem>>, vector<1x128x128xbf16>
    %6 = vector.shape_cast %5 : vector<1x128x128xbf16> to vector<128x128xbf16>
    %cst = arith.constant dense<0.000000e+00> : vector<16x128xf32>
    %7 = tpu.matmul %4, %6, %cst {dimension_numbers = #tpu.dot_dimension_numbers<[1], [0], [0], [1], [0, 0, 1, 1], [], []>} : vector<16x128xbf16>, vector<128x128xbf16>, vector<16x128xf32> -> vector<16x128xf32>
    %c0_12 = arith.constant 0 : index
    %c0_13 = arith.constant 0 : index
    %c0_14 = arith.constant 0 : index
    %8 = vector.load %arg5[%c0_12, %c0_13, %c0_14] : memref<1x1x128xf32, #tpu.memory_space<vmem>>, vector<1x1x128xf32>
    %9 = vector.shape_cast %8 : vector<1x1x128xf32> to vector<1x128xf32>
    %10 = vector.broadcast %9 : vector<1x128xf32> to vector<16x128xf32>
    %11 = arith.addf %7, %10 : vector<16x128xf32>
    %12 = arith.truncf %11 : vector<16x128xf32> to vector<16x128xbf16>
    %c0_15 = arith.constant 0 : index
    %c0_16 = arith.constant 0 : index
    %c0_17 = arith.constant 0 : index
    %13 = vector.load %arg6[%c0_15, %c0_16, %c0_17] : memref<1x128x8xbf16, #tpu.memory_space<vmem>>, vector<1x128x8xbf16>
    %14 = vector.shape_cast %13 : vector<1x128x8xbf16> to vector<128x8xbf16>
    %cst_18 = arith.constant dense<0.000000e+00> : vector<16x8xf32>
    %15 = tpu.matmul %12, %14, %cst_18 {dimension_numbers = #tpu.dot_dimension_numbers<[1], [0], [0], [1], [0, 0, 1, 1], [], []>} : vector<16x128xbf16>, vector<128x8xbf16>, vector<16x8xf32> -> vector<16x8xf32>
    %16 = vector.shape_cast %15 : vector<16x8xf32> to vector<2x8x8xf32>
    %17 = vector.shape_cast %12 : vector<16x128xbf16> to vector<2x8x128xbf16>
    %cst_19 = arith.constant 1.000000e+00 : f32
    %18 = vector.broadcast %cst_19 : f32 to vector<2x8x1xf32>
    %19 = tpu.iota {dimensions = array<i32: 2>} : vector<1x1x128xi32>
    %cst_20 = arith.constant 0.000000e+00 : f32
    %20 = vector.broadcast %cst_20 : f32 to vector<2x8x128xf32>
    %21 = vector.extract_strided_slice %16 {offsets = [0, 0, 0], sizes = [2, 8, 1], strides = [1, 1, 1]} : vector<2x8x8xf32> to vector<2x8x1xf32>
    %22 = vector.extract_strided_slice %16 {offsets = [0, 0, 4], sizes = [2, 8, 1], strides = [1, 1, 1]} : vector<2x8x8xf32> to vector<2x8x1xf32>
    "tpu.trace_start"() <{level = 10 : i32, message = "gik,gjk->gij"}> : () -> ()
    %cst_21 = arith.constant dense<0.000000e+00> : vector<2x8x8xf32>
    %23 = tpu.matmul %18, %22, %cst_21 {dimension_numbers = #tpu.dot_dimension_numbers<[2], [2], [1], [1], [0, 0, 0, 1, 1, 1], [0], [0]>} : vector<2x8x1xf32>, vector<2x8x1xf32>, vector<2x8x8xf32> -> vector<2x8x8xf32>
    "tpu.trace_stop"() : () -> ()
    %24 = vector.broadcast %21 : vector<2x8x1xf32> to vector<2x8x8xf32>
    %25 = arith.addf %24, %23 : vector<2x8x8xf32>
    %cst_22 = arith.constant 0.000000e+00 : f32
    %26 = vector.broadcast %cst_22 : f32 to vector<2x8x8xf32>
    %27 = arith.cmpf ogt, %25, %26 : vector<2x8x8xf32>
    %cst_23 = arith.constant 2.000000e-01 : f32
    %28 = vector.broadcast %cst_23 : f32 to vector<2x8x8xf32>
    %29 = arith.mulf %28, %25 : vector<2x8x8xf32>
    %30 = arith.select %27, %25, %29 : vector<2x8x8xi1>, vector<2x8x8xf32>
    %cst_24 = arith.constant 0.000000e+00 : bf16
    %31 = vector.broadcast %cst_24 : bf16 to vector<2x8x8xbf16>
    %32 = arith.cmpf ogt, %3, %31 : vector<2x8x8xbf16>
    %cst_25 = arith.constant -1.000000e+09 : f32
    %33 = vector.broadcast %cst_25 : f32 to vector<2x8x8xf32>
    %34 = arith.select %32, %30, %33 : vector<2x8x8xi1>, vector<2x8x8xf32>
    %cst_26 = arith.constant dense<0xFF800000> : vector<2x8xf32>
    %35 = vector.multi_reduction <maximumf>, %34, %cst_26 [2] : vector<2x8x8xf32> to vector<2x8xf32>
    %36 = vector.shape_cast %35 : vector<2x8xf32> to vector<2x8x1xf32>
    %37 = vector.broadcast %36 : vector<2x8x1xf32> to vector<2x8x8xf32>
    %38 = arith.subf %34, %37 : vector<2x8x8xf32>
    %39 = math.exp %38 : vector<2x8x8xf32>
    %cst_27 = arith.constant dense<0.000000e+00> : vector<2x8xf32>
    %40 = vector.multi_reduction <add>, %39, %cst_27 [2] : vector<2x8x8xf32> to vector<2x8xf32>
    %41 = vector.shape_cast %40 : vector<2x8xf32> to vector<2x8x1xf32>
    %42 = tpu.reciprocal %41 {approx = true} : vector<2x8x1xf32> -> vector<2x8x1xf32>
    %43 = vector.broadcast %42 : vector<2x8x1xf32> to vector<2x8x8xf32>
    %44 = arith.mulf %39, %43 : vector<2x8x8xf32>
    %c0_i32 = arith.constant 0 : i32
    %45 = vector.broadcast %c0_i32 : i32 to vector<1x1x128xi32>
    %46 = arith.cmpi sge, %19, %45 : vector<1x1x128xi32>
    %c32_i32 = arith.constant 32 : i32
    %47 = vector.broadcast %c32_i32 : i32 to vector<1x1x128xi32>
    %48 = arith.cmpi slt, %19, %47 : vector<1x1x128xi32>
    %49 = arith.andi %46, %48 : vector<1x1x128xi1>
    %cst_28 = arith.constant 0.000000e+00 : bf16
    %50 = vector.broadcast %cst_28 : bf16 to vector<2x8x128xbf16>
    %51 = vector.shape_cast %49 : vector<1x1x128xi1> to vector<1x1x128xi1>
    %52 = vector.broadcast %51 : vector<1x1x128xi1> to vector<2x8x128xi1>
    %53 = arith.select %52, %17, %50 : vector<2x8x128xi1>, vector<2x8x128xbf16>
    %54 = arith.truncf %44 : vector<2x8x8xf32> to vector<2x8x8xbf16>
    "tpu.trace_start"() <{level = 10 : i32, message = "gnm,gmd->gnd"}> : () -> ()
    %cst_29 = arith.constant dense<0.000000e+00> : vector<2x8x128xf32>
    %55 = tpu.matmul %54, %53, %cst_29 {dimension_numbers = #tpu.dot_dimension_numbers<[2], [1], [1], [2], [0, 0, 0, 1, 1, 2], [0], [0]>} : vector<2x8x8xbf16>, vector<2x8x128xbf16>, vector<2x8x128xf32> -> vector<2x8x128xf32>
    "tpu.trace_stop"() : () -> ()
    %56 = arith.addf %20, %55 : vector<2x8x128xf32>
    %57 = vector.extract_strided_slice %16 {offsets = [0, 0, 1], sizes = [2, 8, 1], strides = [1, 1, 1]} : vector<2x8x8xf32> to vector<2x8x1xf32>
    %58 = vector.extract_strided_slice %16 {offsets = [0, 0, 5], sizes = [2, 8, 1], strides = [1, 1, 1]} : vector<2x8x8xf32> to vector<2x8x1xf32>
    "tpu.trace_start"() <{level = 10 : i32, message = "gik,gjk->gij"}> : () -> ()
    %cst_30 = arith.constant dense<0.000000e+00> : vector<2x8x8xf32>
    %59 = tpu.matmul %18, %58, %cst_30 {dimension_numbers = #tpu.dot_dimension_numbers<[2], [2], [1], [1], [0, 0, 0, 1, 1, 1], [0], [0]>} : vector<2x8x1xf32>, vector<2x8x1xf32>, vector<2x8x8xf32> -> vector<2x8x8xf32>
    "tpu.trace_stop"() : () -> ()
    %60 = vector.broadcast %57 : vector<2x8x1xf32> to vector<2x8x8xf32>
    %61 = arith.addf %60, %59 : vector<2x8x8xf32>
    %cst_31 = arith.constant 0.000000e+00 : f32
    %62 = vector.broadcast %cst_31 : f32 to vector<2x8x8xf32>
    %63 = arith.cmpf ogt, %61, %62 : vector<2x8x8xf32>
    %cst_32 = arith.constant 2.000000e-01 : f32
    %64 = vector.broadcast %cst_32 : f32 to vector<2x8x8xf32>
    %65 = arith.mulf %64, %61 : vector<2x8x8xf32>
    %66 = arith.select %63, %61, %65 : vector<2x8x8xi1>, vector<2x8x8xf32>
    %cst_33 = arith.constant 0.000000e+00 : bf16
    %67 = vector.broadcast %cst_33 : bf16 to vector<2x8x8xbf16>
    %68 = arith.cmpf ogt, %3, %67 : vector<2x8x8xbf16>
    %cst_34 = arith.constant -1.000000e+09 : f32
    %69 = vector.broadcast %cst_34 : f32 to vector<2x8x8xf32>
    %70 = arith.select %68, %66, %69 : vector<2x8x8xi1>, vector<2x8x8xf32>
    %cst_35 = arith.constant dense<0xFF800000> : vector<2x8xf32>
    %71 = vector.multi_reduction <maximumf>, %70, %cst_35 [2] : vector<2x8x8xf32> to vector<2x8xf32>
    %72 = vector.shape_cast %71 : vector<2x8xf32> to vector<2x8x1xf32>
    %73 = vector.broadcast %72 : vector<2x8x1xf32> to vector<2x8x8xf32>
    %74 = arith.subf %70, %73 : vector<2x8x8xf32>
    %75 = math.exp %74 : vector<2x8x8xf32>
    %cst_36 = arith.constant dense<0.000000e+00> : vector<2x8xf32>
    %76 = vector.multi_reduction <add>, %75, %cst_36 [2] : vector<2x8x8xf32> to vector<2x8xf32>
    %77 = vector.shape_cast %76 : vector<2x8xf32> to vector<2x8x1xf32>
    %78 = tpu.reciprocal %77 {approx = true} : vector<2x8x1xf32> -> vector<2x8x1xf32>
    %79 = vector.broadcast %78 : vector<2x8x1xf32> to vector<2x8x8xf32>
    %80 = arith.mulf %75, %79 : vector<2x8x8xf32>
    %c32_i32_37 = arith.constant 32 : i32
    %81 = vector.broadcast %c32_i32_37 : i32 to vector<1x1x128xi32>
    %82 = arith.cmpi sge, %19, %81 : vector<1x1x128xi32>
    %c64_i32 = arith.constant 64 : i32
    %83 = vector.broadcast %c64_i32 : i32 to vector<1x1x128xi32>
    %84 = arith.cmpi slt, %19, %83 : vector<1x1x128xi32>
    %85 = arith.andi %82, %84 : vector<1x1x128xi1>
    %cst_38 = arith.constant 0.000000e+00 : bf16
    %86 = vector.broadcast %cst_38 : bf16 to vector<2x8x128xbf16>
    %87 = vector.shape_cast %85 : vector<1x1x128xi1> to vector<1x1x128xi1>
    %88 = vector.broadcast %87 : vector<1x1x128xi1> to vector<2x8x128xi1>
    %89 = arith.select %88, %17, %86 : vector<2x8x128xi1>, vector<2x8x128xbf16>
    %90 = arith.truncf %80 : vector<2x8x8xf32> to vector<2x8x8xbf16>
    "tpu.trace_start"() <{level = 10 : i32, message = "gnm,gmd->gnd"}> : () -> ()
    %cst_39 = arith.constant dense<0.000000e+00> : vector<2x8x128xf32>
    %91 = tpu.matmul %90, %89, %cst_39 {dimension_numbers = #tpu.dot_dimension_numbers<[2], [1], [1], [2], [0, 0, 0, 1, 1, 2], [0], [0]>} : vector<2x8x8xbf16>, vector<2x8x128xbf16>, vector<2x8x128xf32> -> vector<2x8x128xf32>
    "tpu.trace_stop"() : () -> ()
    %92 = arith.addf %56, %91 : vector<2x8x128xf32>
    %93 = vector.extract_strided_slice %16 {offsets = [0, 0, 2], sizes = [2, 8, 1], strides = [1, 1, 1]} : vector<2x8x8xf32> to vector<2x8x1xf32>
    %94 = vector.extract_strided_slice %16 {offsets = [0, 0, 6], sizes = [2, 8, 1], strides = [1, 1, 1]} : vector<2x8x8xf32> to vector<2x8x1xf32>
    "tpu.trace_start"() <{level = 10 : i32, message = "gik,gjk->gij"}> : () -> ()
    %cst_40 = arith.constant dense<0.000000e+00> : vector<2x8x8xf32>
    %95 = tpu.matmul %18, %94, %cst_40 {dimension_numbers = #tpu.dot_dimension_numbers<[2], [2], [1], [1], [0, 0, 0, 1, 1, 1], [0], [0]>} : vector<2x8x1xf32>, vector<2x8x1xf32>, vector<2x8x8xf32> -> vector<2x8x8xf32>
    "tpu.trace_stop"() : () -> ()
    %96 = vector.broadcast %93 : vector<2x8x1xf32> to vector<2x8x8xf32>
    %97 = arith.addf %96, %95 : vector<2x8x8xf32>
    %cst_41 = arith.constant 0.000000e+00 : f32
    %98 = vector.broadcast %cst_41 : f32 to vector<2x8x8xf32>
    %99 = arith.cmpf ogt, %97, %98 : vector<2x8x8xf32>
    %cst_42 = arith.constant 2.000000e-01 : f32
    %100 = vector.broadcast %cst_42 : f32 to vector<2x8x8xf32>
    %101 = arith.mulf %100, %97 : vector<2x8x8xf32>
    %102 = arith.select %99, %97, %101 : vector<2x8x8xi1>, vector<2x8x8xf32>
    %cst_43 = arith.constant 0.000000e+00 : bf16
    %103 = vector.broadcast %cst_43 : bf16 to vector<2x8x8xbf16>
    %104 = arith.cmpf ogt, %3, %103 : vector<2x8x8xbf16>
    %cst_44 = arith.constant -1.000000e+09 : f32
    %105 = vector.broadcast %cst_44 : f32 to vector<2x8x8xf32>
    %106 = arith.select %104, %102, %105 : vector<2x8x8xi1>, vector<2x8x8xf32>
    %cst_45 = arith.constant dense<0xFF800000> : vector<2x8xf32>
    %107 = vector.multi_reduction <maximumf>, %106, %cst_45 [2] : vector<2x8x8xf32> to vector<2x8xf32>
    %108 = vector.shape_cast %107 : vector<2x8xf32> to vector<2x8x1xf32>
    %109 = vector.broadcast %108 : vector<2x8x1xf32> to vector<2x8x8xf32>
    %110 = arith.subf %106, %109 : vector<2x8x8xf32>
    %111 = math.exp %110 : vector<2x8x8xf32>
    %cst_46 = arith.constant dense<0.000000e+00> : vector<2x8xf32>
    %112 = vector.multi_reduction <add>, %111, %cst_46 [2] : vector<2x8x8xf32> to vector<2x8xf32>
    %113 = vector.shape_cast %112 : vector<2x8xf32> to vector<2x8x1xf32>
    %114 = tpu.reciprocal %113 {approx = true} : vector<2x8x1xf32> -> vector<2x8x1xf32>
    %115 = vector.broadcast %114 : vector<2x8x1xf32> to vector<2x8x8xf32>
    %116 = arith.mulf %111, %115 : vector<2x8x8xf32>
    %c64_i32_47 = arith.constant 64 : i32
    %117 = vector.broadcast %c64_i32_47 : i32 to vector<1x1x128xi32>
    %118 = arith.cmpi sge, %19, %117 : vector<1x1x128xi32>
    %c96_i32 = arith.constant 96 : i32
    %119 = vector.broadcast %c96_i32 : i32 to vector<1x1x128xi32>
    %120 = arith.cmpi slt, %19, %119 : vector<1x1x128xi32>
    %121 = arith.andi %118, %120 : vector<1x1x128xi1>
    %cst_48 = arith.constant 0.000000e+00 : bf16
    %122 = vector.broadcast %cst_48 : bf16 to vector<2x8x128xbf16>
    %123 = vector.shape_cast %121 : vector<1x1x128xi1> to vector<1x1x128xi1>
    %124 = vector.broadcast %123 : vector<1x1x128xi1> to vector<2x8x128xi1>
    %125 = arith.select %124, %17, %122 : vector<2x8x128xi1>, vector<2x8x128xbf16>
    %126 = arith.truncf %116 : vector<2x8x8xf32> to vector<2x8x8xbf16>
    "tpu.trace_start"() <{level = 10 : i32, message = "gnm,gmd->gnd"}> : () -> ()
    %cst_49 = arith.constant dense<0.000000e+00> : vector<2x8x128xf32>
    %127 = tpu.matmul %126, %125, %cst_49 {dimension_numbers = #tpu.dot_dimension_numbers<[2], [1], [1], [2], [0, 0, 0, 1, 1, 2], [0], [0]>} : vector<2x8x8xbf16>, vector<2x8x128xbf16>, vector<2x8x128xf32> -> vector<2x8x128xf32>
    "tpu.trace_stop"() : () -> ()
    %128 = arith.addf %92, %127 : vector<2x8x128xf32>
    %129 = vector.extract_strided_slice %16 {offsets = [0, 0, 3], sizes = [2, 8, 1], strides = [1, 1, 1]} : vector<2x8x8xf32> to vector<2x8x1xf32>
    %130 = vector.extract_strided_slice %16 {offsets = [0, 0, 7], sizes = [2, 8, 1], strides = [1, 1, 1]} : vector<2x8x8xf32> to vector<2x8x1xf32>
    "tpu.trace_start"() <{level = 10 : i32, message = "gik,gjk->gij"}> : () -> ()
    %cst_50 = arith.constant dense<0.000000e+00> : vector<2x8x8xf32>
    %131 = tpu.matmul %18, %130, %cst_50 {dimension_numbers = #tpu.dot_dimension_numbers<[2], [2], [1], [1], [0, 0, 0, 1, 1, 1], [0], [0]>} : vector<2x8x1xf32>, vector<2x8x1xf32>, vector<2x8x8xf32> -> vector<2x8x8xf32>
    "tpu.trace_stop"() : () -> ()
    %132 = vector.broadcast %129 : vector<2x8x1xf32> to vector<2x8x8xf32>
    %133 = arith.addf %132, %131 : vector<2x8x8xf32>
    %cst_51 = arith.constant 0.000000e+00 : f32
    %134 = vector.broadcast %cst_51 : f32 to vector<2x8x8xf32>
    %135 = arith.cmpf ogt, %133, %134 : vector<2x8x8xf32>
    %cst_52 = arith.constant 2.000000e-01 : f32
    %136 = vector.broadcast %cst_52 : f32 to vector<2x8x8xf32>
    %137 = arith.mulf %136, %133 : vector<2x8x8xf32>
    %138 = arith.select %135, %133, %137 : vector<2x8x8xi1>, vector<2x8x8xf32>
    %cst_53 = arith.constant 0.000000e+00 : bf16
    %139 = vector.broadcast %cst_53 : bf16 to vector<2x8x8xbf16>
    %140 = arith.cmpf ogt, %3, %139 : vector<2x8x8xbf16>
    %cst_54 = arith.constant -1.000000e+09 : f32
    %141 = vector.broadcast %cst_54 : f32 to vector<2x8x8xf32>
    %142 = arith.select %140, %138, %141 : vector<2x8x8xi1>, vector<2x8x8xf32>
    %cst_55 = arith.constant dense<0xFF800000> : vector<2x8xf32>
    %143 = vector.multi_reduction <maximumf>, %142, %cst_55 [2] : vector<2x8x8xf32> to vector<2x8xf32>
    %144 = vector.shape_cast %143 : vector<2x8xf32> to vector<2x8x1xf32>
    %145 = vector.broadcast %144 : vector<2x8x1xf32> to vector<2x8x8xf32>
    %146 = arith.subf %142, %145 : vector<2x8x8xf32>
    %147 = math.exp %146 : vector<2x8x8xf32>
    %cst_56 = arith.constant dense<0.000000e+00> : vector<2x8xf32>
    %148 = vector.multi_reduction <add>, %147, %cst_56 [2] : vector<2x8x8xf32> to vector<2x8xf32>
    %149 = vector.shape_cast %148 : vector<2x8xf32> to vector<2x8x1xf32>
    %150 = tpu.reciprocal %149 {approx = true} : vector<2x8x1xf32> -> vector<2x8x1xf32>
    %151 = vector.broadcast %150 : vector<2x8x1xf32> to vector<2x8x8xf32>
    %152 = arith.mulf %147, %151 : vector<2x8x8xf32>
    %c96_i32_57 = arith.constant 96 : i32
    %153 = vector.broadcast %c96_i32_57 : i32 to vector<1x1x128xi32>
    %154 = arith.cmpi sge, %19, %153 : vector<1x1x128xi32>
    %c128_i32 = arith.constant 128 : i32
    %155 = vector.broadcast %c128_i32 : i32 to vector<1x1x128xi32>
    %156 = arith.cmpi slt, %19, %155 : vector<1x1x128xi32>
    %157 = arith.andi %154, %156 : vector<1x1x128xi1>
    %cst_58 = arith.constant 0.000000e+00 : bf16
    %158 = vector.broadcast %cst_58 : bf16 to vector<2x8x128xbf16>
    %159 = vector.shape_cast %157 : vector<1x1x128xi1> to vector<1x1x128xi1>
    %160 = vector.broadcast %159 : vector<1x1x128xi1> to vector<2x8x128xi1>
    %161 = arith.select %160, %17, %158 : vector<2x8x128xi1>, vector<2x8x128xbf16>
    %162 = arith.truncf %152 : vector<2x8x8xf32> to vector<2x8x8xbf16>
    "tpu.trace_start"() <{level = 10 : i32, message = "gnm,gmd->gnd"}> : () -> ()
    %cst_59 = arith.constant dense<0.000000e+00> : vector<2x8x128xf32>
    %163 = tpu.matmul %162, %161, %cst_59 {dimension_numbers = #tpu.dot_dimension_numbers<[2], [1], [1], [2], [0, 0, 0, 1, 1, 2], [0], [0]>} : vector<2x8x8xbf16>, vector<2x8x128xbf16>, vector<2x8x128xf32> -> vector<2x8x128xf32>
    "tpu.trace_stop"() : () -> ()
    %164 = arith.addf %128, %163 : vector<2x8x128xf32>
    %cst_60 = arith.constant 0.000000e+00 : f32
    %165 = vector.broadcast %cst_60 : f32 to vector<2x8x128xf32>
    %166 = arith.cmpf ogt, %164, %165 : vector<2x8x128xf32>
    %167 = math.exp %164 : vector<2x8x128xf32>
    %cst_61 = arith.constant 1.000000e+00 : f32
    %168 = vector.broadcast %cst_61 : f32 to vector<2x8x128xf32>
    %169 = arith.subf %167, %168 : vector<2x8x128xf32>
    %170 = arith.select %166, %164, %169 : vector<2x8x128xi1>, vector<2x8x128xf32>
    %171 = arith.truncf %170 : vector<2x8x128xf32> to vector<2x8x128xbf16>
    %c0_62 = arith.constant 0 : index
    %c0_63 = arith.constant 0 : index
    %c0_64 = arith.constant 0 : index
    %c0_65 = arith.constant 0 : index
    %c0_66 = arith.constant 0 : index
    %172 = vector.load %arg7[%c0_62, %c0_63, %c0_64, %c0_65, %c0_66] : memref<1x1x2x8x128xbf16, #tpu.memory_space<vmem>>, vector<1x1x2x8x128xbf16>
    %173 = vector.shape_cast %172 : vector<1x1x2x8x128xbf16> to vector<2x8x128xbf16>
    %174 = vector.shape_cast %171 : vector<2x8x128xbf16> to vector<1x1x2x8x128xbf16>
    tpu.vector_store %arg7[%c0_62, %c0_63, %c0_64, %c0_65, %c0_66], %174 {strides = array<i32>} : memref<1x1x2x8x128xbf16, #tpu.memory_space<vmem>>, vector<1x1x2x8x128xbf16>,
    return
  }
  func.func @transform_0(%arg0: i32, %arg1: i32) -> (i32, i32, i32, i32, i32) {
    %c0_i32 = arith.constant 0 : i32
    %c0_i32_0 = arith.constant 0 : i32
    %c0_i32_1 = arith.constant 0 : i32
    %c0_i32_2 = arith.constant 0 : i32
    %c0_i32_3 = arith.constant 0 : i32
    return %arg0, %c0_i32, %c0_i32_0, %c0_i32_1, %c0_i32_2 : i32, i32, i32, i32, i32
  }
  func.func @transform_1(%arg0: i32, %arg1: i32) -> (i32, i32, i32, i32, i32) {
    %c0_i32 = arith.constant 0 : i32
    %c0_i32_0 = arith.constant 0 : i32
    %c0_i32_1 = arith.constant 0 : i32
    %c0_i32_2 = arith.constant 0 : i32
    return %arg0, %arg1, %c0_i32, %c0_i32_0, %c0_i32_1 : i32, i32, i32, i32, i32
  }
  func.func @transform_2(%arg0: i32, %arg1: i32) -> (i32, i32, i32) {
    %c0_i32 = arith.constant 0 : i32
    %c0_i32_0 = arith.constant 0 : i32
    %c0_i32_1 = arith.constant 0 : i32
    return %arg0, %c0_i32, %c0_i32_0 : i32, i32, i32
  }
  func.func @transform_3(%arg0: i32, %arg1: i32) -> (i32, i32, i32) {
    %c0_i32 = arith.constant 0 : i32
    %c0_i32_0 = arith.constant 0 : i32
    %c0_i32_1 = arith.constant 0 : i32
    return %arg0, %c0_i32, %c0_i32_0 : i32, i32, i32
  }
  func.func @transform_4(%arg0: i32, %arg1: i32) -> (i32, i32, i32) {
    %c0_i32 = arith.constant 0 : i32
    %c0_i32_0 = arith.constant 0 : i32
    %c0_i32_1 = arith.constant 0 : i32
    return %arg0, %c0_i32, %c0_i32_0 : i32, i32, i32
  }
  func.func @transform_5(%arg0: i32, %arg1: i32) -> (i32, i32, i32, i32, i32) {
    %c0_i32 = arith.constant 0 : i32
    %c0_i32_0 = arith.constant 0 : i32
    %c0_i32_1 = arith.constant 0 : i32
    %c0_i32_2 = arith.constant 0 : i32
    return %arg0, %arg1, %c0_i32, %c0_i32_0, %c0_i32_1 : i32, i32, i32, i32, i32
  }
}

module attributes {stable_mosaic.version = 11 : i64} {
  func.func @_gat_layer_kernel(%arg0: i32, %arg1: i32, %arg2: memref<1x1x2x8x128xbf16, #tpu.memory_space<vmem>>, %arg3: memref<1x1x2x8x8xbf16, #tpu.memory_space<vmem>>, %arg4: memref<1x128x128xbf16, #tpu.memory_space<vmem>>, %arg5: memref<1x1x128xf32, #tpu.memory_space<vmem>>, %arg6: memref<1x128x8xbf16, #tpu.memory_space<vmem>>, %arg7: memref<1x1x2x8x128xf32, #tpu.memory_space<vmem>>) attributes {dimension_semantics = [#tpu.dimension_semantics<parallel>, #tpu.dimension_semantics<parallel>], iteration_bounds = array<i64: 3, 2>, scalar_prefetch = 0 : i64, scratch_operands = 0 : i64, tpu.core_type = #tpu.core_type<tc>, window_params = [{transform_indices = @transform_0, window_bounds = array<i64: 1, 1, 2, 8, 128>}, {transform_indices = @transform_1, window_bounds = array<i64: 1, 1, 2, 8, 8>}, {transform_indices = @transform_2, window_bounds = array<i64: 1, 128, 128>}, {transform_indices = @transform_3, window_bounds = array<i64: 1, 1, 128>}, {transform_indices = @transform_4, window_bounds = array<i64: 1, 128, 8>}, {transform_indices = @transform_5, window_bounds = array<i64: 1, 1, 2, 8, 128>}]} {
    %c0 = arith.constant 0 : index
    %c0_0 = arith.constant 0 : index
    %c0_1 = arith.constant 0 : index
    %c0_2 = arith.constant 0 : index
    %c0_3 = arith.constant 0 : index
    %0 = vector.load %arg2[%c0, %c0_0, %c0_1, %c0_2, %c0_3] : memref<1x1x2x8x128xbf16, #tpu.memory_space<vmem>>, vector<1x1x2x8x128xbf16>
    %1 = vector.shape_cast %0 : vector<1x1x2x8x128xbf16> to vector<2x8x128xbf16>
    %c0_4 = arith.constant 0 : index
    %c0_5 = arith.constant 0 : index
    %c0_6 = arith.constant 0 : index
    %c0_7 = arith.constant 0 : index
    %c0_8 = arith.constant 0 : index
    %2 = vector.load %arg3[%c0_4, %c0_5, %c0_6, %c0_7, %c0_8] : memref<1x1x2x8x8xbf16, #tpu.memory_space<vmem>>, vector<1x1x2x8x8xbf16>
    %3 = vector.shape_cast %2 : vector<1x1x2x8x8xbf16> to vector<2x8x8xbf16>
    %4 = vector.shape_cast %1 : vector<2x8x128xbf16> to vector<16x128xbf16>
    %c0_9 = arith.constant 0 : index
    %c0_10 = arith.constant 0 : index
    %c0_11 = arith.constant 0 : index
    %5 = vector.load %arg4[%c0_9, %c0_10, %c0_11] : memref<1x128x128xbf16, #tpu.memory_space<vmem>>, vector<1x128x128xbf16>
    %6 = vector.shape_cast %5 : vector<1x128x128xbf16> to vector<128x128xbf16>
    %cst = arith.constant dense<0.000000e+00> : vector<16x128xf32>
    %7 = tpu.matmul %4, %6, %cst {dimension_numbers = #tpu.dot_dimension_numbers<[1], [0], [0], [1], [0, 0, 1, 1], [], []>} : vector<16x128xbf16>, vector<128x128xbf16>, vector<16x128xf32> -> vector<16x128xf32>
    %c0_12 = arith.constant 0 : index
    %c0_13 = arith.constant 0 : index
    %c0_14 = arith.constant 0 : index
    %8 = vector.load %arg5[%c0_12, %c0_13, %c0_14] : memref<1x1x128xf32, #tpu.memory_space<vmem>>, vector<1x1x128xf32>
    %9 = vector.shape_cast %8 : vector<1x1x128xf32> to vector<1x128xf32>
    %10 = vector.broadcast %9 : vector<1x128xf32> to vector<16x128xf32>
    %11 = arith.addf %7, %10 : vector<16x128xf32>
    %12 = arith.truncf %11 : vector<16x128xf32> to vector<16x128xbf16>
    %c0_15 = arith.constant 0 : index
    %c0_16 = arith.constant 0 : index
    %c0_17 = arith.constant 0 : index
    %13 = vector.load %arg6[%c0_15, %c0_16, %c0_17] : memref<1x128x8xbf16, #tpu.memory_space<vmem>>, vector<1x128x8xbf16>
    %14 = vector.shape_cast %13 : vector<1x128x8xbf16> to vector<128x8xbf16>
    %cst_18 = arith.constant dense<0.000000e+00> : vector<16x8xf32>
    %15 = tpu.matmul %12, %14, %cst_18 {dimension_numbers = #tpu.dot_dimension_numbers<[1], [0], [0], [1], [0, 0, 1, 1], [], []>} : vector<16x128xbf16>, vector<128x8xbf16>, vector<16x8xf32> -> vector<16x8xf32>
    %16 = vector.shape_cast %15 : vector<16x8xf32> to vector<2x8x8xf32>
    %17 = vector.shape_cast %12 : vector<16x128xbf16> to vector<2x8x128xbf16>
    %cst_19 = arith.constant 1.000000e+00 : f32
    %18 = vector.broadcast %cst_19 : f32 to vector<2x8x1xf32>
    %19 = tpu.iota {dimensions = array<i32: 2>} : vector<1x1x128xi32>
    %cst_20 = arith.constant 0.000000e+00 : f32
    %20 = vector.broadcast %cst_20 : f32 to vector<2x8x128xf32>
    %21 = vector.extract_strided_slice %16 {offsets = [0, 0, 0], sizes = [2, 8, 1], strides = [1, 1, 1]} : vector<2x8x8xf32> to vector<2x8x1xf32>
    %22 = vector.extract_strided_slice %16 {offsets = [0, 0, 4], sizes = [2, 8, 1], strides = [1, 1, 1]} : vector<2x8x8xf32> to vector<2x8x1xf32>
    "tpu.trace_start"() <{level = 10 : i32, message = "gik,gjk->gij"}> : () -> ()
    %cst_21 = arith.constant dense<0.000000e+00> : vector<2x8x8xf32>
    %23 = tpu.matmul %18, %22, %cst_21 {dimension_numbers = #tpu.dot_dimension_numbers<[2], [2], [1], [1], [0, 0, 0, 1, 1, 1], [0], [0]>} : vector<2x8x1xf32>, vector<2x8x1xf32>, vector<2x8x8xf32> -> vector<2x8x8xf32>
    "tpu.trace_stop"() : () -> ()
    %24 = vector.broadcast %21 : vector<2x8x1xf32> to vector<2x8x8xf32>
    %25 = arith.addf %24, %23 : vector<2x8x8xf32>
    %cst_22 = arith.constant 0.000000e+00 : f32
    %26 = vector.broadcast %cst_22 : f32 to vector<2x8x8xf32>
    %27 = arith.cmpf ogt, %25, %26 : vector<2x8x8xf32>
    %cst_23 = arith.constant 2.000000e-01 : f32
    %28 = vector.broadcast %cst_23 : f32 to vector<2x8x8xf32>
    %29 = arith.mulf %28, %25 : vector<2x8x8xf32>
    %30 = arith.select %27, %25, %29 : vector<2x8x8xi1>, vector<2x8x8xf32>
    %cst_24 = arith.constant 0.000000e+00 : bf16
    %31 = vector.broadcast %cst_24 : bf16 to vector<2x8x8xbf16>
    %32 = arith.cmpf ogt, %3, %31 : vector<2x8x8xbf16>
    %cst_25 = arith.constant -1.000000e+09 : f32
    %33 = vector.broadcast %cst_25 : f32 to vector<2x8x8xf32>
    %34 = arith.select %32, %30, %33 : vector<2x8x8xi1>, vector<2x8x8xf32>
    %cst_26 = arith.constant dense<0xFF800000> : vector<2x8xf32>
    %35 = vector.multi_reduction <maximumf>, %34, %cst_26 [2] : vector<2x8x8xf32> to vector<2x8xf32>
    %36 = vector.shape_cast %35 : vector<2x8xf32> to vector<2x8x1xf32>
    %37 = vector.broadcast %36 : vector<2x8x1xf32> to vector<2x8x8xf32>
    %38 = arith.subf %34, %37 : vector<2x8x8xf32>
    %39 = math.exp %38 : vector<2x8x8xf32>
    %cst_27 = arith.constant dense<0.000000e+00> : vector<2x8xf32>
    %40 = vector.multi_reduction <add>, %39, %cst_27 [2] : vector<2x8x8xf32> to vector<2x8xf32>
    %41 = vector.shape_cast %40 : vector<2x8xf32> to vector<2x8x1xf32>
    %42 = tpu.reciprocal %41 {approx = true} : vector<2x8x1xf32> -> vector<2x8x1xf32>
    %43 = vector.broadcast %42 : vector<2x8x1xf32> to vector<2x8x8xf32>
    %44 = arith.mulf %39, %43 : vector<2x8x8xf32>
    %c0_i32 = arith.constant 0 : i32
    %45 = vector.broadcast %c0_i32 : i32 to vector<1x1x128xi32>
    %46 = arith.cmpi sge, %19, %45 : vector<1x1x128xi32>
    %c32_i32 = arith.constant 32 : i32
    %47 = vector.broadcast %c32_i32 : i32 to vector<1x1x128xi32>
    %48 = arith.cmpi slt, %19, %47 : vector<1x1x128xi32>
    %49 = arith.andi %46, %48 : vector<1x1x128xi1>
    %cst_28 = arith.constant 0.000000e+00 : bf16
    %50 = vector.broadcast %cst_28 : bf16 to vector<2x8x128xbf16>
    %51 = vector.shape_cast %49 : vector<1x1x128xi1> to vector<1x1x128xi1>
    %52 = vector.broadcast %51 : vector<1x1x128xi1> to vector<2x8x128xi1>
    %53 = arith.select %52, %17, %50 : vector<2x8x128xi1>, vector<2x8x128xbf16>
    %54 = arith.truncf %44 : vector<2x8x8xf32> to vector<2x8x8xbf16>
    "tpu.trace_start"() <{level = 10 : i32, message = "gnm,gmd->gnd"}> : () -> ()
    %cst_29 = arith.constant dense<0.000000e+00> : vector<2x8x128xf32>
    %55 = tpu.matmul %54, %53, %cst_29 {dimension_numbers = #tpu.dot_dimension_numbers<[2], [1], [1], [2], [0, 0, 0, 1, 1, 2], [0], [0]>} : vector<2x8x8xbf16>, vector<2x8x128xbf16>, vector<2x8x128xf32> -> vector<2x8x128xf32>
    "tpu.trace_stop"() : () -> ()
    %56 = arith.addf %20, %55 : vector<2x8x128xf32>
    %57 = vector.extract_strided_slice %16 {offsets = [0, 0, 1], sizes = [2, 8, 1], strides = [1, 1, 1]} : vector<2x8x8xf32> to vector<2x8x1xf32>
    %58 = vector.extract_strided_slice %16 {offsets = [0, 0, 5], sizes = [2, 8, 1], strides = [1, 1, 1]} : vector<2x8x8xf32> to vector<2x8x1xf32>
    "tpu.trace_start"() <{level = 10 : i32, message = "gik,gjk->gij"}> : () -> ()
    %cst_30 = arith.constant dense<0.000000e+00> : vector<2x8x8xf32>
    %59 = tpu.matmul %18, %58, %cst_30 {dimension_numbers = #tpu.dot_dimension_numbers<[2], [2], [1], [1], [0, 0, 0, 1, 1, 1], [0], [0]>} : vector<2x8x1xf32>, vector<2x8x1xf32>, vector<2x8x8xf32> -> vector<2x8x8xf32>
    "tpu.trace_stop"() : () -> ()
    %60 = vector.broadcast %57 : vector<2x8x1xf32> to vector<2x8x8xf32>
    %61 = arith.addf %60, %59 : vector<2x8x8xf32>
    %cst_31 = arith.constant 0.000000e+00 : f32
    %62 = vector.broadcast %cst_31 : f32 to vector<2x8x8xf32>
    %63 = arith.cmpf ogt, %61, %62 : vector<2x8x8xf32>
    %cst_32 = arith.constant 2.000000e-01 : f32
    %64 = vector.broadcast %cst_32 : f32 to vector<2x8x8xf32>
    %65 = arith.mulf %64, %61 : vector<2x8x8xf32>
    %66 = arith.select %63, %61, %65 : vector<2x8x8xi1>, vector<2x8x8xf32>
    %cst_33 = arith.constant 0.000000e+00 : bf16
    %67 = vector.broadcast %cst_33 : bf16 to vector<2x8x8xbf16>
    %68 = arith.cmpf ogt, %3, %67 : vector<2x8x8xbf16>
    %cst_34 = arith.constant -1.000000e+09 : f32
    %69 = vector.broadcast %cst_34 : f32 to vector<2x8x8xf32>
    %70 = arith.select %68, %66, %69 : vector<2x8x8xi1>, vector<2x8x8xf32>
    %cst_35 = arith.constant dense<0xFF800000> : vector<2x8xf32>
    %71 = vector.multi_reduction <maximumf>, %70, %cst_35 [2] : vector<2x8x8xf32> to vector<2x8xf32>
    %72 = vector.shape_cast %71 : vector<2x8xf32> to vector<2x8x1xf32>
    %73 = vector.broadcast %72 : vector<2x8x1xf32> to vector<2x8x8xf32>
    %74 = arith.subf %70, %73 : vector<2x8x8xf32>
    %75 = math.exp %74 : vector<2x8x8xf32>
    %cst_36 = arith.constant dense<0.000000e+00> : vector<2x8xf32>
    %76 = vector.multi_reduction <add>, %75, %cst_36 [2] : vector<2x8x8xf32> to vector<2x8xf32>
    %77 = vector.shape_cast %76 : vector<2x8xf32> to vector<2x8x1xf32>
    %78 = tpu.reciprocal %77 {approx = true} : vector<2x8x1xf32> -> vector<2x8x1xf32>
    %79 = vector.broadcast %78 : vector<2x8x1xf32> to vector<2x8x8xf32>
    %80 = arith.mulf %75, %79 : vector<2x8x8xf32>
    %c32_i32_37 = arith.constant 32 : i32
    %81 = vector.broadcast %c32_i32_37 : i32 to vector<1x1x128xi32>
    %82 = arith.cmpi sge, %19, %81 : vector<1x1x128xi32>
    %c64_i32 = arith.constant 64 : i32
    %83 = vector.broadcast %c64_i32 : i32 to vector<1x1x128xi32>
    %84 = arith.cmpi slt, %19, %83 : vector<1x1x128xi32>
    %85 = arith.andi %82, %84 : vector<1x1x128xi1>
    %cst_38 = arith.constant 0.000000e+00 : bf16
    %86 = vector.broadcast %cst_38 : bf16 to vector<2x8x128xbf16>
    %87 = vector.shape_cast %85 : vector<1x1x128xi1> to vector<1x1x128xi1>
    %88 = vector.broadcast %87 : vector<1x1x128xi1> to vector<2x8x128xi1>
    %89 = arith.select %88, %17, %86 : vector<2x8x128xi1>, vector<2x8x128xbf16>
    %90 = arith.truncf %80 : vector<2x8x8xf32> to vector<2x8x8xbf16>
    "tpu.trace_start"() <{level = 10 : i32, message = "gnm,gmd->gnd"}> : () -> ()
    %cst_39 = arith.constant dense<0.000000e+00> : vector<2x8x128xf32>
    %91 = tpu.matmul %90, %89, %cst_39 {dimension_numbers = #tpu.dot_dimension_numbers<[2], [1], [1], [2], [0, 0, 0, 1, 1, 2], [0], [0]>} : vector<2x8x8xbf16>, vector<2x8x128xbf16>, vector<2x8x128xf32> -> vector<2x8x128xf32>
    "tpu.trace_stop"() : () -> ()
    %92 = arith.addf %56, %91 : vector<2x8x128xf32>
    %93 = vector.extract_strided_slice %16 {offsets = [0, 0, 2], sizes = [2, 8, 1], strides = [1, 1, 1]} : vector<2x8x8xf32> to vector<2x8x1xf32>
    %94 = vector.extract_strided_slice %16 {offsets = [0, 0, 6], sizes = [2, 8, 1], strides = [1, 1, 1]} : vector<2x8x8xf32> to vector<2x8x1xf32>
    "tpu.trace_start"() <{level = 10 : i32, message = "gik,gjk->gij"}> : () -> ()
    %cst_40 = arith.constant dense<0.000000e+00> : vector<2x8x8xf32>
    %95 = tpu.matmul %18, %94, %cst_40 {dimension_numbers = #tpu.dot_dimension_numbers<[2], [2], [1], [1], [0, 0, 0, 1, 1, 1], [0], [0]>} : vector<2x8x1xf32>, vector<2x8x1xf32>, vector<2x8x8xf32> -> vector<2x8x8xf32>
    "tpu.trace_stop"() : () -> ()
    %96 = vector.broadcast %93 : vector<2x8x1xf32> to vector<2x8x8xf32>
    %97 = arith.addf %96, %95 : vector<2x8x8xf32>
    %cst_41 = arith.constant 0.000000e+00 : f32
    %98 = vector.broadcast %cst_41 : f32 to vector<2x8x8xf32>
    %99 = arith.cmpf ogt, %97, %98 : vector<2x8x8xf32>
    %cst_42 = arith.constant 2.000000e-01 : f32
    %100 = vector.broadcast %cst_42 : f32 to vector<2x8x8xf32>
    %101 = arith.mulf %100, %97 : vector<2x8x8xf32>
    %102 = arith.select %99, %97, %101 : vector<2x8x8xi1>, vector<2x8x8xf32>
    %cst_43 = arith.constant 0.000000e+00 : bf16
    %103 = vector.broadcast %cst_43 : bf16 to vector<2x8x8xbf16>
    %104 = arith.cmpf ogt, %3, %103 : vector<2x8x8xbf16>
    %cst_44 = arith.constant -1.000000e+09 : f32
    %105 = vector.broadcast %cst_44 : f32 to vector<2x8x8xf32>
    %106 = arith.select %104, %102, %105 : vector<2x8x8xi1>, vector<2x8x8xf32>
    %cst_45 = arith.constant dense<0xFF800000> : vector<2x8xf32>
    %107 = vector.multi_reduction <maximumf>, %106, %cst_45 [2] : vector<2x8x8xf32> to vector<2x8xf32>
    %108 = vector.shape_cast %107 : vector<2x8xf32> to vector<2x8x1xf32>
    %109 = vector.broadcast %108 : vector<2x8x1xf32> to vector<2x8x8xf32>
    %110 = arith.subf %106, %109 : vector<2x8x8xf32>
    %111 = math.exp %110 : vector<2x8x8xf32>
    %cst_46 = arith.constant dense<0.000000e+00> : vector<2x8xf32>
    %112 = vector.multi_reduction <add>, %111, %cst_46 [2] : vector<2x8x8xf32> to vector<2x8xf32>
    %113 = vector.shape_cast %112 : vector<2x8xf32> to vector<2x8x1xf32>
    %114 = tpu.reciprocal %113 {approx = true} : vector<2x8x1xf32> -> vector<2x8x1xf32>
    %115 = vector.broadcast %114 : vector<2x8x1xf32> to vector<2x8x8xf32>
    %116 = arith.mulf %111, %115 : vector<2x8x8xf32>
    %c64_i32_47 = arith.constant 64 : i32
    %117 = vector.broadcast %c64_i32_47 : i32 to vector<1x1x128xi32>
    %118 = arith.cmpi sge, %19, %117 : vector<1x1x128xi32>
    %c96_i32 = arith.constant 96 : i32
    %119 = vector.broadcast %c96_i32 : i32 to vector<1x1x128xi32>
    %120 = arith.cmpi slt, %19, %119 : vector<1x1x128xi32>
    %121 = arith.andi %118, %120 : vector<1x1x128xi1>
    %cst_48 = arith.constant 0.000000e+00 : bf16
    %122 = vector.broadcast %cst_48 : bf16 to vector<2x8x128xbf16>
    %123 = vector.shape_cast %121 : vector<1x1x128xi1> to vector<1x1x128xi1>
    %124 = vector.broadcast %123 : vector<1x1x128xi1> to vector<2x8x128xi1>
    %125 = arith.select %124, %17, %122 : vector<2x8x128xi1>, vector<2x8x128xbf16>
    %126 = arith.truncf %116 : vector<2x8x8xf32> to vector<2x8x8xbf16>
    "tpu.trace_start"() <{level = 10 : i32, message = "gnm,gmd->gnd"}> : () -> ()
    %cst_49 = arith.constant dense<0.000000e+00> : vector<2x8x128xf32>
    %127 = tpu.matmul %126, %125, %cst_49 {dimension_numbers = #tpu.dot_dimension_numbers<[2], [1], [1], [2], [0, 0, 0, 1, 1, 2], [0], [0]>} : vector<2x8x8xbf16>, vector<2x8x128xbf16>, vector<2x8x128xf32> -> vector<2x8x128xf32>
    "tpu.trace_stop"() : () -> ()
    %128 = arith.addf %92, %127 : vector<2x8x128xf32>
    %129 = vector.extract_strided_slice %16 {offsets = [0, 0, 3], sizes = [2, 8, 1], strides = [1, 1, 1]} : vector<2x8x8xf32> to vector<2x8x1xf32>
    %130 = vector.extract_strided_slice %16 {offsets = [0, 0, 7], sizes = [2, 8, 1], strides = [1, 1, 1]} : vector<2x8x8xf32> to vector<2x8x1xf32>
    "tpu.trace_start"() <{level = 10 : i32, message = "gik,gjk->gij"}> : () -> ()
    %cst_50 = arith.constant dense<0.000000e+00> : vector<2x8x8xf32>
    %131 = tpu.matmul %18, %130, %cst_50 {dimension_numbers = #tpu.dot_dimension_numbers<[2], [2], [1], [1], [0, 0, 0, 1, 1, 1], [0], [0]>} : vector<2x8x1xf32>, vector<2x8x1xf32>, vector<2x8x8xf32> -> vector<2x8x8xf32>
    "tpu.trace_stop"() : () -> ()
    %132 = vector.broadcast %129 : vector<2x8x1xf32> to vector<2x8x8xf32>
    %133 = arith.addf %132, %131 : vector<2x8x8xf32>
    %cst_51 = arith.constant 0.000000e+00 : f32
    %134 = vector.broadcast %cst_51 : f32 to vector<2x8x8xf32>
    %135 = arith.cmpf ogt, %133, %134 : vector<2x8x8xf32>
    %cst_52 = arith.constant 2.000000e-01 : f32
    %136 = vector.broadcast %cst_52 : f32 to vector<2x8x8xf32>
    %137 = arith.mulf %136, %133 : vector<2x8x8xf32>
    %138 = arith.select %135, %133, %137 : vector<2x8x8xi1>, vector<2x8x8xf32>
    %cst_53 = arith.constant 0.000000e+00 : bf16
    %139 = vector.broadcast %cst_53 : bf16 to vector<2x8x8xbf16>
    %140 = arith.cmpf ogt, %3, %139 : vector<2x8x8xbf16>
    %cst_54 = arith.constant -1.000000e+09 : f32
    %141 = vector.broadcast %cst_54 : f32 to vector<2x8x8xf32>
    %142 = arith.select %140, %138, %141 : vector<2x8x8xi1>, vector<2x8x8xf32>
    %cst_55 = arith.constant dense<0xFF800000> : vector<2x8xf32>
    %143 = vector.multi_reduction <maximumf>, %142, %cst_55 [2] : vector<2x8x8xf32> to vector<2x8xf32>
    %144 = vector.shape_cast %143 : vector<2x8xf32> to vector<2x8x1xf32>
    %145 = vector.broadcast %144 : vector<2x8x1xf32> to vector<2x8x8xf32>
    %146 = arith.subf %142, %145 : vector<2x8x8xf32>
    %147 = math.exp %146 : vector<2x8x8xf32>
    %cst_56 = arith.constant dense<0.000000e+00> : vector<2x8xf32>
    %148 = vector.multi_reduction <add>, %147, %cst_56 [2] : vector<2x8x8xf32> to vector<2x8xf32>
    %149 = vector.shape_cast %148 : vector<2x8xf32> to vector<2x8x1xf32>
    %150 = tpu.reciprocal %149 {approx = true} : vector<2x8x1xf32> -> vector<2x8x1xf32>
    %151 = vector.broadcast %150 : vector<2x8x1xf32> to vector<2x8x8xf32>
    %152 = arith.mulf %147, %151 : vector<2x8x8xf32>
    %c96_i32_57 = arith.constant 96 : i32
    %153 = vector.broadcast %c96_i32_57 : i32 to vector<1x1x128xi32>
    %154 = arith.cmpi sge, %19, %153 : vector<1x1x128xi32>
    %c128_i32 = arith.constant 128 : i32
    %155 = vector.broadcast %c128_i32 : i32 to vector<1x1x128xi32>
    %156 = arith.cmpi slt, %19, %155 : vector<1x1x128xi32>
    %157 = arith.andi %154, %156 : vector<1x1x128xi1>
    %cst_58 = arith.constant 0.000000e+00 : bf16
    %158 = vector.broadcast %cst_58 : bf16 to vector<2x8x128xbf16>
    %159 = vector.shape_cast %157 : vector<1x1x128xi1> to vector<1x1x128xi1>
    %160 = vector.broadcast %159 : vector<1x1x128xi1> to vector<2x8x128xi1>
    %161 = arith.select %160, %17, %158 : vector<2x8x128xi1>, vector<2x8x128xbf16>
    %162 = arith.truncf %152 : vector<2x8x8xf32> to vector<2x8x8xbf16>
    "tpu.trace_start"() <{level = 10 : i32, message = "gnm,gmd->gnd"}> : () -> ()
    %cst_59 = arith.constant dense<0.000000e+00> : vector<2x8x128xf32>
    %163 = tpu.matmul %162, %161, %cst_59 {dimension_numbers = #tpu.dot_dimension_numbers<[2], [1], [1], [2], [0, 0, 0, 1, 1, 2], [0], [0]>} : vector<2x8x8xbf16>, vector<2x8x128xbf16>, vector<2x8x128xf32> -> vector<2x8x128xf32>
    "tpu.trace_stop"() : () -> ()
    %164 = arith.addf %128, %163 : vector<2x8x128xf32>
    %c0_60 = arith.constant 0 : index
    %c0_61 = arith.constant 0 : index
    %c0_62 = arith.constant 0 : index
    %c0_63 = arith.constant 0 : index
    %c0_64 = arith.constant 0 : index
    %165 = vector.load %arg7[%c0_60, %c0_61, %c0_62, %c0_63, %c0_64] : memref<1x1x2x8x128xf32, #tpu.memory_space<vmem>>, vector<1x1x2x8x128xf32>
    %166 = vector.shape_cast %165 : vector<1x1x2x8x128xf32> to vector<2x8x128xf32>
    %167 = vector.shape_cast %164 : vector<2x8x128xf32> to vector<1x1x2x8x128xf32>
    tpu.vector_store %arg7[%c0_60, %c0_61, %c0_62, %c0_63, %c0_64], %167 {strides = array<i32>} : memref<1x1x2x8x128xf32, #tpu.memory_space<vmem>>, vector<1x1x2x8x128xf32>,
    return
  }
  func.func @transform_0(%arg0: i32, %arg1: i32) -> (i32, i32, i32, i32, i32) {
    %c0_i32 = arith.constant 0 : i32
    %c0_i32_0 = arith.constant 0 : i32
    %c0_i32_1 = arith.constant 0 : i32
    %c0_i32_2 = arith.constant 0 : i32
    return %arg0, %arg1, %c0_i32, %c0_i32_0, %c0_i32_1 : i32, i32, i32, i32, i32
  }
  func.func @transform_1(%arg0: i32, %arg1: i32) -> (i32, i32, i32, i32, i32) {
    %c0_i32 = arith.constant 0 : i32
    %c0_i32_0 = arith.constant 0 : i32
    %c0_i32_1 = arith.constant 0 : i32
    %c0_i32_2 = arith.constant 0 : i32
    return %arg0, %arg1, %c0_i32, %c0_i32_0, %c0_i32_1 : i32, i32, i32, i32, i32
  }
  func.func @transform_2(%arg0: i32, %arg1: i32) -> (i32, i32, i32) {
    %c0_i32 = arith.constant 0 : i32
    %c0_i32_0 = arith.constant 0 : i32
    %c0_i32_1 = arith.constant 0 : i32
    return %arg0, %c0_i32, %c0_i32_0 : i32, i32, i32
  }
  func.func @transform_3(%arg0: i32, %arg1: i32) -> (i32, i32, i32) {
    %c0_i32 = arith.constant 0 : i32
    %c0_i32_0 = arith.constant 0 : i32
    %c0_i32_1 = arith.constant 0 : i32
    return %arg0, %c0_i32, %c0_i32_0 : i32, i32, i32
  }
  func.func @transform_4(%arg0: i32, %arg1: i32) -> (i32, i32, i32) {
    %c0_i32 = arith.constant 0 : i32
    %c0_i32_0 = arith.constant 0 : i32
    %c0_i32_1 = arith.constant 0 : i32
    return %arg0, %c0_i32, %c0_i32_0 : i32, i32, i32
  }
  func.func @transform_5(%arg0: i32, %arg1: i32) -> (i32, i32, i32, i32, i32) {
    %c0_i32 = arith.constant 0 : i32
    %c0_i32_0 = arith.constant 0 : i32
    %c0_i32_1 = arith.constant 0 : i32
    %c0_i32_2 = arith.constant 0 : i32
    return %arg0, %arg1, %c0_i32, %c0_i32_0, %c0_i32_1 : i32, i32, i32, i32, i32
  }
}

module attributes {stable_mosaic.version = 11 : i64} {
  func.func @_gat_layer_kernel(%arg0: i32, %arg1: i32, %arg2: memref<1x1x2x24x128xbf16, #tpu.memory_space<vmem>>, %arg3: memref<1x1x2x24x24xbf16, #tpu.memory_space<vmem>>, %arg4: memref<1x128x128xbf16, #tpu.memory_space<vmem>>, %arg5: memref<1x1x128xf32, #tpu.memory_space<vmem>>, %arg6: memref<1x128x8xbf16, #tpu.memory_space<vmem>>, %arg7: memref<1x1x2x24x128xbf16, #tpu.memory_space<vmem>>) attributes {dimension_semantics = [#tpu.dimension_semantics<parallel>, #tpu.dimension_semantics<parallel>], iteration_bounds = array<i64: 1, 2>, scalar_prefetch = 0 : i64, scratch_operands = 0 : i64, tpu.core_type = #tpu.core_type<tc>, window_params = [{transform_indices = @transform_0, window_bounds = array<i64: 1, 1, 2, 24, 128>}, {transform_indices = @transform_1, window_bounds = array<i64: 1, 1, 2, 24, 24>}, {transform_indices = @transform_2, window_bounds = array<i64: 1, 128, 128>}, {transform_indices = @transform_3, window_bounds = array<i64: 1, 1, 128>}, {transform_indices = @transform_4, window_bounds = array<i64: 1, 128, 8>}, {transform_indices = @transform_5, window_bounds = array<i64: 1, 1, 2, 24, 128>}]} {
    %c0 = arith.constant 0 : index
    %c0_0 = arith.constant 0 : index
    %c0_1 = arith.constant 0 : index
    %c0_2 = arith.constant 0 : index
    %c0_3 = arith.constant 0 : index
    %0 = vector.load %arg2[%c0, %c0_0, %c0_1, %c0_2, %c0_3] : memref<1x1x2x24x128xbf16, #tpu.memory_space<vmem>>, vector<1x1x2x24x128xbf16>
    %1 = vector.shape_cast %0 : vector<1x1x2x24x128xbf16> to vector<2x24x128xbf16>
    %c0_4 = arith.constant 0 : index
    %c0_5 = arith.constant 0 : index
    %c0_6 = arith.constant 0 : index
    %c0_7 = arith.constant 0 : index
    %c0_8 = arith.constant 0 : index
    %2 = vector.load %arg3[%c0_4, %c0_5, %c0_6, %c0_7, %c0_8] : memref<1x1x2x24x24xbf16, #tpu.memory_space<vmem>>, vector<1x1x2x24x24xbf16>
    %3 = vector.shape_cast %2 : vector<1x1x2x24x24xbf16> to vector<2x24x24xbf16>
    %4 = vector.shape_cast %1 : vector<2x24x128xbf16> to vector<48x128xbf16>
    %c0_9 = arith.constant 0 : index
    %c0_10 = arith.constant 0 : index
    %c0_11 = arith.constant 0 : index
    %5 = vector.load %arg4[%c0_9, %c0_10, %c0_11] : memref<1x128x128xbf16, #tpu.memory_space<vmem>>, vector<1x128x128xbf16>
    %6 = vector.shape_cast %5 : vector<1x128x128xbf16> to vector<128x128xbf16>
    %cst = arith.constant dense<0.000000e+00> : vector<48x128xf32>
    %7 = tpu.matmul %4, %6, %cst {dimension_numbers = #tpu.dot_dimension_numbers<[1], [0], [0], [1], [0, 0, 1, 1], [], []>} : vector<48x128xbf16>, vector<128x128xbf16>, vector<48x128xf32> -> vector<48x128xf32>
    %c0_12 = arith.constant 0 : index
    %c0_13 = arith.constant 0 : index
    %c0_14 = arith.constant 0 : index
    %8 = vector.load %arg5[%c0_12, %c0_13, %c0_14] : memref<1x1x128xf32, #tpu.memory_space<vmem>>, vector<1x1x128xf32>
    %9 = vector.shape_cast %8 : vector<1x1x128xf32> to vector<1x128xf32>
    %10 = vector.broadcast %9 : vector<1x128xf32> to vector<48x128xf32>
    %11 = arith.addf %7, %10 : vector<48x128xf32>
    %12 = arith.truncf %11 : vector<48x128xf32> to vector<48x128xbf16>
    %c0_15 = arith.constant 0 : index
    %c0_16 = arith.constant 0 : index
    %c0_17 = arith.constant 0 : index
    %13 = vector.load %arg6[%c0_15, %c0_16, %c0_17] : memref<1x128x8xbf16, #tpu.memory_space<vmem>>, vector<1x128x8xbf16>
    %14 = vector.shape_cast %13 : vector<1x128x8xbf16> to vector<128x8xbf16>
    %cst_18 = arith.constant dense<0.000000e+00> : vector<48x8xf32>
    %15 = tpu.matmul %12, %14, %cst_18 {dimension_numbers = #tpu.dot_dimension_numbers<[1], [0], [0], [1], [0, 0, 1, 1], [], []>} : vector<48x128xbf16>, vector<128x8xbf16>, vector<48x8xf32> -> vector<48x8xf32>
    %16 = vector.shape_cast %15 : vector<48x8xf32> to vector<2x24x8xf32>
    %17 = vector.shape_cast %12 : vector<48x128xbf16> to vector<2x24x128xbf16>
    %cst_19 = arith.constant 1.000000e+00 : f32
    %18 = vector.broadcast %cst_19 : f32 to vector<2x24x1xf32>
    %19 = tpu.iota {dimensions = array<i32: 2>} : vector<1x1x128xi32>
    %cst_20 = arith.constant 0.000000e+00 : f32
    %20 = vector.broadcast %cst_20 : f32 to vector<2x24x128xf32>
    %21 = vector.extract_strided_slice %16 {offsets = [0, 0, 0], sizes = [2, 24, 1], strides = [1, 1, 1]} : vector<2x24x8xf32> to vector<2x24x1xf32>
    %22 = vector.extract_strided_slice %16 {offsets = [0, 0, 4], sizes = [2, 24, 1], strides = [1, 1, 1]} : vector<2x24x8xf32> to vector<2x24x1xf32>
    "tpu.trace_start"() <{level = 10 : i32, message = "gik,gjk->gij"}> : () -> ()
    %cst_21 = arith.constant dense<0.000000e+00> : vector<2x24x24xf32>
    %23 = tpu.matmul %18, %22, %cst_21 {dimension_numbers = #tpu.dot_dimension_numbers<[2], [2], [1], [1], [0, 0, 0, 1, 1, 1], [0], [0]>} : vector<2x24x1xf32>, vector<2x24x1xf32>, vector<2x24x24xf32> -> vector<2x24x24xf32>
    "tpu.trace_stop"() : () -> ()
    %24 = vector.broadcast %21 : vector<2x24x1xf32> to vector<2x24x24xf32>
    %25 = arith.addf %24, %23 : vector<2x24x24xf32>
    %cst_22 = arith.constant 0.000000e+00 : f32
    %26 = vector.broadcast %cst_22 : f32 to vector<2x24x24xf32>
    %27 = arith.cmpf ogt, %25, %26 : vector<2x24x24xf32>
    %cst_23 = arith.constant 2.000000e-01 : f32
    %28 = vector.broadcast %cst_23 : f32 to vector<2x24x24xf32>
    %29 = arith.mulf %28, %25 : vector<2x24x24xf32>
    %30 = arith.select %27, %25, %29 : vector<2x24x24xi1>, vector<2x24x24xf32>
    %cst_24 = arith.constant 0.000000e+00 : bf16
    %31 = vector.broadcast %cst_24 : bf16 to vector<2x24x24xbf16>
    %32 = arith.cmpf ogt, %3, %31 : vector<2x24x24xbf16>
    %cst_25 = arith.constant -1.000000e+09 : f32
    %33 = vector.broadcast %cst_25 : f32 to vector<2x24x24xf32>
    %34 = arith.select %32, %30, %33 : vector<2x24x24xi1>, vector<2x24x24xf32>
    %cst_26 = arith.constant dense<0xFF800000> : vector<2x24xf32>
    %35 = vector.multi_reduction <maximumf>, %34, %cst_26 [2] : vector<2x24x24xf32> to vector<2x24xf32>
    %36 = vector.shape_cast %35 : vector<2x24xf32> to vector<2x24x1xf32>
    %37 = vector.broadcast %36 : vector<2x24x1xf32> to vector<2x24x24xf32>
    %38 = arith.subf %34, %37 : vector<2x24x24xf32>
    %39 = math.exp %38 : vector<2x24x24xf32>
    %cst_27 = arith.constant dense<0.000000e+00> : vector<2x24xf32>
    %40 = vector.multi_reduction <add>, %39, %cst_27 [2] : vector<2x24x24xf32> to vector<2x24xf32>
    %41 = vector.shape_cast %40 : vector<2x24xf32> to vector<2x24x1xf32>
    %42 = tpu.reciprocal %41 {approx = true} : vector<2x24x1xf32> -> vector<2x24x1xf32>
    %43 = vector.broadcast %42 : vector<2x24x1xf32> to vector<2x24x24xf32>
    %44 = arith.mulf %39, %43 : vector<2x24x24xf32>
    %c0_i32 = arith.constant 0 : i32
    %45 = vector.broadcast %c0_i32 : i32 to vector<1x1x128xi32>
    %46 = arith.cmpi sge, %19, %45 : vector<1x1x128xi32>
    %c32_i32 = arith.constant 32 : i32
    %47 = vector.broadcast %c32_i32 : i32 to vector<1x1x128xi32>
    %48 = arith.cmpi slt, %19, %47 : vector<1x1x128xi32>
    %49 = arith.andi %46, %48 : vector<1x1x128xi1>
    %cst_28 = arith.constant 0.000000e+00 : bf16
    %50 = vector.broadcast %cst_28 : bf16 to vector<2x24x128xbf16>
    %51 = vector.shape_cast %49 : vector<1x1x128xi1> to vector<1x1x128xi1>
    %52 = vector.broadcast %51 : vector<1x1x128xi1> to vector<2x24x128xi1>
    %53 = arith.select %52, %17, %50 : vector<2x24x128xi1>, vector<2x24x128xbf16>
    %54 = arith.truncf %44 : vector<2x24x24xf32> to vector<2x24x24xbf16>
    "tpu.trace_start"() <{level = 10 : i32, message = "gnm,gmd->gnd"}> : () -> ()
    %cst_29 = arith.constant dense<0.000000e+00> : vector<2x24x128xf32>
    %55 = tpu.matmul %54, %53, %cst_29 {dimension_numbers = #tpu.dot_dimension_numbers<[2], [1], [1], [2], [0, 0, 0, 1, 1, 2], [0], [0]>} : vector<2x24x24xbf16>, vector<2x24x128xbf16>, vector<2x24x128xf32> -> vector<2x24x128xf32>
    "tpu.trace_stop"() : () -> ()
    %56 = arith.addf %20, %55 : vector<2x24x128xf32>
    %57 = vector.extract_strided_slice %16 {offsets = [0, 0, 1], sizes = [2, 24, 1], strides = [1, 1, 1]} : vector<2x24x8xf32> to vector<2x24x1xf32>
    %58 = vector.extract_strided_slice %16 {offsets = [0, 0, 5], sizes = [2, 24, 1], strides = [1, 1, 1]} : vector<2x24x8xf32> to vector<2x24x1xf32>
    "tpu.trace_start"() <{level = 10 : i32, message = "gik,gjk->gij"}> : () -> ()
    %cst_30 = arith.constant dense<0.000000e+00> : vector<2x24x24xf32>
    %59 = tpu.matmul %18, %58, %cst_30 {dimension_numbers = #tpu.dot_dimension_numbers<[2], [2], [1], [1], [0, 0, 0, 1, 1, 1], [0], [0]>} : vector<2x24x1xf32>, vector<2x24x1xf32>, vector<2x24x24xf32> -> vector<2x24x24xf32>
    "tpu.trace_stop"() : () -> ()
    %60 = vector.broadcast %57 : vector<2x24x1xf32> to vector<2x24x24xf32>
    %61 = arith.addf %60, %59 : vector<2x24x24xf32>
    %cst_31 = arith.constant 0.000000e+00 : f32
    %62 = vector.broadcast %cst_31 : f32 to vector<2x24x24xf32>
    %63 = arith.cmpf ogt, %61, %62 : vector<2x24x24xf32>
    %cst_32 = arith.constant 2.000000e-01 : f32
    %64 = vector.broadcast %cst_32 : f32 to vector<2x24x24xf32>
    %65 = arith.mulf %64, %61 : vector<2x24x24xf32>
    %66 = arith.select %63, %61, %65 : vector<2x24x24xi1>, vector<2x24x24xf32>
    %cst_33 = arith.constant 0.000000e+00 : bf16
    %67 = vector.broadcast %cst_33 : bf16 to vector<2x24x24xbf16>
    %68 = arith.cmpf ogt, %3, %67 : vector<2x24x24xbf16>
    %cst_34 = arith.constant -1.000000e+09 : f32
    %69 = vector.broadcast %cst_34 : f32 to vector<2x24x24xf32>
    %70 = arith.select %68, %66, %69 : vector<2x24x24xi1>, vector<2x24x24xf32>
    %cst_35 = arith.constant dense<0xFF800000> : vector<2x24xf32>
    %71 = vector.multi_reduction <maximumf>, %70, %cst_35 [2] : vector<2x24x24xf32> to vector<2x24xf32>
    %72 = vector.shape_cast %71 : vector<2x24xf32> to vector<2x24x1xf32>
    %73 = vector.broadcast %72 : vector<2x24x1xf32> to vector<2x24x24xf32>
    %74 = arith.subf %70, %73 : vector<2x24x24xf32>
    %75 = math.exp %74 : vector<2x24x24xf32>
    %cst_36 = arith.constant dense<0.000000e+00> : vector<2x24xf32>
    %76 = vector.multi_reduction <add>, %75, %cst_36 [2] : vector<2x24x24xf32> to vector<2x24xf32>
    %77 = vector.shape_cast %76 : vector<2x24xf32> to vector<2x24x1xf32>
    %78 = tpu.reciprocal %77 {approx = true} : vector<2x24x1xf32> -> vector<2x24x1xf32>
    %79 = vector.broadcast %78 : vector<2x24x1xf32> to vector<2x24x24xf32>
    %80 = arith.mulf %75, %79 : vector<2x24x24xf32>
    %c32_i32_37 = arith.constant 32 : i32
    %81 = vector.broadcast %c32_i32_37 : i32 to vector<1x1x128xi32>
    %82 = arith.cmpi sge, %19, %81 : vector<1x1x128xi32>
    %c64_i32 = arith.constant 64 : i32
    %83 = vector.broadcast %c64_i32 : i32 to vector<1x1x128xi32>
    %84 = arith.cmpi slt, %19, %83 : vector<1x1x128xi32>
    %85 = arith.andi %82, %84 : vector<1x1x128xi1>
    %cst_38 = arith.constant 0.000000e+00 : bf16
    %86 = vector.broadcast %cst_38 : bf16 to vector<2x24x128xbf16>
    %87 = vector.shape_cast %85 : vector<1x1x128xi1> to vector<1x1x128xi1>
    %88 = vector.broadcast %87 : vector<1x1x128xi1> to vector<2x24x128xi1>
    %89 = arith.select %88, %17, %86 : vector<2x24x128xi1>, vector<2x24x128xbf16>
    %90 = arith.truncf %80 : vector<2x24x24xf32> to vector<2x24x24xbf16>
    "tpu.trace_start"() <{level = 10 : i32, message = "gnm,gmd->gnd"}> : () -> ()
    %cst_39 = arith.constant dense<0.000000e+00> : vector<2x24x128xf32>
    %91 = tpu.matmul %90, %89, %cst_39 {dimension_numbers = #tpu.dot_dimension_numbers<[2], [1], [1], [2], [0, 0, 0, 1, 1, 2], [0], [0]>} : vector<2x24x24xbf16>, vector<2x24x128xbf16>, vector<2x24x128xf32> -> vector<2x24x128xf32>
    "tpu.trace_stop"() : () -> ()
    %92 = arith.addf %56, %91 : vector<2x24x128xf32>
    %93 = vector.extract_strided_slice %16 {offsets = [0, 0, 2], sizes = [2, 24, 1], strides = [1, 1, 1]} : vector<2x24x8xf32> to vector<2x24x1xf32>
    %94 = vector.extract_strided_slice %16 {offsets = [0, 0, 6], sizes = [2, 24, 1], strides = [1, 1, 1]} : vector<2x24x8xf32> to vector<2x24x1xf32>
    "tpu.trace_start"() <{level = 10 : i32, message = "gik,gjk->gij"}> : () -> ()
    %cst_40 = arith.constant dense<0.000000e+00> : vector<2x24x24xf32>
    %95 = tpu.matmul %18, %94, %cst_40 {dimension_numbers = #tpu.dot_dimension_numbers<[2], [2], [1], [1], [0, 0, 0, 1, 1, 1], [0], [0]>} : vector<2x24x1xf32>, vector<2x24x1xf32>, vector<2x24x24xf32> -> vector<2x24x24xf32>
    "tpu.trace_stop"() : () -> ()
    %96 = vector.broadcast %93 : vector<2x24x1xf32> to vector<2x24x24xf32>
    %97 = arith.addf %96, %95 : vector<2x24x24xf32>
    %cst_41 = arith.constant 0.000000e+00 : f32
    %98 = vector.broadcast %cst_41 : f32 to vector<2x24x24xf32>
    %99 = arith.cmpf ogt, %97, %98 : vector<2x24x24xf32>
    %cst_42 = arith.constant 2.000000e-01 : f32
    %100 = vector.broadcast %cst_42 : f32 to vector<2x24x24xf32>
    %101 = arith.mulf %100, %97 : vector<2x24x24xf32>
    %102 = arith.select %99, %97, %101 : vector<2x24x24xi1>, vector<2x24x24xf32>
    %cst_43 = arith.constant 0.000000e+00 : bf16
    %103 = vector.broadcast %cst_43 : bf16 to vector<2x24x24xbf16>
    %104 = arith.cmpf ogt, %3, %103 : vector<2x24x24xbf16>
    %cst_44 = arith.constant -1.000000e+09 : f32
    %105 = vector.broadcast %cst_44 : f32 to vector<2x24x24xf32>
    %106 = arith.select %104, %102, %105 : vector<2x24x24xi1>, vector<2x24x24xf32>
    %cst_45 = arith.constant dense<0xFF800000> : vector<2x24xf32>
    %107 = vector.multi_reduction <maximumf>, %106, %cst_45 [2] : vector<2x24x24xf32> to vector<2x24xf32>
    %108 = vector.shape_cast %107 : vector<2x24xf32> to vector<2x24x1xf32>
    %109 = vector.broadcast %108 : vector<2x24x1xf32> to vector<2x24x24xf32>
    %110 = arith.subf %106, %109 : vector<2x24x24xf32>
    %111 = math.exp %110 : vector<2x24x24xf32>
    %cst_46 = arith.constant dense<0.000000e+00> : vector<2x24xf32>
    %112 = vector.multi_reduction <add>, %111, %cst_46 [2] : vector<2x24x24xf32> to vector<2x24xf32>
    %113 = vector.shape_cast %112 : vector<2x24xf32> to vector<2x24x1xf32>
    %114 = tpu.reciprocal %113 {approx = true} : vector<2x24x1xf32> -> vector<2x24x1xf32>
    %115 = vector.broadcast %114 : vector<2x24x1xf32> to vector<2x24x24xf32>
    %116 = arith.mulf %111, %115 : vector<2x24x24xf32>
    %c64_i32_47 = arith.constant 64 : i32
    %117 = vector.broadcast %c64_i32_47 : i32 to vector<1x1x128xi32>
    %118 = arith.cmpi sge, %19, %117 : vector<1x1x128xi32>
    %c96_i32 = arith.constant 96 : i32
    %119 = vector.broadcast %c96_i32 : i32 to vector<1x1x128xi32>
    %120 = arith.cmpi slt, %19, %119 : vector<1x1x128xi32>
    %121 = arith.andi %118, %120 : vector<1x1x128xi1>
    %cst_48 = arith.constant 0.000000e+00 : bf16
    %122 = vector.broadcast %cst_48 : bf16 to vector<2x24x128xbf16>
    %123 = vector.shape_cast %121 : vector<1x1x128xi1> to vector<1x1x128xi1>
    %124 = vector.broadcast %123 : vector<1x1x128xi1> to vector<2x24x128xi1>
    %125 = arith.select %124, %17, %122 : vector<2x24x128xi1>, vector<2x24x128xbf16>
    %126 = arith.truncf %116 : vector<2x24x24xf32> to vector<2x24x24xbf16>
    "tpu.trace_start"() <{level = 10 : i32, message = "gnm,gmd->gnd"}> : () -> ()
    %cst_49 = arith.constant dense<0.000000e+00> : vector<2x24x128xf32>
    %127 = tpu.matmul %126, %125, %cst_49 {dimension_numbers = #tpu.dot_dimension_numbers<[2], [1], [1], [2], [0, 0, 0, 1, 1, 2], [0], [0]>} : vector<2x24x24xbf16>, vector<2x24x128xbf16>, vector<2x24x128xf32> -> vector<2x24x128xf32>
    "tpu.trace_stop"() : () -> ()
    %128 = arith.addf %92, %127 : vector<2x24x128xf32>
    %129 = vector.extract_strided_slice %16 {offsets = [0, 0, 3], sizes = [2, 24, 1], strides = [1, 1, 1]} : vector<2x24x8xf32> to vector<2x24x1xf32>
    %130 = vector.extract_strided_slice %16 {offsets = [0, 0, 7], sizes = [2, 24, 1], strides = [1, 1, 1]} : vector<2x24x8xf32> to vector<2x24x1xf32>
    "tpu.trace_start"() <{level = 10 : i32, message = "gik,gjk->gij"}> : () -> ()
    %cst_50 = arith.constant dense<0.000000e+00> : vector<2x24x24xf32>
    %131 = tpu.matmul %18, %130, %cst_50 {dimension_numbers = #tpu.dot_dimension_numbers<[2], [2], [1], [1], [0, 0, 0, 1, 1, 1], [0], [0]>} : vector<2x24x1xf32>, vector<2x24x1xf32>, vector<2x24x24xf32> -> vector<2x24x24xf32>
    "tpu.trace_stop"() : () -> ()
    %132 = vector.broadcast %129 : vector<2x24x1xf32> to vector<2x24x24xf32>
    %133 = arith.addf %132, %131 : vector<2x24x24xf32>
    %cst_51 = arith.constant 0.000000e+00 : f32
    %134 = vector.broadcast %cst_51 : f32 to vector<2x24x24xf32>
    %135 = arith.cmpf ogt, %133, %134 : vector<2x24x24xf32>
    %cst_52 = arith.constant 2.000000e-01 : f32
    %136 = vector.broadcast %cst_52 : f32 to vector<2x24x24xf32>
    %137 = arith.mulf %136, %133 : vector<2x24x24xf32>
    %138 = arith.select %135, %133, %137 : vector<2x24x24xi1>, vector<2x24x24xf32>
    %cst_53 = arith.constant 0.000000e+00 : bf16
    %139 = vector.broadcast %cst_53 : bf16 to vector<2x24x24xbf16>
    %140 = arith.cmpf ogt, %3, %139 : vector<2x24x24xbf16>
    %cst_54 = arith.constant -1.000000e+09 : f32
    %141 = vector.broadcast %cst_54 : f32 to vector<2x24x24xf32>
    %142 = arith.select %140, %138, %141 : vector<2x24x24xi1>, vector<2x24x24xf32>
    %cst_55 = arith.constant dense<0xFF800000> : vector<2x24xf32>
    %143 = vector.multi_reduction <maximumf>, %142, %cst_55 [2] : vector<2x24x24xf32> to vector<2x24xf32>
    %144 = vector.shape_cast %143 : vector<2x24xf32> to vector<2x24x1xf32>
    %145 = vector.broadcast %144 : vector<2x24x1xf32> to vector<2x24x24xf32>
    %146 = arith.subf %142, %145 : vector<2x24x24xf32>
    %147 = math.exp %146 : vector<2x24x24xf32>
    %cst_56 = arith.constant dense<0.000000e+00> : vector<2x24xf32>
    %148 = vector.multi_reduction <add>, %147, %cst_56 [2] : vector<2x24x24xf32> to vector<2x24xf32>
    %149 = vector.shape_cast %148 : vector<2x24xf32> to vector<2x24x1xf32>
    %150 = tpu.reciprocal %149 {approx = true} : vector<2x24x1xf32> -> vector<2x24x1xf32>
    %151 = vector.broadcast %150 : vector<2x24x1xf32> to vector<2x24x24xf32>
    %152 = arith.mulf %147, %151 : vector<2x24x24xf32>
    %c96_i32_57 = arith.constant 96 : i32
    %153 = vector.broadcast %c96_i32_57 : i32 to vector<1x1x128xi32>
    %154 = arith.cmpi sge, %19, %153 : vector<1x1x128xi32>
    %c128_i32 = arith.constant 128 : i32
    %155 = vector.broadcast %c128_i32 : i32 to vector<1x1x128xi32>
    %156 = arith.cmpi slt, %19, %155 : vector<1x1x128xi32>
    %157 = arith.andi %154, %156 : vector<1x1x128xi1>
    %cst_58 = arith.constant 0.000000e+00 : bf16
    %158 = vector.broadcast %cst_58 : bf16 to vector<2x24x128xbf16>
    %159 = vector.shape_cast %157 : vector<1x1x128xi1> to vector<1x1x128xi1>
    %160 = vector.broadcast %159 : vector<1x1x128xi1> to vector<2x24x128xi1>
    %161 = arith.select %160, %17, %158 : vector<2x24x128xi1>, vector<2x24x128xbf16>
    %162 = arith.truncf %152 : vector<2x24x24xf32> to vector<2x24x24xbf16>
    "tpu.trace_start"() <{level = 10 : i32, message = "gnm,gmd->gnd"}> : () -> ()
    %cst_59 = arith.constant dense<0.000000e+00> : vector<2x24x128xf32>
    %163 = tpu.matmul %162, %161, %cst_59 {dimension_numbers = #tpu.dot_dimension_numbers<[2], [1], [1], [2], [0, 0, 0, 1, 1, 2], [0], [0]>} : vector<2x24x24xbf16>, vector<2x24x128xbf16>, vector<2x24x128xf32> -> vector<2x24x128xf32>
    "tpu.trace_stop"() : () -> ()
    %164 = arith.addf %128, %163 : vector<2x24x128xf32>
    %cst_60 = arith.constant 0.000000e+00 : f32
    %165 = vector.broadcast %cst_60 : f32 to vector<2x24x128xf32>
    %166 = arith.cmpf ogt, %164, %165 : vector<2x24x128xf32>
    %167 = math.exp %164 : vector<2x24x128xf32>
    %cst_61 = arith.constant 1.000000e+00 : f32
    %168 = vector.broadcast %cst_61 : f32 to vector<2x24x128xf32>
    %169 = arith.subf %167, %168 : vector<2x24x128xf32>
    %170 = arith.select %166, %164, %169 : vector<2x24x128xi1>, vector<2x24x128xf32>
    %171 = arith.truncf %170 : vector<2x24x128xf32> to vector<2x24x128xbf16>
    %c0_62 = arith.constant 0 : index
    %c0_63 = arith.constant 0 : index
    %c0_64 = arith.constant 0 : index
    %c0_65 = arith.constant 0 : index
    %c0_66 = arith.constant 0 : index
    %172 = vector.load %arg7[%c0_62, %c0_63, %c0_64, %c0_65, %c0_66] : memref<1x1x2x24x128xbf16, #tpu.memory_space<vmem>>, vector<1x1x2x24x128xbf16>
    %173 = vector.shape_cast %172 : vector<1x1x2x24x128xbf16> to vector<2x24x128xbf16>
    %174 = vector.shape_cast %171 : vector<2x24x128xbf16> to vector<1x1x2x24x128xbf16>
    tpu.vector_store %arg7[%c0_62, %c0_63, %c0_64, %c0_65, %c0_66], %174 {strides = array<i32>} : memref<1x1x2x24x128xbf16, #tpu.memory_space<vmem>>, vector<1x1x2x24x128xbf16>,
    return
  }
  func.func @transform_0(%arg0: i32, %arg1: i32) -> (i32, i32, i32, i32, i32) {
    %c0_i32 = arith.constant 0 : i32
    %c0_i32_0 = arith.constant 0 : i32
    %c0_i32_1 = arith.constant 0 : i32
    %c0_i32_2 = arith.constant 0 : i32
    %c0_i32_3 = arith.constant 0 : i32
    return %arg0, %c0_i32, %c0_i32_0, %c0_i32_1, %c0_i32_2 : i32, i32, i32, i32, i32
  }
  func.func @transform_1(%arg0: i32, %arg1: i32) -> (i32, i32, i32, i32, i32) {
    %c0_i32 = arith.constant 0 : i32
    %c0_i32_0 = arith.constant 0 : i32
    %c0_i32_1 = arith.constant 0 : i32
    %c0_i32_2 = arith.constant 0 : i32
    return %arg0, %arg1, %c0_i32, %c0_i32_0, %c0_i32_1 : i32, i32, i32, i32, i32
  }
  func.func @transform_2(%arg0: i32, %arg1: i32) -> (i32, i32, i32) {
    %c0_i32 = arith.constant 0 : i32
    %c0_i32_0 = arith.constant 0 : i32
    %c0_i32_1 = arith.constant 0 : i32
    return %arg0, %c0_i32, %c0_i32_0 : i32, i32, i32
  }
  func.func @transform_3(%arg0: i32, %arg1: i32) -> (i32, i32, i32) {
    %c0_i32 = arith.constant 0 : i32
    %c0_i32_0 = arith.constant 0 : i32
    %c0_i32_1 = arith.constant 0 : i32
    return %arg0, %c0_i32, %c0_i32_0 : i32, i32, i32
  }
  func.func @transform_4(%arg0: i32, %arg1: i32) -> (i32, i32, i32) {
    %c0_i32 = arith.constant 0 : i32
    %c0_i32_0 = arith.constant 0 : i32
    %c0_i32_1 = arith.constant 0 : i32
    return %arg0, %c0_i32, %c0_i32_0 : i32, i32, i32
  }
  func.func @transform_5(%arg0: i32, %arg1: i32) -> (i32, i32, i32, i32, i32) {
    %c0_i32 = arith.constant 0 : i32
    %c0_i32_0 = arith.constant 0 : i32
    %c0_i32_1 = arith.constant 0 : i32
    %c0_i32_2 = arith.constant 0 : i32
    return %arg0, %arg1, %c0_i32, %c0_i32_0, %c0_i32_1 : i32, i32, i32, i32, i32
  }
}

module attributes {stable_mosaic.version = 11 : i64} {
  func.func @_gat_layer_kernel(%arg0: i32, %arg1: i32, %arg2: memref<1x1x2x24x128xbf16, #tpu.memory_space<vmem>>, %arg3: memref<1x1x2x24x24xbf16, #tpu.memory_space<vmem>>, %arg4: memref<1x128x128xbf16, #tpu.memory_space<vmem>>, %arg5: memref<1x1x128xf32, #tpu.memory_space<vmem>>, %arg6: memref<1x128x8xbf16, #tpu.memory_space<vmem>>, %arg7: memref<1x1x2x24x128xf32, #tpu.memory_space<vmem>>) attributes {dimension_semantics = [#tpu.dimension_semantics<parallel>, #tpu.dimension_semantics<parallel>], iteration_bounds = array<i64: 1, 2>, scalar_prefetch = 0 : i64, scratch_operands = 0 : i64, tpu.core_type = #tpu.core_type<tc>, window_params = [{transform_indices = @transform_0, window_bounds = array<i64: 1, 1, 2, 24, 128>}, {transform_indices = @transform_1, window_bounds = array<i64: 1, 1, 2, 24, 24>}, {transform_indices = @transform_2, window_bounds = array<i64: 1, 128, 128>}, {transform_indices = @transform_3, window_bounds = array<i64: 1, 1, 128>}, {transform_indices = @transform_4, window_bounds = array<i64: 1, 128, 8>}, {transform_indices = @transform_5, window_bounds = array<i64: 1, 1, 2, 24, 128>}]} {
    %c0 = arith.constant 0 : index
    %c0_0 = arith.constant 0 : index
    %c0_1 = arith.constant 0 : index
    %c0_2 = arith.constant 0 : index
    %c0_3 = arith.constant 0 : index
    %0 = vector.load %arg2[%c0, %c0_0, %c0_1, %c0_2, %c0_3] : memref<1x1x2x24x128xbf16, #tpu.memory_space<vmem>>, vector<1x1x2x24x128xbf16>
    %1 = vector.shape_cast %0 : vector<1x1x2x24x128xbf16> to vector<2x24x128xbf16>
    %c0_4 = arith.constant 0 : index
    %c0_5 = arith.constant 0 : index
    %c0_6 = arith.constant 0 : index
    %c0_7 = arith.constant 0 : index
    %c0_8 = arith.constant 0 : index
    %2 = vector.load %arg3[%c0_4, %c0_5, %c0_6, %c0_7, %c0_8] : memref<1x1x2x24x24xbf16, #tpu.memory_space<vmem>>, vector<1x1x2x24x24xbf16>
    %3 = vector.shape_cast %2 : vector<1x1x2x24x24xbf16> to vector<2x24x24xbf16>
    %4 = vector.shape_cast %1 : vector<2x24x128xbf16> to vector<48x128xbf16>
    %c0_9 = arith.constant 0 : index
    %c0_10 = arith.constant 0 : index
    %c0_11 = arith.constant 0 : index
    %5 = vector.load %arg4[%c0_9, %c0_10, %c0_11] : memref<1x128x128xbf16, #tpu.memory_space<vmem>>, vector<1x128x128xbf16>
    %6 = vector.shape_cast %5 : vector<1x128x128xbf16> to vector<128x128xbf16>
    %cst = arith.constant dense<0.000000e+00> : vector<48x128xf32>
    %7 = tpu.matmul %4, %6, %cst {dimension_numbers = #tpu.dot_dimension_numbers<[1], [0], [0], [1], [0, 0, 1, 1], [], []>} : vector<48x128xbf16>, vector<128x128xbf16>, vector<48x128xf32> -> vector<48x128xf32>
    %c0_12 = arith.constant 0 : index
    %c0_13 = arith.constant 0 : index
    %c0_14 = arith.constant 0 : index
    %8 = vector.load %arg5[%c0_12, %c0_13, %c0_14] : memref<1x1x128xf32, #tpu.memory_space<vmem>>, vector<1x1x128xf32>
    %9 = vector.shape_cast %8 : vector<1x1x128xf32> to vector<1x128xf32>
    %10 = vector.broadcast %9 : vector<1x128xf32> to vector<48x128xf32>
    %11 = arith.addf %7, %10 : vector<48x128xf32>
    %12 = arith.truncf %11 : vector<48x128xf32> to vector<48x128xbf16>
    %c0_15 = arith.constant 0 : index
    %c0_16 = arith.constant 0 : index
    %c0_17 = arith.constant 0 : index
    %13 = vector.load %arg6[%c0_15, %c0_16, %c0_17] : memref<1x128x8xbf16, #tpu.memory_space<vmem>>, vector<1x128x8xbf16>
    %14 = vector.shape_cast %13 : vector<1x128x8xbf16> to vector<128x8xbf16>
    %cst_18 = arith.constant dense<0.000000e+00> : vector<48x8xf32>
    %15 = tpu.matmul %12, %14, %cst_18 {dimension_numbers = #tpu.dot_dimension_numbers<[1], [0], [0], [1], [0, 0, 1, 1], [], []>} : vector<48x128xbf16>, vector<128x8xbf16>, vector<48x8xf32> -> vector<48x8xf32>
    %16 = vector.shape_cast %15 : vector<48x8xf32> to vector<2x24x8xf32>
    %17 = vector.shape_cast %12 : vector<48x128xbf16> to vector<2x24x128xbf16>
    %cst_19 = arith.constant 1.000000e+00 : f32
    %18 = vector.broadcast %cst_19 : f32 to vector<2x24x1xf32>
    %19 = tpu.iota {dimensions = array<i32: 2>} : vector<1x1x128xi32>
    %cst_20 = arith.constant 0.000000e+00 : f32
    %20 = vector.broadcast %cst_20 : f32 to vector<2x24x128xf32>
    %21 = vector.extract_strided_slice %16 {offsets = [0, 0, 0], sizes = [2, 24, 1], strides = [1, 1, 1]} : vector<2x24x8xf32> to vector<2x24x1xf32>
    %22 = vector.extract_strided_slice %16 {offsets = [0, 0, 4], sizes = [2, 24, 1], strides = [1, 1, 1]} : vector<2x24x8xf32> to vector<2x24x1xf32>
    "tpu.trace_start"() <{level = 10 : i32, message = "gik,gjk->gij"}> : () -> ()
    %cst_21 = arith.constant dense<0.000000e+00> : vector<2x24x24xf32>
    %23 = tpu.matmul %18, %22, %cst_21 {dimension_numbers = #tpu.dot_dimension_numbers<[2], [2], [1], [1], [0, 0, 0, 1, 1, 1], [0], [0]>} : vector<2x24x1xf32>, vector<2x24x1xf32>, vector<2x24x24xf32> -> vector<2x24x24xf32>
    "tpu.trace_stop"() : () -> ()
    %24 = vector.broadcast %21 : vector<2x24x1xf32> to vector<2x24x24xf32>
    %25 = arith.addf %24, %23 : vector<2x24x24xf32>
    %cst_22 = arith.constant 0.000000e+00 : f32
    %26 = vector.broadcast %cst_22 : f32 to vector<2x24x24xf32>
    %27 = arith.cmpf ogt, %25, %26 : vector<2x24x24xf32>
    %cst_23 = arith.constant 2.000000e-01 : f32
    %28 = vector.broadcast %cst_23 : f32 to vector<2x24x24xf32>
    %29 = arith.mulf %28, %25 : vector<2x24x24xf32>
    %30 = arith.select %27, %25, %29 : vector<2x24x24xi1>, vector<2x24x24xf32>
    %cst_24 = arith.constant 0.000000e+00 : bf16
    %31 = vector.broadcast %cst_24 : bf16 to vector<2x24x24xbf16>
    %32 = arith.cmpf ogt, %3, %31 : vector<2x24x24xbf16>
    %cst_25 = arith.constant -1.000000e+09 : f32
    %33 = vector.broadcast %cst_25 : f32 to vector<2x24x24xf32>
    %34 = arith.select %32, %30, %33 : vector<2x24x24xi1>, vector<2x24x24xf32>
    %cst_26 = arith.constant dense<0xFF800000> : vector<2x24xf32>
    %35 = vector.multi_reduction <maximumf>, %34, %cst_26 [2] : vector<2x24x24xf32> to vector<2x24xf32>
    %36 = vector.shape_cast %35 : vector<2x24xf32> to vector<2x24x1xf32>
    %37 = vector.broadcast %36 : vector<2x24x1xf32> to vector<2x24x24xf32>
    %38 = arith.subf %34, %37 : vector<2x24x24xf32>
    %39 = math.exp %38 : vector<2x24x24xf32>
    %cst_27 = arith.constant dense<0.000000e+00> : vector<2x24xf32>
    %40 = vector.multi_reduction <add>, %39, %cst_27 [2] : vector<2x24x24xf32> to vector<2x24xf32>
    %41 = vector.shape_cast %40 : vector<2x24xf32> to vector<2x24x1xf32>
    %42 = tpu.reciprocal %41 {approx = true} : vector<2x24x1xf32> -> vector<2x24x1xf32>
    %43 = vector.broadcast %42 : vector<2x24x1xf32> to vector<2x24x24xf32>
    %44 = arith.mulf %39, %43 : vector<2x24x24xf32>
    %c0_i32 = arith.constant 0 : i32
    %45 = vector.broadcast %c0_i32 : i32 to vector<1x1x128xi32>
    %46 = arith.cmpi sge, %19, %45 : vector<1x1x128xi32>
    %c32_i32 = arith.constant 32 : i32
    %47 = vector.broadcast %c32_i32 : i32 to vector<1x1x128xi32>
    %48 = arith.cmpi slt, %19, %47 : vector<1x1x128xi32>
    %49 = arith.andi %46, %48 : vector<1x1x128xi1>
    %cst_28 = arith.constant 0.000000e+00 : bf16
    %50 = vector.broadcast %cst_28 : bf16 to vector<2x24x128xbf16>
    %51 = vector.shape_cast %49 : vector<1x1x128xi1> to vector<1x1x128xi1>
    %52 = vector.broadcast %51 : vector<1x1x128xi1> to vector<2x24x128xi1>
    %53 = arith.select %52, %17, %50 : vector<2x24x128xi1>, vector<2x24x128xbf16>
    %54 = arith.truncf %44 : vector<2x24x24xf32> to vector<2x24x24xbf16>
    "tpu.trace_start"() <{level = 10 : i32, message = "gnm,gmd->gnd"}> : () -> ()
    %cst_29 = arith.constant dense<0.000000e+00> : vector<2x24x128xf32>
    %55 = tpu.matmul %54, %53, %cst_29 {dimension_numbers = #tpu.dot_dimension_numbers<[2], [1], [1], [2], [0, 0, 0, 1, 1, 2], [0], [0]>} : vector<2x24x24xbf16>, vector<2x24x128xbf16>, vector<2x24x128xf32> -> vector<2x24x128xf32>
    "tpu.trace_stop"() : () -> ()
    %56 = arith.addf %20, %55 : vector<2x24x128xf32>
    %57 = vector.extract_strided_slice %16 {offsets = [0, 0, 1], sizes = [2, 24, 1], strides = [1, 1, 1]} : vector<2x24x8xf32> to vector<2x24x1xf32>
    %58 = vector.extract_strided_slice %16 {offsets = [0, 0, 5], sizes = [2, 24, 1], strides = [1, 1, 1]} : vector<2x24x8xf32> to vector<2x24x1xf32>
    "tpu.trace_start"() <{level = 10 : i32, message = "gik,gjk->gij"}> : () -> ()
    %cst_30 = arith.constant dense<0.000000e+00> : vector<2x24x24xf32>
    %59 = tpu.matmul %18, %58, %cst_30 {dimension_numbers = #tpu.dot_dimension_numbers<[2], [2], [1], [1], [0, 0, 0, 1, 1, 1], [0], [0]>} : vector<2x24x1xf32>, vector<2x24x1xf32>, vector<2x24x24xf32> -> vector<2x24x24xf32>
    "tpu.trace_stop"() : () -> ()
    %60 = vector.broadcast %57 : vector<2x24x1xf32> to vector<2x24x24xf32>
    %61 = arith.addf %60, %59 : vector<2x24x24xf32>
    %cst_31 = arith.constant 0.000000e+00 : f32
    %62 = vector.broadcast %cst_31 : f32 to vector<2x24x24xf32>
    %63 = arith.cmpf ogt, %61, %62 : vector<2x24x24xf32>
    %cst_32 = arith.constant 2.000000e-01 : f32
    %64 = vector.broadcast %cst_32 : f32 to vector<2x24x24xf32>
    %65 = arith.mulf %64, %61 : vector<2x24x24xf32>
    %66 = arith.select %63, %61, %65 : vector<2x24x24xi1>, vector<2x24x24xf32>
    %cst_33 = arith.constant 0.000000e+00 : bf16
    %67 = vector.broadcast %cst_33 : bf16 to vector<2x24x24xbf16>
    %68 = arith.cmpf ogt, %3, %67 : vector<2x24x24xbf16>
    %cst_34 = arith.constant -1.000000e+09 : f32
    %69 = vector.broadcast %cst_34 : f32 to vector<2x24x24xf32>
    %70 = arith.select %68, %66, %69 : vector<2x24x24xi1>, vector<2x24x24xf32>
    %cst_35 = arith.constant dense<0xFF800000> : vector<2x24xf32>
    %71 = vector.multi_reduction <maximumf>, %70, %cst_35 [2] : vector<2x24x24xf32> to vector<2x24xf32>
    %72 = vector.shape_cast %71 : vector<2x24xf32> to vector<2x24x1xf32>
    %73 = vector.broadcast %72 : vector<2x24x1xf32> to vector<2x24x24xf32>
    %74 = arith.subf %70, %73 : vector<2x24x24xf32>
    %75 = math.exp %74 : vector<2x24x24xf32>
    %cst_36 = arith.constant dense<0.000000e+00> : vector<2x24xf32>
    %76 = vector.multi_reduction <add>, %75, %cst_36 [2] : vector<2x24x24xf32> to vector<2x24xf32>
    %77 = vector.shape_cast %76 : vector<2x24xf32> to vector<2x24x1xf32>
    %78 = tpu.reciprocal %77 {approx = true} : vector<2x24x1xf32> -> vector<2x24x1xf32>
    %79 = vector.broadcast %78 : vector<2x24x1xf32> to vector<2x24x24xf32>
    %80 = arith.mulf %75, %79 : vector<2x24x24xf32>
    %c32_i32_37 = arith.constant 32 : i32
    %81 = vector.broadcast %c32_i32_37 : i32 to vector<1x1x128xi32>
    %82 = arith.cmpi sge, %19, %81 : vector<1x1x128xi32>
    %c64_i32 = arith.constant 64 : i32
    %83 = vector.broadcast %c64_i32 : i32 to vector<1x1x128xi32>
    %84 = arith.cmpi slt, %19, %83 : vector<1x1x128xi32>
    %85 = arith.andi %82, %84 : vector<1x1x128xi1>
    %cst_38 = arith.constant 0.000000e+00 : bf16
    %86 = vector.broadcast %cst_38 : bf16 to vector<2x24x128xbf16>
    %87 = vector.shape_cast %85 : vector<1x1x128xi1> to vector<1x1x128xi1>
    %88 = vector.broadcast %87 : vector<1x1x128xi1> to vector<2x24x128xi1>
    %89 = arith.select %88, %17, %86 : vector<2x24x128xi1>, vector<2x24x128xbf16>
    %90 = arith.truncf %80 : vector<2x24x24xf32> to vector<2x24x24xbf16>
    "tpu.trace_start"() <{level = 10 : i32, message = "gnm,gmd->gnd"}> : () -> ()
    %cst_39 = arith.constant dense<0.000000e+00> : vector<2x24x128xf32>
    %91 = tpu.matmul %90, %89, %cst_39 {dimension_numbers = #tpu.dot_dimension_numbers<[2], [1], [1], [2], [0, 0, 0, 1, 1, 2], [0], [0]>} : vector<2x24x24xbf16>, vector<2x24x128xbf16>, vector<2x24x128xf32> -> vector<2x24x128xf32>
    "tpu.trace_stop"() : () -> ()
    %92 = arith.addf %56, %91 : vector<2x24x128xf32>
    %93 = vector.extract_strided_slice %16 {offsets = [0, 0, 2], sizes = [2, 24, 1], strides = [1, 1, 1]} : vector<2x24x8xf32> to vector<2x24x1xf32>
    %94 = vector.extract_strided_slice %16 {offsets = [0, 0, 6], sizes = [2, 24, 1], strides = [1, 1, 1]} : vector<2x24x8xf32> to vector<2x24x1xf32>
    "tpu.trace_start"() <{level = 10 : i32, message = "gik,gjk->gij"}> : () -> ()
    %cst_40 = arith.constant dense<0.000000e+00> : vector<2x24x24xf32>
    %95 = tpu.matmul %18, %94, %cst_40 {dimension_numbers = #tpu.dot_dimension_numbers<[2], [2], [1], [1], [0, 0, 0, 1, 1, 1], [0], [0]>} : vector<2x24x1xf32>, vector<2x24x1xf32>, vector<2x24x24xf32> -> vector<2x24x24xf32>
    "tpu.trace_stop"() : () -> ()
    %96 = vector.broadcast %93 : vector<2x24x1xf32> to vector<2x24x24xf32>
    %97 = arith.addf %96, %95 : vector<2x24x24xf32>
    %cst_41 = arith.constant 0.000000e+00 : f32
    %98 = vector.broadcast %cst_41 : f32 to vector<2x24x24xf32>
    %99 = arith.cmpf ogt, %97, %98 : vector<2x24x24xf32>
    %cst_42 = arith.constant 2.000000e-01 : f32
    %100 = vector.broadcast %cst_42 : f32 to vector<2x24x24xf32>
    %101 = arith.mulf %100, %97 : vector<2x24x24xf32>
    %102 = arith.select %99, %97, %101 : vector<2x24x24xi1>, vector<2x24x24xf32>
    %cst_43 = arith.constant 0.000000e+00 : bf16
    %103 = vector.broadcast %cst_43 : bf16 to vector<2x24x24xbf16>
    %104 = arith.cmpf ogt, %3, %103 : vector<2x24x24xbf16>
    %cst_44 = arith.constant -1.000000e+09 : f32
    %105 = vector.broadcast %cst_44 : f32 to vector<2x24x24xf32>
    %106 = arith.select %104, %102, %105 : vector<2x24x24xi1>, vector<2x24x24xf32>
    %cst_45 = arith.constant dense<0xFF800000> : vector<2x24xf32>
    %107 = vector.multi_reduction <maximumf>, %106, %cst_45 [2] : vector<2x24x24xf32> to vector<2x24xf32>
    %108 = vector.shape_cast %107 : vector<2x24xf32> to vector<2x24x1xf32>
    %109 = vector.broadcast %108 : vector<2x24x1xf32> to vector<2x24x24xf32>
    %110 = arith.subf %106, %109 : vector<2x24x24xf32>
    %111 = math.exp %110 : vector<2x24x24xf32>
    %cst_46 = arith.constant dense<0.000000e+00> : vector<2x24xf32>
    %112 = vector.multi_reduction <add>, %111, %cst_46 [2] : vector<2x24x24xf32> to vector<2x24xf32>
    %113 = vector.shape_cast %112 : vector<2x24xf32> to vector<2x24x1xf32>
    %114 = tpu.reciprocal %113 {approx = true} : vector<2x24x1xf32> -> vector<2x24x1xf32>
    %115 = vector.broadcast %114 : vector<2x24x1xf32> to vector<2x24x24xf32>
    %116 = arith.mulf %111, %115 : vector<2x24x24xf32>
    %c64_i32_47 = arith.constant 64 : i32
    %117 = vector.broadcast %c64_i32_47 : i32 to vector<1x1x128xi32>
    %118 = arith.cmpi sge, %19, %117 : vector<1x1x128xi32>
    %c96_i32 = arith.constant 96 : i32
    %119 = vector.broadcast %c96_i32 : i32 to vector<1x1x128xi32>
    %120 = arith.cmpi slt, %19, %119 : vector<1x1x128xi32>
    %121 = arith.andi %118, %120 : vector<1x1x128xi1>
    %cst_48 = arith.constant 0.000000e+00 : bf16
    %122 = vector.broadcast %cst_48 : bf16 to vector<2x24x128xbf16>
    %123 = vector.shape_cast %121 : vector<1x1x128xi1> to vector<1x1x128xi1>
    %124 = vector.broadcast %123 : vector<1x1x128xi1> to vector<2x24x128xi1>
    %125 = arith.select %124, %17, %122 : vector<2x24x128xi1>, vector<2x24x128xbf16>
    %126 = arith.truncf %116 : vector<2x24x24xf32> to vector<2x24x24xbf16>
    "tpu.trace_start"() <{level = 10 : i32, message = "gnm,gmd->gnd"}> : () -> ()
    %cst_49 = arith.constant dense<0.000000e+00> : vector<2x24x128xf32>
    %127 = tpu.matmul %126, %125, %cst_49 {dimension_numbers = #tpu.dot_dimension_numbers<[2], [1], [1], [2], [0, 0, 0, 1, 1, 2], [0], [0]>} : vector<2x24x24xbf16>, vector<2x24x128xbf16>, vector<2x24x128xf32> -> vector<2x24x128xf32>
    "tpu.trace_stop"() : () -> ()
    %128 = arith.addf %92, %127 : vector<2x24x128xf32>
    %129 = vector.extract_strided_slice %16 {offsets = [0, 0, 3], sizes = [2, 24, 1], strides = [1, 1, 1]} : vector<2x24x8xf32> to vector<2x24x1xf32>
    %130 = vector.extract_strided_slice %16 {offsets = [0, 0, 7], sizes = [2, 24, 1], strides = [1, 1, 1]} : vector<2x24x8xf32> to vector<2x24x1xf32>
    "tpu.trace_start"() <{level = 10 : i32, message = "gik,gjk->gij"}> : () -> ()
    %cst_50 = arith.constant dense<0.000000e+00> : vector<2x24x24xf32>
    %131 = tpu.matmul %18, %130, %cst_50 {dimension_numbers = #tpu.dot_dimension_numbers<[2], [2], [1], [1], [0, 0, 0, 1, 1, 1], [0], [0]>} : vector<2x24x1xf32>, vector<2x24x1xf32>, vector<2x24x24xf32> -> vector<2x24x24xf32>
    "tpu.trace_stop"() : () -> ()
    %132 = vector.broadcast %129 : vector<2x24x1xf32> to vector<2x24x24xf32>
    %133 = arith.addf %132, %131 : vector<2x24x24xf32>
    %cst_51 = arith.constant 0.000000e+00 : f32
    %134 = vector.broadcast %cst_51 : f32 to vector<2x24x24xf32>
    %135 = arith.cmpf ogt, %133, %134 : vector<2x24x24xf32>
    %cst_52 = arith.constant 2.000000e-01 : f32
    %136 = vector.broadcast %cst_52 : f32 to vector<2x24x24xf32>
    %137 = arith.mulf %136, %133 : vector<2x24x24xf32>
    %138 = arith.select %135, %133, %137 : vector<2x24x24xi1>, vector<2x24x24xf32>
    %cst_53 = arith.constant 0.000000e+00 : bf16
    %139 = vector.broadcast %cst_53 : bf16 to vector<2x24x24xbf16>
    %140 = arith.cmpf ogt, %3, %139 : vector<2x24x24xbf16>
    %cst_54 = arith.constant -1.000000e+09 : f32
    %141 = vector.broadcast %cst_54 : f32 to vector<2x24x24xf32>
    %142 = arith.select %140, %138, %141 : vector<2x24x24xi1>, vector<2x24x24xf32>
    %cst_55 = arith.constant dense<0xFF800000> : vector<2x24xf32>
    %143 = vector.multi_reduction <maximumf>, %142, %cst_55 [2] : vector<2x24x24xf32> to vector<2x24xf32>
    %144 = vector.shape_cast %143 : vector<2x24xf32> to vector<2x24x1xf32>
    %145 = vector.broadcast %144 : vector<2x24x1xf32> to vector<2x24x24xf32>
    %146 = arith.subf %142, %145 : vector<2x24x24xf32>
    %147 = math.exp %146 : vector<2x24x24xf32>
    %cst_56 = arith.constant dense<0.000000e+00> : vector<2x24xf32>
    %148 = vector.multi_reduction <add>, %147, %cst_56 [2] : vector<2x24x24xf32> to vector<2x24xf32>
    %149 = vector.shape_cast %148 : vector<2x24xf32> to vector<2x24x1xf32>
    %150 = tpu.reciprocal %149 {approx = true} : vector<2x24x1xf32> -> vector<2x24x1xf32>
    %151 = vector.broadcast %150 : vector<2x24x1xf32> to vector<2x24x24xf32>
    %152 = arith.mulf %147, %151 : vector<2x24x24xf32>
    %c96_i32_57 = arith.constant 96 : i32
    %153 = vector.broadcast %c96_i32_57 : i32 to vector<1x1x128xi32>
    %154 = arith.cmpi sge, %19, %153 : vector<1x1x128xi32>
    %c128_i32 = arith.constant 128 : i32
    %155 = vector.broadcast %c128_i32 : i32 to vector<1x1x128xi32>
    %156 = arith.cmpi slt, %19, %155 : vector<1x1x128xi32>
    %157 = arith.andi %154, %156 : vector<1x1x128xi1>
    %cst_58 = arith.constant 0.000000e+00 : bf16
    %158 = vector.broadcast %cst_58 : bf16 to vector<2x24x128xbf16>
    %159 = vector.shape_cast %157 : vector<1x1x128xi1> to vector<1x1x128xi1>
    %160 = vector.broadcast %159 : vector<1x1x128xi1> to vector<2x24x128xi1>
    %161 = arith.select %160, %17, %158 : vector<2x24x128xi1>, vector<2x24x128xbf16>
    %162 = arith.truncf %152 : vector<2x24x24xf32> to vector<2x24x24xbf16>
    "tpu.trace_start"() <{level = 10 : i32, message = "gnm,gmd->gnd"}> : () -> ()
    %cst_59 = arith.constant dense<0.000000e+00> : vector<2x24x128xf32>
    %163 = tpu.matmul %162, %161, %cst_59 {dimension_numbers = #tpu.dot_dimension_numbers<[2], [1], [1], [2], [0, 0, 0, 1, 1, 2], [0], [0]>} : vector<2x24x24xbf16>, vector<2x24x128xbf16>, vector<2x24x128xf32> -> vector<2x24x128xf32>
    "tpu.trace_stop"() : () -> ()
    %164 = arith.addf %128, %163 : vector<2x24x128xf32>
    %c0_60 = arith.constant 0 : index
    %c0_61 = arith.constant 0 : index
    %c0_62 = arith.constant 0 : index
    %c0_63 = arith.constant 0 : index
    %c0_64 = arith.constant 0 : index
    %165 = vector.load %arg7[%c0_60, %c0_61, %c0_62, %c0_63, %c0_64] : memref<1x1x2x24x128xf32, #tpu.memory_space<vmem>>, vector<1x1x2x24x128xf32>
    %166 = vector.shape_cast %165 : vector<1x1x2x24x128xf32> to vector<2x24x128xf32>
    %167 = vector.shape_cast %164 : vector<2x24x128xf32> to vector<1x1x2x24x128xf32>
    tpu.vector_store %arg7[%c0_60, %c0_61, %c0_62, %c0_63, %c0_64], %167 {strides = array<i32>} : memref<1x1x2x24x128xf32, #tpu.memory_space<vmem>>, vector<1x1x2x24x128xf32>,
    return
  }
  func.func @transform_0(%arg0: i32, %arg1: i32) -> (i32, i32, i32, i32, i32) {
    %c0_i32 = arith.constant 0 : i32
    %c0_i32_0 = arith.constant 0 : i32
    %c0_i32_1 = arith.constant 0 : i32
    %c0_i32_2 = arith.constant 0 : i32
    return %arg0, %arg1, %c0_i32, %c0_i32_0, %c0_i32_1 : i32, i32, i32, i32, i32
  }
  func.func @transform_1(%arg0: i32, %arg1: i32) -> (i32, i32, i32, i32, i32) {
    %c0_i32 = arith.constant 0 : i32
    %c0_i32_0 = arith.constant 0 : i32
    %c0_i32_1 = arith.constant 0 : i32
    %c0_i32_2 = arith.constant 0 : i32
    return %arg0, %arg1, %c0_i32, %c0_i32_0, %c0_i32_1 : i32, i32, i32, i32, i32
  }
  func.func @transform_2(%arg0: i32, %arg1: i32) -> (i32, i32, i32) {
    %c0_i32 = arith.constant 0 : i32
    %c0_i32_0 = arith.constant 0 : i32
    %c0_i32_1 = arith.constant 0 : i32
    return %arg0, %c0_i32, %c0_i32_0 : i32, i32, i32
  }
  func.func @transform_3(%arg0: i32, %arg1: i32) -> (i32, i32, i32) {
    %c0_i32 = arith.constant 0 : i32
    %c0_i32_0 = arith.constant 0 : i32
    %c0_i32_1 = arith.constant 0 : i32
    return %arg0, %c0_i32, %c0_i32_0 : i32, i32, i32
  }
  func.func @transform_4(%arg0: i32, %arg1: i32) -> (i32, i32, i32) {
    %c0_i32 = arith.constant 0 : i32
    %c0_i32_0 = arith.constant 0 : i32
    %c0_i32_1 = arith.constant 0 : i32
    return %arg0, %c0_i32, %c0_i32_0 : i32, i32, i32
  }
  func.func @transform_5(%arg0: i32, %arg1: i32) -> (i32, i32, i32, i32, i32) {
    %c0_i32 = arith.constant 0 : i32
    %c0_i32_0 = arith.constant 0 : i32
    %c0_i32_1 = arith.constant 0 : i32
    %c0_i32_2 = arith.constant 0 : i32
    return %arg0, %arg1, %c0_i32, %c0_i32_0, %c0_i32_1 : i32, i32, i32, i32, i32
  }
}

module attributes {stable_mosaic.version = 11 : i64} {
  func.func @_readout_kernel(%arg0: i32, %arg1: memref<1x8x8x128xf32, #tpu.memory_space<vmem>>, %arg2: memref<2x8x1xf32, #tpu.memory_space<vmem>>, %arg3: memref<1x1x128xf32, #tpu.memory_space<vmem>>, %arg4: memref<1x1x1xf32, #tpu.memory_space<vmem>>, %arg5: memref<1x8x128xf32, #tpu.memory_space<vmem>>) attributes {dimension_semantics = [#tpu.dimension_semantics<parallel>], iteration_bounds = array<i64: 3>, scalar_prefetch = 0 : i64, scratch_operands = 0 : i64, tpu.core_type = #tpu.core_type<tc>, window_params = [{transform_indices = @transform_0, window_bounds = array<i64: 1, 8, 8, 128>}, {pipeline_mode = #tpu.pipeline_mode<synchronous>, transform_indices = @transform_1, window_bounds = array<i64: 2, 8, 1>}, {transform_indices = @transform_2, window_bounds = array<i64: 1, 1, 128>}, {transform_indices = @transform_3, window_bounds = array<i64: 1, 1, 1>}, {transform_indices = @transform_4, window_bounds = array<i64: 1, 8, 128>}]} {
    %c0 = arith.constant 0 : index
    %c0_0 = arith.constant 0 : index
    %c0_1 = arith.constant 0 : index
    %c0_2 = arith.constant 0 : index
    %0 = vector.load %arg1[%c0, %c0_0, %c0_1, %c0_2] : memref<1x8x8x128xf32, #tpu.memory_space<vmem>>, vector<1x8x8x128xf32>
    %1 = vector.shape_cast %0 : vector<1x8x8x128xf32> to vector<8x8x128xf32>
    %c0_3 = arith.constant 0 : index
    %c0_4 = arith.constant 0 : index
    %c0_5 = arith.constant 0 : index
    %2 = vector.load %arg3[%c0_3, %c0_4, %c0_5] : memref<1x1x128xf32, #tpu.memory_space<vmem>>, vector<1x1x128xf32>
    %3 = vector.shape_cast %2 : vector<1x1x128xf32> to vector<1x128xf32>
    %4 = vector.shape_cast %3 : vector<1x128xf32> to vector<1x1x128xf32>
    %5 = vector.broadcast %4 : vector<1x1x128xf32> to vector<8x8x128xf32>
    %6 = arith.mulf %1, %5 : vector<8x8x128xf32>
    %cst = arith.constant dense<0.000000e+00> : vector<8x8xf32>
    %7 = vector.multi_reduction <add>, %6, %cst [2] : vector<8x8x128xf32> to vector<8x8xf32>
    %8 = vector.shape_cast %7 : vector<8x8xf32> to vector<8x8x1xf32>
    %c0_6 = arith.constant 0 : index
    %c0_7 = arith.constant 0 : index
    %c0_8 = arith.constant 0 : index
    %9 = vector.load %arg4[%c0_6, %c0_7, %c0_8] : memref<1x1x1xf32, #tpu.memory_space<vmem>>, vector<1x1x1xf32>
    %10 = vector.shape_cast %9 : vector<1x1x1xf32> to vector<1x1xf32>
    %11 = vector.shape_cast %10 : vector<1x1xf32> to vector<1x1x1xf32>
    %12 = vector.broadcast %11 : vector<1x1x1xf32> to vector<8x8x1xf32>
    %13 = arith.addf %8, %12 : vector<8x8x1xf32>
    %14 = vector.shape_cast %13 : vector<8x8x1xf32> to vector<4x2x8x1xf32>
    %c0_9 = arith.constant 0 : index
    %c0_10 = arith.constant 0 : index
    %c0_11 = arith.constant 0 : index
    %15 = vector.load %arg2[%c0_9, %c0_10, %c0_11] : memref<2x8x1xf32, #tpu.memory_space<vmem>>, vector<2x8x1xf32>
    %16 = vector.shape_cast %15 : vector<2x8x1xf32> to vector<1x2x8x1xf32>
    %17 = vector.broadcast %16 : vector<1x2x8x1xf32> to vector<4x2x8x1xf32>
    %18 = arith.addf %14, %17 : vector<4x2x8x1xf32>
    %19 = vector.shape_cast %18 : vector<4x2x8x1xf32> to vector<8x8x1xf32>
    %cst_12 = arith.constant dense<0xFF800000> : vector<8x1xf32>
    %20 = vector.multi_reduction <maximumf>, %19, %cst_12 [1] : vector<8x8x1xf32> to vector<8x1xf32>
    %21 = vector.shape_cast %20 : vector<8x1xf32> to vector<8x1x1xf32>
    %22 = vector.broadcast %21 : vector<8x1x1xf32> to vector<8x8x1xf32>
    %23 = arith.subf %19, %22 : vector<8x8x1xf32>
    %24 = math.exp %23 : vector<8x8x1xf32>
    %cst_13 = arith.constant dense<0.000000e+00> : vector<8x1xf32>
    %25 = vector.multi_reduction <add>, %24, %cst_13 [1] : vector<8x8x1xf32> to vector<8x1xf32>
    %26 = vector.shape_cast %25 : vector<8x1xf32> to vector<8x1x1xf32>
    %27 = tpu.reciprocal %26 {approx = true} : vector<8x1x1xf32> -> vector<8x1x1xf32>
    %28 = vector.broadcast %27 : vector<8x1x1xf32> to vector<8x8x1xf32>
    %29 = arith.mulf %24, %28 : vector<8x8x1xf32>
    %30 = vector.broadcast %29 : vector<8x8x1xf32> to vector<8x8x128xf32>
    %31 = arith.mulf %30, %1 : vector<8x8x128xf32>
    %cst_14 = arith.constant dense<0.000000e+00> : vector<8x128xf32>
    %32 = vector.multi_reduction <add>, %31, %cst_14 [1] : vector<8x8x128xf32> to vector<8x128xf32>
    %c0_15 = arith.constant 0 : index
    %c0_16 = arith.constant 0 : index
    %c0_17 = arith.constant 0 : index
    %33 = vector.load %arg5[%c0_15, %c0_16, %c0_17] : memref<1x8x128xf32, #tpu.memory_space<vmem>>, vector<1x8x128xf32>
    %34 = vector.shape_cast %33 : vector<1x8x128xf32> to vector<8x128xf32>
    %35 = vector.shape_cast %32 : vector<8x128xf32> to vector<1x8x128xf32>
    tpu.vector_store %arg5[%c0_15, %c0_16, %c0_17], %35 {strides = array<i32>} : memref<1x8x128xf32, #tpu.memory_space<vmem>>, vector<1x8x128xf32>,
    return
  }
  func.func @transform_0(%arg0: i32) -> (i32, i32, i32, i32) {
    %c0_i32 = arith.constant 0 : i32
    %c0_i32_0 = arith.constant 0 : i32
    %c0_i32_1 = arith.constant 0 : i32
    %c0_i32_2 = arith.constant 0 : i32
    return %arg0, %c0_i32, %c0_i32_0, %c0_i32_1 : i32, i32, i32, i32
  }
  func.func @transform_1(%arg0: i32) -> (i32, i32, i32) {
    %c0_i32 = arith.constant 0 : i32
    %c0_i32_0 = arith.constant 0 : i32
    %c0_i32_1 = arith.constant 0 : i32
    %c0_i32_2 = arith.constant 0 : i32
    return %c0_i32, %c0_i32_0, %c0_i32_1 : i32, i32, i32
  }
  func.func @transform_2(%arg0: i32) -> (i32, i32, i32) {
    %c0_i32 = arith.constant 0 : i32
    %c0_i32_0 = arith.constant 0 : i32
    %c0_i32_1 = arith.constant 0 : i32
    return %arg0, %c0_i32, %c0_i32_0 : i32, i32, i32
  }
  func.func @transform_3(%arg0: i32) -> (i32, i32, i32) {
    %c0_i32 = arith.constant 0 : i32
    %c0_i32_0 = arith.constant 0 : i32
    %c0_i32_1 = arith.constant 0 : i32
    return %arg0, %c0_i32, %c0_i32_0 : i32, i32, i32
  }
  func.func @transform_4(%arg0: i32) -> (i32, i32, i32) {
    %c0_i32 = arith.constant 0 : i32
    %c0_i32_0 = arith.constant 0 : i32
    %c0_i32_1 = arith.constant 0 : i32
    return %arg0, %c0_i32, %c0_i32_0 : i32, i32, i32
  }
}

</mosaic_0001>

<bundles_post_ra>
// kernel: custom-call.3
= control target key start
LH: loop header
LB: loop body
LE: loop exit
PB: predicated region body
PF: predicated region fallthrough
CT: control target
= control target key end

     0   :  { %s6_s0 = inlined_call_operand.vmem [shape: f32[2,2,16], index: 0, kind: output, shape index: {}]  }

// kernel: custom-call.2
= control target key start
LH: loop header
LB: loop body
LE: loop exit
PB: predicated region body
PF: predicated region fallthrough
CT: control target
= control target key end

     0   :  { %s6_s0 = inlined_call_operand.vmem [shape: bf16[2,2,16], index: 0, kind: output, shape index: {}]  }

// kernel: forward.6
= control target key start
LH: loop header
LB: loop body
LE: loop exit
PB: predicated region body
PF: predicated region fallthrough
CT: control target
= control target key end

     0   :  { %s436_s12 = smov 0   ;;  %s459_s0 = inlined_call_operand.vmem [shape: bf16[3,16,32], index: 0, kind: input, shape index: {}]   ;;  %s460_s1 = inlined_call_operand.vmem [shape: bf16[3,32,128], index: 1, kind: input, shape index: {}]   ;;  %s461_s2 = inlined_call_operand.vmem [shape: f32[3,1,128], index: 2, kind: input, shape index: {}]   ;;  %s462_s3 = inlined_call_operand.vmem [shape: f32[3,16,128], index: 3, kind: output, shape index: {}]  }
   0x1 LB: > { %s361_s13 = sadd.s32 4294967295, %s412_s12   ;;  %p365_p0 = scmp.ge.s32.totalorder %s412_s12, 1  ;;  %s412_s12 = sphi %s436_s12, %s13_s12  }
   0x2   : > { %p155_p1 = scmp.lt.s32.totalorder %s412_s12, 4 }
   0x4   : > { %p156_p2 = pnand %p365_p0, %p155_p1 }
   0x5   : > { %p187_p3 = scmp.lt.s32.totalorder (!%p156_p2), %s361_s13, 2  ;;  %v414_v0 = vmov (!%p156_p2), 0.0   ;;  %vm415_vm0 = vmmov (!%p156_p2), 0   ;;  %vm236_vm1 = vcmask (!%p156_p2), 261120  }
   0x6   : > { %159 = sbr.rel (%p156_p2) target bundleno = 243 (0xf3), region = 32  ;;  %385 = vmatprep.subr.bf16.mxu0 (!%p156_p2), %v414_v0  ;;  %389 = vmatprep.mubr.msk.bf16.mxu0 (!%p156_p2), %vm415_vm0, %v414_v0 }
   0xd   : > { %s464_s13 = smov (!%p187_p3, %s361_s13), 2 }
   0xe   : > { %s380_s14 = sshll.u32 %s464_s13, 4  ;;  %s379_s15 = sshll.u32 %s464_s13, 3 }
   0xf   : > { %s196_s18 = scalar_lea.vmem %s460_s1, %s380_s14  ;;  %s191_s21 = scalar_lea.vmem %s459_s0, %s379_s15 }
  0x10   : > { %v403_v1 = vld [vmem:[%s196_s18] sm:$0xff]   ;;  %v404_v2 = vld [vmem:[%s196_s18 + $0x8] sm:$0xff]   ;;  %s199_s24 = scalar_lea.vmem %s461_s2, %s464_s13  ;;  %s204_s27 = scalar_lea.vmem %s462_s3, %s380_s14 }
  0x11   : > { %386 = vmatpush3.bf16.msra.mxu0 %v403_v1  ;;  %v405_v3 = vld [vmem:[%s191_s21] sm:$0xff]  }
  0x12   : > { %387 = vmatprep.subr.bf16.mxu0 %v414_v0  ;;  %v372_v4 = vld [vmem:[%s199_s24] ss:$0 sm:$0xff] }
  0x15   : > { %388 = vmatpush3.bf16.msra.mxu0 %v404_v2 }
  0x18   : > { %390 = vmatmul.mubr.msk.bf16.vlgmr.msra.gmra.mrb[0].mxu0 %vm236_vm1, %v405_v3 }
  0xeb   : > { %v274_v5 = vpop.f32.mrb[0].mxu0 }
  0xec   : > { %v275_v6 = vadd.f32 %v372_v4, %v274_v5  ;;  %v391_v7 = vpop.f32.mrb[1].mxu0 }
  0xed   : > { %v277_v8 = vpop.f32.mrb[2].mxu0 }
  0xee   : > { %v281_v9 = vmax.f32 %v275_v6, 0.0  ;;  %v278_v10 = vadd.f32 %v372_v4, %v277_v8  ;;  %v392_v11 = vpop.f32.mrb[3].mxu0 }
  0xf0   : > { %283 = vst [vmem:[%s204_s27] sm:$0xff] %v281_v9  ;;  %v282_v12 = vmax.f32 %v278_v10, 0.0 }
  0xf2   : > { %284 = vst [vmem:[%s204_s27 + $0x8] sm:$0xff] %v282_v12 }
  0xf3 PF: > { %s13_s12 = sadd.s32 1, %s412_s12  }
  0xf4   : > { %p10_p4 = scmp.ge.s32.totalorder %s13_s12, 5  }
  0xf6   :  { %12 = sbr.rel (!%p10_p4) target bundleno = 1 (0x1), region = 68 }

// kernel: forward.9
= control target key start
LH: loop header
LB: loop body
LE: loop exit
PB: predicated region body
PF: predicated region fallthrough
CT: control target
= control target key end

     0   :  { %s2378_s18 = smov 0   ;;  %s2380_s19 = smov 0   ;;  %s2711_s0 = inlined_call_operand.vmem [shape: bf16[3,1,2,8,128], index: 0, kind: input, shape index: {}]   ;;  %s2712_s1 = inlined_call_operand.vmem [shape: bf16[3,2,2,8,8], index: 1, kind: input, shape index: {}]   ;;  %s2713_s2 = inlined_call_operand.vmem [shape: bf16[3,128,128], index: 2, kind: input, shape index: {}]   ;;  %s2714_s3 = inlined_call_operand.vmem [shape: f32[3,1,128], index: 3, kind: input, shape index: {}]   ;;  %s2715_s4 = inlined_call_operand.vmem [shape: bf16[3,128,8], index: 4, kind: input, shape index: {}]   ;;  %s2716_s5 = inlined_call_operand.vmem [shape: bf16[3,2,2,8,128], index: 5, kind: output, shape index: {}]  }
   0x1   :  { %s2382_s20 = smov 0   ;;  %s2384_s21 = smov 0  }
   0x2   :  { %s2386_s22 = smov 0  }
   0x3 LB: > { %s24_s23 = sadd.s32 1, %s2327_s20  ;;  %s27_s24 = sadd.s32 1, %s2331_s21  ;;  %s2335_s22 = sphi %s2386_s22, %s15_s22   ;;  %s2331_s21 = sphi %s2384_s21, %s2732_s21   ;;  %s2327_s20 = sphi %s2382_s20, %s2731_s20   ;;  %s2323_s19 = sphi %s2380_s19, %s2730_s19   ;;  %s2319_s18 = sphi %s2378_s18, %s2729_s18  }
   0x4   : > { %p25_p0 = scmp.ge.s32.totalorder %s24_s23, 2  ;;  %p1913_p1 = scmp.ge.s32.totalorder %s2335_s22, 1 }
   0x5   : > { %p245_p2 = scmp.lt.s32.totalorder %s2335_s22, 7 }
   0x6   : > { %s2734_s23 = smov (%p25_p0, %s24_s23), 0  ;;  %s2736_s24 = smov (!%p25_p0, %s27_s24), %s2331_s21 }
   0x7   : > { %p246_p3 = pnand %p1913_p1, %p245_p2  ;;  %p29_p4 = scmp.ge.s32.totalorder %s2736_s24, 3 }
   0x8   : > { %p299_p5 = scmp.lt.s32.totalorder (!%p246_p3), %s2323_s19, 2  ;;  %v2337_v0 = vmov (!%p246_p3), 0.0   ;;  %vm2338_vm0 = vmmov (!%p246_p3), 0   ;;  %v573_v18 = vlaneseq (!%p246_p3)  ;;  %vm989_vm8 = vcmask (!%p246_p3), 1043456   ;;  %s2340_s14 = smov (!%p246_p3), 123  }
   0x9   : > { %s2738_s24 = smov (%p29_p4, %s2736_s24), 0  ;;  %249 = sbr.rel (%p246_p3) target bundleno = 2468 (0x9a4), region = 40 }
   0xa   : > { %2034 = vmatprep.subr.bf16.mxu0 (!%p246_p3), %v2337_v0  ;;  %2050 = vmatprep.mubr.msk.bf16.mxu0 (!%p246_p3), %vm2338_vm0, %v2337_v0  ;;  %v574_v19 = vand.u32 (!%p246_p3), 127, %v573_v18  ;;  %v2339_v45 = vmov (!%p246_p3), 1   ;;  %s2341_s15 = smov (!%p246_p3), 124   ;;  %v2342_v50 = vmov (!%p246_p3), 0   ;;  %vm578_vm12 = vcmask (!%p246_p3), 7168   ;;  %p306_p6 = scmp.lt.s32.totalorder (!%p246_p3), %s2319_s18, 1 }
   0xb   : > { %2054 = vmatprep.subr.bf16.mxu1 (!%p246_p3), %v2337_v0  ;;  %2070 = vmatprep.mubr.msk.bf16.mxu1 (!%p246_p3), %vm2338_vm0, %v2337_v0  ;;  %v2343_v54 = vmov (!%p246_p3), 1.0  }
   0xc   : > { %vm1359_vm1 = vcmp.ge.s32.totalorder (!%p246_p3), %v574_v19, 64  ;;  %vm1360_vm2 = vcmp.lt.s32.totalorder (!%p246_p3), %v574_v19, 96  ;;  %vm779_vm3 = vcmp.lt.s32.totalorder (!%p246_p3), %v574_v19, 32  ;;  %vm1651_vm5 = vcmp.ge.s32.totalorder (!%p246_p3), %v574_v19, 96  ;;  %2238 = vset.pattern.permute.xlu1 (!%p246_p3), %v2339_v45  ;;  %2237 = vset.pattern.permute.xlu0 (!%p246_p3), %v2339_v45 }
   0xd   : > { %vm2474_vm4 = vmand (!%p246_p3), %vm1359_vm1, %vm1360_vm2  ;;  %vm976_vm10 = vcmp.ge.s32.totalorder (!%p246_p3), %v574_v19, 32  ;;  %vm977_vm11 = vcmp.lt.s32.totalorder (!%p246_p3), %v574_v19, 64 }
   0xe   : > { %vm2478_vm6 = vmpackc.low (!%p246_p3), %vm779_vm3, %vm779_vm3 }
   0xf   : > { %vm1364_vm7 = vmpackc.low (!%p246_p3), %vm2474_vm4, %vm2474_vm4 }
  0x10   : > { %s2740_s19 = smov (!%p299_p5, %s2323_s19), 2  ;;  %vm2485_vm9 = vmpackc.low %vm1651_vm5, %vm1651_vm5  ;;  %s2742_s18 = smov (!%p306_p6, %s2319_s18), 1  ;;  %vm755_vm5 = vcmask 64512  }
  0x11   : > { %s1975_s25 = sshll.u32 %s2740_s19, 6  ;;  %s1974_s29 = sshll.u32 %s2740_s19, 3  ;;  %vm2531_vm13 = vmand %vm976_vm10, %vm977_vm11 }
  0x12   : > { %s2422_s28 = scalar_lea.vmem %s2713_s2, %s1975_s25  ;;  %s2432_s7 = scalar_lea.vmem %s2715_s4, %s1975_s25  ;;  %vm981_vm14 = vmpackc.low %vm2531_vm13, %vm2531_vm13 }
  0x13   : > { %v2244_v1 = vld [vmem:[%s2422_s28] sm:$0xff]   ;;  %v2245_v2 = vld [vmem:[%s2422_s28 + $0x8] sm:$0xff]   ;;  %v2246_v3 = vld [vmem:[%s2422_s28 + $0x10] sm:$0xff]   ;;  %s2438_s10 = scalar_lea.vmem %s2711_s0, %s1974_s29  ;;  %s320_s13 = scalar_lea.vmem %s2714_s3, %s2740_s19 }
  0x14   : > { %2035 = vmatpush3.bf16.msra.mxu0 %v2244_v1  ;;  %v2253_v4 = vld [vmem:[%s2432_s7] sm:$0xff]   ;;  %v2247_v5 = vld [vmem:[%s2422_s28 + $0x18] sm:$0xff]   ;;  %v2254_v6 = vld [vmem:[%s2432_s7 + $0x8] sm:$0xff]   ;;  %s1916_s16 = sshll.u32 %s2742_s18, 1  ;;  %s1917_s17 = sshll.u32 %s2740_s19, 2 }
  0x15   : > { %2036 = vmatprep.subr.bf16.mxu0 %v2337_v0  ;;  %2055 = vmatpush3.bf16.msra.mxu1 %v2253_v4  ;;  %v2248_v7 = vld [vmem:[%s2422_s28 + $0x20] sm:$0xff]   ;;  %v2255_v8 = vld [vmem:[%s2432_s7 + $0x10] sm:$0xff]   ;;  %v2249_v9 = vld [vmem:[%s2422_s28 + $0x28] sm:$0xff]   ;;  %s2579_s25 = sadd.s32 %s1917_s17, %s1916_s16  ;;  %s2345_s18 = smov 122  }
  0x16   : > { %2056 = vmatprep.subr.bf16.mxu1 %v2337_v0  ;;  %v2256_v10 = vld [vmem:[%s2432_s7 + $0x18] sm:$0xff]   ;;  %v2250_v11 = vld [vmem:[%s2422_s28 + $0x30] sm:$0xff]   ;;  %v2257_v12 = vld [vmem:[%s2432_s7 + $0x20] sm:$0xff]   ;;  %s1918_s26 = sshll.u32 %s2579_s25, 2  ;;  %s2347_s19 = smov 121  }
  0x17   : > { %v2251_v13 = vld [vmem:[%s2422_s28 + $0x38] sm:$0xff]   ;;  %v2258_v14 = vld [vmem:[%s2432_s7 + $0x28] sm:$0xff]   ;;  %v2252_v15 = vld [vmem:[%s2438_s10] sm:$0xff]   ;;  %s312_s29 = scalar_lea.vmem %s2712_s1, %s1918_s26 }
  0x18   : > { %2037 = vmatpush3.bf16.msra.mxu0 %v2245_v2  ;;  %v2259_v16 = vld [vmem:[%s2432_s7 + $0x30] sm:$0xff]   ;;  %v2260_v17 = vld [vmem:[%s2432_s7 + $0x38] sm:$0xff]   ;;  %v1926_v20 = vld [vmem:[%s320_s13] ss:$0 sm:$0xff]  ;;  %s334_s7 = scalar_lea.vmem %s2716_s5, %s1918_s26 }
  0x19   : > { %2038 = vmatprep.subr.bf16.mxu0 %v2337_v0  ;;  %2057 = vmatpush3.bf16.msra.mxu1 %v2254_v6  ;;  %v340_v62 = vld [vmem:[%s312_s29] sm:$0xf]  ;;  %v341_v1 = vld [vmem:[%s312_s29 + $0x4] sm:$0xf] }
  0x1a   : > { %2058 = vmatprep.subr.bf16.mxu1 %v2337_v0  ;;  %vm745_vm15 = vcmp.gt.bf16.partialorder %v340_v62, 0  ;;  %vm746_vm1 = vcmp.gt.bf16.partialorder %v341_v1, 0 }
  0x1b   : > { %v747_v6 = vsel %vm745_vm15, 65537, %v2342_v50 }
  0x1c   : > { %2039 = vmatpush3.bf16.msra.mxu0 %v2246_v3 }
  0x1d   : > { %2040 = vmatprep.subr.bf16.mxu0 %v2337_v0  ;;  %2059 = vmatpush3.bf16.msra.mxu1 %v2255_v8 }
  0x1e   : > { %2060 = vmatprep.subr.bf16.mxu1 %v2337_v0 }
  0x20   : > { %2041 = vmatpush3.bf16.msra.mxu0 %v2247_v5 }
  0x21   : > { %2042 = vmatprep.subr.bf16.mxu0 %v2337_v0  ;;  %2061 = vmatpush3.bf16.msra.mxu1 %v2256_v10  ;;  %v749_v10 = vunpack.c.l.b16 %v747_v6 }
  0x22   : > { %2062 = vmatprep.subr.bf16.mxu1 %v2337_v0 }
  0x23   : > { %vm2589_vm4 = vcmp.ne.s32.totalorder %v749_v10, 0 }
  0x24   : > { %2043 = vmatpush3.bf16.msra.mxu0 %v2248_v7 }
  0x25   : > { %2044 = vmatprep.subr.bf16.mxu0 %v2337_v0  ;;  %2063 = vmatpush3.bf16.msra.mxu1 %v2257_v12 }
  0x26   : > { %2064 = vmatprep.subr.bf16.mxu1 %v2337_v0 }
  0x28   : > { %2045 = vmatpush3.bf16.msra.mxu0 %v2249_v9 }
  0x29   : > { %2046 = vmatprep.subr.bf16.mxu0 %v2337_v0  ;;  %2065 = vmatpush3.bf16.msra.mxu1 %v2258_v14 }
  0x2a   : > { %2066 = vmatprep.subr.bf16.mxu1 %v2337_v0 }
  0x2c   : > { %2047 = vmatpush3.bf16.msra.mxu0 %v2250_v11 }
  0x2d   : > { %2048 = vmatprep.subr.bf16.mxu0 %v2337_v0  ;;  %2067 = vmatpush3.bf16.msra.mxu1 %v2259_v16  ;;  %v748_v16 = vsel %vm746_vm1, 65537, %v2342_v50 }
  0x2e   : > { %2068 = vmatprep.subr.bf16.mxu1 %v2337_v0 }
  0x30   : > { %2049 = vmatpush3.bf16.msra.mxu0 %v2251_v13 }
  0x31   : > { %2074 = vmatprep.subr.mxu0 %v2337_v0  ;;  %2069 = vmatpush3.bf16.msra.mxu1 %v2260_v17 }
  0x32   : > { %2079 = vmatprep.subr.mxu1 %v2337_v0 }
  0x33   : > { %2051 = vmatmul.mubr.bf16.vlgmr.msra.gmra.mrb[0].mxu0 %v2252_v15 }
  0x34   : > { %2076 = vmatprep.mubr.msk.f32.mxu0 %vm2338_vm0, %v2337_v0 }
 0x106   : > { %v453_v22 = vpop.f32.mrb[0].mxu0 }
 0x107   : > { %v454_v23 = vadd.f32 %v1926_v20, %v453_v22  ;;  %v2052_v24 = vpop.f32.mrb[1].mxu0 }
 0x108   : > { %v456_v26 = vpop.f32.mrb[2].mxu0 }
 0x109   : > { %v1977_v27 = vpack.c.bf16 %v454_v23, %v454_v23  ;;  %v457_v28 = vadd.f32 %v1926_v20, %v456_v26  ;;  %v2053_v29 = vpop.f32.mrb[3].mxu0  ;;  %v750_v20 = vunpack.c.l.b16 %v748_v16 }
 0x10b   : > { %v460_v31 = vpack.c.bf16 %v457_v28, %v454_v23  ;;  %v1978_v32 = vpack.c.bf16 %v457_v28, %v457_v28  ;;  %v784_v33 = vsel %vm2478_vm6, %v1977_v27, 0  ;;  %v1365_v35 = vsel %vm1364_vm7, %v1977_v27, 0 }
 0x10c   : > { %v2492_v34 = vsel %vm989_vm8, %v784_v33, 0  ;;  %v1657_v36 = vsel %vm2485_vm9, %v1977_v27, 0  ;;  %v2499_v38 = vsel %vm989_vm8, %v1365_v35, 0  ;;  %v982_v56 = vsel %vm981_vm14, %v1977_v27, 0 }
 0x10d   : > { %2071 = vmatmul.mubr.bf16.vlgmr.msra.gmra.mrb[0].mxu1 %v460_v31  ;;  %v785_v37 = vsel %vm2478_vm6, %v1978_v32, 0  ;;  %v1366_v39 = vsel %vm1364_vm7, %v1978_v32, 0  ;;  %v2510_v42 = vsel %vm989_vm8, %v1657_v36, 0  ;;  %v1658_v43 = vsel %vm2485_vm9, %v1978_v32, 0 }
 0x10e   : > { %2081 = vmatprep.mubr.msk.f32.mxu1 %vm2338_vm0, %v2337_v0  ;;  %v2504_v40 = vsel %vm989_vm8, %v785_v37, 0  ;;  %v2507_v41 = vsel %vm989_vm8, %v1366_v39, 0  ;;  %v2515_v44 = vsel %vm989_vm8, %v1658_v43, 0  ;;  %v991_v58 = vsel %vm989_vm8, %v982_v56, 0 }
 0x10f   : > { %v983_v59 = vsel %vm981_vm14, %v1978_v32, 0  ;;  %v2344_v43 = vmov 2  }
 0x110   : > { %v1037_v60 = vsel %vm989_vm8, %v983_v59, 0  ;;  %vm2598_vm8 = vcmp.ne.s32.totalorder %v750_v20, 0 }
 0x1e0   : > { %v2517_v46 = vpop.f32.mrb[0].mxu1 }
 0x1e1   : > { %788 = vrot.lane.b32.xlu1 %v2517_v46, %s2340_s14  ;;  %576 = vrot.lane.b32.xlu0 %v2517_v46, %s2341_s15  ;;  %v2072_v47 = vpop.f32.mrb[1].mxu1 }
 0x1e2   : > { %v2521_v48 = vpop.f32.mrb[2].mxu1 }
 0x1e3   : > { %v2073_v49 = vpop.f32.mrb[3].mxu1 }
 0x1e5   : > { %862 = vrot.lane.b32.xlu1 %v2521_v48, %s2340_s14  ;;  %655 = vrot.lane.b32.xlu0 %v2521_v48, %s2341_s15 }
 0x1e9   : > { %941 = vperm.xlu1 %2238, %v2521_v48   ;;  %937 = vperm.xlu0 %2237, %v2517_v46  }
 0x1ed   : > { %2239 = vset.pattern.permute.xlu1 %v2342_v50  ;;  %2240 = vset.pattern.permute.xlu0 %v2342_v50 }
 0x1ee   : > { %730 = vperm.xlu1 %2239, %v2517_v46   ;;  %734 = vperm.xlu0 %2240, %v2521_v48  }
 0x1f2   : > { %2241 = vset.pattern.permute.xlu1 %v2344_v43 }
 0x253   : > { %v577_v52 = vpop.permute.xlu0 %576  ;;  %v789_v53 = vpop.permute.xlu1 %788 }
 0x254   : > { %2075 = vmatpush3.xpose.msk.msra.mxu0 %vm578_vm12, %v577_v52 }
 0x255   : > { %2084 = vmatprep.subr.mxu0 %v2337_v0 }
 0x257   : > { %2077 = vmatmul.mubr.msk.f32.vlgmr.msra.gmra.mrb[4].mxu0 %vm578_vm12, %v2343_v54  ;;  %v656_v55 = vpop.permute.xlu0 %655  ;;  %v863_v57 = vpop.permute.xlu1 %862 }
 0x258   : > { %2080 = vmatpush3.xpose.msk.msra.mxu1 %vm578_vm12, %v656_v55  ;;  %2085 = vmatpush3.xpose.msk.msra.mxu0 %vm578_vm12, %v789_v53 }
 0x259   : > { %2086 = vmatprep.mubr.msk.f32.mxu0 %vm2338_vm0, %v2337_v0  ;;  %2089 = vmatprep.subr.mxu1 %v2337_v0 }
 0x25a   : > { %2094 = vmatprep.subr.bf16.mxu0 %v2337_v0 }
 0x25b   : > { %2082 = vmatmul.mubr.msk.f32.vlgmr.msra.gmra.mrb[4].mxu1 %vm578_vm12, %v2343_v54  ;;  %2087 = vmatmul.mubr.msk.f32.vlgmr.msra.gmra.mrb[6].mxu0 %vm578_vm12, %v2343_v54 }
 0x25c   : > { %2090 = vmatpush3.xpose.msk.msra.mxu1 %vm578_vm12, %v863_v57  ;;  %2095 = vmatpush3.bf16.msra.mxu0 %v991_v58 }
 0x25d   : > { %2091 = vmatprep.mubr.msk.f32.mxu1 %vm2338_vm0, %v2337_v0  ;;  %2100 = vmatprep.subr.bf16.mxu1 %v2337_v0 }
 0x25e   : > { %2096 = vmatprep.mubr.msk.bf16.mxu0 %vm2338_vm0, %v2337_v0  ;;  %2106 = vmatprep.subr.bf16.mxu0 %v2337_v0 }
 0x25f   : > { %2092 = vmatmul.mubr.msk.f32.vlgmr.msra.gmra.mrb[6].mxu1 %vm578_vm12, %v2343_v54 }
 0x260   : > { %2101 = vmatpush3.bf16.msra.mxu1 %v1037_v60  ;;  %2102 = vmatprep.mubr.msk.bf16.mxu1 %vm2338_vm0, %v2337_v0 }
 0x261   : > { %2112 = vmatprep.subr.bf16.mxu1 %v2337_v0 }
 0x268   : > { %v942_v61 = vpop.permute.xlu1 %941  ;;  %v938_v63 = vpop.permute.xlu0 %937 }
 0x26d   : > { %v731_v2 = vpop.permute.xlu1 %730  ;;  %v735_v7 = vpop.permute.xlu0 %734 }
 0x32a   : > { %v650_v3 = vpop.f32.mrb[4].mxu0 }
 0x32b   : > { %v737_v4 = vadd.f32 %v731_v2, %v650_v3  ;;  %v2078_v5 = vpop.f32.mrb[5].mxu0 }
 0x32d   : > { %v741_v11 = vmul.f32 0.2, %v737_v4  ;;  %vm739_vm2 = vcmp.gt.f32.partialorder %v737_v4, 0.0 }
 0x32e   : > { %v725_v8 = vpop.f32.mrb[4].mxu1  ;;  %v858_v9 = vpop.f32.mrb[6].mxu0 }
 0x32f   : > { %v738_v12 = vadd.f32 %v735_v7, %v725_v8  ;;  %v944_v13 = vadd.f32 %v938_v63, %v858_v9  ;;  %v2083_v14 = vpop.f32.mrb[5].mxu1  ;;  %v2088_v15 = vpop.f32.mrb[7].mxu0  ;;  %v743_v25 = vsel %vm739_vm2, %v737_v4, %v741_v11 }
 0x330   : > { %v753_v29 = vsel %vm2589_vm4, %v743_v25, -1e+09 }
 0x331   : > { %v948_v17 = vmul.f32 0.2, %v944_v13  ;;  %vm946_vm3 = vcmp.gt.f32.partialorder %v944_v13, 0.0  ;;  %v742_v21 = vmul.f32 0.2, %v738_v12  ;;  %vm740_vm6 = vcmp.gt.f32.partialorder %v738_v12, 0.0 }
 0x332   : > { %v932_v18 = vpop.f32.mrb[6].mxu1  ;;  %v756_v36 = vsel %vm755_vm5, %v753_v29, -inf }
 0x333   : > { %v945_v22 = vadd.f32 %v942_v61, %v932_v18  ;;  %v950_v23 = vsel %vm946_vm3, %v944_v13, %v948_v17  ;;  %v2093_v24 = vpop.f32.mrb[7].mxu1  ;;  %v744_v32 = vsel %vm740_vm6, %v738_v12, %v742_v21 }
 0x334   : > { %v952_v26 = vsel %vm2589_vm4, %v950_v23, -1e+09  ;;  %v754_v37 = vsel %vm2598_vm8, %v744_v32, -1e+09 }
 0x335   : > { %v949_v27 = vmul.f32 0.2, %v945_v22  ;;  %v954_v28 = vsel %vm755_vm5, %v952_v26, -inf  ;;  %vm947_vm7 = vcmp.gt.f32.partialorder %v945_v22, 0.0  ;;  %v759_v39 = vsel %vm755_vm5, %v754_v37, -inf }
 0x336   : > { %955 = vmax.xlane.f32.xlu1 %v954_v28 }
 0x337   : > { %v951_v31 = vsel %vm947_vm7, %v945_v22, %v949_v27  ;;  %v2346_v22 = vmov 3  }
 0x338   : > { %v953_v33 = vsel %vm2598_vm8, %v951_v31, -1e+09  ;;  %2243 = vset.pattern.permute.xlu0 %v2346_v22 }
 0x339   : > { %v957_v35 = vsel %vm755_vm5, %v953_v33, -inf }
 0x33a   : > { %958 = vmax.xlane.f32.xlu0 %v957_v35  ;;  %757 = vmax.xlane.f32.xlu1 %v756_v36 }
 0x33e   : > { %760 = vmax.xlane.f32.xlu0 %v759_v39 }
 0x3c3   : > { %v956_v45 = vpop.xlane.xlu1 %955 }
 0x3c4   : > { %v960_v47 = vsub.f32 %v952_v26, %v956_v45 }
 0x3c6   : > { %v962_v49 = vmul.f32 1.442695, %v960_v47 }
 0x3c7   : > { %v959_v50 = vpop.xlane.xlu0 %958  ;;  %v758_v51 = vpop.xlane.xlu1 %757 }
 0x3c8   : > { %2261 = vpow2.f32 %v962_v49  ;;  %v961_v52 = vsub.f32 %v953_v33, %v959_v50  ;;  %v762_v53 = vsub.f32 %v753_v29, %v758_v51 }
 0x3ca   : > { %v964_v55 = vmul.f32 1.442695, %v961_v52  ;;  %v764_v56 = vmul.f32 1.442695, %v762_v53 }
 0x3cb   : > { %v761_v57 = vpop.xlane.xlu0 %760 }
 0x3cc   : > { %2263 = vpow2.f32 %v964_v55  ;;  %v763_v58 = vsub.f32 %v754_v37, %v761_v57 }
 0x3cd   : > { %2265 = vpow2.f32 %v764_v56 }
 0x3ce   : > { %v766_v59 = vmul.f32 1.442695, %v763_v58 }
 0x3d0   : > { %2267 = vpow2.f32 %v766_v59 }
 0x3d2   : > { %v2262_v60 = vpop.eup %2261 }
 0x3d3   : > { %v966_v61 = vsel %vm755_vm5, %v2262_v60, 0.0 }
 0x3d4   : > { %967 = vadd.xlane.f32.xlu1 %v966_v61 }
 0x3d6   : > { %v2264_v62 = vpop.eup %2263 }
 0x3d7   : > { %v2266_v63 = vpop.eup %2265  ;;  %v969_v1 = vsel %vm755_vm5, %v2264_v62, 0.0 }
 0x3d8   : > { %970 = vadd.xlane.f32.xlu0 %v969_v1  ;;  %v768_v2 = vsel %vm755_vm5, %v2266_v63, 0.0 }
 0x3d9   : > { %769 = vadd.xlane.f32.xlu1 %v768_v2 }
 0x3da   : > { %v2268_v3 = vpop.eup %2267 }
 0x3db   : > { %v771_v4 = vsel %vm755_vm5, %v2268_v3, 0.0 }
 0x3dc   : > { %772 = vadd.xlane.f32.xlu0 %v771_v4 }
 0x3ea   : > { %1171 = vrot.lane.b32.xlu1 %v2517_v46, %s2345_s18 }
 0x3ee   : > { %1320 = vperm.xlu1 %2241, %v2517_v46  }
 0x3f2   : > { %1324 = vperm.xlu1 %2241, %v2521_v48   ;;  %1245 = vrot.lane.b32.xlu0 %v2521_v48, %s2345_s18 }
 0x3f6   : > { %2242 = vset.pattern.permute.xlu1 %v2346_v22 }
 0x461   : > { %v968_v5 = vpop.xlane.xlu1 %967 }
 0x462   : > { %2269 = vrcp.f32 %v968_v5 }
 0x465   : > { %v971_v6 = vpop.xlane.xlu0 %970 }
 0x466   : > { %2271 = vrcp.f32 %v971_v6  ;;  %v770_v7 = vpop.xlane.xlu1 %769 }
 0x467   : > { %2273 = vrcp.f32 %v770_v7 }
 0x469   : > { %v773_v8 = vpop.xlane.xlu0 %772 }
 0x46a   : > { %2275 = vrcp.f32 %v773_v8  ;;  %v1172_v20 = vpop.permute.xlu1 %1171 }
 0x46c   : > { %v2270_v9 = vpop.eup %2269 }
 0x46d   : > { %v974_v10 = vmul.f32 %v2270_v9, %v2262_v60 }
 0x46e   : > { %v1321_v23 = vpop.permute.xlu1 %1320 }
 0x46f   : > { %v984_v11 = vpack.c.bf16 %v974_v10, %v974_v10 }
 0x470   : > { %v2272_v12 = vpop.eup %2271 }
 0x471   : > { %v975_v13 = vmul.f32 %v2272_v12, %v2264_v62  ;;  %2097 = vmatmul.mubr.msk.bf16.vlgmr.msra.gmra.mrb[8].mxu0 %vm755_vm5, %v984_v11  ;;  %v2274_v15 = vpop.eup %2273 }
 0x472   : > { %2107 = vmatpush3.bf16.msra.mxu0 %v2492_v34  ;;  %2108 = vmatprep.mubr.msk.bf16.mxu0 %vm2338_vm0, %v2337_v0  ;;  %v776_v16 = vmul.f32 %v2274_v15, %v2266_v63  ;;  %v1325_v27 = vpop.permute.xlu1 %1324 }
 0x473   : > { %v985_v14 = vpack.c.bf16 %v975_v13, %v975_v13  ;;  %2118 = vmatprep.subr.mxu0 %v2337_v0 }
 0x474   : > { %v2276_v17 = vpop.eup %2275  ;;  %v786_v34 = vpack.c.bf16 %v776_v16, %v776_v16 }
 0x475   : > { %2103 = vmatmul.mubr.msk.bf16.vlgmr.msra.gmra.mrb[8].mxu1 %vm755_vm5, %v985_v14  ;;  %v777_v18 = vmul.f32 %v2276_v17, %v2268_v3 }
 0x476   : > { %2113 = vmatpush3.bf16.msra.mxu1 %v2504_v40  ;;  %2114 = vmatprep.mubr.msk.bf16.mxu1 %vm2338_vm0, %v2337_v0  ;;  %v1246_v40 = vpop.permute.xlu0 %1245 }
 0x477   : > { %2123 = vmatprep.subr.mxu1 %v2337_v0  ;;  %v787_v21 = vpack.c.bf16 %v777_v18, %v777_v18 }
 0x47d   : > { %2109 = vmatmul.mubr.msk.bf16.vlgmr.msra.gmra.mrb[8].mxu0 %vm755_vm5, %v786_v34 }
 0x47e   : > { %2119 = vmatpush3.xpose.msk.msra.mxu0 %vm578_vm12, %v1172_v20  ;;  %2120 = vmatprep.mubr.msk.f32.mxu0 %vm2338_vm0, %v2337_v0 }
 0x47f   : > { %2128 = vmatprep.subr.bf16.mxu0 %v2337_v0 }
 0x481   : > { %2115 = vmatmul.mubr.msk.bf16.vlgmr.msra.gmra.mrb[8].mxu1 %vm755_vm5, %v787_v21 }
 0x482   : > { %2124 = vmatpush3.xpose.msk.msra.mxu1 %vm578_vm12, %v1246_v40  ;;  %2125 = vmatprep.mubr.msk.f32.mxu1 %vm2338_vm0, %v2337_v0 }
 0x483   : > { %2134 = vmatprep.subr.bf16.mxu1 %v2337_v0 }
 0x485   : > { %2121 = vmatmul.mubr.msk.f32.vlgmr.msra.gmra.mrb[12].mxu0 %vm578_vm12, %v2343_v54 }
 0x486   : > { %2129 = vmatpush3.bf16.msra.mxu0 %v2499_v38  ;;  %2130 = vmatprep.mubr.msk.bf16.mxu0 %vm2338_vm0, %v2337_v0 }
 0x487   : > { %2140 = vmatprep.subr.mxu0 %v2337_v0 }
 0x489   : > { %2126 = vmatmul.mubr.msk.f32.vlgmr.msra.gmra.mrb[12].mxu1 %vm578_vm12, %v2343_v54 }
 0x48a   : > { %2135 = vmatpush3.bf16.msra.mxu1 %v2507_v41  ;;  %2136 = vmatprep.mubr.msk.bf16.mxu1 %vm2338_vm0, %v2337_v0 }
 0x48b   : > { %2145 = vmatprep.subr.mxu1 %v2337_v0 }
 0x558   : > { %v1241_v38 = vpop.f32.mrb[12].mxu0 }
 0x559   : > { %v1327_v24 = vadd.f32 %v1321_v23, %v1241_v38  ;;  %v2122_v25 = vpop.f32.mrb[13].mxu0 }
 0x55b   : > { %v1331_v26 = vmul.f32 0.2, %v1327_v24  ;;  %vm1329_vm9 = vcmp.gt.f32.partialorder %v1327_v24, 0.0 }
 0x55c   : > { %v1315_v28 = vpop.f32.mrb[12].mxu1 }
 0x55d   : > { %v1328_v29 = vadd.f32 %v1325_v27, %v1315_v28  ;;  %v1333_v31 = vsel %vm1329_vm9, %v1327_v24, %v1331_v26  ;;  %v2127_v32 = vpop.f32.mrb[13].mxu1 }
 0x55e   : > { %v1335_v41 = vsel %vm2589_vm4, %v1333_v31, -1e+09 }
 0x55f   : > { %v1332_v33 = vmul.f32 0.2, %v1328_v29  ;;  %v1337_v35 = vsel %vm755_vm5, %v1335_v41, -inf  ;;  %vm1330_vm10 = vcmp.gt.f32.partialorder %v1328_v29, 0.0 }
 0x560   : > { %1338 = vmax.xlane.f32.xlu0 %v1337_v35 }
 0x561   : > { %v1334_v36 = vsel %vm1330_vm10, %v1328_v29, %v1332_v33 }
 0x562   : > { %v1336_v37 = vsel %vm2598_vm8, %v1334_v36, -1e+09 }
 0x563   : > { %v1340_v39 = vsel %vm755_vm5, %v1336_v37, -inf }
 0x564   : > { %1341 = vmax.xlane.f32.xlu1 %v1340_v39 }
 0x575   : > { %1463 = vrot.lane.b32.xlu1 %v2517_v46, %s2347_s19 }
 0x579   : > { %1612 = vperm.xlu1 %2242, %v2517_v46  }
 0x57d   : > { %1616 = vperm.xlu1 %2242, %v2521_v48  }
 0x5ed   : > { %v1339_v43 = vpop.xlane.xlu0 %1338 }
 0x5ee   : > { %v1343_v45 = vsub.f32 %v1335_v41, %v1339_v43 }
 0x5f0   : > { %v1345_v47 = vmul.f32 1.442695, %v1343_v45 }
 0x5f1   : > { %v1342_v49 = vpop.xlane.xlu1 %1341 }
 0x5f2   : > { %2277 = vpow2.f32 %v1345_v47  ;;  %v1344_v50 = vsub.f32 %v1336_v37, %v1342_v49 }
 0x5f4   : > { %v1347_v51 = vmul.f32 1.442695, %v1344_v50 }
 0x5f5   : > { %v1464_v62 = vpop.permute.xlu1 %1463 }
 0x5f6   : > { %2279 = vpow2.f32 %v1347_v51 }
 0x5f9   : > { %v1613_v2 = vpop.permute.xlu1 %1612 }
 0x5fc   : > { %v2278_v52 = vpop.eup %2277 }
 0x5fd   : > { %v1349_v53 = vsel %vm755_vm5, %v2278_v52, 0.0  ;;  %v1617_v7 = vpop.permute.xlu1 %1616 }
 0x5fe   : > { %1350 = vadd.xlane.f32.xlu0 %v1349_v53 }
 0x600   : > { %v2280_v55 = vpop.eup %2279 }
 0x601   : > { %v1352_v56 = vsel %vm755_vm5, %v2280_v55, 0.0 }
 0x602   : > { %1353 = vadd.xlane.f32.xlu0 %v1352_v56 }
 0x618   : > { %1537 = vrot.lane.b32.xlu0 %v2521_v48, %s2347_s19 }
 0x68b   : > { %v1351_v46 = vpop.xlane.xlu0 %1350 }
 0x68c   : > { %2281 = vrcp.f32 %v1351_v46 }
 0x68f   : > { %v1354_v57 = vpop.xlane.xlu0 %1353 }
 0x690   : > { %2283 = vrcp.f32 %v1354_v57 }
 0x693   : > { %v1538_v48 = vpop.permute.xlu0 %1537 }
 0x696   : > { %v2282_v58 = vpop.eup %2281 }
 0x697   : > { %v1357_v59 = vmul.f32 %v2282_v58, %v2278_v52 }
 0x699   : > { %v1367_v60 = vpack.c.bf16 %v1357_v59, %v1357_v59 }
 0x69a   : > { %v2284_v61 = vpop.eup %2283 }
 0x69b   : > { %v1358_v63 = vmul.f32 %v2284_v61, %v2280_v55  ;;  %2131 = vmatmul.mubr.msk.bf16.vlgmr.msra.gmra.mrb[8].mxu0 %vm755_vm5, %v1367_v60 }
 0x69c   : > { %2141 = vmatpush3.xpose.msk.msra.mxu0 %vm578_vm12, %v1464_v62  ;;  %2142 = vmatprep.mubr.msk.f32.mxu0 %vm2338_vm0, %v2337_v0 }
 0x69d   : > { %v1368_v1 = vpack.c.bf16 %v1358_v63, %v1358_v63  ;;  %2150 = vmatprep.subr.bf16.mxu0 %v2337_v0 }
 0x69f   : > { %2137 = vmatmul.mubr.msk.bf16.vlgmr.msra.gmra.mrb[8].mxu1 %vm755_vm5, %v1368_v1 }
 0x6a0   : > { %2146 = vmatpush3.xpose.msk.msra.mxu1 %vm578_vm12, %v1538_v48  ;;  %2147 = vmatprep.mubr.msk.f32.mxu1 %vm2338_vm0, %v2337_v0 }
 0x6a1   : > { %2156 = vmatprep.subr.bf16.mxu1 %v2337_v0 }
 0x6a3   : > { %2143 = vmatmul.mubr.msk.f32.vlgmr.msra.gmra.mrb[14].mxu0 %vm578_vm12, %v2343_v54 }
 0x6a4   : > { %2151 = vmatpush3.bf16.msra.mxu0 %v2510_v42  ;;  %2152 = vmatprep.mubr.msk.bf16.mxu0 %vm2338_vm0, %v2337_v0 }
 0x6a7   : > { %2148 = vmatmul.mubr.msk.f32.vlgmr.msra.gmra.mrb[14].mxu1 %vm578_vm12, %v2343_v54 }
 0x6a8   : > { %2157 = vmatpush3.bf16.msra.mxu1 %v2515_v44  ;;  %2158 = vmatprep.mubr.msk.bf16.mxu1 %vm2338_vm0, %v2337_v0 }
 0x776   : > { %v1533_v3 = vpop.f32.mrb[14].mxu0 }
 0x777   : > { %v1619_v4 = vadd.f32 %v1613_v2, %v1533_v3  ;;  %v2144_v5 = vpop.f32.mrb[15].mxu0 }
 0x779   : > { %v1623_v6 = vmul.f32 0.2, %v1619_v4  ;;  %vm1621_vm11 = vcmp.gt.f32.partialorder %v1619_v4, 0.0 }
 0x77a   : > { %v1607_v8 = vpop.f32.mrb[14].mxu1 }
 0x77b   : > { %v1620_v42 = vadd.f32 %v1617_v7, %v1607_v8  ;;  %v1625_v9 = vsel %vm1621_vm11, %v1619_v4, %v1623_v6  ;;  %v2149_v10 = vpop.f32.mrb[15].mxu1 }
 0x77c   : > { %v1627_v11 = vsel %vm2589_vm4, %v1625_v9, -1e+09 }
 0x77d   : > { %v1624_v54 = vmul.f32 0.2, %v1620_v42  ;;  %v1629_v44 = vsel %vm755_vm5, %v1627_v11, -inf  ;;  %vm1622_vm12 = vcmp.gt.f32.partialorder %v1620_v42, 0.0 }
 0x77e   : > { %1630 = vmax.xlane.f32.xlu0 %v1629_v44 }
 0x77f   : > { %v1626_v0 = vsel %vm1622_vm12, %v1620_v42, %v1624_v54 }
 0x780   : > { %v1628_v12 = vsel %vm2598_vm8, %v1626_v0, -1e+09 }
 0x781   : > { %v1632_v13 = vsel %vm755_vm5, %v1628_v12, -inf }
 0x782   : > { %1633 = vmax.xlane.f32.xlu1 %v1632_v13 }
 0x80b   : > { %v1631_v14 = vpop.xlane.xlu0 %1630 }
 0x80c   : > { %v1635_v15 = vsub.f32 %v1627_v11, %v1631_v14 }
 0x80e   : > { %v1637_v16 = vmul.f32 1.442695, %v1635_v15 }
 0x80f   : > { %v1634_v17 = vpop.xlane.xlu1 %1633 }
 0x810   : > { %2285 = vpow2.f32 %v1637_v16  ;;  %v1636_v18 = vsub.f32 %v1628_v12, %v1634_v17 }
 0x812   : > { %v1639_v19 = vmul.f32 1.442695, %v1636_v18 }
 0x814   : > { %2287 = vpow2.f32 %v1639_v19 }
 0x81a   : > { %v2286_v34 = vpop.eup %2285 }
 0x81b   : > { %v1641_v20 = vsel %vm755_vm5, %v2286_v34, 0.0 }
 0x81c   : > { %1642 = vadd.xlane.f32.xlu0 %v1641_v20 }
 0x81e   : > { %v2288_v21 = vpop.eup %2287 }
 0x81f   : > { %v1644_v40 = vsel %vm755_vm5, %v2288_v21, 0.0 }
 0x820   : > { %1645 = vadd.xlane.f32.xlu0 %v1644_v40 }
 0x8a9   : > { %v1643_v30 = vpop.xlane.xlu0 %1642 }
 0x8aa   : > { %2289 = vrcp.f32 %v1643_v30 }
 0x8ad   : > { %v1646_v22 = vpop.xlane.xlu0 %1645 }
 0x8ae   : > { %2291 = vrcp.f32 %v1646_v22 }
 0x8b4   : > { %v2290_v23 = vpop.eup %2289 }
 0x8b5   : > { %v1649_v38 = vmul.f32 %v2290_v23, %v2286_v34 }
 0x8b7   : > { %v1659_v24 = vpack.c.bf16 %v1649_v38, %v1649_v38 }
 0x8b8   : > { %v2292_v25 = vpop.eup %2291 }
 0x8b9   : > { %v1650_v26 = vmul.f32 %v2292_v25, %v2288_v21  ;;  %2153 = vmatmul.mubr.msk.bf16.vlgmr.msra.gmra.mrb[8].mxu0 %vm755_vm5, %v1659_v24 }
 0x8bb   : > { %v1660_v27 = vpack.c.bf16 %v1650_v26, %v1650_v26 }
 0x8bd   : > { %2159 = vmatmul.mubr.msk.bf16.vlgmr.msra.gmra.mrb[8].mxu1 %vm755_vm5, %v1660_v27 }
 0x98c   : > { %v1701_v28 = vpop.f32.mrb[8].mxu0 }
 0x98d   : > { %v1757_v29 = vmul.f32 1.442695, %v1701_v28  ;;  %v2154_v31 = vpop.f32.mrb[9].mxu0  ;;  %vm1755_vm0 = vcmp.gt.f32.partialorder %v1701_v28, 0.0 }
 0x98e   : > { %v1704_v32 = vpop.f32.mrb[10].mxu0 }
 0x98f   : > { %2293 = vpow2.f32 %v1757_v29  ;;  %v2155_v41 = vpop.f32.mrb[11].mxu0 }
 0x990   : > { %v1747_v33 = vpop.f32.mrb[8].mxu1 }
 0x991   : > { %v1759_v35 = vmul.f32 1.442695, %v1747_v33  ;;  %v2160_v36 = vpop.f32.mrb[9].mxu1  ;;  %vm1756_vm13 = vcmp.gt.f32.partialorder %v1747_v33, 0.0 }
 0x992   : > { %v1750_v37 = vpop.f32.mrb[10].mxu1 }
 0x993   : > { %2295 = vpow2.f32 %v1759_v35  ;;  %v2161_v39 = vpop.f32.mrb[11].mxu1 }
 0x999   : > { %v2294_v43 = vpop.eup %2293 }
 0x99a   : > { %v1970_v45 = vadd.f32 -1.0, %v2294_v43 }
 0x99c   : > { %v1763_v50 = vsel %vm1755_vm0, %v1701_v28, %v1970_v45 }
 0x99d   : > { %v2296_v47 = vpop.eup %2295 }
 0x99e   : > { %v1971_v49 = vadd.f32 -1.0, %v2296_v47 }
 0x9a0   : > { %v1764_v51 = vsel %vm1756_vm13, %v1747_v33, %v1971_v49 }
 0x9a1   : > { %v1982_v52 = vpack.c.bf16 %v1764_v51, %v1763_v50 }
 0x9a3   : > { %1983 = vst [vmem:[%s334_s7] sm:$0xff] %v1982_v52  }
 0x9a4 PF: > { %s15_s22 = sadd.s32 1, %s2335_s22   ;;  %s2729_s18 = smov %s2327_s20 }
 0x9a5   : > { %p12_p7 = scmp.ge.s32.totalorder %s15_s22, 8   ;;  %s2730_s19 = smov %s2331_s21 }
 0x9a6   : > { %s2731_s20 = smov %s2734_s23  ;;  %s2732_s21 = smov %s2738_s24 }
 0x9a7   :  { %14 = sbr.rel (!%p12_p7) target bundleno = 3 (0x3), region = 82 }

// kernel: forward.10
= control target key start
LH: loop header
LB: loop body
LE: loop exit
PB: predicated region body
PF: predicated region fallthrough
CT: control target
= control target key end

     0   :  { %s2378_s18 = smov 0   ;;  %s2380_s19 = smov 0   ;;  %s2703_s0 = inlined_call_operand.vmem [shape: bf16[3,2,2,8,128], index: 0, kind: input, shape index: {}]   ;;  %s2704_s1 = inlined_call_operand.vmem [shape: bf16[3,2,2,8,8], index: 1, kind: input, shape index: {}]   ;;  %s2705_s2 = inlined_call_operand.vmem [shape: bf16[3,128,128], index: 2, kind: input, shape index: {}]   ;;  %s2706_s3 = inlined_call_operand.vmem [shape: f32[3,1,128], index: 3, kind: input, shape index: {}]   ;;  %s2707_s4 = inlined_call_operand.vmem [shape: bf16[3,128,8], index: 4, kind: input, shape index: {}]   ;;  %s2708_s5 = inlined_call_operand.vmem [shape: f32[3,2,2,8,128], index: 5, kind: output, shape index: {}]  }
   0x1   :  { %s2382_s20 = smov 0   ;;  %s2384_s21 = smov 0  }
   0x2   :  { %s2386_s22 = smov 0  }
   0x3 LB: > { %s24_s23 = sadd.s32 1, %s2327_s20  ;;  %s27_s24 = sadd.s32 1, %s2331_s21  ;;  %s2335_s22 = sphi %s2386_s22, %s15_s22   ;;  %s2331_s21 = sphi %s2384_s21, %s2724_s21   ;;  %s2327_s20 = sphi %s2382_s20, %s2723_s20   ;;  %s2323_s19 = sphi %s2380_s19, %s2722_s19   ;;  %s2319_s18 = sphi %s2378_s18, %s2721_s18  }
   0x4   : > { %p25_p0 = scmp.ge.s32.totalorder %s24_s23, 2  ;;  %p1924_p1 = scmp.ge.s32.totalorder %s2335_s22, 1 }
   0x5   : > { %p251_p2 = scmp.lt.s32.totalorder %s2335_s22, 7 }
   0x6   : > { %s2726_s23 = smov (%p25_p0, %s24_s23), 0  ;;  %s2728_s24 = smov (!%p25_p0, %s27_s24), %s2331_s21 }
   0x7   : > { %p252_p3 = pnand %p1924_p1, %p251_p2  ;;  %p29_p4 = scmp.ge.s32.totalorder %s2728_s24, 3 }
   0x8   : > { %p309_p5 = scmp.lt.s32.totalorder (!%p252_p3), %s2323_s19, 2  ;;  %p311_p6 = scmp.lt.s32.totalorder (!%p252_p3), %s2319_s18, 1  ;;  %v2337_v0 = vmov (!%p252_p3), 0.0   ;;  %vm2338_vm0 = vmmov (!%p252_p3), 0   ;;  %v587_v18 = vlaneseq (!%p252_p3)  ;;  %vm1003_vm8 = vcmask (!%p252_p3), 1043456  }
   0x9   : > { %s2730_s24 = smov (%p29_p4, %s2728_s24), 0  ;;  %255 = sbr.rel (%p252_p3) target bundleno = 2452 (0x994), region = 40 }
   0xa   : > { %2038 = vmatprep.subr.bf16.mxu0 (!%p252_p3), %v2337_v0  ;;  %2054 = vmatprep.mubr.msk.bf16.mxu0 (!%p252_p3), %vm2338_vm0, %v2337_v0  ;;  %v588_v19 = vand.u32 (!%p252_p3), 127, %v587_v18  ;;  %v2339_v45 = vmov (!%p252_p3), 1   ;;  %s2340_s17 = smov (!%p252_p3), 123   ;;  %v2342_v50 = vmov (!%p252_p3), 0   ;;  %vm592_vm12 = vcmask (!%p252_p3), 7168   ;;  %s2345_s27 = smov (!%p252_p3), 122  }
   0xb   : > { %2058 = vmatprep.subr.bf16.mxu1 (!%p252_p3), %v2337_v0  ;;  %2074 = vmatprep.mubr.msk.bf16.mxu1 (!%p252_p3), %vm2338_vm0, %v2337_v0  ;;  %v2343_v54 = vmov (!%p252_p3), 1.0   ;;  %s2347_s28 = smov (!%p252_p3), 121  }
   0xc   : > { %vm1373_vm1 = vcmp.ge.s32.totalorder (!%p252_p3), %v588_v19, 64  ;;  %vm1374_vm2 = vcmp.lt.s32.totalorder (!%p252_p3), %v588_v19, 96  ;;  %vm793_vm3 = vcmp.lt.s32.totalorder (!%p252_p3), %v588_v19, 32  ;;  %vm1665_vm5 = vcmp.ge.s32.totalorder (!%p252_p3), %v588_v19, 96  ;;  %2242 = vset.pattern.permute.xlu1 (!%p252_p3), %v2339_v45  ;;  %2241 = vset.pattern.permute.xlu0 (!%p252_p3), %v2339_v45 }
   0xd   : > { %vm2477_vm4 = vmand (!%p252_p3), %vm1373_vm1, %vm1374_vm2  ;;  %vm990_vm10 = vcmp.ge.s32.totalorder (!%p252_p3), %v588_v19, 32  ;;  %vm991_vm11 = vcmp.lt.s32.totalorder (!%p252_p3), %v588_v19, 64 }
   0xe   : > { %vm2481_vm6 = vmpackc.low (!%p252_p3), %vm793_vm3, %vm793_vm3 }
   0xf   : > { %vm1378_vm7 = vmpackc.low (!%p252_p3), %vm2477_vm4, %vm2477_vm4 }
  0x10   : > { %s2732_s19 = smov (!%p309_p5, %s2323_s19), 2  ;;  %s2734_s18 = smov (!%p311_p6, %s2319_s18), 1  ;;  %vm2488_vm9 = vmpackc.low %vm1665_vm5, %vm1665_vm5  ;;  %vm769_vm5 = vcmask 64512  }
  0x11   : > { %s1984_s25 = sshll.u32 %s2732_s19, 6  ;;  %s1926_s26 = sshll.u32 %s2732_s19, 2  ;;  %vm2532_vm13 = vmand %vm990_vm10, %vm991_vm11 }
  0x12   : > { %s2421_s29 = scalar_lea.vmem %s2705_s2, %s1984_s25  ;;  %s1925_s30 = sshll.u32 %s2734_s18, 1  ;;  %vm995_vm14 = vmpackc.low %vm2532_vm13, %vm2532_vm13 }
  0x13   : > { %v2248_v1 = vld [vmem:[%s2421_s29] sm:$0xff]   ;;  %s2424_s6 = sadd.s32 %s1926_s26, %s1925_s30  ;;  %v2249_v2 = vld [vmem:[%s2421_s29 + $0x8] sm:$0xff]   ;;  %v2250_v3 = vld [vmem:[%s2421_s29 + $0x10] sm:$0xff]   ;;  %s2433_s10 = scalar_lea.vmem %s2707_s4, %s1984_s25 }
  0x14   : > { %2039 = vmatpush3.bf16.msra.mxu0 %v2248_v1  ;;  %s1927_s7 = sshll.u32 %s2424_s6, 2  ;;  %v2257_v4 = vld [vmem:[%s2433_s10] sm:$0xff]   ;;  %v2251_v5 = vld [vmem:[%s2421_s29 + $0x18] sm:$0xff]   ;;  %v2258_v6 = vld [vmem:[%s2433_s10 + $0x8] sm:$0xff]   ;;  %s334_s16 = scalar_lea.vmem %s2706_s3, %s2732_s19 }
  0x15   : > { %2040 = vmatprep.subr.bf16.mxu0 %v2337_v0  ;;  %s2441_s13 = scalar_lea.vmem %s2703_s0, %s1927_s7  ;;  %2059 = vmatpush3.bf16.msra.mxu1 %v2257_v4  ;;  %v2252_v7 = vld [vmem:[%s2421_s29 + $0x20] sm:$0xff]   ;;  %v2259_v8 = vld [vmem:[%s2433_s10 + $0x10] sm:$0xff]   ;;  %v2253_v9 = vld [vmem:[%s2421_s29 + $0x28] sm:$0xff]   ;;  %s2341_s18 = smov 124  }
  0x16   : > { %2060 = vmatprep.subr.bf16.mxu1 %v2337_v0  ;;  %v2260_v10 = vld [vmem:[%s2433_s10 + $0x18] sm:$0xff]   ;;  %v2254_v11 = vld [vmem:[%s2421_s29 + $0x30] sm:$0xff]   ;;  %v2261_v12 = vld [vmem:[%s2433_s10 + $0x20] sm:$0xff]   ;;  %s326_s26 = scalar_lea.vmem %s2704_s1, %s1927_s7 }
  0x17   : > { %v2255_v13 = vld [vmem:[%s2421_s29 + $0x38] sm:$0xff]   ;;  %v2262_v14 = vld [vmem:[%s2433_s10 + $0x28] sm:$0xff]   ;;  %v2256_v15 = vld [vmem:[%s2441_s13] sm:$0xff]   ;;  %s1937_s29 = sshll.u32 %s2424_s6, 3 }
  0x18   : > { %2041 = vmatpush3.bf16.msra.mxu0 %v2249_v2  ;;  %v2263_v16 = vld [vmem:[%s2433_s10 + $0x30] sm:$0xff]   ;;  %v2264_v17 = vld [vmem:[%s2433_s10 + $0x38] sm:$0xff]   ;;  %v1938_v20 = vld [vmem:[%s334_s16] ss:$0 sm:$0xff]  ;;  %s348_s8 = scalar_lea.vmem %s2708_s5, %s1937_s29 }
  0x19   : > { %2042 = vmatprep.subr.bf16.mxu0 %v2337_v0  ;;  %2061 = vmatpush3.bf16.msra.mxu1 %v2258_v6  ;;  %v354_v62 = vld [vmem:[%s326_s26] sm:$0xf]  ;;  %v355_v1 = vld [vmem:[%s326_s26 + $0x4] sm:$0xf] }
  0x1a   : > { %2062 = vmatprep.subr.bf16.mxu1 %v2337_v0  ;;  %vm759_vm15 = vcmp.gt.bf16.partialorder %v354_v62, 0  ;;  %vm760_vm1 = vcmp.gt.bf16.partialorder %v355_v1, 0 }
  0x1b   : > { %v761_v6 = vsel %vm759_vm15, 65537, %v2342_v50 }
  0x1c   : > { %2043 = vmatpush3.bf16.msra.mxu0 %v2250_v3 }
  0x1d   : > { %2044 = vmatprep.subr.bf16.mxu0 %v2337_v0  ;;  %2063 = vmatpush3.bf16.msra.mxu1 %v2259_v8 }
  0x1e   : > { %2064 = vmatprep.subr.bf16.mxu1 %v2337_v0 }
  0x20   : > { %2045 = vmatpush3.bf16.msra.mxu0 %v2251_v5 }
  0x21   : > { %2046 = vmatprep.subr.bf16.mxu0 %v2337_v0  ;;  %2065 = vmatpush3.bf16.msra.mxu1 %v2260_v10  ;;  %v763_v10 = vunpack.c.l.b16 %v761_v6 }
  0x22   : > { %2066 = vmatprep.subr.bf16.mxu1 %v2337_v0 }
  0x23   : > { %vm2582_vm4 = vcmp.ne.s32.totalorder %v763_v10, 0 }
  0x24   : > { %2047 = vmatpush3.bf16.msra.mxu0 %v2252_v7 }
  0x25   : > { %2048 = vmatprep.subr.bf16.mxu0 %v2337_v0  ;;  %2067 = vmatpush3.bf16.msra.mxu1 %v2261_v12 }
  0x26   : > { %2068 = vmatprep.subr.bf16.mxu1 %v2337_v0 }
  0x28   : > { %2049 = vmatpush3.bf16.msra.mxu0 %v2253_v9 }
  0x29   : > { %2050 = vmatprep.subr.bf16.mxu0 %v2337_v0  ;;  %2069 = vmatpush3.bf16.msra.mxu1 %v2262_v14 }
  0x2a   : > { %2070 = vmatprep.subr.bf16.mxu1 %v2337_v0 }
  0x2c   : > { %2051 = vmatpush3.bf16.msra.mxu0 %v2254_v11 }
  0x2d   : > { %2052 = vmatprep.subr.bf16.mxu0 %v2337_v0  ;;  %2071 = vmatpush3.bf16.msra.mxu1 %v2263_v16  ;;  %v762_v16 = vsel %vm760_vm1, 65537, %v2342_v50 }
  0x2e   : > { %2072 = vmatprep.subr.bf16.mxu1 %v2337_v0 }
  0x30   : > { %2053 = vmatpush3.bf16.msra.mxu0 %v2255_v13 }
  0x31   : > { %2078 = vmatprep.subr.mxu0 %v2337_v0  ;;  %2073 = vmatpush3.bf16.msra.mxu1 %v2264_v17 }
  0x32   : > { %2083 = vmatprep.subr.mxu1 %v2337_v0 }
  0x33   : > { %2055 = vmatmul.mubr.bf16.vlgmr.msra.gmra.mrb[0].mxu0 %v2256_v15 }
  0x34   : > { %2080 = vmatprep.mubr.msk.f32.mxu0 %vm2338_vm0, %v2337_v0 }
 0x106   : > { %v467_v22 = vpop.f32.mrb[0].mxu0 }
 0x107   : > { %v468_v23 = vadd.f32 %v1938_v20, %v467_v22  ;;  %v2056_v24 = vpop.f32.mrb[1].mxu0 }
 0x108   : > { %v470_v26 = vpop.f32.mrb[2].mxu0 }
 0x109   : > { %v1986_v27 = vpack.c.bf16 %v468_v23, %v468_v23  ;;  %v471_v28 = vadd.f32 %v1938_v20, %v470_v26  ;;  %v2057_v29 = vpop.f32.mrb[3].mxu0  ;;  %v764_v20 = vunpack.c.l.b16 %v762_v16 }
 0x10b   : > { %v474_v31 = vpack.c.bf16 %v471_v28, %v468_v23  ;;  %v1987_v32 = vpack.c.bf16 %v471_v28, %v471_v28  ;;  %v798_v33 = vsel %vm2481_vm6, %v1986_v27, 0  ;;  %v1379_v35 = vsel %vm1378_vm7, %v1986_v27, 0 }
 0x10c   : > { %v2495_v34 = vsel %vm1003_vm8, %v798_v33, 0  ;;  %v1671_v36 = vsel %vm2488_vm9, %v1986_v27, 0  ;;  %v2502_v38 = vsel %vm1003_vm8, %v1379_v35, 0  ;;  %v996_v56 = vsel %vm995_vm14, %v1986_v27, 0 }
 0x10d   : > { %2075 = vmatmul.mubr.bf16.vlgmr.msra.gmra.mrb[0].mxu1 %v474_v31  ;;  %v799_v37 = vsel %vm2481_vm6, %v1987_v32, 0  ;;  %v1380_v39 = vsel %vm1378_vm7, %v1987_v32, 0  ;;  %v2513_v42 = vsel %vm1003_vm8, %v1671_v36, 0  ;;  %v1672_v43 = vsel %vm2488_vm9, %v1987_v32, 0 }
 0x10e   : > { %2085 = vmatprep.mubr.msk.f32.mxu1 %vm2338_vm0, %v2337_v0  ;;  %v2507_v40 = vsel %vm1003_vm8, %v799_v37, 0  ;;  %v2510_v41 = vsel %vm1003_vm8, %v1380_v39, 0  ;;  %v2518_v44 = vsel %vm1003_vm8, %v1672_v43, 0  ;;  %v1005_v58 = vsel %vm1003_vm8, %v996_v56, 0 }
 0x10f   : > { %v997_v59 = vsel %vm995_vm14, %v1987_v32, 0  ;;  %v2344_v43 = vmov 2  }
 0x110   : > { %v1051_v60 = vsel %vm1003_vm8, %v997_v59, 0  ;;  %vm2591_vm8 = vcmp.ne.s32.totalorder %v764_v20, 0 }
 0x1e0   : > { %v2520_v46 = vpop.f32.mrb[0].mxu1 }
 0x1e1   : > { %802 = vrot.lane.b32.xlu1 %v2520_v46, %s2340_s17  ;;  %590 = vrot.lane.b32.xlu0 %v2520_v46, %s2341_s18  ;;  %v2076_v47 = vpop.f32.mrb[1].mxu1 }
 0x1e2   : > { %v2524_v48 = vpop.f32.mrb[2].mxu1 }
 0x1e3   : > { %v2077_v49 = vpop.f32.mrb[3].mxu1 }
 0x1e5   : > { %876 = vrot.lane.b32.xlu1 %v2524_v48, %s2340_s17  ;;  %669 = vrot.lane.b32.xlu0 %v2524_v48, %s2341_s18 }
 0x1e9   : > { %955 = vperm.xlu1 %2242, %v2524_v48   ;;  %951 = vperm.xlu0 %2241, %v2520_v46  }
 0x1ed   : > { %2243 = vset.pattern.permute.xlu1 %v2342_v50  ;;  %2244 = vset.pattern.permute.xlu0 %v2342_v50 }
 0x1ee   : > { %744 = vperm.xlu1 %2243, %v2520_v46   ;;  %748 = vperm.xlu0 %2244, %v2524_v48  }
 0x1f2   : > { %2245 = vset.pattern.permute.xlu1 %v2344_v43 }
 0x253   : > { %v591_v52 = vpop.permute.xlu0 %590  ;;  %v803_v53 = vpop.permute.xlu1 %802 }
 0x254   : > { %2079 = vmatpush3.xpose.msk.msra.mxu0 %vm592_vm12, %v591_v52 }
 0x255   : > { %2088 = vmatprep.subr.mxu0 %v2337_v0 }
 0x257   : > { %2081 = vmatmul.mubr.msk.f32.vlgmr.msra.gmra.mrb[4].mxu0 %vm592_vm12, %v2343_v54  ;;  %v670_v55 = vpop.permute.xlu0 %669  ;;  %v877_v57 = vpop.permute.xlu1 %876 }
 0x258   : > { %2084 = vmatpush3.xpose.msk.msra.mxu1 %vm592_vm12, %v670_v55  ;;  %2089 = vmatpush3.xpose.msk.msra.mxu0 %vm592_vm12, %v803_v53 }
 0x259   : > { %2090 = vmatprep.mubr.msk.f32.mxu0 %vm2338_vm0, %v2337_v0  ;;  %2093 = vmatprep.subr.mxu1 %v2337_v0 }
 0x25a   : > { %2098 = vmatprep.subr.bf16.mxu0 %v2337_v0 }
 0x25b   : > { %2086 = vmatmul.mubr.msk.f32.vlgmr.msra.gmra.mrb[4].mxu1 %vm592_vm12, %v2343_v54  ;;  %2091 = vmatmul.mubr.msk.f32.vlgmr.msra.gmra.mrb[6].mxu0 %vm592_vm12, %v2343_v54 }
 0x25c   : > { %2094 = vmatpush3.xpose.msk.msra.mxu1 %vm592_vm12, %v877_v57  ;;  %2099 = vmatpush3.bf16.msra.mxu0 %v1005_v58 }
 0x25d   : > { %2095 = vmatprep.mubr.msk.f32.mxu1 %vm2338_vm0, %v2337_v0  ;;  %2104 = vmatprep.subr.bf16.mxu1 %v2337_v0 }
 0x25e   : > { %2100 = vmatprep.mubr.msk.bf16.mxu0 %vm2338_vm0, %v2337_v0  ;;  %2110 = vmatprep.subr.bf16.mxu0 %v2337_v0 }
 0x25f   : > { %2096 = vmatmul.mubr.msk.f32.vlgmr.msra.gmra.mrb[6].mxu1 %vm592_vm12, %v2343_v54 }
 0x260   : > { %2105 = vmatpush3.bf16.msra.mxu1 %v1051_v60  ;;  %2106 = vmatprep.mubr.msk.bf16.mxu1 %vm2338_vm0, %v2337_v0 }
 0x261   : > { %2116 = vmatprep.subr.bf16.mxu1 %v2337_v0 }
 0x268   : > { %v956_v61 = vpop.permute.xlu1 %955  ;;  %v952_v63 = vpop.permute.xlu0 %951 }
 0x26d   : > { %v745_v2 = vpop.permute.xlu1 %744  ;;  %v749_v7 = vpop.permute.xlu0 %748 }
 0x32a   : > { %v664_v3 = vpop.f32.mrb[4].mxu0 }
 0x32b   : > { %v751_v4 = vadd.f32 %v745_v2, %v664_v3  ;;  %v2082_v5 = vpop.f32.mrb[5].mxu0 }
 0x32d   : > { %v755_v11 = vmul.f32 0.2, %v751_v4  ;;  %vm753_vm2 = vcmp.gt.f32.partialorder %v751_v4, 0.0 }
 0x32e   : > { %v739_v8 = vpop.f32.mrb[4].mxu1  ;;  %v872_v9 = vpop.f32.mrb[6].mxu0 }
 0x32f   : > { %v752_v12 = vadd.f32 %v749_v7, %v739_v8  ;;  %v958_v13 = vadd.f32 %v952_v63, %v872_v9  ;;  %v2087_v14 = vpop.f32.mrb[5].mxu1  ;;  %v2092_v15 = vpop.f32.mrb[7].mxu0  ;;  %v757_v25 = vsel %vm753_vm2, %v751_v4, %v755_v11 }
 0x330   : > { %v767_v29 = vsel %vm2582_vm4, %v757_v25, -1e+09 }
 0x331   : > { %v962_v17 = vmul.f32 0.2, %v958_v13  ;;  %vm960_vm3 = vcmp.gt.f32.partialorder %v958_v13, 0.0  ;;  %v756_v21 = vmul.f32 0.2, %v752_v12  ;;  %vm754_vm6 = vcmp.gt.f32.partialorder %v752_v12, 0.0 }
 0x332   : > { %v946_v18 = vpop.f32.mrb[6].mxu1  ;;  %v770_v36 = vsel %vm769_vm5, %v767_v29, -inf }
 0x333   : > { %v959_v22 = vadd.f32 %v956_v61, %v946_v18  ;;  %v964_v23 = vsel %vm960_vm3, %v958_v13, %v962_v17  ;;  %v2097_v24 = vpop.f32.mrb[7].mxu1  ;;  %v758_v32 = vsel %vm754_vm6, %v752_v12, %v756_v21 }
 0x334   : > { %v966_v26 = vsel %vm2582_vm4, %v964_v23, -1e+09  ;;  %v768_v37 = vsel %vm2591_vm8, %v758_v32, -1e+09 }
 0x335   : > { %v963_v27 = vmul.f32 0.2, %v959_v22  ;;  %v968_v28 = vsel %vm769_vm5, %v966_v26, -inf  ;;  %vm961_vm7 = vcmp.gt.f32.partialorder %v959_v22, 0.0  ;;  %v773_v39 = vsel %vm769_vm5, %v768_v37, -inf }
 0x336   : > { %969 = vmax.xlane.f32.xlu1 %v968_v28 }
 0x337   : > { %v965_v31 = vsel %vm961_vm7, %v959_v22, %v963_v27  ;;  %v2346_v22 = vmov 3  }
 0x338   : > { %v967_v33 = vsel %vm2591_vm8, %v965_v31, -1e+09  ;;  %2247 = vset.pattern.permute.xlu0 %v2346_v22 }
 0x339   : > { %v971_v35 = vsel %vm769_vm5, %v967_v33, -inf }
 0x33a   : > { %972 = vmax.xlane.f32.xlu0 %v971_v35  ;;  %771 = vmax.xlane.f32.xlu1 %v770_v36 }
 0x33e   : > { %774 = vmax.xlane.f32.xlu0 %v773_v39 }
 0x3c3   : > { %v970_v45 = vpop.xlane.xlu1 %969 }
 0x3c4   : > { %v974_v47 = vsub.f32 %v966_v26, %v970_v45 }
 0x3c6   : > { %v976_v49 = vmul.f32 1.442695, %v974_v47 }
 0x3c7   : > { %v973_v50 = vpop.xlane.xlu0 %972  ;;  %v772_v51 = vpop.xlane.xlu1 %771 }
 0x3c8   : > { %2265 = vpow2.f32 %v976_v49  ;;  %v975_v52 = vsub.f32 %v967_v33, %v973_v50  ;;  %v776_v53 = vsub.f32 %v767_v29, %v772_v51 }
 0x3ca   : > { %v978_v55 = vmul.f32 1.442695, %v975_v52  ;;  %v778_v56 = vmul.f32 1.442695, %v776_v53 }
 0x3cb   : > { %v775_v57 = vpop.xlane.xlu0 %774 }
 0x3cc   : > { %2267 = vpow2.f32 %v978_v55  ;;  %v777_v58 = vsub.f32 %v768_v37, %v775_v57 }
 0x3cd   : > { %2269 = vpow2.f32 %v778_v56 }
 0x3ce   : > { %v780_v59 = vmul.f32 1.442695, %v777_v58 }
 0x3d0   : > { %2271 = vpow2.f32 %v780_v59 }
 0x3d2   : > { %v2266_v60 = vpop.eup %2265 }
 0x3d3   : > { %v980_v61 = vsel %vm769_vm5, %v2266_v60, 0.0 }
 0x3d4   : > { %981 = vadd.xlane.f32.xlu1 %v980_v61 }
 0x3d6   : > { %v2268_v62 = vpop.eup %2267 }
 0x3d7   : > { %v2270_v63 = vpop.eup %2269  ;;  %v983_v1 = vsel %vm769_vm5, %v2268_v62, 0.0 }
 0x3d8   : > { %984 = vadd.xlane.f32.xlu0 %v983_v1  ;;  %v782_v2 = vsel %vm769_vm5, %v2270_v63, 0.0 }
 0x3d9   : > { %783 = vadd.xlane.f32.xlu1 %v782_v2 }
 0x3da   : > { %v2272_v3 = vpop.eup %2271 }
 0x3db   : > { %v785_v4 = vsel %vm769_vm5, %v2272_v3, 0.0 }
 0x3dc   : > { %786 = vadd.xlane.f32.xlu0 %v785_v4 }
 0x3ea   : > { %1185 = vrot.lane.b32.xlu1 %v2520_v46, %s2345_s27 }
 0x3ee   : > { %1334 = vperm.xlu1 %2245, %v2520_v46  }
 0x3f2   : > { %1338 = vperm.xlu1 %2245, %v2524_v48   ;;  %1259 = vrot.lane.b32.xlu0 %v2524_v48, %s2345_s27 }
 0x3f6   : > { %2246 = vset.pattern.permute.xlu1 %v2346_v22 }
 0x461   : > { %v982_v5 = vpop.xlane.xlu1 %981 }
 0x462   : > { %2273 = vrcp.f32 %v982_v5 }
 0x465   : > { %v985_v6 = vpop.xlane.xlu0 %984 }
 0x466   : > { %2275 = vrcp.f32 %v985_v6  ;;  %v784_v7 = vpop.xlane.xlu1 %783 }
 0x467   : > { %2277 = vrcp.f32 %v784_v7 }
 0x469   : > { %v787_v8 = vpop.xlane.xlu0 %786 }
 0x46a   : > { %2279 = vrcp.f32 %v787_v8  ;;  %v1186_v20 = vpop.permute.xlu1 %1185 }
 0x46c   : > { %v2274_v9 = vpop.eup %2273 }
 0x46d   : > { %v988_v10 = vmul.f32 %v2274_v9, %v2266_v60 }
 0x46e   : > { %v1335_v23 = vpop.permute.xlu1 %1334 }
 0x46f   : > { %v998_v11 = vpack.c.bf16 %v988_v10, %v988_v10 }
 0x470   : > { %v2276_v12 = vpop.eup %2275 }
 0x471   : > { %v989_v13 = vmul.f32 %v2276_v12, %v2268_v62  ;;  %2101 = vmatmul.mubr.msk.bf16.vlgmr.msra.gmra.mrb[8].mxu0 %vm769_vm5, %v998_v11  ;;  %v2278_v15 = vpop.eup %2277 }
 0x472   : > { %2111 = vmatpush3.bf16.msra.mxu0 %v2495_v34  ;;  %2112 = vmatprep.mubr.msk.bf16.mxu0 %vm2338_vm0, %v2337_v0  ;;  %v790_v16 = vmul.f32 %v2278_v15, %v2270_v63  ;;  %v1339_v27 = vpop.permute.xlu1 %1338 }
 0x473   : > { %v999_v14 = vpack.c.bf16 %v989_v13, %v989_v13  ;;  %2122 = vmatprep.subr.mxu0 %v2337_v0 }
 0x474   : > { %v2280_v17 = vpop.eup %2279  ;;  %v800_v34 = vpack.c.bf16 %v790_v16, %v790_v16 }
 0x475   : > { %2107 = vmatmul.mubr.msk.bf16.vlgmr.msra.gmra.mrb[8].mxu1 %vm769_vm5, %v999_v14  ;;  %v791_v18 = vmul.f32 %v2280_v17, %v2272_v3 }
 0x476   : > { %2117 = vmatpush3.bf16.msra.mxu1 %v2507_v40  ;;  %2118 = vmatprep.mubr.msk.bf16.mxu1 %vm2338_vm0, %v2337_v0  ;;  %v1260_v40 = vpop.permute.xlu0 %1259 }
 0x477   : > { %2127 = vmatprep.subr.mxu1 %v2337_v0  ;;  %v801_v21 = vpack.c.bf16 %v791_v18, %v791_v18 }
 0x47d   : > { %2113 = vmatmul.mubr.msk.bf16.vlgmr.msra.gmra.mrb[8].mxu0 %vm769_vm5, %v800_v34 }
 0x47e   : > { %2123 = vmatpush3.xpose.msk.msra.mxu0 %vm592_vm12, %v1186_v20  ;;  %2124 = vmatprep.mubr.msk.f32.mxu0 %vm2338_vm0, %v2337_v0 }
 0x47f   : > { %2132 = vmatprep.subr.bf16.mxu0 %v2337_v0 }
 0x481   : > { %2119 = vmatmul.mubr.msk.bf16.vlgmr.msra.gmra.mrb[8].mxu1 %vm769_vm5, %v801_v21 }
 0x482   : > { %2128 = vmatpush3.xpose.msk.msra.mxu1 %vm592_vm12, %v1260_v40  ;;  %2129 = vmatprep.mubr.msk.f32.mxu1 %vm2338_vm0, %v2337_v0 }
 0x483   : > { %2138 = vmatprep.subr.bf16.mxu1 %v2337_v0 }
 0x485   : > { %2125 = vmatmul.mubr.msk.f32.vlgmr.msra.gmra.mrb[12].mxu0 %vm592_vm12, %v2343_v54 }
 0x486   : > { %2133 = vmatpush3.bf16.msra.mxu0 %v2502_v38  ;;  %2134 = vmatprep.mubr.msk.bf16.mxu0 %vm2338_vm0, %v2337_v0 }
 0x487   : > { %2144 = vmatprep.subr.mxu0 %v2337_v0 }
 0x489   : > { %2130 = vmatmul.mubr.msk.f32.vlgmr.msra.gmra.mrb[12].mxu1 %vm592_vm12, %v2343_v54 }
 0x48a   : > { %2139 = vmatpush3.bf16.msra.mxu1 %v2510_v41  ;;  %2140 = vmatprep.mubr.msk.bf16.mxu1 %vm2338_vm0, %v2337_v0 }
 0x48b   : > { %2149 = vmatprep.subr.mxu1 %v2337_v0 }
 0x558   : > { %v1255_v38 = vpop.f32.mrb[12].mxu0 }
 0x559   : > { %v1341_v24 = vadd.f32 %v1335_v23, %v1255_v38  ;;  %v2126_v25 = vpop.f32.mrb[13].mxu0 }
 0x55b   : > { %v1345_v26 = vmul.f32 0.2, %v1341_v24  ;;  %vm1343_vm9 = vcmp.gt.f32.partialorder %v1341_v24, 0.0 }
 0x55c   : > { %v1329_v28 = vpop.f32.mrb[12].mxu1 }
 0x55d   : > { %v1342_v29 = vadd.f32 %v1339_v27, %v1329_v28  ;;  %v1347_v31 = vsel %vm1343_vm9, %v1341_v24, %v1345_v26  ;;  %v2131_v32 = vpop.f32.mrb[13].mxu1 }
 0x55e   : > { %v1349_v41 = vsel %vm2582_vm4, %v1347_v31, -1e+09 }
 0x55f   : > { %v1346_v33 = vmul.f32 0.2, %v1342_v29  ;;  %v1351_v35 = vsel %vm769_vm5, %v1349_v41, -inf  ;;  %vm1344_vm10 = vcmp.gt.f32.partialorder %v1342_v29, 0.0 }
 0x560   : > { %1352 = vmax.xlane.f32.xlu0 %v1351_v35 }
 0x561   : > { %v1348_v36 = vsel %vm1344_vm10, %v1342_v29, %v1346_v33 }
 0x562   : > { %v1350_v37 = vsel %vm2591_vm8, %v1348_v36, -1e+09 }
 0x563   : > { %v1354_v39 = vsel %vm769_vm5, %v1350_v37, -inf }
 0x564   : > { %1355 = vmax.xlane.f32.xlu1 %v1354_v39 }
 0x575   : > { %1477 = vrot.lane.b32.xlu1 %v2520_v46, %s2347_s28 }
 0x579   : > { %1626 = vperm.xlu1 %2246, %v2520_v46  }
 0x57d   : > { %1630 = vperm.xlu1 %2246, %v2524_v48  }
 0x5ed   : > { %v1353_v43 = vpop.xlane.xlu0 %1352 }
 0x5ee   : > { %v1357_v45 = vsub.f32 %v1349_v41, %v1353_v43 }
 0x5f0   : > { %v1359_v47 = vmul.f32 1.442695, %v1357_v45 }
 0x5f1   : > { %v1356_v49 = vpop.xlane.xlu1 %1355 }
 0x5f2   : > { %2281 = vpow2.f32 %v1359_v47  ;;  %v1358_v50 = vsub.f32 %v1350_v37, %v1356_v49 }
 0x5f4   : > { %v1361_v51 = vmul.f32 1.442695, %v1358_v50 }
 0x5f5   : > { %v1478_v62 = vpop.permute.xlu1 %1477 }
 0x5f6   : > { %2283 = vpow2.f32 %v1361_v51 }
 0x5f9   : > { %v1627_v2 = vpop.permute.xlu1 %1626 }
 0x5fc   : > { %v2282_v52 = vpop.eup %2281 }
 0x5fd   : > { %v1363_v53 = vsel %vm769_vm5, %v2282_v52, 0.0  ;;  %v1631_v7 = vpop.permute.xlu1 %1630 }
 0x5fe   : > { %1364 = vadd.xlane.f32.xlu0 %v1363_v53 }
 0x600   : > { %v2284_v55 = vpop.eup %2283 }
 0x601   : > { %v1366_v56 = vsel %vm769_vm5, %v2284_v55, 0.0 }
 0x602   : > { %1367 = vadd.xlane.f32.xlu0 %v1366_v56 }
 0x618   : > { %1551 = vrot.lane.b32.xlu0 %v2524_v48, %s2347_s28 }
 0x68b   : > { %v1365_v46 = vpop.xlane.xlu0 %1364 }
 0x68c   : > { %2285 = vrcp.f32 %v1365_v46 }
 0x68f   : > { %v1368_v57 = vpop.xlane.xlu0 %1367 }
 0x690   : > { %2287 = vrcp.f32 %v1368_v57 }
 0x693   : > { %v1552_v48 = vpop.permute.xlu0 %1551 }
 0x696   : > { %v2286_v58 = vpop.eup %2285 }
 0x697   : > { %v1371_v59 = vmul.f32 %v2286_v58, %v2282_v52 }
 0x699   : > { %v1381_v60 = vpack.c.bf16 %v1371_v59, %v1371_v59 }
 0x69a   : > { %v2288_v61 = vpop.eup %2287 }
 0x69b   : > { %v1372_v63 = vmul.f32 %v2288_v61, %v2284_v55  ;;  %2135 = vmatmul.mubr.msk.bf16.vlgmr.msra.gmra.mrb[8].mxu0 %vm769_vm5, %v1381_v60 }
 0x69c   : > { %2145 = vmatpush3.xpose.msk.msra.mxu0 %vm592_vm12, %v1478_v62  ;;  %2146 = vmatprep.mubr.msk.f32.mxu0 %vm2338_vm0, %v2337_v0 }
 0x69d   : > { %v1382_v1 = vpack.c.bf16 %v1372_v63, %v1372_v63  ;;  %2154 = vmatprep.subr.bf16.mxu0 %v2337_v0 }
 0x69f   : > { %2141 = vmatmul.mubr.msk.bf16.vlgmr.msra.gmra.mrb[8].mxu1 %vm769_vm5, %v1382_v1 }
 0x6a0   : > { %2150 = vmatpush3.xpose.msk.msra.mxu1 %vm592_vm12, %v1552_v48  ;;  %2151 = vmatprep.mubr.msk.f32.mxu1 %vm2338_vm0, %v2337_v0 }
 0x6a1   : > { %2160 = vmatprep.subr.bf16.mxu1 %v2337_v0 }
 0x6a3   : > { %2147 = vmatmul.mubr.msk.f32.vlgmr.msra.gmra.mrb[14].mxu0 %vm592_vm12, %v2343_v54 }
 0x6a4   : > { %2155 = vmatpush3.bf16.msra.mxu0 %v2513_v42  ;;  %2156 = vmatprep.mubr.msk.bf16.mxu0 %vm2338_vm0, %v2337_v0 }
 0x6a7   : > { %2152 = vmatmul.mubr.msk.f32.vlgmr.msra.gmra.mrb[14].mxu1 %vm592_vm12, %v2343_v54 }
 0x6a8   : > { %2161 = vmatpush3.bf16.msra.mxu1 %v2518_v44  ;;  %2162 = vmatprep.mubr.msk.bf16.mxu1 %vm2338_vm0, %v2337_v0 }
 0x776   : > { %v1547_v3 = vpop.f32.mrb[14].mxu0 }
 0x777   : > { %v1633_v4 = vadd.f32 %v1627_v2, %v1547_v3  ;;  %v2148_v5 = vpop.f32.mrb[15].mxu0 }
 0x779   : > { %v1637_v6 = vmul.f32 0.2, %v1633_v4  ;;  %vm1635_vm11 = vcmp.gt.f32.partialorder %v1633_v4, 0.0 }
 0x77a   : > { %v1621_v8 = vpop.f32.mrb[14].mxu1 }
 0x77b   : > { %v1634_v42 = vadd.f32 %v1631_v7, %v1621_v8  ;;  %v1639_v9 = vsel %vm1635_vm11, %v1633_v4, %v1637_v6  ;;  %v2153_v10 = vpop.f32.mrb[15].mxu1 }
 0x77c   : > { %v1641_v11 = vsel %vm2582_vm4, %v1639_v9, -1e+09 }
 0x77d   : > { %v1638_v54 = vmul.f32 0.2, %v1634_v42  ;;  %v1643_v44 = vsel %vm769_vm5, %v1641_v11, -inf  ;;  %vm1636_vm12 = vcmp.gt.f32.partialorder %v1634_v42, 0.0 }
 0x77e   : > { %1644 = vmax.xlane.f32.xlu0 %v1643_v44 }
 0x77f   : > { %v1640_v0 = vsel %vm1636_vm12, %v1634_v42, %v1638_v54 }
 0x780   : > { %v1642_v12 = vsel %vm2591_vm8, %v1640_v0, -1e+09 }
 0x781   : > { %v1646_v13 = vsel %vm769_vm5, %v1642_v12, -inf }
 0x782   : > { %1647 = vmax.xlane.f32.xlu1 %v1646_v13 }
 0x80b   : > { %v1645_v14 = vpop.xlane.xlu0 %1644 }
 0x80c   : > { %v1649_v15 = vsub.f32 %v1641_v11, %v1645_v14 }
 0x80e   : > { %v1651_v16 = vmul.f32 1.442695, %v1649_v15 }
 0x80f   : > { %v1648_v17 = vpop.xlane.xlu1 %1647 }
 0x810   : > { %2289 = vpow2.f32 %v1651_v16  ;;  %v1650_v18 = vsub.f32 %v1642_v12, %v1648_v17 }
 0x812   : > { %v1653_v19 = vmul.f32 1.442695, %v1650_v18 }
 0x814   : > { %2291 = vpow2.f32 %v1653_v19 }
 0x81a   : > { %v2290_v34 = vpop.eup %2289 }
 0x81b   : > { %v1655_v20 = vsel %vm769_vm5, %v2290_v34, 0.0 }
 0x81c   : > { %1656 = vadd.xlane.f32.xlu0 %v1655_v20 }
 0x81e   : > { %v2292_v21 = vpop.eup %2291 }
 0x81f   : > { %v1658_v30 = vsel %vm769_vm5, %v2292_v21, 0.0 }
 0x820   : > { %1659 = vadd.xlane.f32.xlu0 %v1658_v30 }
 0x8a9   : > { %v1657_v40 = vpop.xlane.xlu0 %1656 }
 0x8aa   : > { %2293 = vrcp.f32 %v1657_v40 }
 0x8ad   : > { %v1660_v22 = vpop.xlane.xlu0 %1659 }
 0x8ae   : > { %2295 = vrcp.f32 %v1660_v22 }
 0x8b4   : > { %v2294_v23 = vpop.eup %2293 }
 0x8b5   : > { %v1663_v38 = vmul.f32 %v2294_v23, %v2290_v34 }
 0x8b7   : > { %v1673_v24 = vpack.c.bf16 %v1663_v38, %v1663_v38 }
 0x8b8   : > { %v2296_v25 = vpop.eup %2295 }
 0x8b9   : > { %v1664_v26 = vmul.f32 %v2296_v25, %v2292_v21  ;;  %2157 = vmatmul.mubr.msk.bf16.vlgmr.msra.gmra.mrb[8].mxu0 %vm769_vm5, %v1673_v24 }
 0x8bb   : > { %v1674_v27 = vpack.c.bf16 %v1664_v26, %v1664_v26 }
 0x8bd   : > { %2163 = vmatmul.mubr.msk.bf16.vlgmr.msra.gmra.mrb[8].mxu1 %vm769_vm5, %v1674_v27 }
 0x98c   : > { %v1715_v28 = vpop.f32.mrb[8].mxu0 }
 0x98d   : > { %1769 = vst [vmem:[%s348_s8] sm:$0xff] %v1715_v28  ;;  %v2158_v29 = vpop.f32.mrb[9].mxu0 }
 0x98e   : > { %v1718_v31 = vpop.f32.mrb[10].mxu0 }
 0x98f   : > { %v2159_v32 = vpop.f32.mrb[11].mxu0 }
 0x990   : > { %v1761_v41 = vpop.f32.mrb[8].mxu1 }
 0x991   : > { %1770 = vst [vmem:[%s348_s8 + $0x8] sm:$0xff] %v1761_v41  ;;  %v2164_v33 = vpop.f32.mrb[9].mxu1 }
 0x992   : > { %v1764_v35 = vpop.f32.mrb[10].mxu1 }
 0x993   : > { %v2165_v36 = vpop.f32.mrb[11].mxu1 }
 0x994 PF: > { %s15_s22 = sadd.s32 1, %s2335_s22   ;;  %s2721_s18 = smov %s2327_s20 }
 0x995   : > { %p12_p7 = scmp.ge.s32.totalorder %s15_s22, 8   ;;  %s2722_s19 = smov %s2331_s21 }
 0x996   : > { %s2723_s20 = smov %s2726_s23  ;;  %s2724_s21 = smov %s2730_s24 }
 0x997   :  { %14 = sbr.rel (!%p12_p7) target bundleno = 3 (0x3), region = 82 }

// kernel: forward.7
= control target key start
LH: loop header
LB: loop body
LE: loop exit
PB: predicated region body
PF: predicated region fallthrough
CT: control target
= control target key end

     0   :  { %s3555_s18 = smov 0   ;;  %s3557_s19 = smov 0   ;;  %s4285_s0 = inlined_call_operand.vmem [shape: bf16[1,1,2,24,128], index: 0, kind: input, shape index: {}]   ;;  %s4286_s1 = inlined_call_operand.vmem [shape: bf16[1,2,2,24,24], index: 1, kind: input, shape index: {}]   ;;  %s4287_s2 = inlined_call_operand.vmem [shape: bf16[1,128,128], index: 2, kind: input, shape index: {}]   ;;  %s4288_s3 = inlined_call_operand.vmem [shape: f32[1,1,128], index: 3, kind: input, shape index: {}]   ;;  %s4289_s4 = inlined_call_operand.vmem [shape: bf16[1,128,8], index: 4, kind: input, shape index: {}]   ;;  %s4290_s5 = inlined_call_operand.vmem [shape: bf16[1,2,2,24,128], index: 5, kind: output, shape index: {}]  }
   0x1   :  { %s3559_s20 = smov 0  }
   0x2 LB: > { %s24_s21 = sadd.s32 1, %s3507_s19  ;;  %p2719_p0 = scmp.ge.s32.totalorder %s3511_s20, 1  ;;  %s3511_s20 = sphi %s3559_s20, %s15_s20   ;;  %s3507_s19 = sphi %s3557_s19, %s4314_s19   ;;  %s3503_s18 = sphi %s3555_s18, %s4313_s18  }
   0x3   : > { %p25_p1 = scmp.ge.s32.totalorder %s24_s21, 2  ;;  %p245_p2 = scmp.lt.s32.totalorder %s3511_s20, 3 }
   0x5   : > { %s4316_s21 = smov (%p25_p1, %s24_s21), 0  ;;  %p246_p3 = pnand %p2719_p0, %p245_p2 }
   0x6   : > { %v3362_v0 = vld [vmem:[%s4287_s2] sm:$0xff] (!%p246_p3)   ;;  %v3513_v1 = vmov (!%p246_p3), 0.0   ;;  %v3363_v2 = vld [vmem:[%s4287_s2 + $0x8] sm:$0xff] (!%p246_p3)   ;;  %vm3514_vm0 = vmmov (!%p246_p3), 0   ;;  %v3364_v3 = vld [vmem:[%s4287_s2 + $0x10] sm:$0xff] (!%p246_p3)   ;;  %v641_v20 = vlaneseq (!%p246_p3)  ;;  %s3517_s16 = smov (!%p246_p3), 124  }
   0x7   : > { %249 = sbr.rel (%p246_p3) target bundleno = 2540 (0x9ec), region = 40  ;;  %2973 = vmatprep.subr.bf16.mxu0 (!%p246_p3), %v3513_v1  ;;  %3001 = vmatprep.subr.bf16.mxu1 (!%p246_p3), %v3513_v1  ;;  %v3365_v4 = vld [vmem:[%s4287_s2 + $0x18] sm:$0xff] (!%p246_p3)   ;;  %v3373_v5 = vld [vmem:[%s4289_s4] sm:$0xff] (!%p246_p3)   ;;  %v3374_v6 = vld [vmem:[%s4289_s4 + $0x8] sm:$0xff] (!%p246_p3)   ;;  %s3518_s17 = smov (!%p246_p3), 123   ;;  %vm652_vm13 = vcmask (!%p246_p3), 7168  }
   0x8   : > { %2974 = vmatpush3.bf16.msra.mxu0 (!%p246_p3), %v3362_v0  ;;  %2989 = vmatprep.mubr.msk.bf16.mxu0 (!%p246_p3), %vm3514_vm0, %v3513_v1  ;;  %v3366_v7 = vld [vmem:[%s4287_s2 + $0x20] sm:$0xff] (!%p246_p3)   ;;  %v3375_v8 = vld [vmem:[%s4289_s4 + $0x10] sm:$0xff] (!%p246_p3)   ;;  %v3367_v9 = vld [vmem:[%s4287_s2 + $0x28] sm:$0xff] (!%p246_p3)   ;;  %v642_v21 = vand.u32 (!%p246_p3), 127, %v641_v20  ;;  %vm1333_vm15 = vcmask (!%p246_p3), 1043456   ;;  %p306_p4 = scmp.lt.s32.totalorder (!%p246_p3), %s3503_s18, 1 }
   0x9   : > { %2975 = vmatprep.subr.bf16.mxu0 (!%p246_p3), %v3513_v1  ;;  %3017 = vmatprep.mubr.msk.bf16.mxu1 (!%p246_p3), %vm3514_vm0, %v3513_v1  ;;  %v3376_v10 = vld [vmem:[%s4289_s4 + $0x18] sm:$0xff] (!%p246_p3)   ;;  %v3368_v11 = vld [vmem:[%s4287_s2 + $0x30] sm:$0xff] (!%p246_p3)   ;;  %v3377_v12 = vld [vmem:[%s4289_s4 + $0x20] sm:$0xff] (!%p246_p3)   ;;  %s3522_s26 = smov (!%p246_p3), 122   ;;  %s3524_s27 = smov (!%p246_p3), 121  }
   0xa   : > { %3002 = vmatpush3.bf16.msra.mxu1 (!%p246_p3), %v3373_v5  ;;  %v3369_v13 = vld [vmem:[%s4287_s2 + $0x38] sm:$0xff] (!%p246_p3)   ;;  %v3370_v14 = vld [vmem:[%s4285_s0] sm:$0xff] (!%p246_p3)   ;;  %v3378_v15 = vld [vmem:[%s4289_s4 + $0x28] sm:$0xff] (!%p246_p3)   ;;  %vm1302_vm1 = vcmp.ge.s32.totalorder (!%p246_p3), %v642_v21, 32  ;;  %vm1303_vm2 = vcmp.lt.s32.totalorder (!%p246_p3), %v642_v21, 64  ;;  %vm1887_vm3 = vcmp.ge.s32.totalorder (!%p246_p3), %v642_v21, 64 }
   0xb   : > { %3003 = vmatprep.subr.bf16.mxu1 (!%p246_p3), %v3513_v1  ;;  %v3371_v16 = vld [vmem:[%s4285_s0 + $0x8] sm:$0xff] (!%p246_p3)   ;;  %v3372_v17 = vld [vmem:[%s4285_s0 + $0x10] sm:$0xff] (!%p246_p3)   ;;  %v3380_v19 = vld [vmem:[%s4289_s4 + $0x38] sm:$0xff] (!%p246_p3)   ;;  %vm1888_vm4 = vcmp.lt.s32.totalorder (!%p246_p3), %v642_v21, 96  ;;  %vm983_vm6 = vcmp.lt.s32.totalorder (!%p246_p3), %v642_v21, 32  ;;  %vm2345_vm9 = vcmp.ge.s32.totalorder (!%p246_p3), %v642_v21, 96 }
   0xc   : > { %2976 = vmatpush3.bf16.msra.mxu0 (!%p246_p3), %v3363_v2  ;;  %v3379_v18 = vld [vmem:[%s4289_s4 + $0x30] sm:$0xff] (!%p246_p3)   ;;  %vm1304_vm5 = vmand (!%p246_p3), %vm1302_vm1, %vm1303_vm2  ;;  %v2722_v22 = vld [vmem:[%s4288_s3] ss:$0 sm:$0xff] (!%p246_p3)  ;;  %v3515_v21 = vmov (!%p246_p3), 1  }
   0xd   : > { %2977 = vmatprep.subr.bf16.mxu0 (!%p246_p3), %v3513_v1  ;;  %vm1889_vm7 = vmand (!%p246_p3), %vm1887_vm3, %vm1888_vm4  ;;  %3335 = vset.pattern.permute.xlu1 (!%p246_p3), %v3515_v21 }
   0xe   : > { %3004 = vmatpush3.bf16.msra.mxu1 %v3374_v6  ;;  %vm3661_vm8 = vmpackc.low %vm1304_vm5, %vm1304_vm5  ;;  %3334 = vset.pattern.permute.xlu0 %v3515_v21  ;;  %s4318_s18 = smov (!%p306_p4, %s3503_s18), 1 }
   0xf   : > { %3005 = vmatprep.subr.bf16.mxu1 %v3513_v1  ;;  %vm3665_vm10 = vmpackc.low %vm983_vm6, %vm983_vm6  ;;  %s3277_s22 = smul.u32 24, %s4318_s18 }
  0x10   : > { %2978 = vmatpush3.bf16.msra.mxu0 %v3364_v3  ;;  %vm3669_vm11 = vmpackc.low %vm1889_vm7, %vm1889_vm7 }
  0x11   : > { %2979 = vmatprep.subr.bf16.mxu0 %v3513_v1  ;;  %vm3673_vm12 = vmpackc.low %vm2345_vm9, %vm2345_vm9  ;;  %s3907_s25 = scalar_lea.vmem %s4286_s1, %s3277_s22  ;;  %vm915_vm9 = vcmask 195584   ;;  %s334_s30 = scalar_lea.vmem %s4290_s5, %s3277_s22 }
  0x12   : > { %3006 = vmatpush3.bf16.msra.mxu1 %v3375_v8  ;;  %vm3811_vm14 = vmpackc.low %vm652_vm13, %vm652_vm13 }
  0x13   : > { %3007 = vmatprep.subr.bf16.mxu1 %v3513_v1 }
  0x14   : > { %2980 = vmatpush3.bf16.msra.mxu0 %v3365_v4 }
  0x15   : > { %2981 = vmatprep.subr.bf16.mxu0 %v3513_v1 }
  0x16   : > { %3008 = vmatpush3.bf16.msra.mxu1 %v3376_v10 }
  0x17   : > { %3009 = vmatprep.subr.bf16.mxu1 %v3513_v1 }
  0x18   : > { %2982 = vmatpush3.bf16.msra.mxu0 %v3366_v7 }
  0x19   : > { %2983 = vmatprep.subr.bf16.mxu0 %v3513_v1 }
  0x1a   : > { %3010 = vmatpush3.bf16.msra.mxu1 %v3377_v12 }
  0x1b   : > { %3011 = vmatprep.subr.bf16.mxu1 %v3513_v1 }
  0x1c   : > { %2984 = vmatpush3.bf16.msra.mxu0 %v3367_v9 }
  0x1d   : > { %2985 = vmatprep.subr.bf16.mxu0 %v3513_v1 }
  0x1e   : > { %3012 = vmatpush3.bf16.msra.mxu1 %v3378_v15 }
  0x1f   : > { %3013 = vmatprep.subr.bf16.mxu1 %v3513_v1 }
  0x20   : > { %2986 = vmatpush3.bf16.msra.mxu0 %v3368_v11 }
  0x21   : > { %2987 = vmatprep.subr.bf16.mxu0 %v3513_v1 }
  0x22   : > { %3014 = vmatpush3.bf16.msra.mxu1 %v3379_v18 }
  0x23   : > { %3015 = vmatprep.subr.bf16.mxu1 %v3513_v1 }
  0x24   : > { %2988 = vmatpush3.bf16.msra.mxu0 %v3369_v13 }
  0x26   : > { %3016 = vmatpush3.bf16.msra.mxu1 %v3380_v19 }
  0x27   : > { %2990 = vmatmul.mubr.bf16.vlgmr.msra.gmra.mrb[0].mxu0 %v3370_v14 }
  0x28   : > { %2993 = vmatprep.mubr.msk.bf16.mxu0 %vm3514_vm0, %v3513_v1 }
  0x2f   : > { %2994 = vmatmul.mubr.bf16.gmra.mrb[4].mxu0 %v3371_v16 }
  0x30   : > { %2997 = vmatprep.mubr.msk.bf16.mxu0 %vm3514_vm0, %v3513_v1 }
  0x37   : > { %2998 = vmatmul.mubr.bf16.gmra.mrb[8].mxu0 %v3372_v17 }
  0x38   : > { %3035 = vmatprep.mubr.msk.f32.mxu0 %vm3514_vm0, %v3513_v1 }
  0xfa   : > { %v473_v23 = vpop.f32.mrb[0].mxu0 }
  0xfb   : > { %v474_v25 = vadd.f32 %v2722_v22, %v473_v23  ;;  %v2991_v26 = vpop.f32.mrb[1].mxu0 }
  0xfc   : > { %v476_v28 = vpop.f32.mrb[2].mxu0 }
  0xfd   : > { %v2842_v30 = vpack.c.bf16 %v474_v25, %v474_v25  ;;  %v477_v31 = vadd.f32 %v2722_v22, %v476_v28  ;;  %v2992_v32 = vpop.f32.mrb[3].mxu0 }
  0xff   : > { %v496_v34 = vpack.c.bf16 %v477_v31, %v474_v25  ;;  %v2843_v35 = vpack.c.bf16 %v477_v31, %v477_v31  ;;  %v1308_v36 = vsel %vm3661_vm8, %v2842_v30, 0  ;;  %v988_v37 = vsel %vm3665_vm10, %v2842_v30, 0 }
 0x100   : > { %v1893_v38 = vsel %vm3669_vm11, %v2842_v30, 0  ;;  %v2351_v39 = vsel %vm3673_vm12, %v2842_v30, 0 }
 0x101   : > { %3018 = vmatmul.mubr.bf16.vlgmr.msra.gmra.mrb[0].mxu1 %v496_v34  ;;  %v1309_v40 = vsel %vm3661_vm8, %v2843_v35, 0  ;;  %v989_v41 = vsel %vm3665_vm10, %v2843_v35, 0  ;;  %v1894_v42 = vsel %vm3669_vm11, %v2843_v35, 0  ;;  %v2352_v43 = vsel %vm3673_vm12, %v2843_v35, 0 }
 0x102   : > { %v481_v44 = vpop.f32.mrb[4].mxu0  ;;  %3021 = vmatprep.mubr.msk.bf16.mxu1 %vm3514_vm0, %v3513_v1  ;;  %v3695_v45 = vcombine.low %v1308_v36, %v1309_v40  ;;  %v3697_v46 = vcombine.low %v988_v37, %v989_v41  ;;  %v3699_v47 = vcombine.low %v1893_v38, %v1894_v42  ;;  %v3701_v48 = vcombine.low %v2351_v39, %v2352_v43 }
 0x103   : > { %v482_v49 = vadd.f32 %v2722_v22, %v481_v44  ;;  %v2995_v50 = vpop.f32.mrb[5].mxu0  ;;  %v3519_v38 = vmov 0  }
 0x104   : > { %v484_v51 = vpop.f32.mrb[6].mxu0 }
 0x105   : > { %v3703_v52 = vpack.c.bf16 %v482_v49, %v482_v49  ;;  %v485_v53 = vadd.f32 %v2722_v22, %v484_v51  ;;  %v2996_v54 = vpop.f32.mrb[7].mxu0 }
 0x106   : > { %v3520_v54 = vmov 1.0  }
 0x107   : > { %v497_v55 = vpack.c.bf16 %v485_v53, %v482_v49  ;;  %v2845_v56 = vpack.c.bf16 %v485_v53, %v485_v53  ;;  %v3708_v57 = vsel %vm3665_vm10, %v3703_v52, 0  ;;  %v3713_v58 = vsel %vm3669_vm11, %v3703_v52, 0 }
 0x108   : > { %v3718_v59 = vsel %vm3673_vm12, %v3703_v52, 0 }
 0x109   : > { %3022 = vmatmul.mubr.bf16.gmra.mrb[4].mxu1 %v497_v55  ;;  %v1896_v60 = vsel %vm3669_vm11, %v2845_v56, 0  ;;  %v2354_v62 = vsel %vm3673_vm12, %v2845_v56, 0  ;;  %v1311_v6 = vsel %vm3661_vm8, %v2845_v56, 0  ;;  %v991_v7 = vsel %vm3665_vm10, %v2845_v56, 0 }
 0x10a   : > { %v489_v61 = vpop.f32.mrb[8].mxu0  ;;  %3025 = vmatprep.mubr.msk.bf16.mxu1 %vm3514_vm0, %v3513_v1 }
 0x10b   : > { %v490_v63 = vadd.f32 %v2722_v22, %v489_v61  ;;  %v2999_v0 = vpop.f32.mrb[9].mxu0 }
 0x10c   : > { %v492_v2 = vpop.f32.mrb[10].mxu0 }
 0x10d   : > { %v2846_v3 = vpack.c.bf16 %v490_v63, %v490_v63  ;;  %v493_v4 = vadd.f32 %v2722_v22, %v492_v2  ;;  %v3000_v5 = vpop.f32.mrb[11].mxu0  ;;  %v3516_v22 = vmov 0.0|0.0  }
 0x10e   : > { %3213 = vmatprep.subr.bf16.mxu0 %v3516_v22  ;;  %3217 = vmatprep.subr.bf16.mxu1 %v3516_v22  ;;  %v1310_v5 = vsel %vm3661_vm8, %v3703_v52, 0 }
 0x10f   : > { %v498_v8 = vpack.c.bf16 %v493_v4, %v490_v63  ;;  %v3730_v9 = vpack.c.bf16 %v493_v4, %v493_v4  ;;  %v1312_v10 = vsel %vm3661_vm8, %v2846_v3, 0  ;;  %v992_v11 = vsel %vm3665_vm10, %v2846_v3, 0 }
 0x110   : > { %v3736_v12 = vcombine.low %v1311_v6, %v1312_v10  ;;  %v3738_v13 = vcombine.low %v991_v7, %v992_v11  ;;  %v1897_v14 = vsel %vm3669_vm11, %v2846_v3, 0  ;;  %v2355_v15 = vsel %vm3673_vm12, %v2846_v3, 0 }
 0x111   : > { %3026 = vmatmul.mubr.bf16.gmra.mrb[8].mxu1 %v498_v8  ;;  %v3747_v16 = vsel %vm3665_vm10, %v3730_v9, 0  ;;  %v3749_v17 = vcombine.low %v1896_v60, %v1897_v14  ;;  %v3754_v18 = vsel %vm3669_vm11, %v3730_v9, 0  ;;  %v3758_v19 = vcombine.low %v2354_v62, %v2355_v15 }
 0x112   : > { %3050 = vmatprep.mubr.msk.f32.mxu1 %vm3514_vm0, %v3513_v1  ;;  %v3763_v20 = vsel %vm3673_vm12, %v3730_v9, 0  ;;  %v2773_v6 = vcombine.low %v1310_v5, %v1310_v5 }
 0x114   : > { %v1335_v7 = vsel %vm1333_vm15, %v2773_v6, 0 }
 0x1d4   : > { %v3767_v23 = vpop.f32.mrb[0].mxu1 }
 0x1d5   : > { %v3019_v25 = vpop.f32.mrb[1].mxu1 }
 0x1d6   : > { %v3769_v26 = vpop.f32.mrb[2].mxu1 }
 0x1d7   : > { %v3020_v27 = vpop.f32.mrb[3].mxu1  ;;  %v3773_v28 = vpack.i.bf16 %v3769_v26, %v3767_v23 }
 0x1d9   : > { %3315 = vrot.lane.b32.xlu0 %v3773_v28, %s3517_s16 }
 0x1dc   : > { %v3776_v29 = vpop.f32.mrb[4].mxu1 }
 0x1dd   : > { %v3023_v30 = vpop.f32.mrb[5].mxu1  ;;  %650 = vrot.lane.b32.xlu1 %v3776_v29, %s3517_s16 }
 0x1de   : > { %v3779_v31 = vpop.f32.mrb[6].mxu1 }
 0x1df   : > { %v3024_v32 = vpop.f32.mrb[7].mxu1 }
 0x1e0   : > { %v344_v32 = vld [vmem:[%s3907_s25] sm:$0xf] }
 0x1e1   : > { %vm885_vm1 = vcmp.gt.bf16.partialorder %v344_v32, 0 }
 0x1e4   : > { %v3781_v33 = vpop.f32.mrb[8].mxu1 }
 0x1e5   : > { %v3027_v34 = vpop.f32.mrb[9].mxu1  ;;  %v3785_v35 = vpack.i.bf16 %v3781_v33, %v3779_v31 }
 0x1e6   : > { %v3787_v36 = vpop.f32.mrb[10].mxu1 }
 0x1e7   : > { %3320 = vrot.lane.b32.xlu0 %v3785_v35, %s3517_s16  ;;  %749 = vrot.lane.b32.xlu1 %v3787_v36, %s3517_s16  ;;  %v3028_v37 = vpop.f32.mrb[11].mxu1 }
 0x1e8   : > { %v345_v37 = vld [vmem:[%s3907_s25 + $0x4] sm:$0xf] }
 0x1e9   : > { %vm886_vm2 = vcmp.gt.bf16.partialorder %v345_v37, 0 }
 0x1eb   : > { %3325 = vrot.lane.b32.xlu0 %v3773_v28, %s3518_s17  ;;  %3330 = vrot.lane.b32.xlu1 %v3785_v35, %s3518_s17 }
 0x1ef   : > { %1002 = vrot.lane.b32.xlu0 %v3776_v29, %s3518_s17  ;;  %1094 = vrot.lane.b32.xlu1 %v3787_v36, %s3518_s17 }
 0x1f3   : > { %1183 = vperm.xlu0 %3334, %v3767_v23   ;;  %1187 = vperm.xlu1 %3335, %v3769_v26  }
 0x1f7   : > { %1199 = vperm.xlu0 %3334, %v3781_v33   ;;  %1195 = vperm.xlu1 %3335, %v3779_v31  }
 0x1fb   : > { %1203 = vperm.xlu0 %3334, %v3787_v36   ;;  %1191 = vperm.xlu1 %3335, %v3776_v29  }
 0x1ff   : > { %3337 = vset.pattern.permute.xlu0 %v3519_v38  ;;  %3336 = vset.pattern.permute.xlu1 %v3519_v38 }
 0x200   : > { %842 = vperm.xlu0 %3337, %v3769_v26   ;;  %838 = vperm.xlu1 %3336, %v3767_v23  }
 0x204   : > { %846 = vperm.xlu0 %3337, %v3776_v29   ;;  %850 = vperm.xlu1 %3336, %v3779_v31  }
 0x208   : > { %854 = vperm.xlu1 %3336, %v3781_v33  }
 0x20c   : > { %858 = vperm.xlu1 %3336, %v3787_v36  }
 0x24b   : > { %v3316_v39 = vpop.permute.xlu0 %3315 }
 0x24c   : > { %v3318_v40 = vunpack.i.h.bf16 %v3316_v39  ;;  %v3317_v41 = vunpack.i.l.bf16 %v3316_v39  ;;  %v346_v39 = vld [vmem:[%s3907_s25 + $0x8] sm:$0xf] }
 0x24d   : > { %vm887_vm3 = vcmp.gt.bf16.partialorder %v346_v39, 0 }
 0x24e   : > { %v3214_v43 = vpack.c.bf16 %v3318_v40, %v3317_v41 }
 0x24f   : > { %v651_v44 = vpop.permute.xlu1 %650 }
 0x250   : > { %3216 = vmatpush3.bf16.xpose.msk.msra.mxu0 %vm3811_vm14, %v3214_v43 }
 0x251   : > { %3033 = vmatprep.subr.mxu0 %v3513_v1 }
 0x258   : > { %3034 = vmatpush3.xpose.msk.msra.mxu0 %vm652_vm13, %v651_v44  ;;  %v347_v44 = vld [vmem:[%s3907_s25 + $0xc] sm:$0xf] }
 0x259   : > { %v3321_v49 = vpop.permute.xlu0 %3320  ;;  %3221 = vmatprep.subr.bf16.mxu0 %v3516_v22  ;;  %v750_v53 = vpop.permute.xlu1 %749  ;;  %vm888_vm4 = vcmp.gt.bf16.partialorder %v347_v44, 0 }
 0x25a   : > { %v3323_v50 = vunpack.i.h.bf16 %v3321_v49  ;;  %v3322_v51 = vunpack.i.l.bf16 %v3321_v49  ;;  %v891_v49 = vsel %vm885_vm1, 65537, %v3519_v38  ;;  %v894_v5 = vsel %vm888_vm4, 65537, %v3519_v38 }
 0x25b   : > { %3036 = vmatmul.mubr.msk.f32.vlgmr.msra.gmra.mrb[12].mxu0 %vm652_vm13, %v3520_v54  ;;  %v900_v37 = vunpack.c.l.b16 %v894_v5 }
 0x25c   : > { %v3218_v55 = vpack.c.bf16 %v3323_v50, %v3322_v51  ;;  %3038 = vmatprep.mubr.msk.f32.mxu0 %vm3514_vm0, %v3513_v1 }
 0x25d   : > { %v3326_v56 = vpop.permute.xlu0 %3325  ;;  %v3331_v63 = vpop.permute.xlu1 %3330 }
 0x25e   : > { %v3328_v60 = vunpack.i.h.bf16 %v3326_v56  ;;  %v3327_v61 = vunpack.i.l.bf16 %v3326_v56  ;;  %3220 = vmatpush3.bf16.xpose.msk.msra.mxu1 %vm3811_vm14, %v3218_v55  ;;  %v3333_v0 = vunpack.i.h.bf16 %v3331_v63  ;;  %v3332_v2 = vunpack.i.l.bf16 %v3331_v63  ;;  %v348_v56 = vld [vmem:[%s3907_s25 + $0x10] sm:$0xf] }
 0x25f   : > { %3039 = vmatmul.mubr.msk.f32.gmra.mrb[14].mxu0 %vm652_vm13, %v3520_v54  ;;  %3048 = vmatprep.subr.mxu1 %v3513_v1  ;;  %v897_v63 = vunpack.c.l.b16 %v891_v49  ;;  %vm889_vm6 = vcmp.gt.bf16.partialorder %v348_v56, 0 }
 0x260   : > { %v3222_v62 = vpack.c.bf16 %v3328_v60, %v3327_v61  ;;  %3041 = vmatprep.mubr.msk.f32.mxu0 %vm3514_vm0, %v3513_v1  ;;  %v3226_v3 = vpack.c.bf16 %v3333_v0, %v3332_v2  ;;  %v892_v0 = vsel %vm886_vm2, 65537, %v3519_v38  ;;  %v893_v2 = vsel %vm887_vm3, 65537, %v3519_v38 }
 0x261   : > { %v1003_v4 = vpop.permute.xlu0 %1002  ;;  %v1095_v52 = vpop.permute.xlu1 %1094  ;;  %vm3929_vm7 = vcmp.ne.s32.totalorder %v897_v63, 0  ;;  %v895_v39 = vsel %vm889_vm6, 65537, %v3519_v38  ;;  %vm3954_vm2 = vcmp.ne.s32.totalorder %v900_v37, 0 }
 0x262   : > { %3224 = vmatpush3.bf16.xpose.msk.msra.mxu0 %vm3811_vm14, %v3222_v62 }
 0x263   : > { %3042 = vmatmul.mubr.msk.f32.gmra.mrb[16].mxu0 %vm652_vm13, %v3520_v54  ;;  %3063 = vmatprep.subr.mxu0 %v3513_v1 }
 0x264   : > { %3065 = vmatprep.mubr.msk.f32.mxu0 %vm3514_vm0, %v3513_v1 }
 0x266   : > { %3049 = vmatpush3.xpose.msk.msra.mxu1 %vm652_vm13, %v750_v53 }
 0x267   : > { %3225 = vmatprep.subr.bf16.mxu1 %v3516_v22 }
 0x269   : > { %3051 = vmatmul.mubr.msk.f32.vlgmr.msra.gmra.mrb[12].mxu1 %vm652_vm13, %v3520_v54 }
 0x26a   : > { %3064 = vmatpush3.xpose.msk.msra.mxu0 %vm652_vm13, %v1003_v4  ;;  %3228 = vmatpush3.bf16.xpose.msk.msra.mxu1 %vm3811_vm14, %v3226_v3 }
 0x26b   : > { %3089 = vmatprep.subr.bf16.mxu0 %v3695_v45  ;;  %3053 = vmatprep.mubr.msk.f32.mxu1 %vm3514_vm0, %v3513_v1 }
 0x26c   : > { %3078 = vmatprep.subr.mxu1 %v3513_v1 }
 0x26d   : > { %3054 = vmatmul.mubr.msk.f32.gmra.mrb[14].mxu1 %vm652_vm13, %v3520_v54  ;;  %3066 = vmatmul.mubr.msk.f32.vlgmr.msra.gmra.mrb[18].mxu0 %vm652_vm13, %v3520_v54 }
 0x26e   : > { %3090 = vmatpush3.bf16.msra.mxu0 %v3695_v45  ;;  %3056 = vmatprep.mubr.msk.f32.mxu1 %vm3514_vm0, %v3513_v1  ;;  %v1313_v45 = vsel %vm3661_vm8, %v3730_v9, 0 }
 0x26f   : > { %3269 = vmatprep.subr.msk.bf16.mxu0 %vm1333_vm15, %v2773_v6  ;;  %3068 = vmatprep.mubr.msk.f32.mxu0 %vm3514_vm0, %v3513_v1  ;;  %v2777_v24 = vcombine.low %v1313_v45, %v1313_v45  ;;  %v898_v45 = vunpack.c.l.b16 %v892_v0 }
 0x271   : > { %3057 = vmatmul.mubr.msk.f32.gmra.mrb[16].mxu1 %vm652_vm13, %v3520_v54  ;;  %3069 = vmatmul.mubr.msk.f32.gmra.mrb[20].mxu0 %vm652_vm13, %v3520_v54  ;;  %v1401_v8 = vsel %vm1333_vm15, %v2777_v24, 0  ;;  %vm3941_vm12 = vcmp.ne.s32.totalorder %v898_v45, 0  ;;  %v901_v45 = vunpack.c.l.b16 %v895_v39 }
 0x272   : > { %3092 = vmatpush3.bf16.msra.mxu0 %v1335_v7  ;;  %3079 = vmatpush3.xpose.msk.msra.mxu1 %vm652_vm13, %v1095_v52  ;;  %v1188_v9 = vpop.permute.xlu1 %1187 }
 0x273   : > { %3097 = vmatprep.subr.bf16.mxu1 %v3736_v12  ;;  %3105 = vmatprep.subr.bf16.mxu0 %v3697_v46 }
 0x274   : > { %3071 = vmatprep.mubr.msk.f32.mxu0 %vm3514_vm0, %v3513_v1  ;;  %3080 = vmatprep.mubr.msk.f32.mxu1 %vm3514_vm0, %v3513_v1 }
 0x275   : > { %3072 = vmatmul.mubr.msk.f32.gmra.mrb[22].mxu0 %vm652_vm13, %v3520_v54  ;;  %3081 = vmatmul.mubr.msk.f32.vlgmr.msra.gmra.mrb[18].mxu1 %vm652_vm13, %v3520_v54 }
 0x276   : > { %3098 = vmatpush3.bf16.msra.mxu1 %v3736_v12  ;;  %3083 = vmatprep.mubr.msk.f32.mxu1 %vm3514_vm0, %v3513_v1  ;;  %v1184_v12 = vpop.permute.xlu0 %1183  ;;  %v3900_v15 = vpop.permute.xlu1 %1195 }
 0x277   : > { %3270 = vmatprep.subr.msk.bf16.mxu1 %vm1333_vm15, %v2777_v24  ;;  %v899_v24 = vunpack.c.l.b16 %v893_v2 }
 0x279   : > { %3084 = vmatmul.mubr.msk.f32.gmra.mrb[20].mxu1 %vm652_vm13, %v3520_v54  ;;  %vm3945_vm1 = vcmp.ne.s32.totalorder %v899_v24, 0 }
 0x27a   : > { %3100 = vmatpush3.bf16.msra.mxu1 %v1401_v8  ;;  %3086 = vmatprep.mubr.msk.f32.mxu1 %vm3514_vm0, %v3513_v1  ;;  %v3911_v27 = vpop.permute.xlu0 %1199  ;;  %v1192_v34 = vpop.permute.xlu1 %1191  ;;  %v349_v8 = vld [vmem:[%s3907_s25 + $0x14] sm:$0xf] }
 0x27b   : > { %3113 = vmatprep.subr.bf16.mxu1 %v3738_v13  ;;  %vm890_vm11 = vcmp.gt.bf16.partialorder %v349_v8, 0 }
 0x27c   : > { %v896_v24 = vsel %vm890_vm11, 65537, %v3519_v38 }
 0x27d   : > { %3087 = vmatmul.mubr.msk.f32.gmra.mrb[22].mxu1 %vm652_vm13, %v3520_v54 }
 0x27e   : > { %v3916_v41 = vpop.permute.xlu0 %1203 }
 0x27f   : > { %v839_v50 = vpop.permute.xlu1 %838 }
 0x282   : > { %v843_v3 = vpop.permute.xlu0 %842 }
 0x32e   : > { %v728_v10 = vpop.f32.mrb[12].mxu0 }
 0x32f   : > { %v3037_v11 = vpop.f32.mrb[13].mxu0  ;;  %v861_v51 = vadd.f32 %v839_v50, %v728_v10 }
 0x331   : > { %v873_v6 = vmul.f32 0.2, %v861_v51  ;;  %vm867_vm8 = vcmp.gt.f32.partialorder %v861_v51, 0.0 }
 0x332   : > { %v3898_v14 = vpop.f32.mrb[14].mxu0 }
 0x333   : > { %v3040_v21 = vpop.f32.mrb[15].mxu0  ;;  %v879_v56 = vsel %vm867_vm8, %v861_v51, %v873_v6  ;;  %v847_v51 = vpop.permute.xlu0 %846  ;;  %v862_v6 = vadd.f32 %v843_v3, %v3898_v14 }
 0x336   : > { %v3909_v25 = vpop.f32.mrb[16].mxu0 }
 0x337   : > { %v3043_v30 = vpop.f32.mrb[17].mxu0 }
 0x33c   : > { %v823_v40 = vpop.f32.mrb[12].mxu1 }
 0x33d   : > { %v3052_v43 = vpop.f32.mrb[13].mxu1 }
 0x33e   : > { %v851_v43 = vpop.permute.xlu1 %850 }
 0x340   : > { %v3920_v53 = vpop.f32.mrb[14].mxu1  ;;  %v1076_v55 = vpop.f32.mrb[18].mxu0 }
 0x341   : > { %v1206_v60 = vadd.f32 %v1184_v12, %v1076_v55  ;;  %v3055_v61 = vpop.f32.mrb[15].mxu1  ;;  %v3067_v62 = vpop.f32.mrb[19].mxu0 }
 0x342   : > { %v864_v61 = vadd.f32 %v851_v43, %v823_v40  ;;  %v855_v43 = vpop.permute.xlu1 %854 }
 0x343   : > { %v1218_v4 = vmul.f32 0.2, %v1206_v60  ;;  %vm1212_vm5 = vcmp.gt.f32.partialorder %v1206_v60, 0.0 }
 0x344   : > { %v3926_v52 = vpop.f32.mrb[16].mxu1  ;;  %v1081_v7 = vpop.f32.mrb[20].mxu0  ;;  %v876_v8 = vmul.f32 0.2, %v864_v61  ;;  %vm870_vm6 = vcmp.gt.f32.partialorder %v864_v61, 0.0 }
 0x345   : > { %v1207_v10 = vadd.f32 %v1188_v9, %v1081_v7  ;;  %v3058_v11 = vpop.f32.mrb[17].mxu1  ;;  %v3070_v12 = vpop.f32.mrb[21].mxu0  ;;  %v1224_v30 = vsel %vm1212_vm5, %v1206_v60, %v1218_v4  ;;  %vm3977_vm5 = vcmp.ne.s32.totalorder %v901_v45, 0 }
 0x346   : > { %v3935_v32 = vsel %vm3929_vm7, %v1224_v30, -1e+09  ;;  %v3966_v12 = vsel %vm3929_vm7, %v879_v56, -1e+09 }
 0x347   : > { %v1219_v44 = vmul.f32 0.2, %v1207_v10  ;;  %v1236_v9 = vsel %vm915_vm9, %v3935_v32, -inf  ;;  %vm1213_vm10 = vcmp.gt.f32.partialorder %v1207_v10, 0.0 }
 0x348   : > { %v1086_v49 = vpop.f32.mrb[22].mxu0  ;;  %v1168_v50 = vpop.f32.mrb[18].mxu1  ;;  %1237 = vmax.xlane.f32.xlu0 %v1236_v9 }
 0x349   : > { %v1208_v62 = vadd.f32 %v1192_v34, %v1086_v49  ;;  %v1209_v63 = vadd.f32 %v3900_v15, %v1168_v50  ;;  %v3082_v0 = vpop.f32.mrb[19].mxu1  ;;  %v1225_v2 = vsel %vm1213_vm10, %v1207_v10, %v1219_v44  ;;  %v3073_v4 = vpop.f32.mrb[23].mxu0  ;;  %v863_v10 = vadd.f32 %v847_v51, %v3909_v25 }
 0x34a   : > { %v3952_v5 = vsel %vm3941_vm12, %v1225_v2, -1e+09  ;;  %v874_v49 = vmul.f32 0.2, %v862_v6  ;;  %vm868_vm10 = vcmp.gt.f32.partialorder %v862_v6, 0.0  ;;  %v882_v4 = vsel %vm870_vm6, %v864_v61, %v876_v8 }
 0x34b   : > { %v1220_v40 = vmul.f32 0.2, %v1208_v62  ;;  %v1221_v34 = vmul.f32 0.2, %v1209_v63  ;;  %v1239_v15 = vsel %vm915_vm9, %v3952_v5, -inf  ;;  %vm1214_vm3 = vcmp.gt.f32.partialorder %v1208_v62, 0.0 }
 0x34c   : > { %v1173_v11 = vpop.f32.mrb[20].mxu1  ;;  %1240 = vmax.xlane.f32.xlu1 %v1239_v15  ;;  %vm1215_vm4 = vcmp.gt.f32.partialorder %v1209_v63, 0.0  ;;  %v875_v50 = vmul.f32 0.2, %v863_v10  ;;  %vm869_vm11 = vcmp.gt.f32.partialorder %v863_v10, 0.0  ;;  %v916_v15 = vsel %vm915_vm9, %v3966_v12, -inf }
 0x34d   : > { %v1210_v38 = vadd.f32 %v3911_v27, %v1173_v11  ;;  %v3085_v30 = vpop.f32.mrb[21].mxu1  ;;  %v1226_v37 = vsel %vm1214_vm3, %v1208_v62, %v1220_v40  ;;  %v1227_v39 = vsel %vm1215_vm4, %v1209_v63, %v1221_v34  ;;  %v902_v62 = vunpack.c.l.b16 %v896_v24  ;;  %v859_v24 = vpop.permute.xlu1 %858 }
 0x34e   : > { %v3971_v44 = vsel %vm3945_vm1, %v1226_v37, -1e+09  ;;  %v3975_v14 = vsel %vm3954_vm2, %v1227_v39, -1e+09  ;;  %v865_v63 = vadd.f32 %v855_v43, %v3920_v53  ;;  %v880_v61 = vsel %vm868_vm10, %v862_v6, %v874_v49 }
 0x34f   : > { %v1222_v3 = vmul.f32 0.2, %v1210_v38  ;;  %v1242_v27 = vsel %vm915_vm9, %v3971_v44, -inf  ;;  %v1245_v9 = vsel %vm915_vm9, %v3975_v14, -inf  ;;  %vm1216_vm8 = vcmp.gt.f32.partialorder %v1210_v38, 0.0 }
 0x350   : > { %v1178_v56 = vpop.f32.mrb[22].mxu1  ;;  %1243 = vmax.xlane.f32.xlu1 %v1242_v27  ;;  %1246 = vmax.xlane.f32.xlu0 %v1245_v9  ;;  %vm3992_vm4 = vcmp.ne.s32.totalorder %v902_v62, 0  ;;  %v877_v11 = vmul.f32 0.2, %v865_v63  ;;  %v866_v8 = vadd.f32 %v859_v24, %v3926_v52  ;;  %v881_v30 = vsel %vm869_vm11, %v863_v10, %v875_v50 }
 0x351   : > { %v1211_v0 = vadd.f32 %v3916_v41, %v1178_v56  ;;  %v1228_v2 = vsel %vm1216_vm8, %v1210_v38, %v1222_v3  ;;  %v3088_v45 = vpop.f32.mrb[23].mxu1  ;;  %v3998_v41 = vsel %vm3954_vm2, %v882_v4, -1e+09  ;;  %vm871_vm6 = vcmp.gt.f32.partialorder %v865_v63, 0.0 }
 0x352   : > { %v1234_v51 = vsel %vm3977_vm5, %v1228_v2, -1e+09  ;;  %v925_v43 = vsel %vm915_vm9, %v3998_v41, -inf  ;;  %v910_v3 = vsel %vm3941_vm12, %v880_v61, -1e+09  ;;  %v883_v10 = vsel %vm871_vm6, %v865_v63, %v877_v11 }
 0x353   : > { %v1223_v40 = vmul.f32 0.2, %v1211_v0  ;;  %v1248_v34 = vsel %vm915_vm9, %v1234_v51, -inf  ;;  %vm1217_vm3 = vcmp.gt.f32.partialorder %v1211_v0, 0.0  ;;  %v4011_v6 = vsel %vm3945_vm1, %v881_v30, -1e+09 }
 0x354   : > { %1249 = vmax.xlane.f32.xlu0 %v1248_v34  ;;  %917 = vmax.xlane.f32.xlu1 %v916_v15  ;;  %v878_v52 = vmul.f32 0.2, %v866_v8  ;;  %vm872_vm8 = vcmp.gt.f32.partialorder %v866_v8, 0.0  ;;  %v919_v27 = vsel %vm915_vm9, %v910_v3, -inf  ;;  %v922_v9 = vsel %vm915_vm9, %v4011_v6, -inf }
 0x355   : > { %v1229_v38 = vsel %vm1217_vm3, %v1211_v0, %v1223_v40  ;;  %v913_v49 = vsel %vm3977_vm5, %v883_v10, -1e+09  ;;  %v3521_v0 = vmov 2  }
 0x356   : > { %v1235_v37 = vsel %vm3992_vm4, %v1229_v38, -1e+09  ;;  %v884_v50 = vsel %vm872_vm8, %v866_v8, %v878_v52  ;;  %v928_v56 = vsel %vm915_vm9, %v913_v49, -inf  ;;  %3348 = vset.pattern.permute.xlu0 %v3521_v0  ;;  %3349 = vset.pattern.permute.xlu1 %v3521_v0 }
 0x357   : > { %v1251_v39 = vsel %vm915_vm9, %v1235_v37, -inf  ;;  %v914_v62 = vsel %vm3992_vm4, %v884_v50, -1e+09 }
 0x358   : > { %1252 = vmax.xlane.f32.xlu0 %v1251_v39  ;;  %926 = vmax.xlane.f32.xlu1 %v925_v43  ;;  %v931_v63 = vsel %vm915_vm9, %v914_v62, -inf }
 0x35c   : > { %920 = vmax.xlane.f32.xlu0 %v919_v27  ;;  %923 = vmax.xlane.f32.xlu1 %v922_v9 }
 0x360   : > { %929 = vmax.xlane.f32.xlu0 %v928_v56 }
 0x364   : > { %932 = vmax.xlane.f32.xlu0 %v931_v63 }
 0x3d5   : > { %v1238_v2 = vpop.xlane.xlu0 %1237 }
 0x3d6   : > { %v1254_v24 = vsub.f32 %v3935_v32, %v1238_v2 }
 0x3d8   : > { %v1260_v43 = vmul.f32 1.442695, %v1254_v24 }
 0x3d9   : > { %v1241_v4 = vpop.xlane.xlu1 %1240 }
 0x3da   : > { %v1255_v45 = vsub.f32 %v3952_v5, %v1241_v4 }
 0x3dc   : > { %v1262_v40 = vmul.f32 1.442695, %v1255_v45 }
 0x3dd   : > { %v1244_v34 = vpop.xlane.xlu1 %1243  ;;  %v1247_v15 = vpop.xlane.xlu0 %1246 }
 0x3de   : > { %3381 = vpow2.f32 %v1262_v40  ;;  %v1256_v52 = vsub.f32 %v3971_v44, %v1244_v34  ;;  %v1257_v56 = vsub.f32 %v3975_v14, %v1247_v15 }
 0x3e0   : > { %v1264_v32 = vmul.f32 1.442695, %v1256_v52  ;;  %v1266_v0 = vmul.f32 1.442695, %v1257_v56 }
 0x3e1   : > { %v1250_v61 = vpop.xlane.xlu0 %1249  ;;  %v918_v11 = vpop.xlane.xlu1 %917 }
 0x3e2   : > { %v1258_v8 = vsub.f32 %v1234_v51, %v1250_v61  ;;  %v934_v38 = vsub.f32 %v3966_v12, %v918_v11 }
 0x3e4   : > { %v1268_v30 = vmul.f32 1.442695, %v1258_v8  ;;  %v940_v39 = vmul.f32 1.442695, %v934_v38 }
 0x3e5   : > { %v1253_v10 = vpop.xlane.xlu0 %1252  ;;  %v927_v50 = vpop.xlane.xlu1 %926 }
 0x3e6   : > { %3383 = vpow2.f32 %v1268_v30  ;;  %v1259_v27 = vsub.f32 %v1235_v37, %v1253_v10  ;;  %v937_v37 = vsub.f32 %v3998_v41, %v927_v50 }
 0x3e7   : > { %3385 = vpow2.f32 %v940_v39 }
 0x3e8   : > { %v4026_v5 = vpop.eup %3381  ;;  %v1270_v9 = vmul.f32 1.442695, %v1259_v27  ;;  %3387 = vpow2.f32 %v1260_v43  ;;  %v946_v15 = vmul.f32 1.442695, %v937_v37 }
 0x3e9   : > { %v921_v51 = vpop.xlane.xlu0 %920  ;;  %v1275_v12 = vsel %vm915_vm9, %v4026_v5, 0.0  ;;  %v924_v4 = vpop.xlane.xlu1 %923 }
 0x3ea   : > { %3389 = vpow2.f32 %v1270_v9  ;;  %v935_v63 = vsub.f32 %v910_v3, %v921_v51  ;;  %1276 = vadd.xlane.f32.xlu0 %v1275_v12  ;;  %v936_v24 = vsub.f32 %v4011_v6, %v924_v4 }
 0x3eb   : > { %3391 = vpow2.f32 %v1264_v32 }
 0x3ec   : > { %v942_v44 = vmul.f32 1.442695, %v935_v63  ;;  %v944_v30 = vmul.f32 1.442695, %v936_v24 }
 0x3ed   : > { %v930_v2 = vpop.xlane.xlu0 %929 }
 0x3ee   : > { %3393 = vpow2.f32 %v942_v44  ;;  %v938_v45 = vsub.f32 %v913_v49, %v930_v2 }
 0x3ef   : > { %3395 = vpow2.f32 %v1266_v0 }
 0x3f0   : > { %v4032_v40 = vpop.eup %3383  ;;  %v948_v34 = vmul.f32 1.442695, %v938_v45 }
 0x3f1   : > { %v4034_v14 = vpop.eup %3385  ;;  %v933_v3 = vpop.xlane.xlu0 %932  ;;  %v1284_v61 = vsel %vm915_vm9, %v4032_v40, 0.0 }
 0x3f2   : > { %3397 = vpow2.f32 %v948_v34  ;;  %v939_v11 = vsub.f32 %v914_v62, %v933_v3  ;;  %1285 = vadd.xlane.f32.xlu0 %v1284_v61  ;;  %v952_v41 = vsel %vm915_vm9, %v4034_v14, 0.0  ;;  %v4041_v49 = vpop.eup %3387 }
 0x3f3   : > { %953 = vadd.xlane.f32.xlu1 %v952_v41  ;;  %3399 = vpow2.f32 %v946_v15  ;;  %v1272_v62 = vsel %vm915_vm9, %v4041_v49, 0.0 }
 0x3f4   : > { %v4043_v8 = vpop.eup %3389  ;;  %v950_v38 = vmul.f32 1.442695, %v939_v11 }
 0x3f5   : > { %v1287_v6 = vsel %vm915_vm9, %v4043_v8, 0.0  ;;  %v4049_v39 = vpop.eup %3391 }
 0x3f6   : > { %3401 = vpow2.f32 %v950_v38  ;;  %1288 = vadd.xlane.f32.xlu0 %v1287_v6  ;;  %v1278_v10 = vsel %vm915_vm9, %v4049_v39, 0.0 }
 0x3f7   : > { %1273 = vadd.xlane.f32.xlu1 %v1272_v62  ;;  %3403 = vpow2.f32 %v944_v30 }
 0x3f8   : > { %v3394_v43 = vpop.eup %3393 }
 0x3f9   : > { %v955_v52 = vsel %vm915_vm9, %v3394_v43, 0.0  ;;  %v4054_v27 = vpop.eup %3395 }
 0x3fa   : > { %956 = vadd.xlane.f32.xlu0 %v955_v52  ;;  %v1281_v32 = vsel %vm915_vm9, %v4054_v27, 0.0 }
 0x3fb   : > { %1279 = vadd.xlane.f32.xlu1 %v1278_v10 }
 0x3fc   : > { %v4056_v9 = vpop.eup %3397 }
 0x3fd   : > { %v964_v50 = vsel %vm915_vm9, %v4056_v9, 0.0  ;;  %v4062_v56 = vpop.eup %3399 }
 0x3fe   : > { %965 = vadd.xlane.f32.xlu0 %v964_v50  ;;  %v961_v63 = vsel %vm915_vm9, %v4062_v56, 0.0 }
 0x3ff   : > { %1282 = vadd.xlane.f32.xlu1 %v1281_v32 }
 0x400   : > { %v4064_v51 = vpop.eup %3401 }
 0x401   : > { %v967_v12 = vsel %vm915_vm9, %v4064_v51, 0.0  ;;  %v4070_v44 = vpop.eup %3403 }
 0x402   : > { %968 = vadd.xlane.f32.xlu0 %v967_v12  ;;  %v958_v0 = vsel %vm915_vm9, %v4070_v44, 0.0 }
 0x403   : > { %962 = vadd.xlane.f32.xlu1 %v961_v63 }
 0x407   : > { %959 = vadd.xlane.f32.xlu1 %v958_v0 }
 0x418   : > { %3339 = vrot.lane.b32.xlu1 %v3773_v28, %s3522_s26  ;;  %3344 = vrot.lane.b32.xlu0 %v3785_v35, %s3522_s26 }
 0x41c   : > { %1587 = vrot.lane.b32.xlu1 %v3776_v29, %s3522_s26  ;;  %1768 = vperm.xlu0 %3348, %v3767_v23  }
 0x420   : > { %1679 = vrot.lane.b32.xlu1 %v3787_v36, %s3522_s26  ;;  %1784 = vperm.xlu0 %3348, %v3781_v33  }
 0x424   : > { %1772 = vperm.xlu1 %3349, %v3769_v26   ;;  %1788 = vperm.xlu0 %3348, %v3787_v36  }
 0x428   : > { %1780 = vperm.xlu1 %3349, %v3779_v31  }
 0x42c   : > { %1776 = vperm.xlu1 %3349, %v3776_v29  }
 0x477   : > { %v1277_v37 = vpop.xlane.xlu0 %1276 }
 0x478   : > { %3405 = vrcp.f32 %v1277_v37 }
 0x47f   : > { %v1286_v2 = vpop.xlane.xlu0 %1285 }
 0x480   : > { %v954_v4 = vpop.xlane.xlu1 %953 }
 0x482   : > { %v3406_v11 = vpop.eup %3405 }
 0x483   : > { %v1289_v45 = vpop.xlane.xlu0 %1288  ;;  %v1297_v62 = vmul.f32 %v3406_v11, %v4026_v5 }
 0x484   : > { %v1274_v34 = vpop.xlane.xlu1 %1273 }
 0x485   : > { %3407 = vrcp.f32 %v1274_v34 }
 0x486   : > { %3409 = vrcp.f32 %v954_v4 }
 0x487   : > { %v957_v15 = vpop.xlane.xlu0 %956 }
 0x488   : > { %3411 = vrcp.f32 %v957_v15  ;;  %v1280_v24 = vpop.xlane.xlu1 %1279 }
 0x489   : > { %3413 = vrcp.f32 %v1280_v24 }
 0x48a   : > { %3415 = vrcp.f32 %v1289_v45 }
 0x48b   : > { %3417 = vrcp.f32 %v1286_v2  ;;  %v966_v3 = vpop.xlane.xlu0 %965 }
 0x48c   : > { %v1283_v61 = vpop.xlane.xlu1 %1282 }
 0x48d   : > { %3419 = vrcp.f32 %v1283_v61 }
 0x48e   : > { %3421 = vrcp.f32 %v966_v3 }
 0x48f   : > { %v3408_v41 = vpop.eup %3407  ;;  %v969_v32 = vpop.xlane.xlu0 %968 }
 0x490   : > { %v3410_v38 = vpop.eup %3409  ;;  %v963_v30 = vpop.xlane.xlu1 %962  ;;  %v1296_v6 = vmul.f32 %v3408_v41, %v4041_v49 }
 0x491   : > { %3423 = vrcp.f32 %v963_v30  ;;  %v976_v12 = vmul.f32 %v3410_v38, %v4034_v14  ;;  %v2781_v14 = vcombine.low %v3708_v57, %v3708_v57 }
 0x492   : > { %v3412_v52 = vpop.eup %3411  ;;  %v1314_v10 = vpack.c.bf16 %v1297_v62, %v1296_v6 }
 0x493   : > { %v3414_v50 = vpop.eup %3413  ;;  %v977_v63 = vmul.f32 %v3412_v52, %v3394_v43  ;;  %v3345_v62 = vpop.permute.xlu0 %3344 }
 0x494   : > { %v3416_v0 = vpop.eup %3415  ;;  %v1298_v37 = vmul.f32 %v3414_v50, %v4049_v39  ;;  %3093 = vmatprep.mubr.msk.bf16.mxu0 %vm915_vm9, %v1314_v10  ;;  %v960_v2 = vpop.xlane.xlu1 %959  ;;  %v3347_v10 = vunpack.i.h.bf16 %v3345_v62  ;;  %v3346_v50 = vunpack.i.l.bf16 %v3345_v62 }
 0x495   : > { %v3418_v4 = vpop.eup %3417  ;;  %3425 = vrcp.f32 %v960_v2  ;;  %v994_v45 = vpack.c.bf16 %v977_v63, %v976_v12  ;;  %v1301_v34 = vmul.f32 %v3416_v0, %v4043_v8  ;;  %v1467_v8 = vsel %vm1333_vm15, %v2781_v14, 0 }
 0x496   : > { %v1315_v49 = vpack.c.bf16 %v1298_v37, %v1298_v37  ;;  %3427 = vrcp.f32 %v969_v32  ;;  %v1300_v39 = vmul.f32 %v3418_v4, %v4032_v40  ;;  %v3234_v32 = vpack.c.bf16 %v3347_v10, %v3346_v50 }
 0x497   : > { %v3420_v5 = vpop.eup %3419  ;;  %v1317_v61 = vpack.c.bf16 %v1301_v34, %v1301_v34  ;;  %v2801_v12 = vcombine.low %v3713_v58, %v3713_v58 }
 0x498   : > { %3094 = vmatmul.mubr.msk.bf16.vlgmr.msra.gmra.mrb[24].mxu0 %vm915_vm9, %v1315_v49  ;;  %v1299_v43 = vmul.f32 %v3420_v5, %v4054_v27  ;;  %v3422_v15 = vpop.eup %3421  ;;  %v3340_v11 = vpop.permute.xlu1 %3339 }
 0x499   : > { %3106 = vmatpush3.bf16.msra.mxu0 %v3697_v46  ;;  %3109 = vmatprep.mubr.msk.bf16.mxu0 %vm915_vm9, %v994_v45  ;;  %v980_v27 = vmul.f32 %v3422_v15, %v4056_v9  ;;  %v2785_v46 = vcombine.low %v3747_v16, %v3747_v16  ;;  %v3342_v30 = vunpack.i.h.bf16 %v3340_v11  ;;  %v3341_v9 = vunpack.i.l.bf16 %v3340_v11 }
 0x49a   : > { %3271 = vmatprep.subr.msk.bf16.mxu0 %vm1333_vm15, %v2781_v14  ;;  %v1316_v24 = vpack.c.bf16 %v1300_v39, %v1299_v43  ;;  %v1919_v0 = vsel %vm1333_vm15, %v2801_v12, 0 }
 0x49b   : > { %v3424_v3 = vpop.eup %3423  ;;  %v1533_v6 = vsel %vm1333_vm15, %v2785_v46, 0  ;;  %v3230_v52 = vpack.c.bf16 %v3342_v30, %v3341_v9 }
 0x49c   : > { %3101 = vmatprep.mubr.msk.bf16.mxu1 %vm915_vm9, %v1316_v24  ;;  %v979_v57 = vmul.f32 %v3424_v3, %v4062_v56 }
 0x49d   : > { %3108 = vmatpush3.bf16.msra.mxu0 %v1467_v8  ;;  %3102 = vmatmul.mubr.msk.bf16.vlgmr.msra.gmra.mrb[24].mxu1 %vm915_vm9, %v1317_v61 }
 0x49e   : > { %3114 = vmatpush3.bf16.msra.mxu1 %v3738_v13  ;;  %v996_v40 = vpack.c.bf16 %v980_v27, %v979_v57  ;;  %3229 = vmatprep.subr.bf16.mxu0 %v3516_v22 }
 0x49f   : > { %v3426_v41 = vpop.eup %3425  ;;  %3272 = vmatprep.subr.msk.bf16.mxu1 %vm1333_vm15, %v2785_v46 }
 0x4a0   : > { %v3428_v38 = vpop.eup %3427  ;;  %v978_v56 = vmul.f32 %v3426_v41, %v4070_v44  ;;  %3117 = vmatprep.mubr.msk.bf16.mxu1 %vm915_vm9, %v996_v40 }
 0x4a1   : > { %v981_v13 = vmul.f32 %v3428_v38, %v4064_v51  ;;  %v1588_v51 = vpop.permute.xlu1 %1587 }
 0x4a2   : > { %3116 = vmatpush3.bf16.msra.mxu1 %v1533_v6  ;;  %v995_v16 = vpack.c.bf16 %v978_v56, %v978_v56 }
 0x4a3   : > { %3233 = vmatprep.subr.bf16.mxu1 %v3516_v22  ;;  %v997_v44 = vpack.c.bf16 %v981_v13, %v981_v13 }
 0x4a4   : > { %3110 = vmatmul.mubr.msk.bf16.vlgmr.msra.gmra.mrb[24].mxu0 %vm915_vm9, %v995_v16 }
 0x4a5   : > { %3127 = vmatprep.mubr.msk.f32.mxu0 %vm3514_vm0, %v3513_v1  ;;  %v1680_v63 = vpop.permute.xlu1 %1679 }
 0x4a6   : > { %3232 = vmatpush3.bf16.xpose.msk.msra.mxu0 %vm3811_vm14, %v3230_v52 }
 0x4a7   : > { %3125 = vmatprep.subr.mxu0 %v3513_v1 }
 0x4a9   : > { %3118 = vmatmul.mubr.msk.bf16.vlgmr.msra.gmra.mrb[24].mxu1 %vm915_vm9, %v997_v44 }
 0x4aa   : > { %3142 = vmatprep.mubr.msk.f32.mxu1 %vm3514_vm0, %v3513_v1 }
 0x4ab   : > { %3236 = vmatpush3.bf16.xpose.msk.msra.mxu1 %vm3811_vm14, %v3234_v32 }
 0x4ac   : > { %3140 = vmatprep.subr.mxu1 %v3513_v1 }
 0x4ae   : > { %3126 = vmatpush3.xpose.msk.msra.mxu0 %vm652_vm13, %v1588_v51 }
 0x4af   : > { %3151 = vmatprep.subr.bf16.mxu0 %v3699_v47 }
 0x4b1   : > { %3128 = vmatmul.mubr.msk.f32.vlgmr.msra.gmra.mrb[28].mxu0 %vm652_vm13, %v3520_v54 }
 0x4b2   : > { %3152 = vmatpush3.bf16.msra.mxu0 %v3699_v47  ;;  %3130 = vmatprep.mubr.msk.f32.mxu0 %vm3514_vm0, %v3513_v1  ;;  %v2805_v47 = vcombine.low %v3754_v18, %v3754_v18  ;;  %v1769_v18 = vpop.permute.xlu0 %1768 }
 0x4b3   : > { %3141 = vmatpush3.xpose.msk.msra.mxu1 %vm652_vm13, %v1680_v63  ;;  %3273 = vmatprep.subr.msk.bf16.mxu0 %vm1333_vm15, %v2801_v12 }
 0x4b4   : > { %3159 = vmatprep.subr.bf16.mxu1 %v3749_v17  ;;  %v1985_v58 = vsel %vm1333_vm15, %v2805_v47, 0 }
 0x4b5   : > { %3131 = vmatmul.mubr.msk.f32.gmra.mrb[30].mxu0 %vm652_vm13, %v3520_v54 }
 0x4b6   : > { %3143 = vmatmul.mubr.msk.f32.vlgmr.msra.gmra.mrb[28].mxu1 %vm652_vm13, %v3520_v54  ;;  %3154 = vmatpush3.bf16.msra.mxu0 %v1919_v0  ;;  %v1785_v3 = vpop.permute.xlu0 %1784 }
 0x4b7   : > { %3160 = vmatpush3.bf16.msra.mxu1 %v3749_v17  ;;  %3133 = vmatprep.mubr.msk.f32.mxu0 %vm3514_vm0, %v3513_v1  ;;  %v1773_v17 = vpop.permute.xlu1 %1772 }
 0x4b8   : > { %3274 = vmatprep.subr.msk.bf16.mxu1 %vm1333_vm15, %v2805_v47  ;;  %3145 = vmatprep.mubr.msk.f32.mxu1 %vm3514_vm0, %v3513_v1 }
 0x4b9   : > { %3134 = vmatmul.mubr.msk.f32.gmra.mrb[32].mxu0 %vm652_vm13, %v3520_v54  ;;  %3237 = vmatprep.subr.bf16.mxu0 %v3516_v22 }
 0x4ba   : > { %3146 = vmatmul.mubr.msk.f32.gmra.mrb[30].mxu1 %vm652_vm13, %v3520_v54  ;;  %v1789_v10 = vpop.permute.xlu0 %1788 }
 0x4bb   : > { %3162 = vmatpush3.bf16.msra.mxu1 %v1985_v58  ;;  %3148 = vmatprep.mubr.msk.f32.mxu1 %vm3514_vm0, %v3513_v1  ;;  %v1781_v45 = vpop.permute.xlu1 %1780 }
 0x4bc   : > { %3241 = vmatprep.subr.bf16.mxu1 %v3516_v22 }
 0x4be   : > { %3149 = vmatmul.mubr.msk.f32.gmra.mrb[32].mxu1 %vm652_vm13, %v3520_v54 }
 0x4bf   : > { %v1777_v57 = vpop.permute.xlu1 %1776 }
 0x584   : > { %v1661_v37 = vpop.f32.mrb[28].mxu0 }
 0x585   : > { %v1791_v2 = vadd.f32 %v1769_v18, %v1661_v37  ;;  %v3129_v4 = vpop.f32.mrb[29].mxu0 }
 0x587   : > { %v1803_v49 = vmul.f32 0.2, %v1791_v2  ;;  %vm1797_vm10 = vcmp.gt.f32.partialorder %v1791_v2, 0.0 }
 0x588   : > { %v1666_v5 = vpop.f32.mrb[30].mxu0 }
 0x589   : > { %v1792_v34 = vadd.f32 %v1773_v17, %v1666_v5  ;;  %v1753_v14 = vpop.f32.mrb[28].mxu1  ;;  %v3132_v43 = vpop.f32.mrb[31].mxu0  ;;  %v1809_v39 = vsel %vm1797_vm10, %v1791_v2, %v1803_v49 }
 0x58a   : > { %v1794_v15 = vadd.f32 %v1781_v45, %v1753_v14  ;;  %v3144_v24 = vpop.f32.mrb[29].mxu1  ;;  %v1815_v22 = vsel %vm3929_vm7, %v1809_v39, -1e+09  ;;  %v3523_v45 = vmov 3  }
 0x58b   : > { %v1804_v61 = vmul.f32 0.2, %v1792_v34  ;;  %v1821_v8 = vsel %vm915_vm9, %v1815_v22, -inf  ;;  %vm1798_vm11 = vcmp.gt.f32.partialorder %v1792_v34, 0.0  ;;  %3360 = vset.pattern.permute.xlu1 %v3523_v45  ;;  %3361 = vset.pattern.permute.xlu0 %v3523_v45 }
 0x58c   : > { %v1806_v27 = vmul.f32 0.2, %v1794_v15  ;;  %1822 = vmax.xlane.f32.xlu1 %v1821_v8  ;;  %v1671_v11 = vpop.f32.mrb[32].mxu0  ;;  %vm1800_vm3 = vcmp.gt.f32.partialorder %v1794_v15, 0.0 }
 0x58d   : > { %v1793_v46 = vadd.f32 %v1777_v57, %v1671_v11  ;;  %v1758_v40 = vpop.f32.mrb[30].mxu1  ;;  %v1810_v41 = vsel %vm1798_vm11, %v1792_v34, %v1804_v61  ;;  %v3135_v38 = vpop.f32.mrb[33].mxu0 }
 0x58e   : > { %v1795_v56 = vadd.f32 %v1785_v3, %v1758_v40  ;;  %v3147_v30 = vpop.f32.mrb[31].mxu1  ;;  %v1816_v9 = vsel %vm3941_vm12, %v1810_v41, -1e+09  ;;  %v1812_v6 = vsel %vm1800_vm3, %v1794_v15, %v1806_v27 }
 0x58f   : > { %v1805_v62 = vmul.f32 0.2, %v1793_v46  ;;  %v1824_v16 = vsel %vm915_vm9, %v1816_v9, -inf  ;;  %vm1799_vm6 = vcmp.gt.f32.partialorder %v1793_v46, 0.0  ;;  %v1818_v52 = vsel %vm3954_vm2, %v1812_v6, -1e+09 }
 0x590   : > { %v1807_v13 = vmul.f32 0.2, %v1795_v56  ;;  %1825 = vmax.xlane.f32.xlu0 %v1824_v16  ;;  %vm1801_vm8 = vcmp.gt.f32.partialorder %v1795_v56, 0.0  ;;  %v1830_v63 = vsel %vm915_vm9, %v1818_v52, -inf }
 0x591   : > { %v1763_v50 = vpop.f32.mrb[32].mxu1  ;;  %v1811_v44 = vsel %vm1799_vm6, %v1793_v46, %v1805_v62 }
 0x592   : > { %v1796_v32 = vadd.f32 %v1789_v10, %v1763_v50  ;;  %v1813_v51 = vsel %vm1801_vm8, %v1795_v56, %v1807_v13  ;;  %v3150_v12 = vpop.f32.mrb[33].mxu1  ;;  %v1817_v17 = vsel %vm3945_vm1, %v1811_v44, -1e+09 }
 0x593   : > { %v1819_v0 = vsel %vm3977_vm5, %v1813_v51, -1e+09  ;;  %v1827_v37 = vsel %vm915_vm9, %v1817_v17, -inf }
 0x594   : > { %v1808_v47 = vmul.f32 0.2, %v1796_v32  ;;  %1831 = vmax.xlane.f32.xlu0 %v1830_v63  ;;  %v1833_v58 = vsel %vm915_vm9, %v1819_v0, -inf  ;;  %vm1802_vm10 = vcmp.gt.f32.partialorder %v1796_v32, 0.0 }
 0x595   : > { %1834 = vmax.xlane.f32.xlu1 %v1833_v58 }
 0x596   : > { %v1814_v18 = vsel %vm1802_vm10, %v1796_v32, %v1808_v47 }
 0x597   : > { %v1820_v2 = vsel %vm3992_vm4, %v1814_v18, -1e+09 }
 0x598   : > { %1828 = vmax.xlane.f32.xlu0 %v1827_v37  ;;  %v1836_v4 = vsel %vm915_vm9, %v1820_v2, -inf }
 0x599   : > { %1837 = vmax.xlane.f32.xlu1 %v1836_v4 }
 0x619   : > { %v1823_v49 = vpop.xlane.xlu1 %1822 }
 0x61a   : > { %v1839_v5 = vsub.f32 %v1815_v22, %v1823_v49 }
 0x61c   : > { %v1845_v34 = vmul.f32 1.442695, %v1839_v5 }
 0x61d   : > { %v1826_v14 = vpop.xlane.xlu0 %1825 }
 0x61e   : > { %3429 = vpow2.f32 %v1845_v34  ;;  %v1840_v43 = vsub.f32 %v1816_v9, %v1826_v14 }
 0x620   : > { %v1847_v39 = vmul.f32 1.442695, %v1840_v43 }
 0x621   : > { %v1832_v15 = vpop.xlane.xlu0 %1831 }
 0x622   : > { %3431 = vpow2.f32 %v1847_v39  ;;  %v1835_v24 = vpop.xlane.xlu1 %1834  ;;  %v1842_v61 = vsub.f32 %v1818_v52, %v1832_v15 }
 0x623   : > { %v1843_v3 = vsub.f32 %v1819_v0, %v1835_v24 }
 0x624   : > { %v1851_v41 = vmul.f32 1.442695, %v1842_v61 }
 0x625   : > { %v1853_v8 = vmul.f32 1.442695, %v1843_v3  ;;  %v1829_v57 = vpop.xlane.xlu0 %1828 }
 0x626   : > { %v1841_v27 = vsub.f32 %v1817_v17, %v1829_v57  ;;  %v1838_v11 = vpop.xlane.xlu1 %1837 }
 0x627   : > { %3433 = vpow2.f32 %v1853_v8  ;;  %v1844_v46 = vsub.f32 %v1820_v2, %v1838_v11  ;;  %v2821_v8 = vcombine.low %v3718_v59, %v3718_v59 }
 0x628   : > { %v3430_v40 = vpop.eup %3429  ;;  %v1849_v38 = vmul.f32 1.442695, %v1841_v27 }
 0x629   : > { %v1855_v22 = vmul.f32 1.442695, %v1844_v46  ;;  %v1857_v56 = vsel %vm915_vm9, %v3430_v40, 0.0  ;;  %v2377_v42 = vsel %vm1333_vm15, %v2821_v8, 0 }
 0x62a   : > { %3435 = vpow2.f32 %v1849_v38  ;;  %1858 = vadd.xlane.f32.xlu0 %v1857_v56 }
 0x62b   : > { %3437 = vpow2.f32 %v1855_v22 }
 0x62c   : > { %v3432_v30 = vpop.eup %3431  ;;  %3439 = vpow2.f32 %v1851_v41 }
 0x62d   : > { %v1860_v9 = vsel %vm915_vm9, %v3432_v30, 0.0 }
 0x62e   : > { %1861 = vadd.xlane.f32.xlu1 %v1860_v9 }
 0x631   : > { %v3434_v6 = vpop.eup %3433 }
 0x632   : > { %v1869_v62 = vsel %vm915_vm9, %v3434_v6, 0.0 }
 0x633   : > { %1870 = vadd.xlane.f32.xlu1 %v1869_v62 }
 0x634   : > { %v3436_v16 = vpop.eup %3435 }
 0x635   : > { %v3438_v13 = vpop.eup %3437  ;;  %v1863_v52 = vsel %vm915_vm9, %v3436_v16, 0.0 }
 0x636   : > { %v3440_v10 = vpop.eup %3439  ;;  %1864 = vadd.xlane.f32.xlu0 %v1863_v52  ;;  %v1872_v50 = vsel %vm915_vm9, %v3438_v13, 0.0 }
 0x637   : > { %1873 = vadd.xlane.f32.xlu1 %v1872_v50  ;;  %v1866_v44 = vsel %vm915_vm9, %v3440_v10, 0.0 }
 0x63a   : > { %1867 = vadd.xlane.f32.xlu0 %v1866_v44 }
 0x648   : > { %3356 = vrot.lane.b32.xlu1 %v3785_v35, %s3524_s27 }
 0x64c   : > { %2045 = vrot.lane.b32.xlu1 %v3776_v29, %s3524_s27 }
 0x650   : > { %2226 = vperm.xlu1 %3360, %v3767_v23   ;;  %3351 = vrot.lane.b32.xlu0 %v3773_v28, %s3524_s27 }
 0x654   : > { %2238 = vperm.xlu1 %3360, %v3779_v31   ;;  %2137 = vrot.lane.b32.xlu0 %v3787_v36, %s3524_s27 }
 0x658   : > { %2242 = vperm.xlu1 %3360, %v3781_v33   ;;  %2230 = vperm.xlu0 %3361, %v3769_v26  }
 0x65c   : > { %2246 = vperm.xlu1 %3360, %v3787_v36   ;;  %2234 = vperm.xlu0 %3361, %v3776_v29  }
 0x6b7   : > { %v1859_v32 = vpop.xlane.xlu0 %1858 }
 0x6b8   : > { %3441 = vrcp.f32 %v1859_v32 }
 0x6bb   : > { %v1862_v35 = vpop.xlane.xlu1 %1861 }
 0x6bc   : > { %3443 = vrcp.f32 %v1862_v35 }
 0x6c0   : > { %v1871_v51 = vpop.xlane.xlu1 %1870 }
 0x6c2   : > { %v3442_v12 = vpop.eup %3441 }
 0x6c3   : > { %v1865_v23 = vpop.xlane.xlu0 %1864  ;;  %v1881_v33 = vmul.f32 %v3442_v12, %v3430_v40 }
 0x6c4   : > { %3445 = vrcp.f32 %v1865_v23  ;;  %v1874_v28 = vpop.xlane.xlu1 %1873 }
 0x6c5   : > { %3447 = vrcp.f32 %v1874_v28 }
 0x6c6   : > { %v3444_v31 = vpop.eup %3443  ;;  %3449 = vrcp.f32 %v1871_v51 }
 0x6c7   : > { %v1868_v63 = vpop.xlane.xlu0 %1867  ;;  %v1882_v0 = vmul.f32 %v3444_v31, %v3432_v30 }
 0x6c8   : > { %3451 = vrcp.f32 %v1868_v63  ;;  %v3357_v2 = vpop.permute.xlu1 %3356 }
 0x6c9   : > { %v1899_v26 = vpack.c.bf16 %v1882_v0, %v1881_v33  ;;  %v3359_v34 = vunpack.i.h.bf16 %v3357_v2  ;;  %v3358_v14 = vunpack.i.l.bf16 %v3357_v2 }
 0x6cb   : > { %3155 = vmatprep.mubr.msk.bf16.mxu0 %vm915_vm9, %v1899_v26  ;;  %v3352_v29 = vpop.permute.xlu0 %3351  ;;  %v3242_v3 = vpack.c.bf16 %v3359_v34, %v3358_v14 }
 0x6cc   : > { %v3354_v47 = vunpack.i.h.bf16 %v3352_v29  ;;  %v3353_v58 = vunpack.i.l.bf16 %v3352_v29  ;;  %v2046_v61 = vpop.permute.xlu1 %2045 }
 0x6ce   : > { %v3446_v36 = vpop.eup %3445  ;;  %v3238_v5 = vpack.c.bf16 %v3354_v47, %v3353_v58 }
 0x6cf   : > { %v3448_v17 = vpop.eup %3447  ;;  %v1883_v18 = vmul.f32 %v3446_v36, %v3436_v16  ;;  %v2138_v57 = vpop.permute.xlu0 %2137 }
 0x6d0   : > { %v3450_v37 = vpop.eup %3449  ;;  %v1886_v49 = vmul.f32 %v3448_v17, %v3438_v13 }
 0x6d1   : > { %v1900_v4 = vpack.c.bf16 %v1883_v18, %v1883_v18  ;;  %v1885_v39 = vmul.f32 %v3450_v37, %v3434_v6 }
 0x6d2   : > { %v3452_v45 = vpop.eup %3451  ;;  %v1902_v24 = vpack.c.bf16 %v1886_v49, %v1886_v49 }
 0x6d3   : > { %3156 = vmatmul.mubr.msk.bf16.vlgmr.msra.gmra.mrb[24].mxu0 %vm915_vm9, %v1900_v4  ;;  %v1884_v43 = vmul.f32 %v3452_v45, %v3440_v10 }
 0x6d4   : > { %3240 = vmatpush3.bf16.xpose.msk.msra.mxu0 %vm3811_vm14, %v3238_v5  ;;  %3173 = vmatprep.mubr.msk.f32.mxu0 %vm3514_vm0, %v3513_v1 }
 0x6d5   : > { %v1901_v15 = vpack.c.bf16 %v1885_v39, %v1884_v43  ;;  %3171 = vmatprep.subr.mxu0 %v3513_v1 }
 0x6d7   : > { %3163 = vmatprep.mubr.msk.bf16.mxu1 %vm915_vm9, %v1901_v15  ;;  %v2231_v40 = vpop.permute.xlu0 %2230 }
 0x6d8   : > { %3164 = vmatmul.mubr.msk.bf16.vlgmr.msra.gmra.mrb[24].mxu1 %vm915_vm9, %v1902_v24 }
 0x6d9   : > { %3244 = vmatpush3.bf16.xpose.msk.msra.mxu1 %vm3811_vm14, %v3242_v3  ;;  %3188 = vmatprep.mubr.msk.f32.mxu1 %vm3514_vm0, %v3513_v1 }
 0x6da   : > { %3186 = vmatprep.subr.mxu1 %v3513_v1 }
 0x6db   : > { %v2235_v52 = vpop.permute.xlu0 %2234 }
 0x6dc   : > { %3172 = vmatpush3.xpose.msk.msra.mxu0 %vm652_vm13, %v2046_v61 }
 0x6dd   : > { %3197 = vmatprep.subr.bf16.mxu0 %v3701_v48 }
 0x6df   : > { %3174 = vmatmul.mubr.msk.f32.vlgmr.msra.gmra.mrb[34].mxu0 %vm652_vm13, %v3520_v54 }
 0x6e0   : > { %3198 = vmatpush3.bf16.msra.mxu0 %v3701_v48  ;;  %3176 = vmatprep.mubr.msk.f32.mxu0 %vm3514_vm0, %v3513_v1  ;;  %v2825_v48 = vcombine.low %v3763_v20, %v3763_v20 }
 0x6e1   : > { %3187 = vmatpush3.xpose.msk.msra.mxu1 %vm652_vm13, %v2138_v57  ;;  %3275 = vmatprep.subr.msk.bf16.mxu0 %vm1333_vm15, %v2821_v8 }
 0x6e2   : > { %3205 = vmatprep.subr.bf16.mxu1 %v3758_v19  ;;  %v2443_v59 = vsel %vm1333_vm15, %v2825_v48, 0 }
 0x6e3   : > { %3177 = vmatmul.mubr.msk.f32.gmra.mrb[36].mxu0 %vm652_vm13, %v3520_v54 }
 0x6e4   : > { %3189 = vmatmul.mubr.msk.f32.vlgmr.msra.gmra.mrb[34].mxu1 %vm652_vm13, %v3520_v54  ;;  %3200 = vmatpush3.bf16.msra.mxu0 %v2377_v42 }
 0x6e5   : > { %3206 = vmatpush3.bf16.msra.mxu1 %v3758_v19  ;;  %3179 = vmatprep.mubr.msk.f32.mxu0 %vm3514_vm0, %v3513_v1  ;;  %v2227_v19 = vpop.permute.xlu1 %2226 }
 0x6e6   : > { %3276 = vmatprep.subr.msk.bf16.mxu1 %vm1333_vm15, %v2825_v48  ;;  %3191 = vmatprep.mubr.msk.f32.mxu1 %vm3514_vm0, %v3513_v1 }
 0x6e7   : > { %3180 = vmatmul.mubr.msk.f32.gmra.mrb[38].mxu0 %vm652_vm13, %v3520_v54 }
 0x6e8   : > { %3192 = vmatmul.mubr.msk.f32.gmra.mrb[36].mxu1 %vm652_vm13, %v3520_v54 }
 0x6e9   : > { %3208 = vmatpush3.bf16.msra.mxu1 %v2443_v59  ;;  %3194 = vmatprep.mubr.msk.f32.mxu1 %vm3514_vm0, %v3513_v1  ;;  %v2239_v27 = vpop.permute.xlu1 %2238 }
 0x6ec   : > { %3195 = vmatmul.mubr.msk.f32.gmra.mrb[38].mxu1 %vm652_vm13, %v3520_v54 }
 0x6ed   : > { %v2243_v16 = vpop.permute.xlu1 %2242 }
 0x6f1   : > { %v2247_v29 = vpop.permute.xlu1 %2246 }
 0x7b2   : > { %v2119_v20 = vpop.f32.mrb[34].mxu0 }
 0x7b3   : > { %v2249_v11 = vadd.f32 %v2227_v19, %v2119_v20  ;;  %v3175_v46 = vpop.f32.mrb[35].mxu0 }
 0x7b5   : > { %v2261_v41 = vmul.f32 0.2, %v2249_v11  ;;  %vm2255_vm14 = vcmp.gt.f32.partialorder %v2249_v11, 0.0 }
 0x7b6   : > { %v2124_v38 = vpop.f32.mrb[36].mxu0 }
 0x7b7   : > { %v2250_v22 = vadd.f32 %v2231_v40, %v2124_v38  ;;  %v2211_v56 = vpop.f32.mrb[34].mxu1  ;;  %v3178_v30 = vpop.f32.mrb[37].mxu0  ;;  %v2267_v9 = vsel %vm2255_vm14, %v2249_v11, %v2261_v41 }
 0x7b8   : > { %v2252_v6 = vadd.f32 %v2239_v27, %v2211_v56  ;;  %v3190_v62 = vpop.f32.mrb[35].mxu1  ;;  %v2273_v1 = vsel %vm3929_vm7, %v2267_v9, -1e+09 }
 0x7b9   : > { %v2262_v54 = vmul.f32 0.2, %v2250_v22  ;;  %v2279_v13 = vsel %vm915_vm9, %v2273_v1, -inf  ;;  %vm2256_vm0 = vcmp.gt.f32.partialorder %v2250_v22, 0.0 }
 0x7ba   : > { %v2264_v10 = vmul.f32 0.2, %v2252_v6  ;;  %2280 = vmax.xlane.f32.xlu0 %v2279_v13  ;;  %v2129_v50 = vpop.f32.mrb[38].mxu0  ;;  %vm2258_vm13 = vcmp.gt.f32.partialorder %v2252_v6, 0.0 }
 0x7bb   : > { %v2251_v44 = vadd.f32 %v2235_v52, %v2129_v50  ;;  %v2216_v32 = vpop.f32.mrb[36].mxu1  ;;  %v2268_v35 = vsel %vm2256_vm0, %v2250_v22, %v2262_v54  ;;  %v3181_v51 = vpop.f32.mrb[39].mxu0 }
 0x7bc   : > { %v2253_v23 = vadd.f32 %v2243_v16, %v2216_v32  ;;  %v3193_v12 = vpop.f32.mrb[37].mxu1  ;;  %v2274_v21 = vsel %vm3941_vm12, %v2268_v35, -1e+09  ;;  %v2270_v28 = vsel %vm2258_vm13, %v2252_v6, %v2264_v10 }
 0x7bd   : > { %v2263_v31 = vmul.f32 0.2, %v2251_v44  ;;  %v2282_v63 = vsel %vm915_vm9, %v2274_v21, -inf  ;;  %v2276_v33 = vsel %vm3954_vm2, %v2270_v28, -1e+09  ;;  %vm2257_vm15 = vcmp.gt.f32.partialorder %v2251_v44, 0.0 }
 0x7be   : > { %v2265_v0 = vmul.f32 0.2, %v2253_v23  ;;  %2283 = vmax.xlane.f32.xlu1 %v2282_v63  ;;  %v2288_v26 = vsel %vm915_vm9, %v2276_v33, -inf  ;;  %vm2259_vm7 = vcmp.gt.f32.partialorder %v2253_v23, 0.0 }
 0x7bf   : > { %v2221_v36 = vpop.f32.mrb[38].mxu1  ;;  %2289 = vmax.xlane.f32.xlu0 %v2288_v26  ;;  %v2269_v47 = vsel %vm2257_vm15, %v2251_v44, %v2263_v31 }
 0x7c0   : > { %v2254_v58 = vadd.f32 %v2247_v29, %v2221_v36  ;;  %v2275_v55 = vsel %vm3945_vm1, %v2269_v47, -1e+09  ;;  %v2271_v17 = vsel %vm2259_vm7, %v2253_v23, %v2265_v0  ;;  %v3196_v18 = vpop.f32.mrb[39].mxu1 }
 0x7c1   : > { %v2285_v37 = vsel %vm915_vm9, %v2275_v55, -inf  ;;  %v2277_v7 = vsel %vm3977_vm5, %v2271_v17, -1e+09 }
 0x7c2   : > { %v2266_v2 = vmul.f32 0.2, %v2254_v58  ;;  %2286 = vmax.xlane.f32.xlu1 %v2285_v37  ;;  %v2291_v4 = vsel %vm915_vm9, %v2277_v7, -inf  ;;  %vm2260_vm12 = vcmp.gt.f32.partialorder %v2254_v58, 0.0 }
 0x7c3   : > { %2292 = vmax.xlane.f32.xlu0 %v2291_v4 }
 0x7c4   : > { %v2272_v45 = vsel %vm2260_vm12, %v2254_v58, %v2266_v2 }
 0x7c5   : > { %v2278_v49 = vsel %vm3992_vm4, %v2272_v45, -1e+09 }
 0x7c6   : > { %v2294_v60 = vsel %vm915_vm9, %v2278_v49, -inf }
 0x7c7   : > { %2295 = vmax.xlane.f32.xlu0 %v2294_v60 }
 0x847   : > { %v2281_v5 = vpop.xlane.xlu0 %2280 }
 0x848   : > { %v2297_v34 = vsub.f32 %v2273_v1, %v2281_v5 }
 0x84a   : > { %v2303_v14 = vmul.f32 1.442695, %v2297_v34 }
 0x84b   : > { %v2284_v43 = vpop.xlane.xlu1 %2283 }
 0x84c   : > { %3453 = vpow2.f32 %v2303_v14  ;;  %v2298_v25 = vsub.f32 %v2274_v21, %v2284_v43  ;;  %v2290_v39 = vpop.xlane.xlu0 %2289 }
 0x84d   : > { %v2300_v15 = vsub.f32 %v2276_v33, %v2290_v39 }
 0x84e   : > { %v2305_v24 = vmul.f32 1.442695, %v2298_v25 }
 0x84f   : > { %v2309_v3 = vmul.f32 1.442695, %v2300_v15  ;;  %v2287_v61 = vpop.xlane.xlu1 %2286 }
 0x850   : > { %3455 = vpow2.f32 %v2305_v24  ;;  %v2299_v8 = vsub.f32 %v2275_v55, %v2287_v61  ;;  %v2293_v57 = vpop.xlane.xlu0 %2292 }
 0x851   : > { %3457 = vpow2.f32 %v2309_v3  ;;  %v2301_v53 = vsub.f32 %v2277_v7, %v2293_v57 }
 0x852   : > { %v2307_v42 = vmul.f32 1.442695, %v2299_v8 }
 0x853   : > { %v2311_v48 = vmul.f32 1.442695, %v2301_v53 }
 0x854   : > { %3459 = vpow2.f32 %v2307_v42  ;;  %v2296_v59 = vpop.xlane.xlu0 %2295 }
 0x855   : > { %3461 = vpow2.f32 %v2311_v48  ;;  %v2302_v19 = vsub.f32 %v2278_v49, %v2296_v59 }
 0x856   : > { %v3454_v20 = vpop.eup %3453 }
 0x857   : > { %v2313_v27 = vmul.f32 1.442695, %v2302_v19  ;;  %v2315_v11 = vsel %vm915_vm9, %v3454_v20, 0.0 }
 0x858   : > { %2316 = vadd.xlane.f32.xlu1 %v2315_v11 }
 0x859   : > { %3463 = vpow2.f32 %v2313_v27 }
 0x85a   : > { %v3456_v46 = vpop.eup %3455 }
 0x85b   : > { %v3458_v40 = vpop.eup %3457  ;;  %v2318_v41 = vsel %vm915_vm9, %v3456_v46, 0.0 }
 0x85c   : > { %2319 = vadd.xlane.f32.xlu0 %v2318_v41  ;;  %v2324_v38 = vsel %vm915_vm9, %v3458_v40, 0.0 }
 0x85d   : > { %2325 = vadd.xlane.f32.xlu1 %v2324_v38 }
 0x85e   : > { %v3460_v22 = vpop.eup %3459 }
 0x85f   : > { %v3462_v56 = vpop.eup %3461  ;;  %v2321_v30 = vsel %vm915_vm9, %v3460_v22, 0.0 }
 0x860   : > { %v2327_v9 = vsel %vm915_vm9, %v3462_v56, 0.0 }
 0x861   : > { %2328 = vadd.xlane.f32.xlu0 %v2327_v9  ;;  %2322 = vadd.xlane.f32.xlu1 %v2321_v30 }
 0x863   : > { %v3464_v6 = vpop.eup %3463 }
 0x864   : > { %v2330_v62 = vsel %vm915_vm9, %v3464_v6, 0.0 }
 0x865   : > { %2331 = vadd.xlane.f32.xlu0 %v2330_v62 }
 0x8e5   : > { %v2317_v1 = vpop.xlane.xlu1 %2316 }
 0x8e6   : > { %3465 = vrcp.f32 %v2317_v1 }
 0x8e9   : > { %v2320_v16 = vpop.xlane.xlu0 %2319 }
 0x8ea   : > { %3467 = vrcp.f32 %v2320_v16  ;;  %v2326_v54 = vpop.xlane.xlu1 %2325 }
 0x8eb   : > { %3469 = vrcp.f32 %v2326_v54 }
 0x8ee   : > { %v2329_v13 = vpop.xlane.xlu0 %2328  ;;  %v2323_v52 = vpop.xlane.xlu1 %2322 }
 0x8ef   : > { %3471 = vrcp.f32 %v2329_v13 }
 0x8f0   : > { %3473 = vrcp.f32 %v2323_v52  ;;  %v3466_v10 = vpop.eup %3465 }
 0x8f1   : > { %v2339_v32 = vmul.f32 %v3466_v10, %v3454_v20 }
 0x8f2   : > { %v2332_v50 = vpop.xlane.xlu0 %2331 }
 0x8f3   : > { %3475 = vrcp.f32 %v2332_v50 }
 0x8f4   : > { %v3468_v44 = vpop.eup %3467 }
 0x8f5   : > { %v2340_v35 = vmul.f32 %v3468_v44, %v3456_v46  ;;  %v3470_v51 = vpop.eup %3469 }
 0x8f6   : > { %v2342_v28 = vmul.f32 %v3470_v51, %v3458_v40 }
 0x8f7   : > { %v2357_v23 = vpack.c.bf16 %v2340_v35, %v2339_v32 }
 0x8f9   : > { %v3472_v12 = vpop.eup %3471  ;;  %3201 = vmatprep.mubr.msk.bf16.mxu0 %vm915_vm9, %v2357_v23 }
 0x8fa   : > { %v3474_v21 = vpop.eup %3473  ;;  %v2343_v31 = vmul.f32 %v3472_v12, %v3462_v56 }
 0x8fb   : > { %v2341_v63 = vmul.f32 %v3474_v21, %v3460_v22 }
 0x8fc   : > { %v2359_v33 = vpack.c.bf16 %v2343_v31, %v2342_v28 }
 0x8fd   : > { %v3476_v0 = vpop.eup %3475  ;;  %v2358_v26 = vpack.c.bf16 %v2341_v63, %v2341_v63 }
 0x8fe   : > { %v2344_v29 = vmul.f32 %v3476_v0, %v3464_v6  ;;  %3209 = vmatprep.mubr.msk.bf16.mxu1 %vm915_vm9, %v2359_v33 }
 0x8ff   : > { %3202 = vmatmul.mubr.msk.bf16.vlgmr.msra.gmra.mrb[24].mxu0 %vm915_vm9, %v2358_v26 }
 0x900   : > { %v2360_v36 = vpack.c.bf16 %v2344_v29, %v2344_v29 }
 0x902   : > { %3210 = vmatmul.mubr.msk.bf16.vlgmr.msra.gmra.mrb[24].mxu1 %vm915_vm9, %v2360_v36 }
 0x9d2   : > { %v3203_v47 = vpop.f32.mrb[24].mxu0 }
 0x9d3   : > { %v2509_v58 = vmul.f32 1.442695, %v3203_v47  ;;  %v2413_v55 = vpop.f32.mrb[25].mxu0  ;;  %vm2501_vm2 = vcmp.gt.f32.partialorder %v3203_v47, 0.0 }
 0x9d4   : > { %v2505_v17 = vmul.f32 1.442695, %v2413_v55  ;;  %v3204_v18 = vpop.f32.mrb[26].mxu0  ;;  %vm2499_vm9 = vcmp.gt.f32.partialorder %v2413_v55, 0.0 }
 0x9d5   : > { %3477 = vpow2.f32 %v2509_v58  ;;  %v2416_v37 = vpop.f32.mrb[27].mxu0  ;;  %v3211_v7 = vpop.f32.mrb[24].mxu1 }
 0x9d6   : > { %3479 = vpow2.f32 %v2505_v17  ;;  %v2507_v2 = vmul.f32 1.442695, %v2416_v37  ;;  %v2479_v4 = vpop.f32.mrb[25].mxu1  ;;  %v2515_v45 = vmul.f32 1.442695, %v3211_v7  ;;  %vm2500_vm1 = vcmp.gt.f32.partialorder %v2416_v37, 0.0 }
 0x9d7   : > { %v2511_v49 = vmul.f32 1.442695, %v2479_v4  ;;  %v3212_v60 = vpop.f32.mrb[26].mxu1  ;;  %vm2502_vm5 = vcmp.gt.f32.partialorder %v2479_v4, 0.0  ;;  %vm2504_vm4 = vcmp.gt.f32.partialorder %v3211_v7, 0.0 }
 0x9d8   : > { %3481 = vpow2.f32 %v2507_v2  ;;  %v2482_v5 = vpop.f32.mrb[27].mxu1 }
 0x9d9   : > { %3483 = vpow2.f32 %v2515_v45  ;;  %v2513_v34 = vmul.f32 1.442695, %v2482_v5  ;;  %vm2503_vm11 = vcmp.gt.f32.partialorder %v2482_v5, 0.0 }
 0x9da   : > { %3485 = vpow2.f32 %v2511_v49 }
 0x9db   : > { %3487 = vpow2.f32 %v2513_v34 }
 0x9df   : > { %v3478_v14 = vpop.eup %3477 }
 0x9e0   : > { %v3480_v43 = vpop.eup %3479  ;;  %v2830_v24 = vadd.f32 -1.0, %v3478_v14 }
 0x9e1   : > { %v2828_v25 = vadd.f32 -1.0, %v3480_v43 }
 0x9e2   : > { %v3482_v39 = vpop.eup %3481  ;;  %v2525_v20 = vsel %vm2501_vm2, %v3203_v47, %v2830_v24 }
 0x9e3   : > { %v3484_v15 = vpop.eup %3483  ;;  %v2829_v3 = vadd.f32 -1.0, %v3482_v39  ;;  %v2523_v53 = vsel %vm2499_vm9, %v2413_v55, %v2828_v25 }
 0x9e4   : > { %v3486_v61 = vpop.eup %3485  ;;  %v2833_v8 = vadd.f32 -1.0, %v3484_v15 }
 0x9e5   : > { %v3488_v57 = vpop.eup %3487  ;;  %v2524_v42 = vsel %vm2500_vm1, %v2416_v37, %v2829_v3  ;;  %v2831_v48 = vadd.f32 -1.0, %v3486_v61 }
 0x9e6   : > { %v2857_v59 = vpack.c.bf16 %v2524_v42, %v2523_v53  ;;  %v2832_v19 = vadd.f32 -1.0, %v3488_v57  ;;  %v2528_v11 = vsel %vm2504_vm4, %v3211_v7, %v2833_v8 }
 0x9e7   : > { %v2526_v27 = vsel %vm2502_vm5, %v2479_v4, %v2831_v48 }
 0x9e8   : > { %2858 = vst [vmem:[%s334_s30] sm:$0xff] %v2857_v59   ;;  %v2862_v46 = vpack.c.bf16 %v2526_v27, %v2525_v20  ;;  %v2527_v40 = vsel %vm2503_vm11, %v2482_v5, %v2832_v19 }
 0x9e9   : > { %v2867_v41 = vpack.c.bf16 %v2528_v11, %v2527_v40 }
 0x9ea   : > { %2869 = vst [vmem:[%s334_s30 + $0x8] sm:$0xff] %v2862_v46  }
 0x9eb   : > { %2870 = vst [vmem:[%s334_s30 + $0x10] sm:$0xff] %v2867_v41  }
 0x9ec PF: > { %s15_s20 = sadd.s32 1, %s3511_s20   ;;  %s4313_s18 = smov %s3507_s19 }
 0x9ed   : > { %p12_p5 = scmp.ge.s32.totalorder %s15_s20, 4   ;;  %s4314_s19 = smov %s4316_s21 }
 0x9ef   :  { %14 = sbr.rel (!%p12_p5) target bundleno = 2 (0x2), region = 82 }

// kernel: forward.8
= control target key start
LH: loop header
LB: loop body
LE: loop exit
PB: predicated region body
PF: predicated region fallthrough
CT: control target
= control target key end

     0   :  { %s3473_s18 = smov 0   ;;  %s3475_s19 = smov 0   ;;  %s4199_s0 = inlined_call_operand.vmem [shape: bf16[1,2,2,24,128], index: 0, kind: input, shape index: {}]   ;;  %s4200_s1 = inlined_call_operand.vmem [shape: bf16[1,2,2,24,24], index: 1, kind: input, shape index: {}]   ;;  %s4201_s2 = inlined_call_operand.vmem [shape: bf16[1,128,128], index: 2, kind: input, shape index: {}]   ;;  %s4202_s3 = inlined_call_operand.vmem [shape: f32[1,1,128], index: 3, kind: input, shape index: {}]   ;;  %s4203_s4 = inlined_call_operand.vmem [shape: bf16[1,128,8], index: 4, kind: input, shape index: {}]   ;;  %s4204_s5 = inlined_call_operand.vmem [shape: f32[1,2,2,24,128], index: 5, kind: output, shape index: {}]  }
   0x1   :  { %s3477_s20 = smov 0  }
   0x2 LB: > { %s24_s21 = sadd.s32 1, %s3425_s19  ;;  %p2682_p0 = scmp.ge.s32.totalorder %s3429_s20, 1  ;;  %s3429_s20 = sphi %s3477_s20, %s15_s20   ;;  %s3425_s19 = sphi %s3475_s19, %s4228_s19   ;;  %s3421_s18 = sphi %s3473_s18, %s4227_s18  }
   0x3   : > { %p25_p1 = scmp.ge.s32.totalorder %s24_s21, 2  ;;  %p251_p2 = scmp.lt.s32.totalorder %s3429_s20, 3 }
   0x5   : > { %s4230_s21 = smov (%p25_p1, %s24_s21), 0  ;;  %p252_p3 = pnand %p2682_p0, %p251_p2 }
   0x6   : > { %v3292_v0 = vld [vmem:[%s4201_s2] sm:$0xff] (!%p252_p3)   ;;  %v3431_v1 = vmov (!%p252_p3), 0.0   ;;  %v3293_v2 = vld [vmem:[%s4201_s2 + $0x8] sm:$0xff] (!%p252_p3)   ;;  %vm3432_vm0 = vmmov (!%p252_p3), 0   ;;  %p311_p4 = scmp.lt.s32.totalorder (!%p252_p3), %s3421_s18, 1  ;;  %v3294_v3 = vld [vmem:[%s4201_s2 + $0x10] sm:$0xff] (!%p252_p3)   ;;  %v655_v20 = vlaneseq (!%p252_p3) }
   0x7   : > { %255 = sbr.rel (%p252_p3) target bundleno = 2522 (0x9da), region = 40  ;;  %2902 = vmatprep.subr.bf16.mxu0 (!%p252_p3), %v3431_v1  ;;  %2930 = vmatprep.subr.bf16.mxu1 (!%p252_p3), %v3431_v1  ;;  %v3303_v4 = vld [vmem:[%s4203_s4] sm:$0xff] (!%p252_p3)   ;;  %v3295_v5 = vld [vmem:[%s4201_s2 + $0x18] sm:$0xff] (!%p252_p3)   ;;  %v3304_v6 = vld [vmem:[%s4203_s4 + $0x8] sm:$0xff] (!%p252_p3)   ;;  %s3435_s15 = smov (!%p252_p3), 124   ;;  %vm666_vm13 = vcmask (!%p252_p3), 7168  }
   0x8   : > { %2903 = vmatpush3.bf16.msra.mxu0 (!%p252_p3), %v3292_v0  ;;  %2918 = vmatprep.mubr.msk.bf16.mxu0 (!%p252_p3), %vm3432_vm0, %v3431_v1  ;;  %v3296_v7 = vld [vmem:[%s4201_s2 + $0x20] sm:$0xff] (!%p252_p3)   ;;  %v3305_v8 = vld [vmem:[%s4203_s4 + $0x10] sm:$0xff] (!%p252_p3)   ;;  %v3297_v9 = vld [vmem:[%s4201_s2 + $0x28] sm:$0xff] (!%p252_p3)   ;;  %v656_v21 = vand.u32 (!%p252_p3), 127, %v655_v20  ;;  %s3436_s16 = smov (!%p252_p3), 123   ;;  %vm1347_vm15 = vcmask (!%p252_p3), 1043456  }
   0x9   : > { %2904 = vmatprep.subr.bf16.mxu0 (!%p252_p3), %v3431_v1  ;;  %2946 = vmatprep.mubr.msk.bf16.mxu1 (!%p252_p3), %vm3432_vm0, %v3431_v1  ;;  %v3306_v10 = vld [vmem:[%s4203_s4 + $0x18] sm:$0xff] (!%p252_p3)   ;;  %v3298_v11 = vld [vmem:[%s4201_s2 + $0x30] sm:$0xff] (!%p252_p3)   ;;  %v3307_v12 = vld [vmem:[%s4203_s4 + $0x20] sm:$0xff] (!%p252_p3)   ;;  %s3442_s24 = smov (!%p252_p3), 121  }
   0xa   : > { %2931 = vmatpush3.bf16.msra.mxu1 (!%p252_p3), %v3303_v4  ;;  %v3299_v13 = vld [vmem:[%s4201_s2 + $0x38] sm:$0xff] (!%p252_p3)   ;;  %v3308_v14 = vld [vmem:[%s4203_s4 + $0x28] sm:$0xff] (!%p252_p3)   ;;  %v3309_v18 = vld [vmem:[%s4203_s4 + $0x30] sm:$0xff] (!%p252_p3)   ;;  %vm1316_vm1 = vcmp.ge.s32.totalorder (!%p252_p3), %v656_v21, 32  ;;  %vm1317_vm2 = vcmp.lt.s32.totalorder (!%p252_p3), %v656_v21, 64  ;;  %vm1901_vm3 = vcmp.ge.s32.totalorder (!%p252_p3), %v656_v21, 64 }
   0xb   : > { %2932 = vmatprep.subr.bf16.mxu1 (!%p252_p3), %v3431_v1  ;;  %v3310_v19 = vld [vmem:[%s4203_s4 + $0x38] sm:$0xff] (!%p252_p3)   ;;  %vm1902_vm4 = vcmp.lt.s32.totalorder (!%p252_p3), %v656_v21, 96  ;;  %vm1318_vm5 = vmand (!%p252_p3), %vm1316_vm1, %vm1317_vm2  ;;  %v2686_v22 = vld [vmem:[%s4202_s3] ss:$0 sm:$0xff] (!%p252_p3)  ;;  %vm997_vm6 = vcmp.lt.s32.totalorder (!%p252_p3), %v656_v21, 32  ;;  %vm2359_vm9 = vcmp.ge.s32.totalorder (!%p252_p3), %v656_v21, 96 }
   0xc   : > { %2905 = vmatpush3.bf16.msra.mxu0 (!%p252_p3), %v3293_v2  ;;  %vm1903_vm7 = vmand (!%p252_p3), %vm1901_vm3, %vm1902_vm4  ;;  %v3433_v21 = vmov (!%p252_p3), 1  }
   0xd   : > { %2906 = vmatprep.subr.bf16.mxu0 (!%p252_p3), %v3431_v1  ;;  %vm3581_vm8 = vmpackc.low (!%p252_p3), %vm1318_vm5, %vm1318_vm5  ;;  %3265 = vset.pattern.permute.xlu1 (!%p252_p3), %v3433_v21 }
   0xe   : > { %s4232_s18 = smov (!%p311_p4, %s3421_s18), 1  ;;  %2933 = vmatpush3.bf16.msra.mxu1 %v3304_v6  ;;  %vm3585_vm10 = vmpackc.low %vm997_vm6, %vm997_vm6  ;;  %3264 = vset.pattern.permute.xlu0 %v3433_v21 }
   0xf   : > { %s3206_s28 = smul.u32 24, %s4232_s18  ;;  %2934 = vmatprep.subr.bf16.mxu1 %v3431_v1  ;;  %vm3589_vm11 = vmpackc.low %vm1903_vm7, %vm1903_vm7 }
  0x10   : > { %2907 = vmatpush3.bf16.msra.mxu0 %v3294_v3  ;;  %vm3593_vm12 = vmpackc.low %vm2359_vm9, %vm2359_vm9  ;;  %vm929_vm9 = vcmask 195584   ;;  %s3207_s25 = smul.u32 48, %s4232_s18 }
  0x11   : > { %s3516_s6 = scalar_lea.vmem %s4199_s0, %s3206_s28  ;;  %2908 = vmatprep.subr.bf16.mxu0 %v3431_v1  ;;  %vm3731_vm14 = vmpackc.low %vm666_vm13, %vm666_vm13  ;;  %s3822_s23 = scalar_lea.vmem %s4200_s1, %s3206_s28 }
  0x12   : > { %2935 = vmatpush3.bf16.msra.mxu1 %v3305_v8  ;;  %v3300_v15 = vld [vmem:[%s3516_s6] sm:$0xff]   ;;  %v3301_v16 = vld [vmem:[%s3516_s6 + $0x8] sm:$0xff]   ;;  %v3302_v17 = vld [vmem:[%s3516_s6 + $0x10] sm:$0xff]   ;;  %s3440_s28 = smov 122   ;;  %s348_s29 = scalar_lea.vmem %s4204_s5, %s3207_s25 }
  0x13   : > { %2936 = vmatprep.subr.bf16.mxu1 %v3431_v1 }
  0x14   : > { %2909 = vmatpush3.bf16.msra.mxu0 %v3295_v5 }
  0x15   : > { %2910 = vmatprep.subr.bf16.mxu0 %v3431_v1 }
  0x16   : > { %2937 = vmatpush3.bf16.msra.mxu1 %v3306_v10 }
  0x17   : > { %2938 = vmatprep.subr.bf16.mxu1 %v3431_v1 }
  0x18   : > { %2911 = vmatpush3.bf16.msra.mxu0 %v3296_v7 }
  0x19   : > { %2912 = vmatprep.subr.bf16.mxu0 %v3431_v1 }
  0x1a   : > { %2939 = vmatpush3.bf16.msra.mxu1 %v3307_v12 }
  0x1b   : > { %2940 = vmatprep.subr.bf16.mxu1 %v3431_v1 }
  0x1c   : > { %2913 = vmatpush3.bf16.msra.mxu0 %v3297_v9 }
  0x1d   : > { %2914 = vmatprep.subr.bf16.mxu0 %v3431_v1 }
  0x1e   : > { %2941 = vmatpush3.bf16.msra.mxu1 %v3308_v14 }
  0x1f   : > { %2942 = vmatprep.subr.bf16.mxu1 %v3431_v1 }
  0x20   : > { %2915 = vmatpush3.bf16.msra.mxu0 %v3298_v11 }
  0x21   : > { %2916 = vmatprep.subr.bf16.mxu0 %v3431_v1 }
  0x22   : > { %2943 = vmatpush3.bf16.msra.mxu1 %v3309_v18 }
  0x23   : > { %2944 = vmatprep.subr.bf16.mxu1 %v3431_v1 }
  0x24   : > { %2917 = vmatpush3.bf16.msra.mxu0 %v3299_v13 }
  0x26   : > { %2945 = vmatpush3.bf16.msra.mxu1 %v3310_v19 }
  0x27   : > { %2919 = vmatmul.mubr.bf16.vlgmr.msra.gmra.mrb[0].mxu0 %v3300_v15 }
  0x28   : > { %2922 = vmatprep.mubr.msk.bf16.mxu0 %vm3432_vm0, %v3431_v1 }
  0x2f   : > { %2923 = vmatmul.mubr.bf16.gmra.mrb[4].mxu0 %v3301_v16 }
  0x30   : > { %2926 = vmatprep.mubr.msk.bf16.mxu0 %vm3432_vm0, %v3431_v1 }
  0x37   : > { %2927 = vmatmul.mubr.bf16.gmra.mrb[8].mxu0 %v3302_v17 }
  0x38   : > { %2964 = vmatprep.mubr.msk.f32.mxu0 %vm3432_vm0, %v3431_v1 }
  0xfa   : > { %v487_v23 = vpop.f32.mrb[0].mxu0 }
  0xfb   : > { %v488_v25 = vadd.f32 %v2686_v22, %v487_v23  ;;  %v2920_v26 = vpop.f32.mrb[1].mxu0 }
  0xfc   : > { %v490_v28 = vpop.f32.mrb[2].mxu0 }
  0xfd   : > { %v2794_v30 = vpack.c.bf16 %v488_v25, %v488_v25  ;;  %v491_v31 = vadd.f32 %v2686_v22, %v490_v28  ;;  %v2921_v32 = vpop.f32.mrb[3].mxu0 }
  0xff   : > { %v510_v34 = vpack.c.bf16 %v491_v31, %v488_v25  ;;  %v2795_v35 = vpack.c.bf16 %v491_v31, %v491_v31  ;;  %v1322_v36 = vsel %vm3581_vm8, %v2794_v30, 0  ;;  %v1002_v37 = vsel %vm3585_vm10, %v2794_v30, 0 }
 0x100   : > { %v1907_v38 = vsel %vm3589_vm11, %v2794_v30, 0  ;;  %v2365_v39 = vsel %vm3593_vm12, %v2794_v30, 0 }
 0x101   : > { %2947 = vmatmul.mubr.bf16.vlgmr.msra.gmra.mrb[0].mxu1 %v510_v34  ;;  %v1323_v40 = vsel %vm3581_vm8, %v2795_v35, 0  ;;  %v1003_v41 = vsel %vm3585_vm10, %v2795_v35, 0  ;;  %v1908_v42 = vsel %vm3589_vm11, %v2795_v35, 0  ;;  %v2366_v43 = vsel %vm3593_vm12, %v2795_v35, 0 }
 0x102   : > { %v495_v44 = vpop.f32.mrb[4].mxu0  ;;  %2950 = vmatprep.mubr.msk.bf16.mxu1 %vm3432_vm0, %v3431_v1  ;;  %v3615_v45 = vcombine.low %v1322_v36, %v1323_v40  ;;  %v3617_v46 = vcombine.low %v1002_v37, %v1003_v41  ;;  %v3619_v47 = vcombine.low %v1907_v38, %v1908_v42  ;;  %v3621_v48 = vcombine.low %v2365_v39, %v2366_v43 }
 0x103   : > { %v496_v49 = vadd.f32 %v2686_v22, %v495_v44  ;;  %v2924_v50 = vpop.f32.mrb[5].mxu0  ;;  %v3437_v38 = vmov 0  }
 0x104   : > { %v498_v51 = vpop.f32.mrb[6].mxu0 }
 0x105   : > { %v3623_v52 = vpack.c.bf16 %v496_v49, %v496_v49  ;;  %v499_v53 = vadd.f32 %v2686_v22, %v498_v51  ;;  %v2925_v54 = vpop.f32.mrb[7].mxu0 }
 0x106   : > { %v3438_v54 = vmov 1.0  }
 0x107   : > { %v511_v55 = vpack.c.bf16 %v499_v53, %v496_v49  ;;  %v2797_v56 = vpack.c.bf16 %v499_v53, %v499_v53  ;;  %v3628_v57 = vsel %vm3585_vm10, %v3623_v52, 0  ;;  %v3633_v58 = vsel %vm3589_vm11, %v3623_v52, 0 }
 0x108   : > { %v3638_v59 = vsel %vm3593_vm12, %v3623_v52, 0 }
 0x109   : > { %2951 = vmatmul.mubr.bf16.gmra.mrb[4].mxu1 %v511_v55  ;;  %v1910_v60 = vsel %vm3589_vm11, %v2797_v56, 0  ;;  %v2368_v62 = vsel %vm3593_vm12, %v2797_v56, 0  ;;  %v1325_v6 = vsel %vm3581_vm8, %v2797_v56, 0  ;;  %v1005_v7 = vsel %vm3585_vm10, %v2797_v56, 0 }
 0x10a   : > { %v503_v61 = vpop.f32.mrb[8].mxu0  ;;  %2954 = vmatprep.mubr.msk.bf16.mxu1 %vm3432_vm0, %v3431_v1 }
 0x10b   : > { %v504_v63 = vadd.f32 %v2686_v22, %v503_v61  ;;  %v2928_v0 = vpop.f32.mrb[9].mxu0 }
 0x10c   : > { %v506_v2 = vpop.f32.mrb[10].mxu0 }
 0x10d   : > { %v2798_v3 = vpack.c.bf16 %v504_v63, %v504_v63  ;;  %v507_v4 = vadd.f32 %v2686_v22, %v506_v2  ;;  %v2929_v5 = vpop.f32.mrb[11].mxu0  ;;  %v3434_v22 = vmov 0.0|0.0  }
 0x10e   : > { %3142 = vmatprep.subr.bf16.mxu0 %v3434_v22  ;;  %3146 = vmatprep.subr.bf16.mxu1 %v3434_v22  ;;  %v1324_v5 = vsel %vm3581_vm8, %v3623_v52, 0 }
 0x10f   : > { %v512_v8 = vpack.c.bf16 %v507_v4, %v504_v63  ;;  %v3650_v9 = vpack.c.bf16 %v507_v4, %v507_v4  ;;  %v1326_v10 = vsel %vm3581_vm8, %v2798_v3, 0  ;;  %v1006_v11 = vsel %vm3585_vm10, %v2798_v3, 0 }
 0x110   : > { %v3656_v12 = vcombine.low %v1325_v6, %v1326_v10  ;;  %v3658_v13 = vcombine.low %v1005_v7, %v1006_v11  ;;  %v1911_v14 = vsel %vm3589_vm11, %v2798_v3, 0  ;;  %v2369_v15 = vsel %vm3593_vm12, %v2798_v3, 0 }
 0x111   : > { %2955 = vmatmul.mubr.bf16.gmra.mrb[8].mxu1 %v512_v8  ;;  %v3667_v16 = vsel %vm3585_vm10, %v3650_v9, 0  ;;  %v3669_v17 = vcombine.low %v1910_v60, %v1911_v14  ;;  %v3674_v18 = vsel %vm3589_vm11, %v3650_v9, 0  ;;  %v3678_v19 = vcombine.low %v2368_v62, %v2369_v15 }
 0x112   : > { %2979 = vmatprep.mubr.msk.f32.mxu1 %vm3432_vm0, %v3431_v1  ;;  %v3683_v20 = vsel %vm3593_vm12, %v3650_v9, 0  ;;  %v2737_v6 = vcombine.low %v1324_v5, %v1324_v5 }
 0x114   : > { %v1349_v7 = vsel %vm1347_vm15, %v2737_v6, 0 }
 0x1d4   : > { %v3687_v23 = vpop.f32.mrb[0].mxu1 }
 0x1d5   : > { %v2948_v25 = vpop.f32.mrb[1].mxu1 }
 0x1d6   : > { %v3689_v26 = vpop.f32.mrb[2].mxu1 }
 0x1d7   : > { %v2949_v27 = vpop.f32.mrb[3].mxu1  ;;  %v3693_v28 = vpack.i.bf16 %v3689_v26, %v3687_v23 }
 0x1d9   : > { %3245 = vrot.lane.b32.xlu0 %v3693_v28, %s3435_s15 }
 0x1dc   : > { %v3696_v29 = vpop.f32.mrb[4].mxu1 }
 0x1dd   : > { %v2952_v30 = vpop.f32.mrb[5].mxu1  ;;  %664 = vrot.lane.b32.xlu1 %v3696_v29, %s3435_s15 }
 0x1de   : > { %v3699_v31 = vpop.f32.mrb[6].mxu1 }
 0x1df   : > { %v2953_v32 = vpop.f32.mrb[7].mxu1 }
 0x1e0   : > { %v358_v32 = vld [vmem:[%s3822_s23] sm:$0xf] }
 0x1e1   : > { %vm899_vm1 = vcmp.gt.bf16.partialorder %v358_v32, 0 }
 0x1e4   : > { %v3701_v33 = vpop.f32.mrb[8].mxu1 }
 0x1e5   : > { %v2956_v34 = vpop.f32.mrb[9].mxu1  ;;  %v3705_v35 = vpack.i.bf16 %v3701_v33, %v3699_v31 }
 0x1e6   : > { %v3707_v36 = vpop.f32.mrb[10].mxu1 }
 0x1e7   : > { %3250 = vrot.lane.b32.xlu0 %v3705_v35, %s3435_s15  ;;  %763 = vrot.lane.b32.xlu1 %v3707_v36, %s3435_s15  ;;  %v2957_v37 = vpop.f32.mrb[11].mxu1 }
 0x1e8   : > { %v359_v37 = vld [vmem:[%s3822_s23 + $0x4] sm:$0xf] }
 0x1e9   : > { %vm900_vm2 = vcmp.gt.bf16.partialorder %v359_v37, 0 }
 0x1eb   : > { %3255 = vrot.lane.b32.xlu0 %v3693_v28, %s3436_s16  ;;  %3260 = vrot.lane.b32.xlu1 %v3705_v35, %s3436_s16 }
 0x1ef   : > { %1016 = vrot.lane.b32.xlu0 %v3696_v29, %s3436_s16  ;;  %1108 = vrot.lane.b32.xlu1 %v3707_v36, %s3436_s16 }
 0x1f3   : > { %1197 = vperm.xlu0 %3264, %v3687_v23   ;;  %1201 = vperm.xlu1 %3265, %v3689_v26  }
 0x1f7   : > { %1213 = vperm.xlu0 %3264, %v3701_v33   ;;  %1209 = vperm.xlu1 %3265, %v3699_v31  }
 0x1fb   : > { %1217 = vperm.xlu0 %3264, %v3707_v36   ;;  %1205 = vperm.xlu1 %3265, %v3696_v29  }
 0x1ff   : > { %3267 = vset.pattern.permute.xlu0 %v3437_v38  ;;  %3266 = vset.pattern.permute.xlu1 %v3437_v38 }
 0x200   : > { %856 = vperm.xlu0 %3267, %v3689_v26   ;;  %852 = vperm.xlu1 %3266, %v3687_v23  }
 0x204   : > { %860 = vperm.xlu0 %3267, %v3696_v29   ;;  %864 = vperm.xlu1 %3266, %v3699_v31  }
 0x208   : > { %868 = vperm.xlu1 %3266, %v3701_v33  }
 0x20c   : > { %872 = vperm.xlu1 %3266, %v3707_v36  }
 0x24b   : > { %v3246_v39 = vpop.permute.xlu0 %3245 }
 0x24c   : > { %v3248_v40 = vunpack.i.h.bf16 %v3246_v39  ;;  %v3247_v41 = vunpack.i.l.bf16 %v3246_v39  ;;  %v360_v39 = vld [vmem:[%s3822_s23 + $0x8] sm:$0xf] }
 0x24d   : > { %vm901_vm3 = vcmp.gt.bf16.partialorder %v360_v39, 0 }
 0x24e   : > { %v3143_v43 = vpack.c.bf16 %v3248_v40, %v3247_v41 }
 0x24f   : > { %v665_v44 = vpop.permute.xlu1 %664 }
 0x250   : > { %3145 = vmatpush3.bf16.xpose.msk.msra.mxu0 %vm3731_vm14, %v3143_v43 }
 0x251   : > { %2962 = vmatprep.subr.mxu0 %v3431_v1 }
 0x258   : > { %2963 = vmatpush3.xpose.msk.msra.mxu0 %vm666_vm13, %v665_v44  ;;  %v361_v44 = vld [vmem:[%s3822_s23 + $0xc] sm:$0xf] }
 0x259   : > { %v3251_v49 = vpop.permute.xlu0 %3250  ;;  %3150 = vmatprep.subr.bf16.mxu0 %v3434_v22  ;;  %v764_v53 = vpop.permute.xlu1 %763  ;;  %vm902_vm4 = vcmp.gt.bf16.partialorder %v361_v44, 0 }
 0x25a   : > { %v3253_v50 = vunpack.i.h.bf16 %v3251_v49  ;;  %v3252_v51 = vunpack.i.l.bf16 %v3251_v49  ;;  %v905_v49 = vsel %vm899_vm1, 65537, %v3437_v38  ;;  %v908_v5 = vsel %vm902_vm4, 65537, %v3437_v38 }
 0x25b   : > { %2965 = vmatmul.mubr.msk.f32.vlgmr.msra.gmra.mrb[12].mxu0 %vm666_vm13, %v3438_v54  ;;  %v914_v37 = vunpack.c.l.b16 %v908_v5 }
 0x25c   : > { %v3147_v55 = vpack.c.bf16 %v3253_v50, %v3252_v51  ;;  %2967 = vmatprep.mubr.msk.f32.mxu0 %vm3432_vm0, %v3431_v1 }
 0x25d   : > { %v3256_v56 = vpop.permute.xlu0 %3255  ;;  %v3261_v63 = vpop.permute.xlu1 %3260 }
 0x25e   : > { %v3258_v60 = vunpack.i.h.bf16 %v3256_v56  ;;  %v3257_v61 = vunpack.i.l.bf16 %v3256_v56  ;;  %3149 = vmatpush3.bf16.xpose.msk.msra.mxu1 %vm3731_vm14, %v3147_v55  ;;  %v3263_v0 = vunpack.i.h.bf16 %v3261_v63  ;;  %v3262_v2 = vunpack.i.l.bf16 %v3261_v63  ;;  %v362_v56 = vld [vmem:[%s3822_s23 + $0x10] sm:$0xf] }
 0x25f   : > { %2968 = vmatmul.mubr.msk.f32.gmra.mrb[14].mxu0 %vm666_vm13, %v3438_v54  ;;  %2977 = vmatprep.subr.mxu1 %v3431_v1  ;;  %v911_v63 = vunpack.c.l.b16 %v905_v49  ;;  %vm903_vm6 = vcmp.gt.bf16.partialorder %v362_v56, 0 }
 0x260   : > { %v3151_v62 = vpack.c.bf16 %v3258_v60, %v3257_v61  ;;  %2970 = vmatprep.mubr.msk.f32.mxu0 %vm3432_vm0, %v3431_v1  ;;  %v3155_v3 = vpack.c.bf16 %v3263_v0, %v3262_v2  ;;  %v906_v0 = vsel %vm900_vm2, 65537, %v3437_v38  ;;  %v907_v2 = vsel %vm901_vm3, 65537, %v3437_v38 }
 0x261   : > { %v1017_v4 = vpop.permute.xlu0 %1016  ;;  %v1109_v52 = vpop.permute.xlu1 %1108  ;;  %vm3844_vm7 = vcmp.ne.s32.totalorder %v911_v63, 0  ;;  %v909_v39 = vsel %vm903_vm6, 65537, %v3437_v38  ;;  %vm3869_vm2 = vcmp.ne.s32.totalorder %v914_v37, 0 }
 0x262   : > { %3153 = vmatpush3.bf16.xpose.msk.msra.mxu0 %vm3731_vm14, %v3151_v62 }
 0x263   : > { %2971 = vmatmul.mubr.msk.f32.gmra.mrb[16].mxu0 %vm666_vm13, %v3438_v54  ;;  %2992 = vmatprep.subr.mxu0 %v3431_v1 }
 0x264   : > { %2994 = vmatprep.mubr.msk.f32.mxu0 %vm3432_vm0, %v3431_v1 }
 0x266   : > { %2978 = vmatpush3.xpose.msk.msra.mxu1 %vm666_vm13, %v764_v53 }
 0x267   : > { %3154 = vmatprep.subr.bf16.mxu1 %v3434_v22 }
 0x269   : > { %2980 = vmatmul.mubr.msk.f32.vlgmr.msra.gmra.mrb[12].mxu1 %vm666_vm13, %v3438_v54 }
 0x26a   : > { %2993 = vmatpush3.xpose.msk.msra.mxu0 %vm666_vm13, %v1017_v4  ;;  %3157 = vmatpush3.bf16.xpose.msk.msra.mxu1 %vm3731_vm14, %v3155_v3 }
 0x26b   : > { %3018 = vmatprep.subr.bf16.mxu0 %v3615_v45  ;;  %2982 = vmatprep.mubr.msk.f32.mxu1 %vm3432_vm0, %v3431_v1 }
 0x26c   : > { %3007 = vmatprep.subr.mxu1 %v3431_v1 }
 0x26d   : > { %2983 = vmatmul.mubr.msk.f32.gmra.mrb[14].mxu1 %vm666_vm13, %v3438_v54  ;;  %2995 = vmatmul.mubr.msk.f32.vlgmr.msra.gmra.mrb[18].mxu0 %vm666_vm13, %v3438_v54 }
 0x26e   : > { %3019 = vmatpush3.bf16.msra.mxu0 %v3615_v45  ;;  %2985 = vmatprep.mubr.msk.f32.mxu1 %vm3432_vm0, %v3431_v1  ;;  %v1327_v45 = vsel %vm3581_vm8, %v3650_v9, 0 }
 0x26f   : > { %3198 = vmatprep.subr.msk.bf16.mxu0 %vm1347_vm15, %v2737_v6  ;;  %2997 = vmatprep.mubr.msk.f32.mxu0 %vm3432_vm0, %v3431_v1  ;;  %v2741_v8 = vcombine.low %v1327_v45, %v1327_v45  ;;  %v912_v45 = vunpack.c.l.b16 %v906_v0 }
 0x271   : > { %2986 = vmatmul.mubr.msk.f32.gmra.mrb[16].mxu1 %vm666_vm13, %v3438_v54  ;;  %2998 = vmatmul.mubr.msk.f32.gmra.mrb[20].mxu0 %vm666_vm13, %v3438_v54  ;;  %v1415_v24 = vsel %vm1347_vm15, %v2741_v8, 0  ;;  %vm3856_vm12 = vcmp.ne.s32.totalorder %v912_v45, 0  ;;  %v915_v45 = vunpack.c.l.b16 %v909_v39 }
 0x272   : > { %3021 = vmatpush3.bf16.msra.mxu0 %v1349_v7  ;;  %3008 = vmatpush3.xpose.msk.msra.mxu1 %vm666_vm13, %v1109_v52  ;;  %v1202_v9 = vpop.permute.xlu1 %1201 }
 0x273   : > { %3026 = vmatprep.subr.bf16.mxu1 %v3656_v12  ;;  %3034 = vmatprep.subr.bf16.mxu0 %v3617_v46 }
 0x274   : > { %3000 = vmatprep.mubr.msk.f32.mxu0 %vm3432_vm0, %v3431_v1  ;;  %3009 = vmatprep.mubr.msk.f32.mxu1 %vm3432_vm0, %v3431_v1 }
 0x275   : > { %3001 = vmatmul.mubr.msk.f32.gmra.mrb[22].mxu0 %vm666_vm13, %v3438_v54  ;;  %3010 = vmatmul.mubr.msk.f32.vlgmr.msra.gmra.mrb[18].mxu1 %vm666_vm13, %v3438_v54 }
 0x276   : > { %3027 = vmatpush3.bf16.msra.mxu1 %v3656_v12  ;;  %3012 = vmatprep.mubr.msk.f32.mxu1 %vm3432_vm0, %v3431_v1  ;;  %v1198_v12 = vpop.permute.xlu0 %1197  ;;  %v3815_v15 = vpop.permute.xlu1 %1209 }
 0x277   : > { %3199 = vmatprep.subr.msk.bf16.mxu1 %vm1347_vm15, %v2741_v8  ;;  %v913_v8 = vunpack.c.l.b16 %v907_v2 }
 0x279   : > { %3013 = vmatmul.mubr.msk.f32.gmra.mrb[20].mxu1 %vm666_vm13, %v3438_v54  ;;  %vm3860_vm1 = vcmp.ne.s32.totalorder %v913_v8, 0 }
 0x27a   : > { %3029 = vmatpush3.bf16.msra.mxu1 %v1415_v24  ;;  %3015 = vmatprep.mubr.msk.f32.mxu1 %vm3432_vm0, %v3431_v1  ;;  %v3826_v27 = vpop.permute.xlu0 %1213  ;;  %v1206_v34 = vpop.permute.xlu1 %1205  ;;  %v363_v24 = vld [vmem:[%s3822_s23 + $0x14] sm:$0xf] }
 0x27b   : > { %3042 = vmatprep.subr.bf16.mxu1 %v3658_v13  ;;  %vm904_vm11 = vcmp.gt.bf16.partialorder %v363_v24, 0 }
 0x27c   : > { %v910_v8 = vsel %vm904_vm11, 65537, %v3437_v38 }
 0x27d   : > { %3016 = vmatmul.mubr.msk.f32.gmra.mrb[22].mxu1 %vm666_vm13, %v3438_v54 }
 0x27e   : > { %v3831_v41 = vpop.permute.xlu0 %1217 }
 0x27f   : > { %v853_v50 = vpop.permute.xlu1 %852 }
 0x282   : > { %v857_v3 = vpop.permute.xlu0 %856 }
 0x32e   : > { %v742_v10 = vpop.f32.mrb[12].mxu0 }
 0x32f   : > { %v2966_v11 = vpop.f32.mrb[13].mxu0  ;;  %v875_v51 = vadd.f32 %v853_v50, %v742_v10 }
 0x331   : > { %v887_v6 = vmul.f32 0.2, %v875_v51  ;;  %vm881_vm8 = vcmp.gt.f32.partialorder %v875_v51, 0.0 }
 0x332   : > { %v3813_v14 = vpop.f32.mrb[14].mxu0 }
 0x333   : > { %v2969_v21 = vpop.f32.mrb[15].mxu0  ;;  %v893_v56 = vsel %vm881_vm8, %v875_v51, %v887_v6  ;;  %v861_v51 = vpop.permute.xlu0 %860 }
 0x336   : > { %v3824_v25 = vpop.f32.mrb[16].mxu0 }
 0x337   : > { %v2972_v30 = vpop.f32.mrb[17].mxu0 }
 0x33c   : > { %v837_v40 = vpop.f32.mrb[12].mxu1 }
 0x33d   : > { %v2981_v43 = vpop.f32.mrb[13].mxu1 }
 0x33e   : > { %v865_v43 = vpop.permute.xlu1 %864 }
 0x340   : > { %v3835_v53 = vpop.f32.mrb[14].mxu1  ;;  %v1090_v55 = vpop.f32.mrb[18].mxu0 }
 0x341   : > { %v1220_v60 = vadd.f32 %v1198_v12, %v1090_v55  ;;  %v2984_v61 = vpop.f32.mrb[15].mxu1  ;;  %v2996_v62 = vpop.f32.mrb[19].mxu0 }
 0x342   : > { %v878_v61 = vadd.f32 %v865_v43, %v837_v40  ;;  %v869_v43 = vpop.permute.xlu1 %868 }
 0x343   : > { %v1232_v4 = vmul.f32 0.2, %v1220_v60  ;;  %vm1226_vm5 = vcmp.gt.f32.partialorder %v1220_v60, 0.0 }
 0x344   : > { %v3841_v52 = vpop.f32.mrb[16].mxu1  ;;  %v1095_v7 = vpop.f32.mrb[20].mxu0  ;;  %v890_v24 = vmul.f32 0.2, %v878_v61  ;;  %vm884_vm6 = vcmp.gt.f32.partialorder %v878_v61, 0.0 }
 0x345   : > { %v1221_v10 = vadd.f32 %v1202_v9, %v1095_v7  ;;  %v2987_v11 = vpop.f32.mrb[17].mxu1  ;;  %v2999_v12 = vpop.f32.mrb[21].mxu0  ;;  %v1238_v30 = vsel %vm1226_vm5, %v1220_v60, %v1232_v4  ;;  %vm3892_vm5 = vcmp.ne.s32.totalorder %v915_v45, 0 }
 0x346   : > { %v3850_v32 = vsel %vm3844_vm7, %v1238_v30, -1e+09  ;;  %v3881_v12 = vsel %vm3844_vm7, %v893_v56, -1e+09 }
 0x347   : > { %v1233_v44 = vmul.f32 0.2, %v1221_v10  ;;  %v1250_v9 = vsel %vm929_vm9, %v3850_v32, -inf  ;;  %vm1227_vm10 = vcmp.gt.f32.partialorder %v1221_v10, 0.0 }
 0x348   : > { %v1182_v49 = vpop.f32.mrb[18].mxu1  ;;  %1251 = vmax.xlane.f32.xlu0 %v1250_v9  ;;  %v1100_v50 = vpop.f32.mrb[22].mxu0 }
 0x349   : > { %v1223_v62 = vadd.f32 %v3815_v15, %v1182_v49  ;;  %v1222_v63 = vadd.f32 %v1206_v34, %v1100_v50  ;;  %v3011_v0 = vpop.f32.mrb[19].mxu1  ;;  %v1239_v2 = vsel %vm1227_vm10, %v1221_v10, %v1233_v44  ;;  %v3002_v4 = vpop.f32.mrb[23].mxu0  ;;  %v876_v34 = vadd.f32 %v857_v3, %v3813_v14 }
 0x34a   : > { %v3867_v5 = vsel %vm3856_vm12, %v1239_v2, -1e+09  ;;  %v877_v10 = vadd.f32 %v861_v51, %v3824_v25  ;;  %v896_v4 = vsel %vm884_vm6, %v878_v61, %v890_v24 }
 0x34b   : > { %v1235_v40 = vmul.f32 0.2, %v1223_v62  ;;  %v1234_v6 = vmul.f32 0.2, %v1222_v63  ;;  %v1253_v15 = vsel %vm929_vm9, %v3867_v5, -inf  ;;  %vm1229_vm3 = vcmp.gt.f32.partialorder %v1223_v62, 0.0 }
 0x34c   : > { %v1187_v11 = vpop.f32.mrb[20].mxu1  ;;  %1254 = vmax.xlane.f32.xlu1 %v1253_v15  ;;  %vm1228_vm4 = vcmp.gt.f32.partialorder %v1222_v63, 0.0  ;;  %v888_v49 = vmul.f32 0.2, %v876_v34  ;;  %v889_v50 = vmul.f32 0.2, %v877_v10 }
 0x34d   : > { %v1224_v38 = vadd.f32 %v3826_v27, %v1187_v11  ;;  %v3014_v30 = vpop.f32.mrb[21].mxu1  ;;  %v1241_v37 = vsel %vm1229_vm3, %v1223_v62, %v1235_v40  ;;  %v1240_v39 = vsel %vm1228_vm4, %v1222_v63, %v1234_v6  ;;  %v916_v62 = vunpack.c.l.b16 %v910_v8  ;;  %v873_v8 = vpop.permute.xlu1 %872 }
 0x34e   : > { %v3886_v44 = vsel %vm3869_vm2, %v1241_v37, -1e+09  ;;  %v3890_v14 = vsel %vm3860_vm1, %v1240_v39, -1e+09  ;;  %vm882_vm10 = vcmp.gt.f32.partialorder %v876_v34, 0.0  ;;  %v879_v63 = vadd.f32 %v869_v43, %v3835_v53 }
 0x34f   : > { %v1236_v3 = vmul.f32 0.2, %v1224_v38  ;;  %v1259_v27 = vsel %vm929_vm9, %v3886_v44, -inf  ;;  %v1256_v9 = vsel %vm929_vm9, %v3890_v14, -inf  ;;  %vm1230_vm8 = vcmp.gt.f32.partialorder %v1224_v38, 0.0 }
 0x350   : > { %v1192_v56 = vpop.f32.mrb[22].mxu1  ;;  %1260 = vmax.xlane.f32.xlu0 %v1259_v27  ;;  %1257 = vmax.xlane.f32.xlu1 %v1256_v9  ;;  %vm883_vm11 = vcmp.gt.f32.partialorder %v877_v10, 0.0  ;;  %v930_v15 = vsel %vm929_vm9, %v3881_v12, -inf  ;;  %vm3907_vm4 = vcmp.ne.s32.totalorder %v916_v62, 0  ;;  %v894_v61 = vsel %vm882_vm10, %v876_v34, %v888_v49 }
 0x351   : > { %v1225_v0 = vadd.f32 %v3831_v41, %v1192_v56  ;;  %v1242_v2 = vsel %vm1230_vm8, %v1224_v38, %v1236_v3  ;;  %v3017_v45 = vpop.f32.mrb[23].mxu1  ;;  %v3913_v41 = vsel %vm3869_vm2, %v896_v4, -1e+09  ;;  %v891_v11 = vmul.f32 0.2, %v879_v63 }
 0x352   : > { %v1248_v51 = vsel %vm3892_vm5, %v1242_v2, -1e+09  ;;  %v880_v24 = vadd.f32 %v873_v8, %v3841_v52  ;;  %v895_v30 = vsel %vm883_vm11, %v877_v10, %v889_v50  ;;  %vm885_vm6 = vcmp.gt.f32.partialorder %v879_v63, 0.0 }
 0x353   : > { %v1237_v40 = vmul.f32 0.2, %v1225_v0  ;;  %v1262_v6 = vsel %vm929_vm9, %v1248_v51, -inf  ;;  %vm1231_vm3 = vcmp.gt.f32.partialorder %v1225_v0, 0.0  ;;  %v939_v43 = vsel %vm929_vm9, %v3913_v41, -inf }
 0x354   : > { %1263 = vmax.xlane.f32.xlu0 %v1262_v6  ;;  %931 = vmax.xlane.f32.xlu1 %v930_v15  ;;  %v924_v3 = vsel %vm3856_vm12, %v894_v61, -1e+09  ;;  %v3926_v34 = vsel %vm3860_vm1, %v895_v30, -1e+09  ;;  %v892_v52 = vmul.f32 0.2, %v880_v24  ;;  %v897_v10 = vsel %vm885_vm6, %v879_v63, %v891_v11 }
 0x355   : > { %v1243_v38 = vsel %vm1231_vm3, %v1225_v0, %v1237_v40  ;;  %vm886_vm8 = vcmp.gt.f32.partialorder %v880_v24, 0.0  ;;  %v933_v27 = vsel %vm929_vm9, %v924_v3, -inf  ;;  %v936_v9 = vsel %vm929_vm9, %v3926_v34, -inf }
 0x356   : > { %v1249_v37 = vsel %vm3907_vm4, %v1243_v38, -1e+09  ;;  %v927_v49 = vsel %vm3892_vm5, %v897_v10, -1e+09  ;;  %v898_v50 = vsel %vm886_vm8, %v880_v24, %v892_v52  ;;  %v3439_v0 = vmov 2  }
 0x357   : > { %v1265_v39 = vsel %vm929_vm9, %v1249_v37, -inf  ;;  %v942_v56 = vsel %vm929_vm9, %v927_v49, -inf  ;;  %v928_v62 = vsel %vm3907_vm4, %v898_v50, -1e+09  ;;  %3278 = vset.pattern.permute.xlu0 %v3439_v0  ;;  %3279 = vset.pattern.permute.xlu1 %v3439_v0 }
 0x358   : > { %1266 = vmax.xlane.f32.xlu0 %v1265_v39  ;;  %940 = vmax.xlane.f32.xlu1 %v939_v43  ;;  %v945_v63 = vsel %vm929_vm9, %v928_v62, -inf }
 0x35c   : > { %934 = vmax.xlane.f32.xlu0 %v933_v27  ;;  %937 = vmax.xlane.f32.xlu1 %v936_v9 }
 0x360   : > { %943 = vmax.xlane.f32.xlu0 %v942_v56 }
 0x364   : > { %946 = vmax.xlane.f32.xlu0 %v945_v63 }
 0x3d5   : > { %v1252_v2 = vpop.xlane.xlu0 %1251 }
 0x3d6   : > { %v1268_v8 = vsub.f32 %v3850_v32, %v1252_v2 }
 0x3d8   : > { %v1274_v43 = vmul.f32 1.442695, %v1268_v8 }
 0x3d9   : > { %v1255_v4 = vpop.xlane.xlu1 %1254 }
 0x3da   : > { %v1269_v45 = vsub.f32 %v3867_v5, %v1255_v4 }
 0x3dc   : > { %v1276_v40 = vmul.f32 1.442695, %v1269_v45 }
 0x3dd   : > { %v1261_v6 = vpop.xlane.xlu0 %1260  ;;  %v1258_v15 = vpop.xlane.xlu1 %1257 }
 0x3de   : > { %3311 = vpow2.f32 %v1276_v40  ;;  %v1270_v52 = vsub.f32 %v3890_v14, %v1258_v15  ;;  %v1271_v32 = vsub.f32 %v3886_v44, %v1261_v6 }
 0x3e0   : > { %v1278_v56 = vmul.f32 1.442695, %v1270_v52  ;;  %v1280_v0 = vmul.f32 1.442695, %v1271_v32 }
 0x3e1   : > { %v1264_v61 = vpop.xlane.xlu0 %1263  ;;  %v932_v11 = vpop.xlane.xlu1 %931 }
 0x3e2   : > { %v1272_v24 = vsub.f32 %v1248_v51, %v1264_v61  ;;  %v948_v38 = vsub.f32 %v3881_v12, %v932_v11 }
 0x3e4   : > { %v1282_v30 = vmul.f32 1.442695, %v1272_v24  ;;  %v954_v39 = vmul.f32 1.442695, %v948_v38 }
 0x3e5   : > { %v1267_v10 = vpop.xlane.xlu0 %1266  ;;  %v941_v50 = vpop.xlane.xlu1 %940 }
 0x3e6   : > { %3313 = vpow2.f32 %v1282_v30  ;;  %v1273_v27 = vsub.f32 %v1249_v37, %v1267_v10  ;;  %v951_v37 = vsub.f32 %v3913_v41, %v941_v50 }
 0x3e7   : > { %3315 = vpow2.f32 %v954_v39 }
 0x3e8   : > { %v3941_v5 = vpop.eup %3311  ;;  %v1284_v9 = vmul.f32 1.442695, %v1273_v27  ;;  %3317 = vpow2.f32 %v1274_v43  ;;  %v960_v15 = vmul.f32 1.442695, %v951_v37 }
 0x3e9   : > { %v935_v51 = vpop.xlane.xlu0 %934  ;;  %v1289_v12 = vsel %vm929_vm9, %v3941_v5, 0.0  ;;  %v938_v4 = vpop.xlane.xlu1 %937 }
 0x3ea   : > { %3319 = vpow2.f32 %v1284_v9  ;;  %v949_v63 = vsub.f32 %v924_v3, %v935_v51  ;;  %1290 = vadd.xlane.f32.xlu0 %v1289_v12  ;;  %v950_v8 = vsub.f32 %v3926_v34, %v938_v4 }
 0x3eb   : > { %3321 = vpow2.f32 %v1278_v56 }
 0x3ec   : > { %v956_v14 = vmul.f32 1.442695, %v949_v63  ;;  %v958_v30 = vmul.f32 1.442695, %v950_v8 }
 0x3ed   : > { %v944_v2 = vpop.xlane.xlu0 %943 }
 0x3ee   : > { %3323 = vpow2.f32 %v956_v14  ;;  %v952_v45 = vsub.f32 %v927_v49, %v944_v2 }
 0x3ef   : > { %3325 = vpow2.f32 %v1280_v0 }
 0x3f0   : > { %v3947_v40 = vpop.eup %3313  ;;  %v962_v44 = vmul.f32 1.442695, %v952_v45 }
 0x3f1   : > { %v3949_v6 = vpop.eup %3315  ;;  %v947_v3 = vpop.xlane.xlu0 %946  ;;  %v1298_v61 = vsel %vm929_vm9, %v3947_v40, 0.0 }
 0x3f2   : > { %3327 = vpow2.f32 %v962_v44  ;;  %v953_v11 = vsub.f32 %v928_v62, %v947_v3  ;;  %1299 = vadd.xlane.f32.xlu0 %v1298_v61  ;;  %v966_v41 = vsel %vm929_vm9, %v3949_v6, 0.0  ;;  %v3956_v49 = vpop.eup %3317 }
 0x3f3   : > { %967 = vadd.xlane.f32.xlu1 %v966_v41  ;;  %3329 = vpow2.f32 %v960_v15  ;;  %v1286_v62 = vsel %vm929_vm9, %v3956_v49, 0.0 }
 0x3f4   : > { %v3958_v24 = vpop.eup %3319  ;;  %v964_v38 = vmul.f32 1.442695, %v953_v11 }
 0x3f5   : > { %v1301_v34 = vsel %vm929_vm9, %v3958_v24, 0.0  ;;  %v3964_v39 = vpop.eup %3321 }
 0x3f6   : > { %3331 = vpow2.f32 %v964_v38  ;;  %1302 = vadd.xlane.f32.xlu0 %v1301_v34  ;;  %v1292_v10 = vsel %vm929_vm9, %v3964_v39, 0.0 }
 0x3f7   : > { %1287 = vadd.xlane.f32.xlu1 %v1286_v62  ;;  %3333 = vpow2.f32 %v958_v30 }
 0x3f8   : > { %v3324_v43 = vpop.eup %3323 }
 0x3f9   : > { %v969_v52 = vsel %vm929_vm9, %v3324_v43, 0.0  ;;  %v3969_v27 = vpop.eup %3325 }
 0x3fa   : > { %970 = vadd.xlane.f32.xlu0 %v969_v52  ;;  %v1295_v32 = vsel %vm929_vm9, %v3969_v27, 0.0 }
 0x3fb   : > { %1293 = vadd.xlane.f32.xlu1 %v1292_v10 }
 0x3fc   : > { %v3971_v9 = vpop.eup %3327 }
 0x3fd   : > { %v978_v50 = vsel %vm929_vm9, %v3971_v9, 0.0  ;;  %v3977_v56 = vpop.eup %3329 }
 0x3fe   : > { %979 = vadd.xlane.f32.xlu0 %v978_v50  ;;  %v975_v63 = vsel %vm929_vm9, %v3977_v56, 0.0 }
 0x3ff   : > { %1296 = vadd.xlane.f32.xlu1 %v1295_v32 }
 0x400   : > { %v3979_v51 = vpop.eup %3331 }
 0x401   : > { %v981_v12 = vsel %vm929_vm9, %v3979_v51, 0.0  ;;  %v3985_v14 = vpop.eup %3333 }
 0x402   : > { %982 = vadd.xlane.f32.xlu0 %v981_v12  ;;  %v972_v0 = vsel %vm929_vm9, %v3985_v14, 0.0 }
 0x403   : > { %976 = vadd.xlane.f32.xlu1 %v975_v63 }
 0x407   : > { %973 = vadd.xlane.f32.xlu1 %v972_v0 }
 0x418   : > { %3269 = vrot.lane.b32.xlu1 %v3693_v28, %s3440_s28  ;;  %3274 = vrot.lane.b32.xlu0 %v3705_v35, %s3440_s28 }
 0x41c   : > { %1601 = vrot.lane.b32.xlu1 %v3696_v29, %s3440_s28  ;;  %1782 = vperm.xlu0 %3278, %v3687_v23  }
 0x420   : > { %1693 = vrot.lane.b32.xlu1 %v3707_v36, %s3440_s28  ;;  %1798 = vperm.xlu0 %3278, %v3701_v33  }
 0x424   : > { %1786 = vperm.xlu1 %3279, %v3689_v26   ;;  %1802 = vperm.xlu0 %3278, %v3707_v36  }
 0x428   : > { %1794 = vperm.xlu1 %3279, %v3699_v31  }
 0x42c   : > { %1790 = vperm.xlu1 %3279, %v3696_v29  }
 0x477   : > { %v1291_v37 = vpop.xlane.xlu0 %1290 }
 0x478   : > { %3335 = vrcp.f32 %v1291_v37 }
 0x47f   : > { %v1300_v2 = vpop.xlane.xlu0 %1299 }
 0x480   : > { %v968_v4 = vpop.xlane.xlu1 %967 }
 0x482   : > { %v3336_v11 = vpop.eup %3335 }
 0x483   : > { %v1303_v45 = vpop.xlane.xlu0 %1302  ;;  %v1311_v62 = vmul.f32 %v3336_v11, %v3941_v5 }
 0x484   : > { %v1288_v44 = vpop.xlane.xlu1 %1287 }
 0x485   : > { %3337 = vrcp.f32 %v1288_v44 }
 0x486   : > { %3339 = vrcp.f32 %v968_v4 }
 0x487   : > { %v971_v15 = vpop.xlane.xlu0 %970 }
 0x488   : > { %3341 = vrcp.f32 %v971_v15  ;;  %v1294_v8 = vpop.xlane.xlu1 %1293 }
 0x489   : > { %3343 = vrcp.f32 %v1294_v8 }
 0x48a   : > { %3345 = vrcp.f32 %v1303_v45 }
 0x48b   : > { %3347 = vrcp.f32 %v1300_v2  ;;  %v980_v3 = vpop.xlane.xlu0 %979 }
 0x48c   : > { %v1297_v61 = vpop.xlane.xlu1 %1296 }
 0x48d   : > { %3349 = vrcp.f32 %v1297_v61 }
 0x48e   : > { %3351 = vrcp.f32 %v980_v3 }
 0x48f   : > { %v3338_v41 = vpop.eup %3337  ;;  %v983_v32 = vpop.xlane.xlu0 %982 }
 0x490   : > { %v3340_v38 = vpop.eup %3339  ;;  %v977_v30 = vpop.xlane.xlu1 %976  ;;  %v1310_v34 = vmul.f32 %v3338_v41, %v3956_v49 }
 0x491   : > { %3353 = vrcp.f32 %v977_v30  ;;  %v990_v12 = vmul.f32 %v3340_v38, %v3949_v6  ;;  %v2745_v6 = vcombine.low %v3628_v57, %v3628_v57 }
 0x492   : > { %v3342_v52 = vpop.eup %3341  ;;  %v1328_v10 = vpack.c.bf16 %v1311_v62, %v1310_v34 }
 0x493   : > { %v3344_v50 = vpop.eup %3343  ;;  %v991_v63 = vmul.f32 %v3342_v52, %v3324_v43  ;;  %v3275_v62 = vpop.permute.xlu0 %3274 }
 0x494   : > { %v3346_v0 = vpop.eup %3345  ;;  %v1312_v37 = vmul.f32 %v3344_v50, %v3964_v39  ;;  %3022 = vmatprep.mubr.msk.bf16.mxu0 %vm929_vm9, %v1328_v10  ;;  %v974_v2 = vpop.xlane.xlu1 %973  ;;  %v3277_v10 = vunpack.i.h.bf16 %v3275_v62  ;;  %v3276_v50 = vunpack.i.l.bf16 %v3275_v62 }
 0x495   : > { %v3348_v4 = vpop.eup %3347  ;;  %3355 = vrcp.f32 %v974_v2  ;;  %v1008_v45 = vpack.c.bf16 %v991_v63, %v990_v12  ;;  %v1315_v44 = vmul.f32 %v3346_v0, %v3958_v24  ;;  %v1481_v24 = vsel %vm1347_vm15, %v2745_v6, 0 }
 0x496   : > { %v1329_v49 = vpack.c.bf16 %v1312_v37, %v1312_v37  ;;  %3357 = vrcp.f32 %v983_v32  ;;  %v1314_v39 = vmul.f32 %v3348_v4, %v3947_v40  ;;  %v3163_v32 = vpack.c.bf16 %v3277_v10, %v3276_v50 }
 0x497   : > { %v3350_v5 = vpop.eup %3349  ;;  %v1331_v61 = vpack.c.bf16 %v1315_v44, %v1315_v44  ;;  %v2765_v12 = vcombine.low %v3633_v58, %v3633_v58 }
 0x498   : > { %3023 = vmatmul.mubr.msk.bf16.vlgmr.msra.gmra.mrb[24].mxu0 %vm929_vm9, %v1329_v49  ;;  %v1313_v43 = vmul.f32 %v3350_v5, %v3969_v27  ;;  %v3352_v15 = vpop.eup %3351  ;;  %v3270_v11 = vpop.permute.xlu1 %3269 }
 0x499   : > { %3035 = vmatpush3.bf16.msra.mxu0 %v3617_v46  ;;  %3038 = vmatprep.mubr.msk.bf16.mxu0 %vm929_vm9, %v1008_v45  ;;  %v994_v27 = vmul.f32 %v3352_v15, %v3971_v9  ;;  %v2749_v46 = vcombine.low %v3667_v16, %v3667_v16  ;;  %v3272_v30 = vunpack.i.h.bf16 %v3270_v11  ;;  %v3271_v9 = vunpack.i.l.bf16 %v3270_v11 }
 0x49a   : > { %3200 = vmatprep.subr.msk.bf16.mxu0 %vm1347_vm15, %v2745_v6  ;;  %v1330_v8 = vpack.c.bf16 %v1314_v39, %v1313_v43  ;;  %v1933_v0 = vsel %vm1347_vm15, %v2765_v12, 0 }
 0x49b   : > { %v3354_v3 = vpop.eup %3353  ;;  %v1547_v34 = vsel %vm1347_vm15, %v2749_v46, 0  ;;  %v3159_v52 = vpack.c.bf16 %v3272_v30, %v3271_v9 }
 0x49c   : > { %3030 = vmatprep.mubr.msk.bf16.mxu1 %vm929_vm9, %v1330_v8  ;;  %v993_v57 = vmul.f32 %v3354_v3, %v3977_v56 }
 0x49d   : > { %3037 = vmatpush3.bf16.msra.mxu0 %v1481_v24  ;;  %3031 = vmatmul.mubr.msk.bf16.vlgmr.msra.gmra.mrb[24].mxu1 %vm929_vm9, %v1331_v61 }
 0x49e   : > { %3043 = vmatpush3.bf16.msra.mxu1 %v3658_v13  ;;  %v1010_v40 = vpack.c.bf16 %v994_v27, %v993_v57  ;;  %3158 = vmatprep.subr.bf16.mxu0 %v3434_v22 }
 0x49f   : > { %v3356_v41 = vpop.eup %3355  ;;  %3201 = vmatprep.subr.msk.bf16.mxu1 %vm1347_vm15, %v2749_v46 }
 0x4a0   : > { %v3358_v38 = vpop.eup %3357  ;;  %v992_v56 = vmul.f32 %v3356_v41, %v3985_v14  ;;  %3046 = vmatprep.mubr.msk.bf16.mxu1 %vm929_vm9, %v1010_v40 }
 0x4a1   : > { %v995_v13 = vmul.f32 %v3358_v38, %v3979_v51  ;;  %v1602_v51 = vpop.permute.xlu1 %1601 }
 0x4a2   : > { %3045 = vmatpush3.bf16.msra.mxu1 %v1547_v34  ;;  %v1009_v16 = vpack.c.bf16 %v992_v56, %v992_v56 }
 0x4a3   : > { %3162 = vmatprep.subr.bf16.mxu1 %v3434_v22  ;;  %v1011_v14 = vpack.c.bf16 %v995_v13, %v995_v13 }
 0x4a4   : > { %3039 = vmatmul.mubr.msk.bf16.vlgmr.msra.gmra.mrb[24].mxu0 %vm929_vm9, %v1009_v16 }
 0x4a5   : > { %3056 = vmatprep.mubr.msk.f32.mxu0 %vm3432_vm0, %v3431_v1  ;;  %v1694_v63 = vpop.permute.xlu1 %1693 }
 0x4a6   : > { %3161 = vmatpush3.bf16.xpose.msk.msra.mxu0 %vm3731_vm14, %v3159_v52 }
 0x4a7   : > { %3054 = vmatprep.subr.mxu0 %v3431_v1 }
 0x4a9   : > { %3047 = vmatmul.mubr.msk.bf16.vlgmr.msra.gmra.mrb[24].mxu1 %vm929_vm9, %v1011_v14 }
 0x4aa   : > { %3071 = vmatprep.mubr.msk.f32.mxu1 %vm3432_vm0, %v3431_v1 }
 0x4ab   : > { %3165 = vmatpush3.bf16.xpose.msk.msra.mxu1 %vm3731_vm14, %v3163_v32 }
 0x4ac   : > { %3069 = vmatprep.subr.mxu1 %v3431_v1 }
 0x4ae   : > { %3055 = vmatpush3.xpose.msk.msra.mxu0 %vm666_vm13, %v1602_v51 }
 0x4af   : > { %3080 = vmatprep.subr.bf16.mxu0 %v3619_v47 }
 0x4b1   : > { %3057 = vmatmul.mubr.msk.f32.vlgmr.msra.gmra.mrb[28].mxu0 %vm666_vm13, %v3438_v54 }
 0x4b2   : > { %3081 = vmatpush3.bf16.msra.mxu0 %v3619_v47  ;;  %3059 = vmatprep.mubr.msk.f32.mxu0 %vm3432_vm0, %v3431_v1  ;;  %v2769_v47 = vcombine.low %v3674_v18, %v3674_v18  ;;  %v1783_v18 = vpop.permute.xlu0 %1782 }
 0x4b3   : > { %3070 = vmatpush3.xpose.msk.msra.mxu1 %vm666_vm13, %v1694_v63  ;;  %3202 = vmatprep.subr.msk.bf16.mxu0 %vm1347_vm15, %v2765_v12 }
 0x4b4   : > { %3088 = vmatprep.subr.bf16.mxu1 %v3669_v17  ;;  %v1999_v58 = vsel %vm1347_vm15, %v2769_v47, 0 }
 0x4b5   : > { %3060 = vmatmul.mubr.msk.f32.gmra.mrb[30].mxu0 %vm666_vm13, %v3438_v54 }
 0x4b6   : > { %3072 = vmatmul.mubr.msk.f32.vlgmr.msra.gmra.mrb[28].mxu1 %vm666_vm13, %v3438_v54  ;;  %3083 = vmatpush3.bf16.msra.mxu0 %v1933_v0  ;;  %v1799_v3 = vpop.permute.xlu0 %1798 }
 0x4b7   : > { %3089 = vmatpush3.bf16.msra.mxu1 %v3669_v17  ;;  %3062 = vmatprep.mubr.msk.f32.mxu0 %vm3432_vm0, %v3431_v1  ;;  %v1787_v17 = vpop.permute.xlu1 %1786 }
 0x4b8   : > { %3203 = vmatprep.subr.msk.bf16.mxu1 %vm1347_vm15, %v2769_v47  ;;  %3074 = vmatprep.mubr.msk.f32.mxu1 %vm3432_vm0, %v3431_v1 }
 0x4b9   : > { %3063 = vmatmul.mubr.msk.f32.gmra.mrb[32].mxu0 %vm666_vm13, %v3438_v54  ;;  %3166 = vmatprep.subr.bf16.mxu0 %v3434_v22 }
 0x4ba   : > { %3075 = vmatmul.mubr.msk.f32.gmra.mrb[30].mxu1 %vm666_vm13, %v3438_v54  ;;  %v1803_v10 = vpop.permute.xlu0 %1802 }
 0x4bb   : > { %3091 = vmatpush3.bf16.msra.mxu1 %v1999_v58  ;;  %3077 = vmatprep.mubr.msk.f32.mxu1 %vm3432_vm0, %v3431_v1  ;;  %v1795_v45 = vpop.permute.xlu1 %1794 }
 0x4bc   : > { %3170 = vmatprep.subr.bf16.mxu1 %v3434_v22 }
 0x4be   : > { %3078 = vmatmul.mubr.msk.f32.gmra.mrb[32].mxu1 %vm666_vm13, %v3438_v54 }
 0x4bf   : > { %v1791_v57 = vpop.permute.xlu1 %1790 }
 0x584   : > { %v1675_v37 = vpop.f32.mrb[28].mxu0 }
 0x585   : > { %v1805_v2 = vadd.f32 %v1783_v18, %v1675_v37  ;;  %v3058_v4 = vpop.f32.mrb[29].mxu0 }
 0x587   : > { %v1817_v49 = vmul.f32 0.2, %v1805_v2  ;;  %vm1811_vm10 = vcmp.gt.f32.partialorder %v1805_v2, 0.0 }
 0x588   : > { %v1680_v5 = vpop.f32.mrb[30].mxu0 }
 0x589   : > { %v1806_v44 = vadd.f32 %v1787_v17, %v1680_v5  ;;  %v1767_v6 = vpop.f32.mrb[28].mxu1  ;;  %v3061_v43 = vpop.f32.mrb[31].mxu0  ;;  %v1823_v39 = vsel %vm1811_vm10, %v1805_v2, %v1817_v49 }
 0x58a   : > { %v1808_v15 = vadd.f32 %v1795_v45, %v1767_v6  ;;  %v3073_v8 = vpop.f32.mrb[29].mxu1  ;;  %v1829_v22 = vsel %vm3844_vm7, %v1823_v39, -1e+09  ;;  %v3441_v45 = vmov 3  }
 0x58b   : > { %v1818_v61 = vmul.f32 0.2, %v1806_v44  ;;  %v1835_v24 = vsel %vm929_vm9, %v1829_v22, -inf  ;;  %vm1812_vm11 = vcmp.gt.f32.partialorder %v1806_v44, 0.0  ;;  %3290 = vset.pattern.permute.xlu1 %v3441_v45  ;;  %3291 = vset.pattern.permute.xlu0 %v3441_v45 }
 0x58c   : > { %v1820_v27 = vmul.f32 0.2, %v1808_v15  ;;  %1836 = vmax.xlane.f32.xlu1 %v1835_v24  ;;  %v1685_v11 = vpop.f32.mrb[32].mxu0  ;;  %vm1814_vm3 = vcmp.gt.f32.partialorder %v1808_v15, 0.0 }
 0x58d   : > { %v1807_v46 = vadd.f32 %v1791_v57, %v1685_v11  ;;  %v1772_v40 = vpop.f32.mrb[30].mxu1  ;;  %v1824_v41 = vsel %vm1812_vm11, %v1806_v44, %v1818_v61  ;;  %v3064_v38 = vpop.f32.mrb[33].mxu0 }
 0x58e   : > { %v1809_v56 = vadd.f32 %v1799_v3, %v1772_v40  ;;  %v3076_v30 = vpop.f32.mrb[31].mxu1  ;;  %v1830_v9 = vsel %vm3856_vm12, %v1824_v41, -1e+09  ;;  %v1826_v34 = vsel %vm1814_vm3, %v1808_v15, %v1820_v27 }
 0x58f   : > { %v1819_v62 = vmul.f32 0.2, %v1807_v46  ;;  %v1838_v16 = vsel %vm929_vm9, %v1830_v9, -inf  ;;  %vm1813_vm6 = vcmp.gt.f32.partialorder %v1807_v46, 0.0  ;;  %v1832_v52 = vsel %vm3869_vm2, %v1826_v34, -1e+09 }
 0x590   : > { %v1821_v13 = vmul.f32 0.2, %v1809_v56  ;;  %1839 = vmax.xlane.f32.xlu0 %v1838_v16  ;;  %vm1815_vm8 = vcmp.gt.f32.partialorder %v1809_v56, 0.0  ;;  %v1844_v63 = vsel %vm929_vm9, %v1832_v52, -inf }
 0x591   : > { %v1777_v50 = vpop.f32.mrb[32].mxu1  ;;  %v1825_v14 = vsel %vm1813_vm6, %v1807_v46, %v1819_v62 }
 0x592   : > { %v1810_v32 = vadd.f32 %v1803_v10, %v1777_v50  ;;  %v1827_v51 = vsel %vm1815_vm8, %v1809_v56, %v1821_v13  ;;  %v3079_v12 = vpop.f32.mrb[33].mxu1  ;;  %v1831_v17 = vsel %vm3860_vm1, %v1825_v14, -1e+09 }
 0x593   : > { %v1833_v0 = vsel %vm3892_vm5, %v1827_v51, -1e+09  ;;  %v1841_v37 = vsel %vm929_vm9, %v1831_v17, -inf }
 0x594   : > { %v1822_v47 = vmul.f32 0.2, %v1810_v32  ;;  %1845 = vmax.xlane.f32.xlu0 %v1844_v63  ;;  %v1847_v58 = vsel %vm929_vm9, %v1833_v0, -inf  ;;  %vm1816_vm10 = vcmp.gt.f32.partialorder %v1810_v32, 0.0 }
 0x595   : > { %1848 = vmax.xlane.f32.xlu1 %v1847_v58 }
 0x596   : > { %v1828_v18 = vsel %vm1816_vm10, %v1810_v32, %v1822_v47 }
 0x597   : > { %v1834_v2 = vsel %vm3907_vm4, %v1828_v18, -1e+09 }
 0x598   : > { %1842 = vmax.xlane.f32.xlu0 %v1841_v37  ;;  %v1850_v4 = vsel %vm929_vm9, %v1834_v2, -inf }
 0x599   : > { %1851 = vmax.xlane.f32.xlu1 %v1850_v4 }
 0x619   : > { %v1837_v49 = vpop.xlane.xlu1 %1836 }
 0x61a   : > { %v1853_v5 = vsub.f32 %v1829_v22, %v1837_v49 }
 0x61c   : > { %v1859_v44 = vmul.f32 1.442695, %v1853_v5 }
 0x61d   : > { %v1840_v6 = vpop.xlane.xlu0 %1839 }
 0x61e   : > { %3359 = vpow2.f32 %v1859_v44  ;;  %v1854_v43 = vsub.f32 %v1830_v9, %v1840_v6 }
 0x620   : > { %v1861_v39 = vmul.f32 1.442695, %v1854_v43 }
 0x621   : > { %v1846_v15 = vpop.xlane.xlu0 %1845 }
 0x622   : > { %3361 = vpow2.f32 %v1861_v39  ;;  %v1849_v8 = vpop.xlane.xlu1 %1848  ;;  %v1856_v61 = vsub.f32 %v1832_v52, %v1846_v15 }
 0x623   : > { %v1857_v3 = vsub.f32 %v1833_v0, %v1849_v8 }
 0x624   : > { %v1865_v41 = vmul.f32 1.442695, %v1856_v61 }
 0x625   : > { %v1867_v24 = vmul.f32 1.442695, %v1857_v3  ;;  %v1843_v57 = vpop.xlane.xlu0 %1842 }
 0x626   : > { %v1855_v27 = vsub.f32 %v1831_v17, %v1843_v57  ;;  %v1852_v11 = vpop.xlane.xlu1 %1851 }
 0x627   : > { %3363 = vpow2.f32 %v1867_v24  ;;  %v1858_v46 = vsub.f32 %v1834_v2, %v1852_v11  ;;  %v2785_v24 = vcombine.low %v3638_v59, %v3638_v59 }
 0x628   : > { %v3360_v40 = vpop.eup %3359  ;;  %v1863_v38 = vmul.f32 1.442695, %v1855_v27 }
 0x629   : > { %v1869_v22 = vmul.f32 1.442695, %v1858_v46  ;;  %v1871_v56 = vsel %vm929_vm9, %v3360_v40, 0.0  ;;  %v2391_v42 = vsel %vm1347_vm15, %v2785_v24, 0 }
 0x62a   : > { %3365 = vpow2.f32 %v1863_v38  ;;  %1872 = vadd.xlane.f32.xlu0 %v1871_v56 }
 0x62b   : > { %3367 = vpow2.f32 %v1869_v22 }
 0x62c   : > { %v3362_v30 = vpop.eup %3361  ;;  %3369 = vpow2.f32 %v1865_v41 }
 0x62d   : > { %v1874_v9 = vsel %vm929_vm9, %v3362_v30, 0.0 }
 0x62e   : > { %1875 = vadd.xlane.f32.xlu1 %v1874_v9 }
 0x631   : > { %v3364_v34 = vpop.eup %3363 }
 0x632   : > { %v1883_v62 = vsel %vm929_vm9, %v3364_v34, 0.0 }
 0x633   : > { %1884 = vadd.xlane.f32.xlu1 %v1883_v62 }
 0x634   : > { %v3366_v16 = vpop.eup %3365 }
 0x635   : > { %v3368_v13 = vpop.eup %3367  ;;  %v1877_v52 = vsel %vm929_vm9, %v3366_v16, 0.0 }
 0x636   : > { %v3370_v10 = vpop.eup %3369  ;;  %1878 = vadd.xlane.f32.xlu0 %v1877_v52  ;;  %v1886_v50 = vsel %vm929_vm9, %v3368_v13, 0.0 }
 0x637   : > { %1887 = vadd.xlane.f32.xlu1 %v1886_v50  ;;  %v1880_v14 = vsel %vm929_vm9, %v3370_v10, 0.0 }
 0x63a   : > { %1881 = vadd.xlane.f32.xlu0 %v1880_v14 }
 0x648   : > { %3286 = vrot.lane.b32.xlu1 %v3705_v35, %s3442_s24 }
 0x64c   : > { %2059 = vrot.lane.b32.xlu1 %v3696_v29, %s3442_s24 }
 0x650   : > { %2240 = vperm.xlu1 %3290, %v3687_v23   ;;  %3281 = vrot.lane.b32.xlu0 %v3693_v28, %s3442_s24 }
 0x654   : > { %2252 = vperm.xlu1 %3290, %v3699_v31   ;;  %2151 = vrot.lane.b32.xlu0 %v3707_v36, %s3442_s24 }
 0x658   : > { %2256 = vperm.xlu1 %3290, %v3701_v33   ;;  %2244 = vperm.xlu0 %3291, %v3689_v26  }
 0x65c   : > { %2260 = vperm.xlu1 %3290, %v3707_v36   ;;  %2248 = vperm.xlu0 %3291, %v3696_v29  }
 0x6b7   : > { %v1873_v32 = vpop.xlane.xlu0 %1872 }
 0x6b8   : > { %3371 = vrcp.f32 %v1873_v32 }
 0x6bb   : > { %v1876_v35 = vpop.xlane.xlu1 %1875 }
 0x6bc   : > { %3373 = vrcp.f32 %v1876_v35 }
 0x6c0   : > { %v1885_v51 = vpop.xlane.xlu1 %1884 }
 0x6c2   : > { %v3372_v12 = vpop.eup %3371 }
 0x6c3   : > { %v1879_v23 = vpop.xlane.xlu0 %1878  ;;  %v1895_v33 = vmul.f32 %v3372_v12, %v3360_v40 }
 0x6c4   : > { %3375 = vrcp.f32 %v1879_v23  ;;  %v1888_v28 = vpop.xlane.xlu1 %1887 }
 0x6c5   : > { %3377 = vrcp.f32 %v1888_v28 }
 0x6c6   : > { %v3374_v31 = vpop.eup %3373  ;;  %3379 = vrcp.f32 %v1885_v51 }
 0x6c7   : > { %v1882_v63 = vpop.xlane.xlu0 %1881  ;;  %v1896_v0 = vmul.f32 %v3374_v31, %v3362_v30 }
 0x6c8   : > { %3381 = vrcp.f32 %v1882_v63  ;;  %v3287_v2 = vpop.permute.xlu1 %3286 }
 0x6c9   : > { %v1913_v26 = vpack.c.bf16 %v1896_v0, %v1895_v33  ;;  %v3289_v44 = vunpack.i.h.bf16 %v3287_v2  ;;  %v3288_v6 = vunpack.i.l.bf16 %v3287_v2 }
 0x6cb   : > { %3084 = vmatprep.mubr.msk.bf16.mxu0 %vm929_vm9, %v1913_v26  ;;  %v3282_v29 = vpop.permute.xlu0 %3281  ;;  %v3171_v3 = vpack.c.bf16 %v3289_v44, %v3288_v6 }
 0x6cc   : > { %v3284_v47 = vunpack.i.h.bf16 %v3282_v29  ;;  %v3283_v58 = vunpack.i.l.bf16 %v3282_v29  ;;  %v2060_v61 = vpop.permute.xlu1 %2059 }
 0x6ce   : > { %v3376_v36 = vpop.eup %3375  ;;  %v3167_v5 = vpack.c.bf16 %v3284_v47, %v3283_v58 }
 0x6cf   : > { %v3378_v17 = vpop.eup %3377  ;;  %v1897_v18 = vmul.f32 %v3376_v36, %v3366_v16  ;;  %v2152_v57 = vpop.permute.xlu0 %2151 }
 0x6d0   : > { %v3380_v37 = vpop.eup %3379  ;;  %v1900_v49 = vmul.f32 %v3378_v17, %v3368_v13 }
 0x6d1   : > { %v1914_v4 = vpack.c.bf16 %v1897_v18, %v1897_v18  ;;  %v1899_v39 = vmul.f32 %v3380_v37, %v3364_v34 }
 0x6d2   : > { %v3382_v45 = vpop.eup %3381  ;;  %v1916_v8 = vpack.c.bf16 %v1900_v49, %v1900_v49 }
 0x6d3   : > { %3085 = vmatmul.mubr.msk.bf16.vlgmr.msra.gmra.mrb[24].mxu0 %vm929_vm9, %v1914_v4  ;;  %v1898_v43 = vmul.f32 %v3382_v45, %v3370_v10 }
 0x6d4   : > { %3169 = vmatpush3.bf16.xpose.msk.msra.mxu0 %vm3731_vm14, %v3167_v5  ;;  %3102 = vmatprep.mubr.msk.f32.mxu0 %vm3432_vm0, %v3431_v1 }
 0x6d5   : > { %v1915_v15 = vpack.c.bf16 %v1899_v39, %v1898_v43  ;;  %3100 = vmatprep.subr.mxu0 %v3431_v1 }
 0x6d7   : > { %3092 = vmatprep.mubr.msk.bf16.mxu1 %vm929_vm9, %v1915_v15  ;;  %v2245_v40 = vpop.permute.xlu0 %2244 }
 0x6d8   : > { %3093 = vmatmul.mubr.msk.bf16.vlgmr.msra.gmra.mrb[24].mxu1 %vm929_vm9, %v1916_v8 }
 0x6d9   : > { %3173 = vmatpush3.bf16.xpose.msk.msra.mxu1 %vm3731_vm14, %v3171_v3  ;;  %3117 = vmatprep.mubr.msk.f32.mxu1 %vm3432_vm0, %v3431_v1 }
 0x6da   : > { %3115 = vmatprep.subr.mxu1 %v3431_v1 }
 0x6db   : > { %v2249_v52 = vpop.permute.xlu0 %2248 }
 0x6dc   : > { %3101 = vmatpush3.xpose.msk.msra.mxu0 %vm666_vm13, %v2060_v61 }
 0x6dd   : > { %3126 = vmatprep.subr.bf16.mxu0 %v3621_v48 }
 0x6df   : > { %3103 = vmatmul.mubr.msk.f32.vlgmr.msra.gmra.mrb[34].mxu0 %vm666_vm13, %v3438_v54 }
 0x6e0   : > { %3127 = vmatpush3.bf16.msra.mxu0 %v3621_v48  ;;  %3105 = vmatprep.mubr.msk.f32.mxu0 %vm3432_vm0, %v3431_v1  ;;  %v2789_v48 = vcombine.low %v3683_v20, %v3683_v20 }
 0x6e1   : > { %3116 = vmatpush3.xpose.msk.msra.mxu1 %vm666_vm13, %v2152_v57  ;;  %3204 = vmatprep.subr.msk.bf16.mxu0 %vm1347_vm15, %v2785_v24 }
 0x6e2   : > { %3134 = vmatprep.subr.bf16.mxu1 %v3678_v19  ;;  %v2457_v59 = vsel %vm1347_vm15, %v2789_v48, 0 }
 0x6e3   : > { %3106 = vmatmul.mubr.msk.f32.gmra.mrb[36].mxu0 %vm666_vm13, %v3438_v54 }
 0x6e4   : > { %3118 = vmatmul.mubr.msk.f32.vlgmr.msra.gmra.mrb[34].mxu1 %vm666_vm13, %v3438_v54  ;;  %3129 = vmatpush3.bf16.msra.mxu0 %v2391_v42 }
 0x6e5   : > { %3135 = vmatpush3.bf16.msra.mxu1 %v3678_v19  ;;  %3108 = vmatprep.mubr.msk.f32.mxu0 %vm3432_vm0, %v3431_v1  ;;  %v2241_v19 = vpop.permute.xlu1 %2240 }
 0x6e6   : > { %3205 = vmatprep.subr.msk.bf16.mxu1 %vm1347_vm15, %v2789_v48  ;;  %3120 = vmatprep.mubr.msk.f32.mxu1 %vm3432_vm0, %v3431_v1 }
 0x6e7   : > { %3109 = vmatmul.mubr.msk.f32.gmra.mrb[38].mxu0 %vm666_vm13, %v3438_v54 }
 0x6e8   : > { %3121 = vmatmul.mubr.msk.f32.gmra.mrb[36].mxu1 %vm666_vm13, %v3438_v54 }
 0x6e9   : > { %3137 = vmatpush3.bf16.msra.mxu1 %v2457_v59  ;;  %3123 = vmatprep.mubr.msk.f32.mxu1 %vm3432_vm0, %v3431_v1  ;;  %v2253_v27 = vpop.permute.xlu1 %2252 }
 0x6ec   : > { %3124 = vmatmul.mubr.msk.f32.gmra.mrb[38].mxu1 %vm666_vm13, %v3438_v54 }
 0x6ed   : > { %v2257_v16 = vpop.permute.xlu1 %2256 }
 0x6f1   : > { %v2261_v29 = vpop.permute.xlu1 %2260 }
 0x7b2   : > { %v2133_v20 = vpop.f32.mrb[34].mxu0 }
 0x7b3   : > { %v2263_v11 = vadd.f32 %v2241_v19, %v2133_v20  ;;  %v3104_v46 = vpop.f32.mrb[35].mxu0 }
 0x7b5   : > { %v2275_v41 = vmul.f32 0.2, %v2263_v11  ;;  %vm2269_vm14 = vcmp.gt.f32.partialorder %v2263_v11, 0.0 }
 0x7b6   : > { %v2138_v38 = vpop.f32.mrb[36].mxu0 }
 0x7b7   : > { %v2264_v22 = vadd.f32 %v2245_v40, %v2138_v38  ;;  %v2225_v56 = vpop.f32.mrb[34].mxu1  ;;  %v3107_v30 = vpop.f32.mrb[37].mxu0  ;;  %v2281_v9 = vsel %vm2269_vm14, %v2263_v11, %v2275_v41 }
 0x7b8   : > { %v2266_v34 = vadd.f32 %v2253_v27, %v2225_v56  ;;  %v3119_v62 = vpop.f32.mrb[35].mxu1  ;;  %v2287_v1 = vsel %vm3844_vm7, %v2281_v9, -1e+09 }
 0x7b9   : > { %v2276_v54 = vmul.f32 0.2, %v2264_v22  ;;  %v2293_v13 = vsel %vm929_vm9, %v2287_v1, -inf  ;;  %vm2270_vm0 = vcmp.gt.f32.partialorder %v2264_v22, 0.0 }
 0x7ba   : > { %v2278_v10 = vmul.f32 0.2, %v2266_v34  ;;  %2294 = vmax.xlane.f32.xlu0 %v2293_v13  ;;  %v2143_v50 = vpop.f32.mrb[38].mxu0  ;;  %vm2272_vm13 = vcmp.gt.f32.partialorder %v2266_v34, 0.0 }
 0x7bb   : > { %v2265_v14 = vadd.f32 %v2249_v52, %v2143_v50  ;;  %v2230_v32 = vpop.f32.mrb[36].mxu1  ;;  %v2282_v35 = vsel %vm2270_vm0, %v2264_v22, %v2276_v54  ;;  %v3110_v51 = vpop.f32.mrb[39].mxu0 }
 0x7bc   : > { %v2267_v23 = vadd.f32 %v2257_v16, %v2230_v32  ;;  %v3122_v12 = vpop.f32.mrb[37].mxu1  ;;  %v2288_v21 = vsel %vm3856_vm12, %v2282_v35, -1e+09  ;;  %v2284_v28 = vsel %vm2272_vm13, %v2266_v34, %v2278_v10 }
 0x7bd   : > { %v2277_v31 = vmul.f32 0.2, %v2265_v14  ;;  %v2296_v63 = vsel %vm929_vm9, %v2288_v21, -inf  ;;  %v2290_v33 = vsel %vm3869_vm2, %v2284_v28, -1e+09  ;;  %vm2271_vm15 = vcmp.gt.f32.partialorder %v2265_v14, 0.0 }
 0x7be   : > { %v2279_v0 = vmul.f32 0.2, %v2267_v23  ;;  %2297 = vmax.xlane.f32.xlu1 %v2296_v63  ;;  %v2302_v26 = vsel %vm929_vm9, %v2290_v33, -inf  ;;  %vm2273_vm7 = vcmp.gt.f32.partialorder %v2267_v23, 0.0 }
 0x7bf   : > { %v2235_v36 = vpop.f32.mrb[38].mxu1  ;;  %2303 = vmax.xlane.f32.xlu0 %v2302_v26  ;;  %v2283_v47 = vsel %vm2271_vm15, %v2265_v14, %v2277_v31 }
 0x7c0   : > { %v2268_v58 = vadd.f32 %v2261_v29, %v2235_v36  ;;  %v2289_v55 = vsel %vm3860_vm1, %v2283_v47, -1e+09  ;;  %v2285_v17 = vsel %vm2273_vm7, %v2267_v23, %v2279_v0  ;;  %v3125_v18 = vpop.f32.mrb[39].mxu1 }
 0x7c1   : > { %v2299_v37 = vsel %vm929_vm9, %v2289_v55, -inf  ;;  %v2291_v7 = vsel %vm3892_vm5, %v2285_v17, -1e+09 }
 0x7c2   : > { %v2280_v2 = vmul.f32 0.2, %v2268_v58  ;;  %2300 = vmax.xlane.f32.xlu1 %v2299_v37  ;;  %v2305_v4 = vsel %vm929_vm9, %v2291_v7, -inf  ;;  %vm2274_vm12 = vcmp.gt.f32.partialorder %v2268_v58, 0.0 }
 0x7c3   : > { %2306 = vmax.xlane.f32.xlu0 %v2305_v4 }
 0x7c4   : > { %v2286_v45 = vsel %vm2274_vm12, %v2268_v58, %v2280_v2 }
 0x7c5   : > { %v2292_v49 = vsel %vm3907_vm4, %v2286_v45, -1e+09 }
 0x7c6   : > { %v2308_v60 = vsel %vm929_vm9, %v2292_v49, -inf }
 0x7c7   : > { %2309 = vmax.xlane.f32.xlu0 %v2308_v60 }
 0x847   : > { %v2295_v5 = vpop.xlane.xlu0 %2294 }
 0x848   : > { %v2311_v44 = vsub.f32 %v2287_v1, %v2295_v5 }
 0x84a   : > { %v2317_v6 = vmul.f32 1.442695, %v2311_v44 }
 0x84b   : > { %v2298_v43 = vpop.xlane.xlu1 %2297 }
 0x84c   : > { %3383 = vpow2.f32 %v2317_v6  ;;  %v2312_v25 = vsub.f32 %v2288_v21, %v2298_v43  ;;  %v2304_v39 = vpop.xlane.xlu0 %2303 }
 0x84d   : > { %v2314_v15 = vsub.f32 %v2290_v33, %v2304_v39 }
 0x84e   : > { %v2319_v8 = vmul.f32 1.442695, %v2312_v25 }
 0x84f   : > { %v2323_v3 = vmul.f32 1.442695, %v2314_v15  ;;  %v2301_v61 = vpop.xlane.xlu1 %2300 }
 0x850   : > { %3385 = vpow2.f32 %v2319_v8  ;;  %v2313_v24 = vsub.f32 %v2289_v55, %v2301_v61  ;;  %v2307_v57 = vpop.xlane.xlu0 %2306 }
 0x851   : > { %3387 = vpow2.f32 %v2323_v3  ;;  %v2315_v53 = vsub.f32 %v2291_v7, %v2307_v57 }
 0x852   : > { %v2321_v42 = vmul.f32 1.442695, %v2313_v24 }
 0x853   : > { %v2325_v48 = vmul.f32 1.442695, %v2315_v53 }
 0x854   : > { %3389 = vpow2.f32 %v2321_v42  ;;  %v2310_v59 = vpop.xlane.xlu0 %2309 }
 0x855   : > { %3391 = vpow2.f32 %v2325_v48  ;;  %v2316_v19 = vsub.f32 %v2292_v49, %v2310_v59 }
 0x856   : > { %v3384_v20 = vpop.eup %3383 }
 0x857   : > { %v2327_v27 = vmul.f32 1.442695, %v2316_v19  ;;  %v2329_v11 = vsel %vm929_vm9, %v3384_v20, 0.0 }
 0x858   : > { %2330 = vadd.xlane.f32.xlu1 %v2329_v11 }
 0x859   : > { %3393 = vpow2.f32 %v2327_v27 }
 0x85a   : > { %v3386_v46 = vpop.eup %3385 }
 0x85b   : > { %v3388_v40 = vpop.eup %3387  ;;  %v2332_v41 = vsel %vm929_vm9, %v3386_v46, 0.0 }
 0x85c   : > { %2333 = vadd.xlane.f32.xlu0 %v2332_v41  ;;  %v2338_v38 = vsel %vm929_vm9, %v3388_v40, 0.0 }
 0x85d   : > { %2339 = vadd.xlane.f32.xlu1 %v2338_v38 }
 0x85e   : > { %v3390_v22 = vpop.eup %3389 }
 0x85f   : > { %v3392_v56 = vpop.eup %3391  ;;  %v2335_v30 = vsel %vm929_vm9, %v3390_v22, 0.0 }
 0x860   : > { %v2341_v9 = vsel %vm929_vm9, %v3392_v56, 0.0 }
 0x861   : > { %2342 = vadd.xlane.f32.xlu0 %v2341_v9  ;;  %2336 = vadd.xlane.f32.xlu1 %v2335_v30 }
 0x863   : > { %v3394_v34 = vpop.eup %3393 }
 0x864   : > { %v2344_v62 = vsel %vm929_vm9, %v3394_v34, 0.0 }
 0x865   : > { %2345 = vadd.xlane.f32.xlu0 %v2344_v62 }
 0x8e5   : > { %v2331_v1 = vpop.xlane.xlu1 %2330 }
 0x8e6   : > { %3395 = vrcp.f32 %v2331_v1 }
 0x8e9   : > { %v2334_v16 = vpop.xlane.xlu0 %2333 }
 0x8ea   : > { %3397 = vrcp.f32 %v2334_v16  ;;  %v2340_v54 = vpop.xlane.xlu1 %2339 }
 0x8eb   : > { %3399 = vrcp.f32 %v2340_v54 }
 0x8ee   : > { %v2343_v13 = vpop.xlane.xlu0 %2342  ;;  %v2337_v52 = vpop.xlane.xlu1 %2336 }
 0x8ef   : > { %3401 = vrcp.f32 %v2343_v13 }
 0x8f0   : > { %3403 = vrcp.f32 %v2337_v52  ;;  %v3396_v10 = vpop.eup %3395 }
 0x8f1   : > { %v2353_v32 = vmul.f32 %v3396_v10, %v3384_v20 }
 0x8f2   : > { %v2346_v50 = vpop.xlane.xlu0 %2345 }
 0x8f3   : > { %3405 = vrcp.f32 %v2346_v50 }
 0x8f4   : > { %v3398_v14 = vpop.eup %3397 }
 0x8f5   : > { %v2354_v35 = vmul.f32 %v3398_v14, %v3386_v46  ;;  %v3400_v51 = vpop.eup %3399 }
 0x8f6   : > { %v2356_v28 = vmul.f32 %v3400_v51, %v3388_v40 }
 0x8f7   : > { %v2371_v23 = vpack.c.bf16 %v2354_v35, %v2353_v32 }
 0x8f9   : > { %v3402_v12 = vpop.eup %3401  ;;  %3130 = vmatprep.mubr.msk.bf16.mxu0 %vm929_vm9, %v2371_v23 }
 0x8fa   : > { %v3404_v21 = vpop.eup %3403  ;;  %v2357_v31 = vmul.f32 %v3402_v12, %v3392_v56 }
 0x8fb   : > { %v2355_v63 = vmul.f32 %v3404_v21, %v3390_v22 }
 0x8fc   : > { %v2373_v33 = vpack.c.bf16 %v2357_v31, %v2356_v28 }
 0x8fd   : > { %v3406_v0 = vpop.eup %3405  ;;  %v2372_v26 = vpack.c.bf16 %v2355_v63, %v2355_v63 }
 0x8fe   : > { %v2358_v29 = vmul.f32 %v3406_v0, %v3394_v34  ;;  %3138 = vmatprep.mubr.msk.bf16.mxu1 %vm929_vm9, %v2373_v33 }
 0x8ff   : > { %3131 = vmatmul.mubr.msk.bf16.vlgmr.msra.gmra.mrb[24].mxu0 %vm929_vm9, %v2372_v26 }
 0x900   : > { %v2374_v36 = vpack.c.bf16 %v2358_v29, %v2358_v29 }
 0x902   : > { %3139 = vmatmul.mubr.msk.bf16.vlgmr.msra.gmra.mrb[24].mxu1 %vm929_vm9, %v2374_v36 }
 0x9d2   : > { %v3132_v47 = vpop.f32.mrb[24].mxu0 }
 0x9d3   : > { %2515 = vst [vmem:[%s348_s29 + $0x10] sm:$0xff] %v3132_v47  ;;  %v2427_v58 = vpop.f32.mrb[25].mxu0 }
 0x9d4   : > { %2513 = vst [vmem:[%s348_s29] sm:$0xff] %v2427_v58  ;;  %v3133_v55 = vpop.f32.mrb[26].mxu0 }
 0x9d5   : > { %v2430_v17 = vpop.f32.mrb[27].mxu0  ;;  %v3140_v18 = vpop.f32.mrb[24].mxu1 }
 0x9d6   : > { %2514 = vst [vmem:[%s348_s29 + $0x8] sm:$0xff] %v2430_v17  ;;  %2518 = vst [vmem:[%s348_s29 + $0x28] sm:$0xff] %v3140_v18  ;;  %v2493_v37 = vpop.f32.mrb[25].mxu1 }
 0x9d7   : > { %2516 = vst [vmem:[%s348_s29 + $0x18] sm:$0xff] %v2493_v37  ;;  %v3141_v7 = vpop.f32.mrb[26].mxu1 }
 0x9d8   : > { %v2496_v2 = vpop.f32.mrb[27].mxu1 }
 0x9d9   : > { %2517 = vst [vmem:[%s348_s29 + $0x20] sm:$0xff] %v2496_v2 }
 0x9da PF: > { %s15_s20 = sadd.s32 1, %s3429_s20   ;;  %s4227_s18 = smov %s3425_s19 }
 0x9db   : > { %p12_p5 = scmp.ge.s32.totalorder %s15_s20, 4   ;;  %s4228_s19 = smov %s4230_s21 }
 0x9dd   :  { %14 = sbr.rel (!%p12_p5) target bundleno = 2 (0x2), region = 82 }

// kernel: forward.11
= control target key start
LH: loop header
LB: loop body
LE: loop exit
PB: predicated region body
PF: predicated region fallthrough
CT: control target
= control target key end

     0   :  { %s722_s15 = smov 0   ;;  %s849_s0 = inlined_call_operand.vmem [shape: f32[3,8,8,128], index: 0, kind: input, shape index: {}]   ;;  %s850_s1 = inlined_call_operand.vmem [shape: f32[2,8,1], index: 1, kind: input, shape index: {}]   ;;  %s851_s2 = inlined_call_operand.vmem [shape: f32[3,1,128], index: 2, kind: input, shape index: {}]   ;;  %s852_s3 = inlined_call_operand.vmem [shape: f32[3,1,1], index: 3, kind: input, shape index: {}]   ;;  %s853_s4 = inlined_call_operand.vmem [shape: f32[3,8,128], index: 4, kind: output, shape index: {}]  }
   0x1 LB: > { %s632_s16 = sadd.s32 4294967295, %s694_s15   ;;  %p636_p0 = scmp.ge.s32.totalorder %s694_s15, 1  ;;  %s694_s15 = sphi %s722_s15, %s14_s15  }
   0x2   : > { %p178_p1 = scmp.lt.s32.totalorder %s694_s15, 4 }
   0x4   : > { %p179_p2 = pnand %p636_p0, %p178_p1 }
   0x5   : > { %p209_p3 = scmp.lt.s32.totalorder (!%p179_p2), %s632_s16, 2  ;;  %v696_v17 = vmov (!%p179_p2), 0   ;;  %v278_v19 = vld [vmem:[%s850_s1] sm:$0xff] (!%p179_p2)  ;;  %vm288_vm0 = vcmask (!%p179_p2), 7168   ;;  %v279_v26 = vld [vmem:[%s850_s1 + $0x8] sm:$0xff] (!%p179_p2)  ;;  %vm545_vm1 = vcmask (!%p179_p2), 1041409  }
   0x6   : > { %182 = sbr.rel (%p179_p2) target bundleno = 392 (0x188), region = 36  ;;  %654 = vset.pattern.permute.xlu0 (!%p179_p2), %v696_v17  ;;  %655 = vset.pattern.permute.xlu1 (!%p179_p2), %v696_v17  ;;  %vm547_vm2 = vcmask (!%p179_p2), 1042434   ;;  %vm549_vm3 = vcmask (!%p179_p2), 1043459   ;;  %vm551_vm4 = vcmask (!%p179_p2), 1044484   ;;  %vm553_vm5 = vcmask (!%p179_p2), 1045509  }
   0x7   : > { %vm555_vm6 = vcmask (!%p179_p2), 1046534   ;;  %vm557_vm7 = vcmask (!%p179_p2), 1047559  }
   0xd   : > { %s855_s16 = smov (!%p209_p3, %s632_s16), 2 }
   0xe   : > { %s644_s17 = sshll.u32 %s855_s16, 6  ;;  %s216_s20 = scalar_lea.vmem %s851_s2, %s855_s16 }
   0xf   : > { %s213_s23 = scalar_lea.vmem %s849_s0, %s644_s17  ;;  %v640_v0 = vld [vmem:[%s216_s20] ss:$0 sm:$0xff]  ;;  %s219_s26 = scalar_lea.vmem %s852_s3, %s855_s16 }
  0x10   : > { %v740_v1 = vld [vmem:[%s213_s23 + $0x10] sm:$0xff]  ;;  %v742_v2 = vld [vmem:[%s213_s23] sm:$0xff]  ;;  %v744_v3 = vld [vmem:[%s213_s23 + $0x18] sm:$0xff]  ;;  %s639_s5 = sshll.u32 %s855_s16, 3 }
  0x11   : > { %v241_v4 = vmul.f32 %v640_v0, %v740_v1  ;;  %v239_v5 = vmul.f32 %v640_v0, %v742_v2  ;;  %v748_v6 = vld [vmem:[%s213_s23 + $0x8] sm:$0xff]  ;;  %v242_v7 = vmul.f32 %v640_v0, %v744_v3  ;;  %v754_v10 = vld [vmem:[%s213_s23 + $0x20] sm:$0xff]  ;;  %v758_v13 = vld [vmem:[%s213_s23 + $0x38] sm:$0xff]  ;;  %s223_s8 = scalar_lea.vmem %s853_s4, %s639_s5 }
  0x12   : > { %v240_v8 = vmul.f32 %v640_v0, %v748_v6  ;;  %v752_v9 = vld [vmem:[%s213_s23 + $0x28] sm:$0xff]  ;;  %v243_v12 = vmul.f32 %v640_v0, %v754_v10  ;;  %v760_v14 = vld [vmem:[%s213_s23 + $0x30] sm:$0xff]  ;;  %v246_v15 = vmul.f32 %v640_v0, %v758_v13  ;;  %v641_v18 = vld [vmem:[%s219_s26] ss:$0 sm:$0xff] }
  0x13   : > { %251 = vadd.xlane.f32.xlu1 %v241_v4  ;;  %247 = vadd.xlane.f32.xlu0 %v239_v5  ;;  %v244_v11 = vmul.f32 %v640_v0, %v752_v9  ;;  %v245_v16 = vmul.f32 %v640_v0, %v760_v14 }
  0x17   : > { %253 = vadd.xlane.f32.xlu1 %v242_v7  ;;  %249 = vadd.xlane.f32.xlu0 %v240_v8 }
  0x1b   : > { %257 = vadd.xlane.f32.xlu1 %v244_v11  ;;  %255 = vadd.xlane.f32.xlu0 %v243_v12 }
  0x1f   : > { %261 = vadd.xlane.f32.xlu1 %v246_v15  ;;  %259 = vadd.xlane.f32.xlu0 %v245_v16 }
  0xa0   : > { %v252_v20 = vpop.xlane.xlu1 %251  ;;  %v248_v21 = vpop.xlane.xlu0 %247 }
  0xa1   : > { %v272_v22 = vadd.f32 %v641_v18, %v252_v20  ;;  %v270_v23 = vadd.f32 %v641_v18, %v248_v21 }
  0xa3   : > { %v282_v24 = vadd.f32 %v278_v19, %v272_v22  ;;  %v280_v25 = vadd.f32 %v278_v19, %v270_v23 }
  0xa4   : > { %v254_v27 = vpop.xlane.xlu1 %253  ;;  %v250_v28 = vpop.xlane.xlu0 %249 }
  0xa5   : > { %v303_v29 = vsel %vm288_vm0, %v282_v24, -inf  ;;  %v289_v30 = vsel %vm288_vm0, %v280_v25, -inf  ;;  %v273_v31 = vadd.f32 %v641_v18, %v254_v27  ;;  %v271_v32 = vadd.f32 %v641_v18, %v250_v28 }
  0xa6   : > { %v304_v33 = vrot.slane %v303_v29, 4  ;;  %v290_v34 = vrot.slane %v289_v30, 4 }
  0xa7   : > { %v776_v35 = vadd.f32 %v279_v26, %v273_v31  ;;  %v778_v36 = vadd.f32 %v279_v26, %v271_v32 }
  0xa8   : > { %v305_v37 = vmax.f32 %v303_v29, %v304_v33  ;;  %v291_v38 = vmax.f32 %v289_v30, %v290_v34  ;;  %v258_v39 = vpop.xlane.xlu1 %257  ;;  %v256_v40 = vpop.xlane.xlu0 %255 }
  0xa9   : > { %v310_v41 = vsel %vm288_vm0, %v776_v35, -inf  ;;  %v296_v42 = vsel %vm288_vm0, %v778_v36, -inf  ;;  %v275_v43 = vadd.f32 %v641_v18, %v258_v39  ;;  %v274_v44 = vadd.f32 %v641_v18, %v256_v40 }
  0xaa   : > { %v306_v45 = vrot.slane %v305_v37, 2  ;;  %v292_v46 = vrot.slane %v291_v38, 2  ;;  %v311_v47 = vrot.slane %v310_v41, 4  ;;  %v297_v48 = vrot.slane %v296_v42, 4 }
  0xab   : > { %v784_v49 = vadd.f32 %v279_v26, %v275_v43  ;;  %v786_v50 = vadd.f32 %v278_v19, %v274_v44 }
  0xac   : > { %v307_v51 = vmax.f32 %v305_v37, %v306_v45  ;;  %v293_v52 = vmax.f32 %v291_v38, %v292_v46  ;;  %v312_v53 = vmax.f32 %v310_v41, %v311_v47  ;;  %v298_v54 = vmax.f32 %v296_v42, %v297_v48  ;;  %v262_v55 = vpop.xlane.xlu1 %261  ;;  %v260_v56 = vpop.xlane.xlu0 %259 }
  0xad   : > { %v324_v57 = vsel %vm288_vm0, %v784_v49, -inf  ;;  %v317_v58 = vsel %vm288_vm0, %v786_v50, -inf  ;;  %v277_v59 = vadd.f32 %v641_v18, %v262_v55  ;;  %v276_v60 = vadd.f32 %v641_v18, %v260_v56 }
  0xae   : > { %v308_v61 = vrot.slane %v307_v51, 1  ;;  %v294_v62 = vrot.slane %v293_v52, 1  ;;  %v313_v63 = vrot.slane %v312_v53, 2  ;;  %v299_v0 = vrot.slane %v298_v54, 2 }
  0xaf   : > { %v325_v4 = vrot.slane %v324_v57, 4  ;;  %v318_v5 = vrot.slane %v317_v58, 4  ;;  %v287_v7 = vadd.f32 %v279_v26, %v277_v59  ;;  %v286_v8 = vadd.f32 %v278_v19, %v276_v60 }
  0xb0   : > { %v309_v11 = vmax.f32 %v307_v51, %v308_v61  ;;  %v295_v12 = vmax.f32 %v293_v52, %v294_v62  ;;  %v314_v15 = vmax.f32 %v312_v53, %v313_v63  ;;  %v300_v16 = vmax.f32 %v298_v54, %v299_v0 }
  0xb1   : > { %v326_v17 = vmax.f32 %v324_v57, %v325_v4  ;;  %v319_v20 = vmax.f32 %v317_v58, %v318_v5  ;;  %v338_v21 = vsel %vm288_vm0, %v287_v7, -inf  ;;  %v331_v22 = vsel %vm288_vm0, %v286_v8, -inf }
  0xb2   : > { %v347_v23 = vsub.f32 %v282_v24, %v309_v11  ;;  %v345_v18 = vsub.f32 %v280_v25, %v295_v12  ;;  %v315_v27 = vrot.slane %v314_v15, 1  ;;  %v301_v28 = vrot.slane %v300_v16, 1 }
  0xb3   : > { %v327_v29 = vrot.slane %v326_v17, 2  ;;  %v320_v30 = vrot.slane %v319_v20, 2  ;;  %v339_v31 = vrot.slane %v338_v21, 4  ;;  %v332_v32 = vrot.slane %v331_v22, 4 }
  0xb4   : > { %v357_v26 = vmul.f32 1.442695, %v347_v23  ;;  %v353_v19 = vmul.f32 1.442695, %v345_v18  ;;  %v316_v33 = vmax.f32 %v314_v15, %v315_v27  ;;  %v302_v34 = vmax.f32 %v300_v16, %v301_v28 }
  0xb5   : > { %v328_v37 = vmax.f32 %v326_v17, %v327_v29  ;;  %v321_v38 = vmax.f32 %v319_v20, %v320_v30  ;;  %v340_v39 = vmax.f32 %v338_v21, %v339_v31  ;;  %v333_v40 = vmax.f32 %v331_v22, %v332_v32 }
  0xb6   : > { %656 = vpow2.f32 %v357_v26  ;;  %v348_v41 = vsub.f32 %v776_v35, %v316_v33  ;;  %v346_v24 = vsub.f32 %v778_v36, %v302_v34 }
  0xb7   : > { %658 = vpow2.f32 %v353_v19  ;;  %v329_v25 = vrot.slane %v328_v37, 1  ;;  %v322_v42 = vrot.slane %v321_v38, 1  ;;  %v341_v43 = vrot.slane %v340_v39, 2 }
  0xb8   : > { %v359_v44 = vmul.f32 1.442695, %v348_v41  ;;  %v355_v45 = vmul.f32 1.442695, %v346_v24  ;;  %v334_v46 = vrot.slane %v333_v40, 2 }
  0xb9   : > { %v330_v47 = vmax.f32 %v328_v37, %v329_v25  ;;  %v323_v48 = vmax.f32 %v321_v38, %v322_v42  ;;  %v342_v51 = vmax.f32 %v340_v39, %v341_v43 }
  0xba   : > { %660 = vpow2.f32 %v359_v44  ;;  %v335_v52 = vmax.f32 %v333_v40, %v334_v46 }
  0xbb   : > { %662 = vpow2.f32 %v355_v45  ;;  %v350_v53 = vsub.f32 %v784_v49, %v330_v47  ;;  %v349_v54 = vsub.f32 %v786_v50, %v323_v48  ;;  %v343_v35 = vrot.slane %v342_v51, 1 }
  0xbc   : > { %v336_v55 = vrot.slane %v335_v52, 1 }
  0xbd   : > { %v363_v36 = vmul.f32 1.442695, %v350_v53  ;;  %v361_v56 = vmul.f32 1.442695, %v349_v54  ;;  %v344_v57 = vmax.f32 %v342_v51, %v343_v35 }
  0xbe   : > { %v337_v58 = vmax.f32 %v335_v52, %v336_v55 }
  0xbf   : > { %664 = vpow2.f32 %v363_v36  ;;  %v352_v59 = vsub.f32 %v287_v7, %v344_v57 }
  0xc0   : > { %v798_v60 = vpop.eup %656  ;;  %666 = vpow2.f32 %v361_v56  ;;  %v351_v61 = vsub.f32 %v286_v8, %v337_v58 }
  0xc1   : > { %v800_v62 = vpop.eup %658  ;;  %v383_v63 = vsel %vm288_vm0, %v798_v60, 0.0  ;;  %v367_v49 = vmul.f32 1.442695, %v352_v59 }
  0xc2   : > { %v384_v0 = vrot.slane %v383_v63, 4  ;;  %v369_v50 = vsel %vm288_vm0, %v800_v62, 0.0  ;;  %v365_v4 = vmul.f32 1.442695, %v351_v61 }
  0xc3   : > { %v370_v5 = vrot.slane %v369_v50, 4  ;;  %668 = vpow2.f32 %v367_v49 }
  0xc4   : > { %v806_v11 = vpop.eup %660  ;;  %v385_v7 = vadd.f32 %v384_v0, %v383_v63  ;;  %670 = vpow2.f32 %v365_v4 }
  0xc5   : > { %v808_v12 = vpop.eup %662  ;;  %v371_v8 = vadd.f32 %v370_v5, %v369_v50  ;;  %v390_v15 = vsel %vm288_vm0, %v806_v11, 0.0 }
  0xc6   : > { %v391_v16 = vrot.slane %v390_v15, 4  ;;  %v376_v17 = vsel %vm288_vm0, %v808_v12, 0.0  ;;  %v386_v20 = vrot.slane %v385_v7, 2 }
  0xc7   : > { %v377_v21 = vrot.slane %v376_v17, 4  ;;  %v372_v22 = vrot.slane %v371_v8, 2 }
  0xc8   : > { %v392_v23 = vadd.f32 %v391_v16, %v390_v15  ;;  %v387_v18 = vadd.f32 %v386_v20, %v385_v7 }
  0xc9   : > { %v814_v27 = vpop.eup %664  ;;  %v378_v28 = vadd.f32 %v377_v21, %v376_v17  ;;  %v373_v29 = vadd.f32 %v372_v22, %v371_v8 }
  0xca   : > { %v816_v30 = vpop.eup %666  ;;  %v404_v31 = vsel %vm288_vm0, %v814_v27, 0.0  ;;  %v393_v32 = vrot.slane %v392_v23, 2  ;;  %v388_v38 = vrot.slane %v387_v18, 1 }
  0xcb   : > { %v405_v26 = vrot.slane %v404_v31, 4  ;;  %v397_v19 = vsel %vm288_vm0, %v816_v30, 0.0  ;;  %v374_v33 = vrot.slane %v373_v29, 1  ;;  %v379_v34 = vrot.slane %v378_v28, 2 }
  0xcc   : > { %v398_v37 = vrot.slane %v397_v19, 4  ;;  %v394_v39 = vadd.f32 %v393_v32, %v392_v23  ;;  %v389_v48 = vadd.f32 %v388_v38, %v387_v18 }
  0xcd   : > { %v822_v40 = vpop.eup %668  ;;  %v406_v41 = vadd.f32 %v405_v26, %v404_v31  ;;  %v375_v24 = vadd.f32 %v374_v33, %v373_v29  ;;  %v380_v25 = vadd.f32 %v379_v34, %v378_v28 }
  0xce   : > { %v671_v42 = vpop.eup %670  ;;  %v399_v43 = vadd.f32 %v398_v37, %v397_v19  ;;  %v418_v44 = vsel %vm288_vm0, %v822_v40, 0.0  ;;  %v395_v51 = vrot.slane %v394_v39, 1 }
  0xcf   : > { %v411_v45 = vsel %vm288_vm0, %v671_v42, 0.0  ;;  %672 = vrcp.f32 %v375_v24  ;;  %v381_v46 = vrot.slane %v380_v25, 1  ;;  %v419_v53 = vrot.slane %v418_v44, 4 }
  0xd0   : > { %v412_v47 = vrot.slane %v411_v45, 4  ;;  %v400_v52 = vrot.slane %v399_v43, 2  ;;  %v407_v35 = vrot.slane %v406_v41, 2  ;;  %v396_v56 = vadd.f32 %v395_v51, %v394_v39 }
  0xd1   : > { %v382_v54 = vadd.f32 %v381_v46, %v380_v25  ;;  %v420_v57 = vadd.f32 %v419_v53, %v418_v44 }
  0xd2   : > { %v413_v55 = vadd.f32 %v412_v47, %v411_v45  ;;  %v401_v36 = vadd.f32 %v400_v52, %v399_v43  ;;  %v408_v59 = vadd.f32 %v407_v35, %v406_v41 }
  0xd3   : > { %674 = vrcp.f32 %v382_v54  ;;  %v421_v4 = vrot.slane %v420_v57, 2 }
  0xd4   : > { %676 = vrcp.f32 %v389_v48  ;;  %v402_v58 = vrot.slane %v401_v36, 1  ;;  %v414_v61 = vrot.slane %v413_v55, 2  ;;  %v409_v0 = vrot.slane %v408_v59, 1 }
  0xd5   : > { %678 = vrcp.f32 %v396_v56  ;;  %v422_v16 = vadd.f32 %v421_v4, %v420_v57 }
  0xd6   : > { %v403_v49 = vadd.f32 %v402_v58, %v401_v36  ;;  %v415_v50 = vadd.f32 %v414_v61, %v413_v55  ;;  %v410_v8 = vadd.f32 %v409_v0, %v408_v59 }
  0xd7   : > { %v423_v22 = vrot.slane %v422_v16, 1 }
  0xd8   : > { %680 = vrcp.f32 %v403_v49  ;;  %v416_v15 = vrot.slane %v415_v50, 1 }
  0xd9   : > { %v673_v63 = vpop.eup %672  ;;  %682 = vrcp.f32 %v410_v8  ;;  %v424_v28 = vadd.f32 %v423_v22, %v422_v16 }
  0xda   : > { %v433_v5 = vmul.f32 %v673_v63, %v800_v62  ;;  %v417_v21 = vadd.f32 %v416_v15, %v415_v50 }
  0xdc   : > { %443 = vperm.xlu0 %654, %v433_v5   ;;  %684 = vrcp.f32 %v417_v21 }
  0xdd   : > { %v675_v7 = vpop.eup %674  ;;  %686 = vrcp.f32 %v424_v28 }
  0xde   : > { %v677_v17 = vpop.eup %676  ;;  %v434_v20 = vmul.f32 %v675_v7, %v808_v12 }
  0xdf   : > { %v679_v23 = vpop.eup %678  ;;  %v435_v18 = vmul.f32 %v677_v17, %v798_v60 }
  0xe0   : > { %448 = vperm.xlu1 %655, %v434_v20   ;;  %v436_v62 = vmul.f32 %v679_v23, %v806_v11 }
  0xe2   : > { %v681_v29 = vpop.eup %680 }
  0xe3   : > { %v437_v31 = vmul.f32 %v681_v29, %v816_v30  ;;  %v683_v32 = vpop.eup %682 }
  0xe4   : > { %453 = vperm.xlu1 %655, %v435_v18   ;;  %v438_v12 = vmul.f32 %v683_v32, %v814_v27 }
  0xe6   : > { %v685_v26 = vpop.eup %684 }
  0xe7   : > { %v439_v19 = vmul.f32 %v685_v26, %v671_v42  ;;  %v687_v33 = vpop.eup %686 }
  0xe8   : > { %458 = vperm.xlu1 %655, %v436_v62   ;;  %v440_v60 = vmul.f32 %v687_v33, %v822_v40 }
  0xec   : > { %463 = vperm.xlu1 %655, %v437_v31  }
  0xf0   : > { %468 = vperm.xlu1 %655, %v438_v12  }
  0xf4   : > { %473 = vperm.xlu1 %655, %v439_v19  }
  0xf8   : > { %478 = vperm.xlu1 %655, %v440_v60  }
 0x15b   : > { %v444_v37 = vpop.permute.xlu0 %443 }
 0x15c   : > { %v481_v30 = vmul.f32 %v444_v37, %v742_v2 }
 0x15e   : > { %v489_v42 = vrot.slane %v481_v30, 4 }
 0x15f   : > { %v449_v34 = vpop.permute.xlu1 %448 }
 0x160   : > { %v482_v38 = vmul.f32 %v449_v34, %v748_v6  ;;  %v490_v47 = vadd.f32 %v489_v42, %v481_v30 }
 0x162   : > { %v495_v24 = vrot.slane %v482_v38, 4  ;;  %v491_v54 = vrot.slane %v490_v47, 2 }
 0x163   : > { %v454_v11 = vpop.permute.xlu1 %453 }
 0x164   : > { %v483_v39 = vmul.f32 %v454_v11, %v740_v1  ;;  %v496_v45 = vadd.f32 %v495_v24, %v482_v38  ;;  %v492_v59 = vadd.f32 %v491_v54, %v490_v47 }
 0x166   : > { %v501_v25 = vrot.slane %v483_v39, 4  ;;  %v497_v52 = vrot.slane %v496_v45, 2  ;;  %v493_v15 = vrot.slane %v492_v59, 1 }
 0x167   : > { %v459_v41 = vpop.permute.xlu1 %458 }
 0x168   : > { %v484_v27 = vmul.f32 %v459_v41, %v744_v3  ;;  %v502_v46 = vadd.f32 %v501_v25, %v483_v39  ;;  %v498_v56 = vadd.f32 %v497_v52, %v496_v45  ;;  %v494_v62 = vadd.f32 %v493_v15, %v492_v59 }
 0x16a   : > { %v507_v43 = vrot.slane %v484_v27, 4  ;;  %v503_v53 = vrot.slane %v502_v46, 2  ;;  %v499_v4 = vrot.slane %v498_v56, 1 }
 0x16b   : > { %v464_v44 = vpop.permute.xlu1 %463 }
 0x16c   : > { %v485_v40 = vmul.f32 %v464_v44, %v754_v10  ;;  %v508_v48 = vadd.f32 %v507_v43, %v484_v27  ;;  %v504_v10 = vadd.f32 %v503_v53, %v502_v46  ;;  %v500_v22 = vadd.f32 %v499_v4, %v498_v56 }
 0x16e   : > { %v513_v51 = vrot.slane %v485_v40, 4  ;;  %v509_v35 = vrot.slane %v508_v48, 2  ;;  %v505_v8 = vrot.slane %v504_v10, 1  ;;  %v546_v12 = vsel %vm545_vm1, %v500_v22, %v494_v62 }
 0x16f   : > { %v469_v6 = vpop.permute.xlu1 %468 }
 0x170   : > { %v514_v1 = vadd.f32 %v513_v51, %v485_v40  ;;  %v486_v2 = vmul.f32 %v469_v6, %v752_v9  ;;  %v510_v61 = vadd.f32 %v509_v35, %v508_v48  ;;  %v506_v28 = vadd.f32 %v505_v8, %v504_v10 }
 0x172   : > { %v519_v3 = vrot.slane %v486_v2, 4  ;;  %v515_v55 = vrot.slane %v514_v1, 2  ;;  %v511_v16 = vrot.slane %v510_v61, 1  ;;  %v548_v33 = vsel %vm547_vm2, %v506_v28, %v546_v12 }
 0x173   : > { %v474_v36 = vpop.permute.xlu1 %473 }
 0x174   : > { %v520_v57 = vadd.f32 %v519_v3, %v486_v2  ;;  %v487_v58 = vmul.f32 %v474_v36, %v760_v14  ;;  %v516_v0 = vadd.f32 %v515_v55, %v514_v1  ;;  %v512_v29 = vadd.f32 %v511_v16, %v510_v61 }
 0x176   : > { %v521_v63 = vrot.slane %v520_v57, 2  ;;  %v525_v49 = vrot.slane %v487_v58, 4  ;;  %v517_v21 = vrot.slane %v516_v0, 1  ;;  %v550_v34 = vsel %vm549_vm3, %v512_v29, %v548_v33 }
 0x177   : > { %v479_v50 = vpop.permute.xlu1 %478 }
 0x178   : > { %v522_v5 = vadd.f32 %v521_v63, %v520_v57  ;;  %v526_v9 = vadd.f32 %v525_v49, %v487_v58  ;;  %v488_v7 = vmul.f32 %v479_v50, %v758_v13  ;;  %v518_v13 = vadd.f32 %v517_v21, %v516_v0 }
 0x17a   : > { %v527_v17 = vrot.slane %v526_v9, 2  ;;  %v531_v20 = vrot.slane %v488_v7, 4  ;;  %v523_v14 = vrot.slane %v522_v5, 1  ;;  %v552_v11 = vsel %vm551_vm4, %v518_v13, %v550_v34 }
 0x17c   : > { %v528_v23 = vadd.f32 %v527_v17, %v526_v9  ;;  %v532_v18 = vadd.f32 %v531_v20, %v488_v7  ;;  %v524_v26 = vadd.f32 %v523_v14, %v522_v5 }
 0x17e   : > { %v529_v31 = vrot.slane %v528_v23, 1  ;;  %v533_v32 = vrot.slane %v532_v18, 2  ;;  %v554_v38 = vsel %vm553_vm5, %v524_v26, %v552_v11 }
 0x180   : > { %v534_v19 = vadd.f32 %v533_v32, %v532_v18  ;;  %v530_v60 = vadd.f32 %v529_v31, %v528_v23 }
 0x182   : > { %v535_v37 = vrot.slane %v534_v19, 1  ;;  %v556_v30 = vsel %vm555_vm6, %v530_v60, %v554_v38 }
 0x184   : > { %v536_v39 = vadd.f32 %v535_v37, %v534_v19 }
 0x186   : > { %v558_v41 = vsel %vm557_vm7, %v536_v39, %v556_v30 }
 0x187   : > { %560 = vst [vmem:[%s223_s8] sm:$0xff] %v558_v41 }
 0x188 PF: > { %s14_s15 = sadd.s32 1, %s694_s15  }
 0x189   : > { %p11_p4 = scmp.ge.s32.totalorder %s14_s15, 5  }
 0x18b   :  { %13 = sbr.rel (!%p11_p4) target bundleno = 1 (0x1), region = 72 }

</bundles_post_ra>
